<compile_context>
chip_gen: v7x
topology: tpu7x:2x2x1
jax: 0.10.0
libtpu: 0.0.40
codegen_flags: <defaults>
</compile_context>

<pallas_src>
import math
import functools

import jax
import jax.numpy as jnp
from jax import random
from jax.experimental import pallas as pl
from jax.experimental.pallas import tpu as pltpu

_SQRT1_2 = 0.7071067811865476


# ---------------------------------------------------------------------------
# Elementwise helpers usable inside Pallas kernels (and in the pure-JAX ref).
# ---------------------------------------------------------------------------
def _erf(x):
    # Abramowitz & Stegun 7.1.26 rational approximation (|err| < 1.5e-7).
    a1, a2, a3, a4, a5 = (0.254829592, -0.284496736, 1.421413741,
                          -1.453152027, 1.061405429)
    p = 0.3275911
    ax = jnp.abs(x)
    t = 1.0 / (1.0 + p * ax)
    poly = ((((a5 * t + a4) * t + a3) * t + a2) * t + a1) * t
    y = 1.0 - poly * jnp.exp(-ax * ax)
    return jnp.where(x >= 0, y, -y)


def _gelu(x):  # exact (erf-based) GELU, matching torch.nn.GELU()
    return 0.5 * x * (1.0 + _erf(x * _SQRT1_2))


def _layer_norm(x, g, b, eps=1e-5):
    mu = jnp.mean(x, axis=-1, keepdims=True)
    xc = x - mu
    var = jnp.mean(xc * xc, axis=-1, keepdims=True)
    return xc * jax.lax.rsqrt(var + eps) * g + b


# ---------------------------------------------------------------------------
# Fused CrossAttention kernel: one grid step == one batch element.
# ---------------------------------------------------------------------------
def _cross_attention_kernel(num_heads, head_dim,
                            x_ref, ctx_ref,
                            ng_ref, nb_ref, cg_ref, cb_ref,
                            wp_ref, bp_ref,
                            wq_ref, bq_ref, wkv_ref, bkv_ref,
                            wo_ref, bo_ref,
                            g2_ref, b2_ref,
                            w1_ref, b1_ref, w2_ref, bf2_ref,
                            o_ref):
    E = num_heads * head_dim
    scale = 1.0 / math.sqrt(head_dim)

    x = x_ref[0]                        # (L, E)   queries (spatial positions)
    ctx = ctx_ref[0]                    # (S, Dc)  context tokens

    # LayerNorms fused with the matmuls that consume them.
    xn = _layer_norm(x, ng_ref[...], nb_ref[...])                       # (L, E)
    cn = _layer_norm(ctx, cg_ref[...], cb_ref[...])                     # (S, Dc)
    ctxp = jnp.dot(cn, wp_ref[...],
                   preferred_element_type=jnp.float32) + bp_ref[...]    # (S, E)

    # Q projection; K and V projections packed into one lane-dense matmul.
    q = jnp.dot(xn, wq_ref[...],
                preferred_element_type=jnp.float32) + bq_ref[...]       # (L, E)
    kv = jnp.dot(ctxp, wkv_ref[...],
                 preferred_element_type=jnp.float32) + bkv_ref[...]     # (S, 2E)

    # Multi-head attention: all heads handled inside this single kernel
    # invocation (static unroll over num_heads).  The output projection is
    # folded per-head (Wo split along its input rows) so the concatenation of
    # heads is replaced by an accumulation of small matmuls.
    y = None
    for h in range(num_heads):
        lo = h * head_dim
        hi = lo + head_dim
        qh = q[:, lo:hi] * scale                                        # (L, Dh)
        kh = kv[:, lo:hi]                                               # (S, Dh)
        vh = kv[:, E + lo:E + hi]                                       # (S, Dh)
        s = jax.lax.dot_general(qh, kh, (((1,), (1,)), ((), ())),
                                preferred_element_type=jnp.float32)     # (L, S)
        m = jnp.max(s, axis=-1, keepdims=True)
        e = jnp.exp(s - m)
        p = e / jnp.sum(e, axis=-1, keepdims=True)
        oh = jnp.dot(p, vh, preferred_element_type=jnp.float32)         # (L, Dh)
        contrib = jnp.dot(oh, wo_ref[lo:hi, :],
                          preferred_element_type=jnp.float32)           # (L, E)
        y = contrib if y is None else y + contrib
    y = y + bo_ref[...]

    # Residual + fused LN -> Linear -> GELU -> Linear -> residual.
    x2 = xn + y
    s2 = _layer_norm(x2, g2_ref[...], b2_ref[...])
    h1 = _gelu(jnp.dot(s2, w1_ref[...],
                       preferred_element_type=jnp.float32) + b1_ref[...])
    h2 = jnp.dot(h1, w2_ref[...],
                 preferred_element_type=jnp.float32) + bf2_ref[...]
    o_ref[0] = x2 + h2


# ---------------------------------------------------------------------------
# Python wrapper: layout plumbing + pallas_call.
# ---------------------------------------------------------------------------
def cross_attention_forward(params, x, context, num_heads=4):
    B, C, H, W = x.shape
    L = H * W
    E = C
    Dh = E // num_heads
    Bc, S, Dc = context.shape

    # (B, C, H, W) -> (B, L, E): per-batch (L, E) matches torch's (HW, B, C)
    # sequence-first layout sliced at batch b.
    x_seq = x.reshape(B, C, L).transpose(0, 2, 1)

    mha = params["mha"]
    wq = mha["wq"].T                                             # (E, E)
    bq = mha["bq"].reshape(1, E)
    wkv = jnp.concatenate([mha["wk"].T, mha["wv"].T], axis=1)    # (E, 2E)
    bkv = jnp.concatenate([mha["bk"], mha["bv"]]).reshape(1, 2 * E)
    wo = mha["wo"].T                                             # (E, E)
    bo = mha["bo"].reshape(1, E)

    wp = params["proj"]["w"].T                                   # (Dc, E)
    bp = params["proj"]["b"].reshape(1, E)
    w1 = params["fc1"]["w"].T
    b1 = params["fc1"]["b"].reshape(1, E)
    w2 = params["fc2"]["w"].T
    b2f = params["fc2"]["b"].reshape(1, E)

    ng = params["norm"]["g"].reshape(1, E)
    nb = params["norm"]["b"].reshape(1, E)
    cg = params["cnorm"]["g"].reshape(1, Dc)
    cb = params["cnorm"]["b"].reshape(1, Dc)
    g2 = params["ln2"]["g"].reshape(1, E)
    b2 = params["ln2"]["b"].reshape(1, E)

    def rep(shape):  # batch-invariant operand (weights / norm params)
        return pl.BlockSpec(shape, lambda b: (0,) * len(shape))

    out = pl.pallas_call(
        functools.partial(_cross_attention_kernel, num_heads, Dh),
        grid=(B,),
        in_specs=[
            pl.BlockSpec((1, L, E), lambda b: (b, 0, 0)),        # x
            pl.BlockSpec((1, S, Dc), lambda b: (b, 0, 0)),       # context
            rep((1, E)), rep((1, E)),                            # norm g/b
            rep((1, Dc)), rep((1, Dc)),                          # context_norm g/b
            rep((Dc, E)), rep((1, E)),                           # proj w/b
            rep((E, E)), rep((1, E)),                            # Wq / bq
            rep((E, 2 * E)), rep((1, 2 * E)),                    # packed Wkv / bkv
            rep((E, E)), rep((1, E)),                            # Wo / bo
            rep((1, E)), rep((1, E)),                            # seq LN g/b
            rep((E, E)), rep((1, E)),                            # fc1 w/b
            rep((E, E)), rep((1, E)),                            # fc2 w/b
        ],
        out_specs=pl.BlockSpec((1, L, E), lambda b: (b, 0, 0)),
        out_shape=jax.ShapeDtypeStruct((B, L, E), jnp.float32),
        compiler_params=pltpu.CompilerParams(
            dimension_semantics=("parallel",)),
    )(x_seq, context,
      ng, nb, cg, cb,
      wp, bp,
      wq, bq, wkv, bkv,
      wo, bo,
      g2, b2,
      w1, b1, w2, b2f)

    # (B, L, E) -> (B, C, H, W), matching x.permute(1, 2, 0).view(b, c, h, w).
    return out.transpose(0, 2, 1).reshape(B, C, H, W)


# ---------------------------------------------------------------------------
# Pure-JAX reference (mirrors the PyTorch forward exactly) for validation.
# ---------------------------------------------------------------------------
def cross_attention_reference(params, x, context, num_heads=4):
    B, C, H, W = x.shape
    L = H * W
    E = C
    Dh = E // num_heads
    Bc, S, Dc = context.shape

    xs = x.reshape(B, C, L).transpose(2, 0, 1)                    # (L, B, E)
    cn = _layer_norm(context, params["cnorm"]["g"], params["cnorm"]["b"])
    ctxp = cn @ params["proj"]["w"].T + params["proj"]["b"]       # (B, S, E)
    ctxp = ctxp.transpose(1, 0, 2)                                # (S, B, E)
    xn = _layer_norm(xs, params["norm"]["g"], params["norm"]["b"])

    mha = params["mha"]
    q = xn @ mha["wq"].T + mha["bq"]
    k = ctxp @ mha["wk"].T + mha["bk"]
    v = ctxp @ mha["wv"].T + mha["bv"]
    scale = 1.0 / math.sqrt(Dh)
    qh = q.reshape(L, B, num_heads, Dh).transpose(1, 2, 0, 3)     # (B, H, L, Dh)
    kh = k.reshape(S, B, num_heads, Dh).transpose(1, 2, 0, 3)
    vh = v.reshape(S, B, num_heads, Dh).transpose(1, 2, 0, 3)
    sc = jnp.einsum("bhld,bhsd->bhls", qh * scale, kh)
    p = jax.nn.softmax(sc, axis=-1)
    o = jnp.einsum("bhls,bhsd->bhld", p, vh)
    o = o.transpose(2, 0, 1, 3).reshape(L, B, E)
    y = o @ mha["wo"].T + mha["bo"]

    x2 = xn + y
    s2 = _layer_norm(x2, params["ln2"]["g"], params["ln2"]["b"])
    h1 = jax.nn.gelu(s2 @ params["fc1"]["w"].T + params["fc1"]["b"],
                     approximate=False)
    h2 = h1 @ params["fc2"]["w"].T + params["fc2"]["b"]
    x3 = x2 + h2
    return x3.transpose(1, 2, 0).reshape(B, C, H, W)


# ---------------------------------------------------------------------------
# Deterministic parameter initialization.
# ---------------------------------------------------------------------------
def init_params(key, in_size, context_dim):
    it = iter(random.split(key, 32))

    def lin(fi, fo):
        return {"w": random.normal(next(it), (fo, fi), jnp.float32) / math.sqrt(fi),
                "b": 0.02 * random.normal(next(it), (fo,), jnp.float32)}

    def ln(d):
        return {"g": 1.0 + 0.1 * random.normal(next(it), (d,), jnp.float32),
                "b": 0.05 * random.normal(next(it), (d,), jnp.float32)}

    q, k, v, o = (lin(in_size, in_size) for _ in range(4))
    return {
        "norm": ln(in_size),
        "cnorm": ln(context_dim),
        "proj": lin(context_dim, in_size),
        "mha": {"wq": q["w"], "bq": q["b"], "wk": k["w"], "bk": k["b"],
                "wv": v["w"], "bv": v["b"], "wo": o["w"], "bo": o["b"]},
        "ln2": ln(in_size),
        "fc1": lin(in_size, in_size),
        "fc2": lin(in_size, in_size),
    }


if __name__ == "__main__":
    # Shapes match the UNet's first cross-attention stage: C=128, 16x16 spatial.
    in_size, context_dim, num_heads = 128, 32, 4
    B, H, W, S = 2, 16, 16, 8

    key = random.PRNGKey(0)
    pkey, dkey = random.split(key)
    params = init_params(pkey, in_size, context_dim)
    dk = random.split(dkey, 2)
    x = random.normal(dk[0], (B, in_size, H, W), jnp.float32)
    context = random.normal(dk[1], (B, S, context_dim), jnp.float32)

    fwd = jax.jit(functools.partial(cross_attention_forward, num_heads=num_heads))
    out = jax.block_until_ready(fwd(params, x, context))

    assert out.shape == (B, in_size, H, W)
    assert bool(jnp.all(jnp.isfinite(out)))

    ref = cross_attention_reference(params, x, context, num_heads=num_heads)
    err = float(jnp.max(jnp.abs(out - ref)))
    assert err < 1e-2, f"max abs err {err}"
    print("KERNEL_OK")
</pallas_src>

<mosaic_0001>
module attributes {stable_mosaic.version = 11 : i64} {
  func.func @_cross_attention_kernel(%arg0: i32, %arg1: memref<1x256x128xf32, #tpu.memory_space<vmem>>, %arg2: memref<1x8x32xf32, #tpu.memory_space<vmem>>, %arg3: memref<1x128xf32, #tpu.memory_space<vmem>>, %arg4: memref<1x128xf32, #tpu.memory_space<vmem>>, %arg5: memref<1x32xf32, #tpu.memory_space<vmem>>, %arg6: memref<1x32xf32, #tpu.memory_space<vmem>>, %arg7: memref<32x128xf32, #tpu.memory_space<vmem>>, %arg8: memref<1x128xf32, #tpu.memory_space<vmem>>, %arg9: memref<128x128xf32, #tpu.memory_space<vmem>>, %arg10: memref<1x128xf32, #tpu.memory_space<vmem>>, %arg11: memref<128x256xf32, #tpu.memory_space<vmem>>, %arg12: memref<1x256xf32, #tpu.memory_space<vmem>>, %arg13: memref<128x128xf32, #tpu.memory_space<vmem>>, %arg14: memref<1x128xf32, #tpu.memory_space<vmem>>, %arg15: memref<1x128xf32, #tpu.memory_space<vmem>>, %arg16: memref<1x128xf32, #tpu.memory_space<vmem>>, %arg17: memref<128x128xf32, #tpu.memory_space<vmem>>, %arg18: memref<1x128xf32, #tpu.memory_space<vmem>>, %arg19: memref<128x128xf32, #tpu.memory_space<vmem>>, %arg20: memref<1x128xf32, #tpu.memory_space<vmem>>, %arg21: memref<1x256x128xf32, #tpu.memory_space<vmem>>) attributes {dimension_semantics = [#tpu.dimension_semantics<parallel>], iteration_bounds = array<i64: 2>, scalar_prefetch = 0 : i64, scratch_operands = 0 : i64, tpu.core_type = #tpu.core_type<tc>, window_params = [{transform_indices = @transform_0, window_bounds = array<i64: 1, 256, 128>}, {transform_indices = @transform_1, window_bounds = array<i64: 1, 8, 32>}, {pipeline_mode = #tpu.pipeline_mode<synchronous>, transform_indices = @transform_2, window_bounds = array<i64: 1, 128>}, {pipeline_mode = #tpu.pipeline_mode<synchronous>, transform_indices = @transform_3, window_bounds = array<i64: 1, 128>}, {pipeline_mode = #tpu.pipeline_mode<synchronous>, transform_indices = @transform_4, window_bounds = array<i64: 1, 32>}, {pipeline_mode = #tpu.pipeline_mode<synchronous>, transform_indices = @transform_5, window_bounds = array<i64: 1, 32>}, {pipeline_mode = #tpu.pipeline_mode<synchronous>, transform_indices = @transform_6, window_bounds = array<i64: 32, 128>}, {pipeline_mode = #tpu.pipeline_mode<synchronous>, transform_indices = @transform_7, window_bounds = array<i64: 1, 128>}, {pipeline_mode = #tpu.pipeline_mode<synchronous>, transform_indices = @transform_8, window_bounds = array<i64: 128, 128>}, {pipeline_mode = #tpu.pipeline_mode<synchronous>, transform_indices = @transform_9, window_bounds = array<i64: 1, 128>}, {pipeline_mode = #tpu.pipeline_mode<synchronous>, transform_indices = @transform_10, window_bounds = array<i64: 128, 256>}, {pipeline_mode = #tpu.pipeline_mode<synchronous>, transform_indices = @transform_11, window_bounds = array<i64: 1, 256>}, {pipeline_mode = #tpu.pipeline_mode<synchronous>, transform_indices = @transform_12, window_bounds = array<i64: 128, 128>}, {pipeline_mode = #tpu.pipeline_mode<synchronous>, transform_indices = @transform_13, window_bounds = array<i64: 1, 128>}, {pipeline_mode = #tpu.pipeline_mode<synchronous>, transform_indices = @transform_14, window_bounds = array<i64: 1, 128>}, {pipeline_mode = #tpu.pipeline_mode<synchronous>, transform_indices = @transform_15, window_bounds = array<i64: 1, 128>}, {pipeline_mode = #tpu.pipeline_mode<synchronous>, transform_indices = @transform_16, window_bounds = array<i64: 128, 128>}, {pipeline_mode = #tpu.pipeline_mode<synchronous>, transform_indices = @transform_17, window_bounds = array<i64: 1, 128>}, {pipeline_mode = #tpu.pipeline_mode<synchronous>, transform_indices = @transform_18, window_bounds = array<i64: 128, 128>}, {pipeline_mode = #tpu.pipeline_mode<synchronous>, transform_indices = @transform_19, window_bounds = array<i64: 1, 128>}, {transform_indices = @transform_20, window_bounds = array<i64: 1, 256, 128>}]} {
    %c0 = arith.constant 0 : index
    %c0_0 = arith.constant 0 : index
    %c0_1 = arith.constant 0 : index
    %0 = vector.load %arg1[%c0, %c0_0, %c0_1] : memref<1x256x128xf32, #tpu.memory_space<vmem>>, vector<1x256x128xf32>
    %1 = vector.shape_cast %0 : vector<1x256x128xf32> to vector<256x128xf32>
    %c0_2 = arith.constant 0 : index
    %c0_3 = arith.constant 0 : index
    %c0_4 = arith.constant 0 : index
    %2 = vector.load %arg2[%c0_2, %c0_3, %c0_4] : memref<1x8x32xf32, #tpu.memory_space<vmem>>, vector<1x8x32xf32>
    %3 = vector.shape_cast %2 : vector<1x8x32xf32> to vector<8x32xf32>
    %c0_5 = arith.constant 0 : index
    %c0_6 = arith.constant 0 : index
    %4 = vector.load %arg3[%c0_5, %c0_6] : memref<1x128xf32, #tpu.memory_space<vmem>>, vector<1x128xf32>
    %c0_7 = arith.constant 0 : index
    %c0_8 = arith.constant 0 : index
    %5 = vector.load %arg4[%c0_7, %c0_8] : memref<1x128xf32, #tpu.memory_space<vmem>>, vector<1x128xf32>
    %cst = arith.constant dense<0.000000e+00> : vector<256xf32>
    %6 = vector.multi_reduction <add>, %1, %cst [1] : vector<256x128xf32> to vector<256xf32>
    %7 = vector.shape_cast %6 : vector<256xf32> to vector<256x1xf32>
    %cst_9 = arith.constant 1.280000e+02 : f32
    %8 = vector.broadcast %cst_9 : f32 to vector<256x1xf32>
    %9 = arith.divf %7, %8 : vector<256x1xf32>
    %10 = vector.broadcast %9 : vector<256x1xf32> to vector<256x128xf32>
    %11 = arith.subf %1, %10 : vector<256x128xf32>
    %12 = arith.mulf %11, %11 : vector<256x128xf32>
    %cst_10 = arith.constant dense<0.000000e+00> : vector<256xf32>
    %13 = vector.multi_reduction <add>, %12, %cst_10 [1] : vector<256x128xf32> to vector<256xf32>
    %14 = vector.shape_cast %13 : vector<256xf32> to vector<256x1xf32>
    %cst_11 = arith.constant 1.280000e+02 : f32
    %15 = vector.broadcast %cst_11 : f32 to vector<256x1xf32>
    %16 = arith.divf %14, %15 : vector<256x1xf32>
    %cst_12 = arith.constant 9.99999974E-6 : f32
    %17 = vector.broadcast %cst_12 : f32 to vector<256x1xf32>
    %18 = arith.addf %16, %17 : vector<256x1xf32>
    %19 = math.rsqrt %18 : vector<256x1xf32>
    %20 = vector.broadcast %19 : vector<256x1xf32> to vector<256x128xf32>
    %21 = arith.mulf %11, %20 : vector<256x128xf32>
    %22 = vector.broadcast %4 : vector<1x128xf32> to vector<256x128xf32>
    %23 = arith.mulf %21, %22 : vector<256x128xf32>
    %24 = vector.broadcast %5 : vector<1x128xf32> to vector<256x128xf32>
    %25 = arith.addf %23, %24 : vector<256x128xf32>
    %c0_13 = arith.constant 0 : index
    %c0_14 = arith.constant 0 : index
    %26 = vector.load %arg5[%c0_13, %c0_14] : memref<1x32xf32, #tpu.memory_space<vmem>>, vector<1x32xf32>
    %c0_15 = arith.constant 0 : index
    %c0_16 = arith.constant 0 : index
    %27 = vector.load %arg6[%c0_15, %c0_16] : memref<1x32xf32, #tpu.memory_space<vmem>>, vector<1x32xf32>
    %cst_17 = arith.constant dense<0.000000e+00> : vector<8xf32>
    %28 = vector.multi_reduction <add>, %3, %cst_17 [1] : vector<8x32xf32> to vector<8xf32>
    %29 = vector.shape_cast %28 : vector<8xf32> to vector<8x1xf32>
    %cst_18 = arith.constant 3.200000e+01 : f32
    %30 = vector.broadcast %cst_18 : f32 to vector<8x1xf32>
    %31 = arith.divf %29, %30 : vector<8x1xf32>
    %32 = vector.broadcast %31 : vector<8x1xf32> to vector<8x32xf32>
    %33 = arith.subf %3, %32 : vector<8x32xf32>
    %34 = arith.mulf %33, %33 : vector<8x32xf32>
    %cst_19 = arith.constant dense<0.000000e+00> : vector<8xf32>
    %35 = vector.multi_reduction <add>, %34, %cst_19 [1] : vector<8x32xf32> to vector<8xf32>
    %36 = vector.shape_cast %35 : vector<8xf32> to vector<8x1xf32>
    %cst_20 = arith.constant 3.200000e+01 : f32
    %37 = vector.broadcast %cst_20 : f32 to vector<8x1xf32>
    %38 = arith.divf %36, %37 : vector<8x1xf32>
    %cst_21 = arith.constant 9.99999974E-6 : f32
    %39 = vector.broadcast %cst_21 : f32 to vector<8x1xf32>
    %40 = arith.addf %38, %39 : vector<8x1xf32>
    %41 = math.rsqrt %40 : vector<8x1xf32>
    %42 = vector.broadcast %41 : vector<8x1xf32> to vector<8x32xf32>
    %43 = arith.mulf %33, %42 : vector<8x32xf32>
    %44 = vector.broadcast %26 : vector<1x32xf32> to vector<8x32xf32>
    %45 = arith.mulf %43, %44 : vector<8x32xf32>
    %46 = vector.broadcast %27 : vector<1x32xf32> to vector<8x32xf32>
    %47 = arith.addf %45, %46 : vector<8x32xf32>
    %c0_22 = arith.constant 0 : index
    %c0_23 = arith.constant 0 : index
    %48 = vector.load %arg7[%c0_22, %c0_23] : memref<32x128xf32, #tpu.memory_space<vmem>>, vector<32x128xf32>
    %cst_24 = arith.constant dense<0.000000e+00> : vector<8x128xf32>
    %49 = tpu.matmul %47, %48, %cst_24 {dimension_numbers = #tpu.dot_dimension_numbers<[1], [0], [0], [1], [0, 0, 1, 1], [], []>} : vector<8x32xf32>, vector<32x128xf32>, vector<8x128xf32> -> vector<8x128xf32>
    %c0_25 = arith.constant 0 : index
    %c0_26 = arith.constant 0 : index
    %50 = vector.load %arg8[%c0_25, %c0_26] : memref<1x128xf32, #tpu.memory_space<vmem>>, vector<1x128xf32>
    %51 = vector.broadcast %50 : vector<1x128xf32> to vector<8x128xf32>
    %52 = arith.addf %49, %51 : vector<8x128xf32>
    %c0_27 = arith.constant 0 : index
    %c0_28 = arith.constant 0 : index
    %53 = vector.load %arg9[%c0_27, %c0_28] : memref<128x128xf32, #tpu.memory_space<vmem>>, vector<128x128xf32>
    %cst_29 = arith.constant dense<0.000000e+00> : vector<256x128xf32>
    %54 = tpu.matmul %25, %53, %cst_29 {dimension_numbers = #tpu.dot_dimension_numbers<[1], [0], [0], [1], [0, 0, 1, 1], [], []>} : vector<256x128xf32>, vector<128x128xf32>, vector<256x128xf32> -> vector<256x128xf32>
    %c0_30 = arith.constant 0 : index
    %c0_31 = arith.constant 0 : index
    %55 = vector.load %arg10[%c0_30, %c0_31] : memref<1x128xf32, #tpu.memory_space<vmem>>, vector<1x128xf32>
    %56 = vector.broadcast %55 : vector<1x128xf32> to vector<256x128xf32>
    %57 = arith.addf %54, %56 : vector<256x128xf32>
    %c0_32 = arith.constant 0 : index
    %c0_33 = arith.constant 0 : index
    %58 = vector.load %arg11[%c0_32, %c0_33] : memref<128x256xf32, #tpu.memory_space<vmem>>, vector<128x256xf32>
    %cst_34 = arith.constant dense<0.000000e+00> : vector<8x256xf32>
    %59 = tpu.matmul %52, %58, %cst_34 {dimension_numbers = #tpu.dot_dimension_numbers<[1], [0], [0], [1], [0, 0, 1, 1], [], []>} : vector<8x128xf32>, vector<128x256xf32>, vector<8x256xf32> -> vector<8x256xf32>
    %c0_35 = arith.constant 0 : index
    %c0_36 = arith.constant 0 : index
    %60 = vector.load %arg12[%c0_35, %c0_36] : memref<1x256xf32, #tpu.memory_space<vmem>>, vector<1x256xf32>
    %61 = vector.broadcast %60 : vector<1x256xf32> to vector<8x256xf32>
    %62 = arith.addf %59, %61 : vector<8x256xf32>
    %63 = vector.extract_strided_slice %57 {offsets = [0, 0], sizes = [256, 32], strides = [1, 1]} : vector<256x128xf32> to vector<256x32xf32>
    %cst_37 = arith.constant 0.176776692 : f32
    %64 = vector.broadcast %cst_37 : f32 to vector<256x32xf32>
    %65 = arith.mulf %63, %64 : vector<256x32xf32>
    %66 = vector.extract_strided_slice %62 {offsets = [0, 0], sizes = [8, 32], strides = [1, 1]} : vector<8x256xf32> to vector<8x32xf32>
    %67 = vector.extract_strided_slice %62 {offsets = [0, 128], sizes = [8, 32], strides = [1, 1]} : vector<8x256xf32> to vector<8x32xf32>
    %cst_38 = arith.constant dense<0.000000e+00> : vector<256x8xf32>
    %68 = tpu.matmul %65, %66, %cst_38 {dimension_numbers = #tpu.dot_dimension_numbers<[1], [1], [0], [0], [0, 0, 1, 0], [], []>} : vector<256x32xf32>, vector<8x32xf32>, vector<256x8xf32> -> vector<256x8xf32>
    %cst_39 = arith.constant dense<0xFF800000> : vector<256xf32>
    %69 = vector.multi_reduction <maximumf>, %68, %cst_39 [1] : vector<256x8xf32> to vector<256xf32>
    %70 = vector.shape_cast %69 : vector<256xf32> to vector<256x1xf32>
    %71 = vector.broadcast %70 : vector<256x1xf32> to vector<256x8xf32>
    %72 = arith.subf %68, %71 : vector<256x8xf32>
    %73 = math.exp %72 : vector<256x8xf32>
    %cst_40 = arith.constant dense<0.000000e+00> : vector<256xf32>
    %74 = vector.multi_reduction <add>, %73, %cst_40 [1] : vector<256x8xf32> to vector<256xf32>
    %75 = vector.shape_cast %74 : vector<256xf32> to vector<256x1xf32>
    %76 = vector.broadcast %75 : vector<256x1xf32> to vector<256x8xf32>
    %77 = arith.divf %73, %76 : vector<256x8xf32>
    %cst_41 = arith.constant dense<0.000000e+00> : vector<256x32xf32>
    %78 = tpu.matmul %77, %67, %cst_41 {dimension_numbers = #tpu.dot_dimension_numbers<[1], [0], [0], [1], [0, 0, 1, 1], [], []>} : vector<256x8xf32>, vector<8x32xf32>, vector<256x32xf32> -> vector<256x32xf32>
    %c0_42 = arith.constant 0 : index
    %c0_43 = arith.constant 0 : index
    %79 = vector.load %arg13[%c0_42, %c0_43] : memref<128x128xf32, #tpu.memory_space<vmem>>, vector<32x128xf32>
    %cst_44 = arith.constant dense<0.000000e+00> : vector<256x128xf32>
    %80 = tpu.matmul %78, %79, %cst_44 {dimension_numbers = #tpu.dot_dimension_numbers<[1], [0], [0], [1], [0, 0, 1, 1], [], []>} : vector<256x32xf32>, vector<32x128xf32>, vector<256x128xf32> -> vector<256x128xf32>
    %81 = vector.extract_strided_slice %57 {offsets = [0, 32], sizes = [256, 32], strides = [1, 1]} : vector<256x128xf32> to vector<256x32xf32>
    %cst_45 = arith.constant 0.176776692 : f32
    %82 = vector.broadcast %cst_45 : f32 to vector<256x32xf32>
    %83 = arith.mulf %81, %82 : vector<256x32xf32>
    %84 = vector.extract_strided_slice %62 {offsets = [0, 32], sizes = [8, 32], strides = [1, 1]} : vector<8x256xf32> to vector<8x32xf32>
    %85 = vector.extract_strided_slice %62 {offsets = [0, 160], sizes = [8, 32], strides = [1, 1]} : vector<8x256xf32> to vector<8x32xf32>
    %cst_46 = arith.constant dense<0.000000e+00> : vector<256x8xf32>
    %86 = tpu.matmul %83, %84, %cst_46 {dimension_numbers = #tpu.dot_dimension_numbers<[1], [1], [0], [0], [0, 0, 1, 0], [], []>} : vector<256x32xf32>, vector<8x32xf32>, vector<256x8xf32> -> vector<256x8xf32>
    %cst_47 = arith.constant dense<0xFF800000> : vector<256xf32>
    %87 = vector.multi_reduction <maximumf>, %86, %cst_47 [1] : vector<256x8xf32> to vector<256xf32>
    %88 = vector.shape_cast %87 : vector<256xf32> to vector<256x1xf32>
    %89 = vector.broadcast %88 : vector<256x1xf32> to vector<256x8xf32>
    %90 = arith.subf %86, %89 : vector<256x8xf32>
    %91 = math.exp %90 : vector<256x8xf32>
    %cst_48 = arith.constant dense<0.000000e+00> : vector<256xf32>
    %92 = vector.multi_reduction <add>, %91, %cst_48 [1] : vector<256x8xf32> to vector<256xf32>
    %93 = vector.shape_cast %92 : vector<256xf32> to vector<256x1xf32>
    %94 = vector.broadcast %93 : vector<256x1xf32> to vector<256x8xf32>
    %95 = arith.divf %91, %94 : vector<256x8xf32>
    %cst_49 = arith.constant dense<0.000000e+00> : vector<256x32xf32>
    %96 = tpu.matmul %95, %85, %cst_49 {dimension_numbers = #tpu.dot_dimension_numbers<[1], [0], [0], [1], [0, 0, 1, 1], [], []>} : vector<256x8xf32>, vector<8x32xf32>, vector<256x32xf32> -> vector<256x32xf32>
    %c32 = arith.constant 32 : index
    %c0_50 = arith.constant 0 : index
    %97 = vector.load %arg13[%c32, %c0_50] : memref<128x128xf32, #tpu.memory_space<vmem>>, vector<32x128xf32>
    %cst_51 = arith.constant dense<0.000000e+00> : vector<256x128xf32>
    %98 = tpu.matmul %96, %97, %cst_51 {dimension_numbers = #tpu.dot_dimension_numbers<[1], [0], [0], [1], [0, 0, 1, 1], [], []>} : vector<256x32xf32>, vector<32x128xf32>, vector<256x128xf32> -> vector<256x128xf32>
    %99 = arith.addf %80, %98 : vector<256x128xf32>
    %100 = vector.extract_strided_slice %57 {offsets = [0, 64], sizes = [256, 32], strides = [1, 1]} : vector<256x128xf32> to vector<256x32xf32>
    %cst_52 = arith.constant 0.176776692 : f32
    %101 = vector.broadcast %cst_52 : f32 to vector<256x32xf32>
    %102 = arith.mulf %100, %101 : vector<256x32xf32>
    %103 = vector.extract_strided_slice %62 {offsets = [0, 64], sizes = [8, 32], strides = [1, 1]} : vector<8x256xf32> to vector<8x32xf32>
    %104 = vector.extract_strided_slice %62 {offsets = [0, 192], sizes = [8, 32], strides = [1, 1]} : vector<8x256xf32> to vector<8x32xf32>
    %cst_53 = arith.constant dense<0.000000e+00> : vector<256x8xf32>
    %105 = tpu.matmul %102, %103, %cst_53 {dimension_numbers = #tpu.dot_dimension_numbers<[1], [1], [0], [0], [0, 0, 1, 0], [], []>} : vector<256x32xf32>, vector<8x32xf32>, vector<256x8xf32> -> vector<256x8xf32>
    %cst_54 = arith.constant dense<0xFF800000> : vector<256xf32>
    %106 = vector.multi_reduction <maximumf>, %105, %cst_54 [1] : vector<256x8xf32> to vector<256xf32>
    %107 = vector.shape_cast %106 : vector<256xf32> to vector<256x1xf32>
    %108 = vector.broadcast %107 : vector<256x1xf32> to vector<256x8xf32>
    %109 = arith.subf %105, %108 : vector<256x8xf32>
    %110 = math.exp %109 : vector<256x8xf32>
    %cst_55 = arith.constant dense<0.000000e+00> : vector<256xf32>
    %111 = vector.multi_reduction <add>, %110, %cst_55 [1] : vector<256x8xf32> to vector<256xf32>
    %112 = vector.shape_cast %111 : vector<256xf32> to vector<256x1xf32>
    %113 = vector.broadcast %112 : vector<256x1xf32> to vector<256x8xf32>
    %114 = arith.divf %110, %113 : vector<256x8xf32>
    %cst_56 = arith.constant dense<0.000000e+00> : vector<256x32xf32>
    %115 = tpu.matmul %114, %104, %cst_56 {dimension_numbers = #tpu.dot_dimension_numbers<[1], [0], [0], [1], [0, 0, 1, 1], [], []>} : vector<256x8xf32>, vector<8x32xf32>, vector<256x32xf32> -> vector<256x32xf32>
    %c64 = arith.constant 64 : index
    %c0_57 = arith.constant 0 : index
    %116 = vector.load %arg13[%c64, %c0_57] : memref<128x128xf32, #tpu.memory_space<vmem>>, vector<32x128xf32>
    %cst_58 = arith.constant dense<0.000000e+00> : vector<256x128xf32>
    %117 = tpu.matmul %115, %116, %cst_58 {dimension_numbers = #tpu.dot_dimension_numbers<[1], [0], [0], [1], [0, 0, 1, 1], [], []>} : vector<256x32xf32>, vector<32x128xf32>, vector<256x128xf32> -> vector<256x128xf32>
    %118 = arith.addf %99, %117 : vector<256x128xf32>
    %119 = vector.extract_strided_slice %57 {offsets = [0, 96], sizes = [256, 32], strides = [1, 1]} : vector<256x128xf32> to vector<256x32xf32>
    %cst_59 = arith.constant 0.176776692 : f32
    %120 = vector.broadcast %cst_59 : f32 to vector<256x32xf32>
    %121 = arith.mulf %119, %120 : vector<256x32xf32>
    %122 = vector.extract_strided_slice %62 {offsets = [0, 96], sizes = [8, 32], strides = [1, 1]} : vector<8x256xf32> to vector<8x32xf32>
    %123 = vector.extract_strided_slice %62 {offsets = [0, 224], sizes = [8, 32], strides = [1, 1]} : vector<8x256xf32> to vector<8x32xf32>
    %cst_60 = arith.constant dense<0.000000e+00> : vector<256x8xf32>
    %124 = tpu.matmul %121, %122, %cst_60 {dimension_numbers = #tpu.dot_dimension_numbers<[1], [1], [0], [0], [0, 0, 1, 0], [], []>} : vector<256x32xf32>, vector<8x32xf32>, vector<256x8xf32> -> vector<256x8xf32>
    %cst_61 = arith.constant dense<0xFF800000> : vector<256xf32>
    %125 = vector.multi_reduction <maximumf>, %124, %cst_61 [1] : vector<256x8xf32> to vector<256xf32>
    %126 = vector.shape_cast %125 : vector<256xf32> to vector<256x1xf32>
    %127 = vector.broadcast %126 : vector<256x1xf32> to vector<256x8xf32>
    %128 = arith.subf %124, %127 : vector<256x8xf32>
    %129 = math.exp %128 : vector<256x8xf32>
    %cst_62 = arith.constant dense<0.000000e+00> : vector<256xf32>
    %130 = vector.multi_reduction <add>, %129, %cst_62 [1] : vector<256x8xf32> to vector<256xf32>
    %131 = vector.shape_cast %130 : vector<256xf32> to vector<256x1xf32>
    %132 = vector.broadcast %131 : vector<256x1xf32> to vector<256x8xf32>
    %133 = arith.divf %129, %132 : vector<256x8xf32>
    %cst_63 = arith.constant dense<0.000000e+00> : vector<256x32xf32>
    %134 = tpu.matmul %133, %123, %cst_63 {dimension_numbers = #tpu.dot_dimension_numbers<[1], [0], [0], [1], [0, 0, 1, 1], [], []>} : vector<256x8xf32>, vector<8x32xf32>, vector<256x32xf32> -> vector<256x32xf32>
    %c96 = arith.constant 96 : index
    %c0_64 = arith.constant 0 : index
    %135 = vector.load %arg13[%c96, %c0_64] : memref<128x128xf32, #tpu.memory_space<vmem>>, vector<32x128xf32>
    %cst_65 = arith.constant dense<0.000000e+00> : vector<256x128xf32>
    %136 = tpu.matmul %134, %135, %cst_65 {dimension_numbers = #tpu.dot_dimension_numbers<[1], [0], [0], [1], [0, 0, 1, 1], [], []>} : vector<256x32xf32>, vector<32x128xf32>, vector<256x128xf32> -> vector<256x128xf32>
    %137 = arith.addf %118, %136 : vector<256x128xf32>
    %c0_66 = arith.constant 0 : index
    %c0_67 = arith.constant 0 : index
    %138 = vector.load %arg14[%c0_66, %c0_67] : memref<1x128xf32, #tpu.memory_space<vmem>>, vector<1x128xf32>
    %139 = vector.broadcast %138 : vector<1x128xf32> to vector<256x128xf32>
    %140 = arith.addf %137, %139 : vector<256x128xf32>
    %141 = arith.addf %25, %140 : vector<256x128xf32>
    %c0_68 = arith.constant 0 : index
    %c0_69 = arith.constant 0 : index
    %142 = vector.load %arg15[%c0_68, %c0_69] : memref<1x128xf32, #tpu.memory_space<vmem>>, vector<1x128xf32>
    %c0_70 = arith.constant 0 : index
    %c0_71 = arith.constant 0 : index
    %143 = vector.load %arg16[%c0_70, %c0_71] : memref<1x128xf32, #tpu.memory_space<vmem>>, vector<1x128xf32>
    %cst_72 = arith.constant dense<0.000000e+00> : vector<256xf32>
    %144 = vector.multi_reduction <add>, %141, %cst_72 [1] : vector<256x128xf32> to vector<256xf32>
    %145 = vector.shape_cast %144 : vector<256xf32> to vector<256x1xf32>
    %cst_73 = arith.constant 1.280000e+02 : f32
    %146 = vector.broadcast %cst_73 : f32 to vector<256x1xf32>
    %147 = arith.divf %145, %146 : vector<256x1xf32>
    %148 = vector.broadcast %147 : vector<256x1xf32> to vector<256x128xf32>
    %149 = arith.subf %141, %148 : vector<256x128xf32>
    %150 = arith.mulf %149, %149 : vector<256x128xf32>
    %cst_74 = arith.constant dense<0.000000e+00> : vector<256xf32>
    %151 = vector.multi_reduction <add>, %150, %cst_74 [1] : vector<256x128xf32> to vector<256xf32>
    %152 = vector.shape_cast %151 : vector<256xf32> to vector<256x1xf32>
    %cst_75 = arith.constant 1.280000e+02 : f32
    %153 = vector.broadcast %cst_75 : f32 to vector<256x1xf32>
    %154 = arith.divf %152, %153 : vector<256x1xf32>
    %cst_76 = arith.constant 9.99999974E-6 : f32
    %155 = vector.broadcast %cst_76 : f32 to vector<256x1xf32>
    %156 = arith.addf %154, %155 : vector<256x1xf32>
    %157 = math.rsqrt %156 : vector<256x1xf32>
    %158 = vector.broadcast %157 : vector<256x1xf32> to vector<256x128xf32>
    %159 = arith.mulf %149, %158 : vector<256x128xf32>
    %160 = vector.broadcast %142 : vector<1x128xf32> to vector<256x128xf32>
    %161 = arith.mulf %159, %160 : vector<256x128xf32>
    %162 = vector.broadcast %143 : vector<1x128xf32> to vector<256x128xf32>
    %163 = arith.addf %161, %162 : vector<256x128xf32>
    %c0_77 = arith.constant 0 : index
    %c0_78 = arith.constant 0 : index
    %164 = vector.load %arg17[%c0_77, %c0_78] : memref<128x128xf32, #tpu.memory_space<vmem>>, vector<128x128xf32>
    %cst_79 = arith.constant dense<0.000000e+00> : vector<256x128xf32>
    %165 = tpu.matmul %163, %164, %cst_79 {dimension_numbers = #tpu.dot_dimension_numbers<[1], [0], [0], [1], [0, 0, 1, 1], [], []>} : vector<256x128xf32>, vector<128x128xf32>, vector<256x128xf32> -> vector<256x128xf32>
    %c0_80 = arith.constant 0 : index
    %c0_81 = arith.constant 0 : index
    %166 = vector.load %arg18[%c0_80, %c0_81] : memref<1x128xf32, #tpu.memory_space<vmem>>, vector<1x128xf32>
    %167 = vector.broadcast %166 : vector<1x128xf32> to vector<256x128xf32>
    %168 = arith.addf %165, %167 : vector<256x128xf32>
    %cst_82 = arith.constant 5.000000e-01 : f32
    %169 = vector.broadcast %cst_82 : f32 to vector<256x128xf32>
    %170 = arith.mulf %169, %168 : vector<256x128xf32>
    %cst_83 = arith.constant 0.707106769 : f32
    %171 = vector.broadcast %cst_83 : f32 to vector<256x128xf32>
    %172 = arith.mulf %168, %171 : vector<256x128xf32>
    %173 = math.absf %172 : vector<256x128xf32>
    %cst_84 = arith.constant 0.327591091 : f32
    %174 = vector.broadcast %cst_84 : f32 to vector<256x128xf32>
    %175 = arith.mulf %174, %173 : vector<256x128xf32>
    %cst_85 = arith.constant 1.000000e+00 : f32
    %176 = vector.broadcast %cst_85 : f32 to vector<256x128xf32>
    %177 = arith.addf %176, %175 : vector<256x128xf32>
    %cst_86 = arith.constant 1.000000e+00 : f32
    %178 = vector.broadcast %cst_86 : f32 to vector<256x128xf32>
    %179 = arith.divf %178, %177 : vector<256x128xf32>
    %cst_87 = arith.constant 1.06140542 : f32
    %180 = vector.broadcast %cst_87 : f32 to vector<256x128xf32>
    %181 = arith.mulf %180, %179 : vector<256x128xf32>
    %cst_88 = arith.constant -1.45315206 : f32
    %182 = vector.broadcast %cst_88 : f32 to vector<256x128xf32>
    %183 = arith.addf %181, %182 : vector<256x128xf32>
    %184 = arith.mulf %183, %179 : vector<256x128xf32>
    %cst_89 = arith.constant 1.42141378 : f32
    %185 = vector.broadcast %cst_89 : f32 to vector<256x128xf32>
    %186 = arith.addf %184, %185 : vector<256x128xf32>
    %187 = arith.mulf %186, %179 : vector<256x128xf32>
    %cst_90 = arith.constant -0.284496725 : f32
    %188 = vector.broadcast %cst_90 : f32 to vector<256x128xf32>
    %189 = arith.addf %187, %188 : vector<256x128xf32>
    %190 = arith.mulf %189, %179 : vector<256x128xf32>
    %cst_91 = arith.constant 0.254829586 : f32
    %191 = vector.broadcast %cst_91 : f32 to vector<256x128xf32>
    %192 = arith.addf %190, %191 : vector<256x128xf32>
    %193 = arith.mulf %192, %179 : vector<256x128xf32>
    %cst_92 = arith.constant 0.000000e+00 : f32
    %194 = vector.broadcast %cst_92 : f32 to vector<256x128xf32>
    %195 = arith.subf %194, %173 : vector<256x128xf32>
    %196 = arith.mulf %195, %173 : vector<256x128xf32>
    %197 = math.exp %196 : vector<256x128xf32>
    %198 = arith.mulf %193, %197 : vector<256x128xf32>
    %cst_93 = arith.constant 1.000000e+00 : f32
    %199 = vector.broadcast %cst_93 : f32 to vector<256x128xf32>
    %200 = arith.subf %199, %198 : vector<256x128xf32>
    %cst_94 = arith.constant 0.000000e+00 : f32
    %201 = vector.broadcast %cst_94 : f32 to vector<256x128xf32>
    %202 = arith.cmpf oge, %172, %201 : vector<256x128xf32>
    %cst_95 = arith.constant 0.000000e+00 : f32
    %203 = vector.broadcast %cst_95 : f32 to vector<256x128xf32>
    %204 = arith.subf %203, %200 : vector<256x128xf32>
    %205 = arith.select %202, %200, %204 : vector<256x128xi1>, vector<256x128xf32>
    %cst_96 = arith.constant 1.000000e+00 : f32
    %206 = vector.broadcast %cst_96 : f32 to vector<256x128xf32>
    %207 = arith.addf %206, %205 : vector<256x128xf32>
    %208 = arith.mulf %170, %207 : vector<256x128xf32>
    %c0_97 = arith.constant 0 : index
    %c0_98 = arith.constant 0 : index
    %209 = vector.load %arg19[%c0_97, %c0_98] : memref<128x128xf32, #tpu.memory_space<vmem>>, vector<128x128xf32>
    %cst_99 = arith.constant dense<0.000000e+00> : vector<256x128xf32>
    %210 = tpu.matmul %208, %209, %cst_99 {dimension_numbers = #tpu.dot_dimension_numbers<[1], [0], [0], [1], [0, 0, 1, 1], [], []>} : vector<256x128xf32>, vector<128x128xf32>, vector<256x128xf32> -> vector<256x128xf32>
    %c0_100 = arith.constant 0 : index
    %c0_101 = arith.constant 0 : index
    %211 = vector.load %arg20[%c0_100, %c0_101] : memref<1x128xf32, #tpu.memory_space<vmem>>, vector<1x128xf32>
    %212 = vector.broadcast %211 : vector<1x128xf32> to vector<256x128xf32>
    %213 = arith.addf %210, %212 : vector<256x128xf32>
    %214 = arith.addf %141, %213 : vector<256x128xf32>
    %c0_102 = arith.constant 0 : index
    %c0_103 = arith.constant 0 : index
    %c0_104 = arith.constant 0 : index
    %215 = vector.load %arg21[%c0_102, %c0_103, %c0_104] : memref<1x256x128xf32, #tpu.memory_space<vmem>>, vector<1x256x128xf32>
    %216 = vector.shape_cast %215 : vector<1x256x128xf32> to vector<256x128xf32>
    %217 = vector.shape_cast %214 : vector<256x128xf32> to vector<1x256x128xf32>
    tpu.vector_store %arg21[%c0_102, %c0_103, %c0_104], %217 {strides = array<i32>} : memref<1x256x128xf32, #tpu.memory_space<vmem>>, vector<1x256x128xf32>,
    return
  }
  func.func @transform_0(%arg0: i32) -> (i32, i32, i32) {
    %c0_i32 = arith.constant 0 : i32
    %c0_i32_0 = arith.constant 0 : i32
    %c0_i32_1 = arith.constant 0 : i32
    return %arg0, %c0_i32, %c0_i32_0 : i32, i32, i32
  }
  func.func @transform_1(%arg0: i32) -> (i32, i32, i32) {
    %c0_i32 = arith.constant 0 : i32
    %c0_i32_0 = arith.constant 0 : i32
    %c0_i32_1 = arith.constant 0 : i32
    return %arg0, %c0_i32, %c0_i32_0 : i32, i32, i32
  }
  func.func @transform_2(%arg0: i32) -> (i32, i32) {
    %c0_i32 = arith.constant 0 : i32
    %c0_i32_0 = arith.constant 0 : i32
    %c0_i32_1 = arith.constant 0 : i32
    return %c0_i32, %c0_i32_0 : i32, i32
  }
  func.func @transform_3(%arg0: i32) -> (i32, i32) {
    %c0_i32 = arith.constant 0 : i32
    %c0_i32_0 = arith.constant 0 : i32
    %c0_i32_1 = arith.constant 0 : i32
    return %c0_i32, %c0_i32_0 : i32, i32
  }
  func.func @transform_4(%arg0: i32) -> (i32, i32) {
    %c0_i32 = arith.constant 0 : i32
    %c0_i32_0 = arith.constant 0 : i32
    %c0_i32_1 = arith.constant 0 : i32
    return %c0_i32, %c0_i32_0 : i32, i32
  }
  func.func @transform_5(%arg0: i32) -> (i32, i32) {
    %c0_i32 = arith.constant 0 : i32
    %c0_i32_0 = arith.constant 0 : i32
    %c0_i32_1 = arith.constant 0 : i32
    return %c0_i32, %c0_i32_0 : i32, i32
  }
  func.func @transform_6(%arg0: i32) -> (i32, i32) {
    %c0_i32 = arith.constant 0 : i32
    %c0_i32_0 = arith.constant 0 : i32
    %c0_i32_1 = arith.constant 0 : i32
    return %c0_i32, %c0_i32_0 : i32, i32
  }
  func.func @transform_7(%arg0: i32) -> (i32, i32) {
    %c0_i32 = arith.constant 0 : i32
    %c0_i32_0 = arith.constant 0 : i32
    %c0_i32_1 = arith.constant 0 : i32
    return %c0_i32, %c0_i32_0 : i32, i32
  }
  func.func @transform_8(%arg0: i32) -> (i32, i32) {
    %c0_i32 = arith.constant 0 : i32
    %c0_i32_0 = arith.constant 0 : i32
    %c0_i32_1 = arith.constant 0 : i32
    return %c0_i32, %c0_i32_0 : i32, i32
  }
  func.func @transform_9(%arg0: i32) -> (i32, i32) {
    %c0_i32 = arith.constant 0 : i32
    %c0_i32_0 = arith.constant 0 : i32
    %c0_i32_1 = arith.constant 0 : i32
    return %c0_i32, %c0_i32_0 : i32, i32
  }
  func.func @transform_10(%arg0: i32) -> (i32, i32) {
    %c0_i32 = arith.constant 0 : i32
    %c0_i32_0 = arith.constant 0 : i32
    %c0_i32_1 = arith.constant 0 : i32
    return %c0_i32, %c0_i32_0 : i32, i32
  }
  func.func @transform_11(%arg0: i32) -> (i32, i32) {
    %c0_i32 = arith.constant 0 : i32
    %c0_i32_0 = arith.constant 0 : i32
    %c0_i32_1 = arith.constant 0 : i32
    return %c0_i32, %c0_i32_0 : i32, i32
  }
  func.func @transform_12(%arg0: i32) -> (i32, i32) {
    %c0_i32 = arith.constant 0 : i32
    %c0_i32_0 = arith.constant 0 : i32
    %c0_i32_1 = arith.constant 0 : i32
    return %c0_i32, %c0_i32_0 : i32, i32
  }
  func.func @transform_13(%arg0: i32) -> (i32, i32) {
    %c0_i32 = arith.constant 0 : i32
    %c0_i32_0 = arith.constant 0 : i32
    %c0_i32_1 = arith.constant 0 : i32
    return %c0_i32, %c0_i32_0 : i32, i32
  }
  func.func @transform_14(%arg0: i32) -> (i32, i32) {
    %c0_i32 = arith.constant 0 : i32
    %c0_i32_0 = arith.constant 0 : i32
    %c0_i32_1 = arith.constant 0 : i32
    return %c0_i32, %c0_i32_0 : i32, i32
  }
  func.func @transform_15(%arg0: i32) -> (i32, i32) {
    %c0_i32 = arith.constant 0 : i32
    %c0_i32_0 = arith.constant 0 : i32
    %c0_i32_1 = arith.constant 0 : i32
    return %c0_i32, %c0_i32_0 : i32, i32
  }
  func.func @transform_16(%arg0: i32) -> (i32, i32) {
    %c0_i32 = arith.constant 0 : i32
    %c0_i32_0 = arith.constant 0 : i32
    %c0_i32_1 = arith.constant 0 : i32
    return %c0_i32, %c0_i32_0 : i32, i32
  }
  func.func @transform_17(%arg0: i32) -> (i32, i32) {
    %c0_i32 = arith.constant 0 : i32
    %c0_i32_0 = arith.constant 0 : i32
    %c0_i32_1 = arith.constant 0 : i32
    return %c0_i32, %c0_i32_0 : i32, i32
  }
  func.func @transform_18(%arg0: i32) -> (i32, i32) {
    %c0_i32 = arith.constant 0 : i32
    %c0_i32_0 = arith.constant 0 : i32
    %c0_i32_1 = arith.constant 0 : i32
    return %c0_i32, %c0_i32_0 : i32, i32
  }
  func.func @transform_19(%arg0: i32) -> (i32, i32) {
    %c0_i32 = arith.constant 0 : i32
    %c0_i32_0 = arith.constant 0 : i32
    %c0_i32_1 = arith.constant 0 : i32
    return %c0_i32, %c0_i32_0 : i32, i32
  }
  func.func @transform_20(%arg0: i32) -> (i32, i32, i32) {
    %c0_i32 = arith.constant 0 : i32
    %c0_i32_0 = arith.constant 0 : i32
    %c0_i32_1 = arith.constant 0 : i32
    return %arg0, %c0_i32, %c0_i32_0 : i32, i32, i32
  }
}

</mosaic_0001>

<bundles_post_ra>
// kernel: cross_attention_forward.1
= control target key start
LH: loop header
LB: loop body
LE: loop exit
PB: predicated region body
PF: predicated region fallthrough
CT: control target
= control target key end

     0   :  { %s16520_s0 = inlined_call_operand.vmem [shape: f32[2,256,128], index: 0, kind: input, shape index: {}]   ;;  %s16521_s1 = inlined_call_operand.vmem [shape: f32[2,8,32], index: 1, kind: input, shape index: {}]   ;;  %s16522_s2 = inlined_call_operand.vmem [shape: f32[1,128], index: 2, kind: input, shape index: {}]   ;;  %s16523_s3 = inlined_call_operand.vmem [shape: f32[1,128], index: 3, kind: input, shape index: {}]   ;;  %s16524_s4 = inlined_call_operand.vmem [shape: f32[1,32], index: 4, kind: input, shape index: {}]   ;;  %s16525_s5 = inlined_call_operand.vmem [shape: f32[1,32], index: 5, kind: input, shape index: {}]   ;;  %s16526_s6 = inlined_call_operand.vmem [shape: f32[32,128], index: 6, kind: input, shape index: {}]   ;;  %s16527_s7 = inlined_call_operand.vmem [shape: f32[1,128], index: 7, kind: input, shape index: {}]   ;;  %s16528_s8 = inlined_call_operand.vmem [shape: f32[128,128], index: 8, kind: input, shape index: {}]   ;;  %s16529_s9 = inlined_call_operand.vmem [shape: f32[1,128], index: 9, kind: input, shape index: {}]   ;;  %s16530_s10 = inlined_call_operand.vmem [shape: f32[128,256], index: 10, kind: input, shape index: {}]   ;;  %s16531_s11 = inlined_call_operand.vmem [shape: f32[1,256], index: 11, kind: input, shape index: {}]   ;;  %s16532_s12 = inlined_call_operand.vmem [shape: f32[128,128], index: 12, kind: input, shape index: {}]   ;;  %s16533_s13 = inlined_call_operand.vmem [shape: f32[1,128], index: 13, kind: input, shape index: {}]   ;;  %s16534_s14 = inlined_call_operand.vmem [shape: f32[1,128], index: 14, kind: input, shape index: {}]   ;;  %s16535_s15 = inlined_call_operand.vmem [shape: f32[1,128], index: 15, kind: input, shape index: {}]   ;;  %s16536_s16 = inlined_call_operand.vmem [shape: f32[128,128], index: 16, kind: input, shape index: {}]   ;;  %s16537_s17 = inlined_call_operand.vmem [shape: f32[1,128], index: 17, kind: input, shape index: {}]   ;;  %s16538_s18 = inlined_call_operand.vmem [shape: f32[128,128], index: 18, kind: input, shape index: {}]   ;;  %s16539_s19 = inlined_call_operand.vmem [shape: f32[1,128], index: 19, kind: input, shape index: {}]   ;;  %s16540_s20 = inlined_call_operand.hbm [shape: f32[2,256,128], index: 20, kind: output, shape index: {}]  }
   0x1   :  { %16726 = sst [smem:[#allocation90_spill]] %s16520_s0 }
   0x2   :  { %16727 = sst [smem:[#allocation91_spill]] %s16521_s1 }
   0x3   :  { %16728 = sst [smem:[#allocation92_spill]] %s16522_s2 }
   0x4   :  { %16729 = sst [smem:[#allocation93_spill]] %s16523_s3 }
   0x5   :  { %16730 = sst [smem:[#allocation94_spill]] %s16524_s4 }
   0x6   :  { %16731 = sst [smem:[#allocation95_spill]] %s16540_s20 }
   0x7   :  { %25 = vsyncpa [#allocation3], 0 }
   0x8   :  { %27 = vsyncpa [#allocation3 + $0x1], 0  ;;  %s12201_s1 = smov 0   ;;  %s12203_s22 = smov 0  }
   0x9   :  { %s12205_s23 = smov 0   ;;  %s12207_s24 = smov 0  }
   0xa LB: > { %16732 = sst [smem:[#allocation5_spill]] %s12073_s1  ;;  %s12222_s2 = sadd.s32 4294967295, %s12085_s24   ;;  %s12085_s24 = sphi %s12207_s24, %s17106_s24   ;;  %s12081_s23 = sphi %s12205_s23, %s17108_s23   ;;  %s12077_s22 = sphi %s12203_s22, %s17110_s22   ;;  %s12073_s1 = sphi %s12201_s1, %s17109_s1  }
   0xb   : > { %16733 = sst [smem:[#allocation6_spill]] %s12081_s23  ;;  %s9094_s25 = sadd.s32 4294967294, %s12085_s24  }
   0xc   : > { %s12226_s3 = sadd.s32 1, %s12085_s24   ;;  %s470_s26 = sadd.s32 1, %s12081_s23 }
   0xd   : > { %16734 = sst [smem:[#allocation7_spill]] %s12226_s3  ;;  %s467_s27 = ssub.s32 %s12085_s24, %s12226_s3 }
   0xe   : > { %p480_p0 = scmp.ne.s32.totalorder %s12081_s23, %s12077_s22  ;;  %p468_p1 = scmp.eq.s32.totalorder %s467_s27, 0 }
   0xf   : > { %p481_p2 = scmp.eq.s32.totalorder %s12222_s2, 1  ;;  %p486_p3 = scmp.ne.s32.totalorder %s12077_s22, %s12073_s1 }
  0x10   : > { %p487_p4 = scmp.eq.s32.totalorder %s9094_s25, 1  ;;  %p9097_p7 = scmp.ge.s32.totalorder %s12085_s24, 1 }
  0x11   : > { %s12237_s28 = scalar_select %p468_p1, %s12081_s23, %s470_s26  }
  0x12   : > { %p12239_p5 = por %p481_p2, %p480_p0  ;;  %p12243_p6 = por %p487_p4, %p486_p3 }
  0x13   : > { %16735 = sst [smem:[#allocation8_spill]] %s12237_s28  ;;  %p574_p8 = scmp.lt.s32.totalorder %s12085_s24, 3 }
  0x15   : > { %p575_p9 = pnand %p9097_p7, %p574_p8 }
  0x17   : > { %578 = sbr.rel (%p575_p9) target bundleno = 4578 (0x11e2), region = 100 }
  0x1e   : > { %p636_p10 = scmp.lt.s32.totalorder %s12222_s2, 1  ;;  %vm1111_vm0 = vcmask 261120   ;;  %s16738_s27 = sld [smem:[#allocation91_spill]]  ;;  %v1140_v47 = vld [vmem:[%s16526_s6] sm:$0xff]  ;;  %v1141_v48 = vld [vmem:[%s16526_s6 + $0x8] sm:$0xff]  ;;  %v12087_v50 = vmov 0.0|0.0  }
  0x1f   : > { %s16739_s1 = sld [smem:[#allocation90_spill]]  ;;  %v10942_v49 = vpack.c.bf16 %v1141_v48, %v1140_v47  ;;  %10941 = vmatprep.subr.bf16.mxu0 %v12087_v50  ;;  %v1142_v51 = vld [vmem:[%s16526_s6 + $0x10] sm:$0xff]  ;;  %v1143_v52 = vld [vmem:[%s16526_s6 + $0x18] sm:$0xff]  ;;  %vm12088_vm1 = vmmov 0   ;;  %v12089_v54 = vmov 0.0   ;;  %v1224_v55 = vld [vmem:[%s16528_s8] sm:$0xff] }
  0x20   : > { %s637_s30 = scalar_select %p636_p10, %s12222_s2, 1  ;;  %v10945_v53 = vpack.c.bf16 %v1143_v52, %v1142_v51  ;;  %10074 = vmatprep.mubr.msk.f32.mxu0 %vm12088_vm1, %v12089_v54  ;;  %v1225_v56 = vld [vmem:[%s16528_s8 + $0x8] sm:$0xff]  ;;  %v1226_v57 = vld [vmem:[%s16528_s8 + $0x10] sm:$0xff]  ;;  %v1227_v59 = vld [vmem:[%s16528_s8 + $0x18] sm:$0xff]  ;;  %vm1943_vm2 = vcmask 64512  }
  0x21   : > { %10943 = vmatpush3.bf16.msra.mxu0 %v10942_v49  ;;  %v10947_v58 = vpack.c.bf16 %v1225_v56, %v1224_v55  ;;  %v10951_v60 = vpack.c.bf16 %v1227_v59, %v1226_v57  ;;  %v1228_v61 = vld [vmem:[%s16528_s8 + $0x20] sm:$0xff]  ;;  %v1229_v62 = vld [vmem:[%s16528_s8 + $0x28] sm:$0xff]  ;;  %s16740_s3 = sld [smem:[#allocation94_spill]]  ;;  %s16741_s25 = sld [smem:[#allocation92_spill]] }
  0x22   : > { %s9101_s0 = sshll.u32 %s637_s30, 3  ;;  %s9507_s21 = sshll.u32 %s637_s30, 8  ;;  %10944 = vmatprep.subr.bf16.mxu0 %v12087_v50  ;;  %v10955_v63 = vpack.c.bf16 %v1229_v62, %v1228_v61 }
  0x23   : > { %10948 = vmatprep.subr.bf16.mxu1 %v10947_v58  ;;  %s633_s30 = sand.u32 1, %s12077_s22  }
  0x24   : > { %s644_s28 = scalar_lea.vmem %s16738_s27, %s9101_s0  ;;  %10950 = vmatpush3.bf16.msra.mxu1 %v10947_v58  ;;  %v9105_v58 = vld [vmem:[%s16525_s5] ss:$0 sm:$0xff]  ;;  %s12090_s0 = smov 96  }
  0x25   : > { %s12257_s20 = scalar_lea.vmem %s16739_s1, %s9507_s21  ;;  %v677_v0 = vld [vmem:[%s644_s28] sm:$0xff]  ;;  %10946 = vmatpush3.bf16.msra.mxu0 %v10945_v53  ;;  %10952 = vmatprep.subr.bf16.mxu1 %v10951_v60  ;;  %s16742_s1 = sld [smem:[#allocation93_spill]] }
  0x26   : > { %v645_v1 = vld [vmem:[%s12257_s20] sm:$0xff]  ;;  %v1112_v2 = vsel %vm1111_vm0, %v677_v0, 0.0  ;;  %v646_v3 = vld [vmem:[%s12257_s20 + $0x8] sm:$0xff]  ;;  %v648_v4 = vld [vmem:[%s12257_s20 + $0x18] sm:$0xff]  ;;  %s12091_s21 = smov 64   ;;  %s9098_s26 = sshll.u32 %s633_s30, 8 }
  0x27   : > { %680 = vadd.xlane.f32.xlu1 %v645_v1  ;;  %1113 = vadd.xlane.f32.xlu0 %v1112_v2  ;;  %v650_v5 = vld [vmem:[%s12257_s20 + $0x28] sm:$0xff]  ;;  %v652_v6 = vld [vmem:[%s12257_s20 + $0x38] sm:$0xff]  ;;  %v12277_v21 = vld [vmem:[%s12257_s20 + $0x10] sm:$0xff]  ;;  %s9508_s27 = sshll.u32 %s12222_s2, 12  ;;  %s16479_s2 = scalar_lea.sflag [#allocation3], %s633_s30 }
  0x28   : > { %v654_v7 = vld [vmem:[%s12257_s20 + $0x48] sm:$0xff]  ;;  %v656_v8 = vld [vmem:[%s12257_s20 + $0x58] sm:$0xff]  ;;  %v12285_v26 = vld [vmem:[%s12257_s20 + $0x20] sm:$0xff]  ;;  %10954 = vmatpush3.bf16.msra.mxu1 %v10951_v60 }
  0x29   : > { %v12293_v31 = vld [vmem:[%s12257_s20 + $0x30] sm:$0xff]  ;;  %v12301_v37 = vld [vmem:[%s12257_s20 + $0x40] sm:$0xff]  ;;  %10956 = vmatprep.subr.bf16.mxu1 %v10955_v63 }
  0x2a   : > { %v12311_v43 = vld [vmem:[%s12257_s20 + $0x50] sm:$0xff]  ;;  %v9104_v53 = vld [vmem:[%s16740_s3] ss:$0 sm:$0xff]  ;;  %s17103_s3 = sld [smem:[#allocation95_spill]] }
  0x2b   : > { %682 = vadd.xlane.f32.xlu1 %v646_v3 }
  0x2c   : > { %10958 = vmatpush3.bf16.msra.mxu1 %v10955_v63 }
  0x2f   : > { %686 = vadd.xlane.f32.xlu1 %v648_v4 }
  0x30   : > { %s16470_s28 = scalar_lea.hbm %s17103_s3, %s9508_s27 }
  0x33   : > { %690 = vadd.xlane.f32.xlu1 %v650_v5 }
  0x37   : > { %694 = vadd.xlane.f32.xlu1 %v652_v6 }
  0x3b   : > { %698 = vadd.xlane.f32.xlu1 %v654_v7 }
  0x3f   : > { %702 = vadd.xlane.f32.xlu1 %v656_v8 }
  0xb4   : > { %v681_v9 = vpop.xlane.xlu1 %680  ;;  %v1114_v10 = vpop.xlane.xlu0 %1113 }
  0xb5   : > { %v1116_v11 = vmul.f32 0.03125, %v1114_v10  ;;  %v745_v34 = vmul.f32 0.0078125, %v681_v9  ;;  %v1236_v9 = vld [vmem:[%s16528_s8 + $0x60] sm:$0xff]  ;;  %v1237_v10 = vld [vmem:[%s16528_s8 + $0x68] sm:$0xff] }
  0xb7   : > { %v12267_v12 = vsub.f32 %v677_v0, %v1116_v11  ;;  %v12306_v40 = vsub.f32 %v645_v1, %v745_v34  ;;  %v1230_v0 = vld [vmem:[%s16528_s8 + $0x30] sm:$0xff]  ;;  %v1231_v1 = vld [vmem:[%s16528_s8 + $0x38] sm:$0xff]  ;;  %v12376_v11 = vld [vmem:[%s12257_s20 + $0x68] sm:$0xff] }
  0xb8   : > { %v683_v13 = vpop.xlane.xlu1 %682  ;;  %v10959_v2 = vpack.c.bf16 %v1231_v1, %v1230_v0  ;;  %v12450_v1 = vld [vmem:[%s12257_s20 + $0xf8] sm:$0xff] }
  0xb9   : > { %v746_v14 = vmul.f32 0.0078125, %v683_v13  ;;  %v1118_v15 = vmul.f32 %v12267_v12, %v12267_v12  ;;  %v809_v45 = vmul.f32 %v12306_v40, %v12306_v40  ;;  %v10971_v13 = vpack.c.bf16 %v1237_v10, %v1236_v9 }
  0xba   : > { %10960 = vmatprep.subr.bf16.mxu1 %v10959_v2 }
  0xbb   : > { %v12271_v16 = vsub.f32 %v646_v3, %v746_v14  ;;  %v1119_v17 = vsel %vm1111_vm0, %v1118_v15, 0.0  ;;  %v1232_v3 = vld [vmem:[%s16528_s8 + $0x40] sm:$0xff]  ;;  %10962 = vmatpush3.bf16.msra.mxu1 %v10959_v2  ;;  %v1238_v14 = vld [vmem:[%s16528_s8 + $0x70] sm:$0xff]  ;;  %v1239_v15 = vld [vmem:[%s16528_s8 + $0x78] sm:$0xff] }
  0xbc   : > { %v687_v18 = vpop.xlane.xlu1 %686  ;;  %1120 = vadd.xlane.f32.xlu0 %v1119_v17  ;;  %v12386_v17 = vld [vmem:[%s12257_s20 + $0x78] sm:$0xff] }
  0xbd   : > { %v748_v19 = vmul.f32 0.0078125, %v687_v18  ;;  %v810_v20 = vmul.f32 %v12271_v16, %v12271_v16  ;;  %v10975_v18 = vpack.c.bf16 %v1239_v15, %v1238_v14  ;;  %v12481_v14 = vld [vmem:[%s16742_s1] ss:$0 sm:$0xff] }
  0xbf   : > { %843 = vadd.xlane.f32.xlu1 %v810_v20  ;;  %v12279_v22 = vsub.f32 %v648_v4, %v748_v19  ;;  %v1233_v4 = vld [vmem:[%s16528_s8 + $0x48] sm:$0xff]  ;;  %v12394_v20 = vld [vmem:[%s12257_s20 + $0x98] sm:$0xff] }
  0xc0   : > { %v691_v23 = vpop.xlane.xlu1 %690  ;;  %684 = vadd.xlane.f32.xlu0 %v12277_v21  ;;  %v12390_v19 = vld [vmem:[%s12257_s20 + $0x88] sm:$0xff] }
  0xc1   : > { %v750_v24 = vmul.f32 0.0078125, %v691_v23  ;;  %v812_v25 = vmul.f32 %v12279_v22, %v12279_v22  ;;  %v12398_v23 = vld [vmem:[%s12257_s20 + $0xa8] sm:$0xff] }
  0xc3   : > { %847 = vadd.xlane.f32.xlu1 %v812_v25  ;;  %v12287_v27 = vsub.f32 %v650_v5, %v750_v24  ;;  %v10963_v5 = vpack.c.bf16 %v1233_v4, %v1232_v3  ;;  %v12402_v24 = vld [vmem:[%s12257_s20 + $0xb8] sm:$0xff]  ;;  %v12406_v25 = vld [vmem:[%s12257_s20 + $0xc8] sm:$0xff] }
  0xc4   : > { %v695_v28 = vpop.xlane.xlu1 %694  ;;  %688 = vadd.xlane.f32.xlu0 %v12285_v26 }
  0xc5   : > { %v752_v29 = vmul.f32 0.0078125, %v695_v28  ;;  %v814_v30 = vmul.f32 %v12287_v27, %v12287_v27  ;;  %10964 = vmatprep.subr.bf16.mxu1 %v10963_v5  ;;  %v12410_v28 = vld [vmem:[%s12257_s20 + $0xd8] sm:$0xff] }
  0xc6   : > { %10966 = vmatpush3.bf16.msra.mxu1 %v10963_v5  ;;  %v12456_v5 = vld [vmem:[%s12257_s20 + $0x60] sm:$0xff] }
  0xc7   : > { %851 = vadd.xlane.f32.xlu1 %v814_v30  ;;  %v12295_v32 = vsub.f32 %v652_v6, %v752_v29  ;;  %v1234_v6 = vld [vmem:[%s16528_s8 + $0x50] sm:$0xff]  ;;  %v12414_v29 = vld [vmem:[%s12257_s20 + $0xe8] sm:$0xff] }
  0xc8   : > { %v699_v33 = vpop.xlane.xlu1 %698  ;;  %692 = vadd.xlane.f32.xlu0 %v12293_v31 }
  0xc9   : > { %v754_v35 = vmul.f32 0.0078125, %v699_v33  ;;  %v816_v36 = vmul.f32 %v12295_v32, %v12295_v32 }
  0xcb   : > { %855 = vadd.xlane.f32.xlu1 %v816_v36  ;;  %v12303_v38 = vsub.f32 %v654_v7, %v754_v35  ;;  %v1235_v7 = vld [vmem:[%s16528_s8 + $0x58] sm:$0xff] }
  0xcc   : > { %v703_v39 = vpop.xlane.xlu1 %702  ;;  %696 = vadd.xlane.f32.xlu0 %v12301_v37 }
  0xcd   : > { %v756_v41 = vmul.f32 0.0078125, %v703_v39  ;;  %v818_v42 = vmul.f32 %v12303_v38, %v12303_v38 }
  0xcf   : > { %859 = vadd.xlane.f32.xlu1 %v818_v42  ;;  %v12313_v44 = vsub.f32 %v656_v8, %v756_v41  ;;  %v10967_v8 = vpack.c.bf16 %v1235_v7, %v1234_v6  ;;  %v12465_v7 = vld [vmem:[%s12257_s20 + $0x80] sm:$0xff] }
  0xd0   : > { %700 = vadd.xlane.f32.xlu0 %v12311_v43 }
  0xd1   : > { %v820_v46 = vmul.f32 %v12313_v44, %v12313_v44  ;;  %10968 = vmatprep.subr.bf16.mxu1 %v10967_v8 }
  0xd2   : > { %10970 = vmatpush3.bf16.msra.mxu1 %v10967_v8  ;;  %v12470_v8 = vld [vmem:[%s16741_s25] ss:$0 sm:$0xff]  ;;  %s12093_s25 = smov [#allocation2]  }
  0xd3   : > { %863 = vadd.xlane.f32.xlu1 %v820_v46  ;;  %10972 = vmatprep.subr.bf16.mxu1 %v10971_v13 }
  0xd4   : > { %841 = vadd.xlane.f32.xlu0 %v809_v45 }
  0xd6   : > { %10974 = vmatpush3.bf16.msra.mxu1 %v10971_v13 }
  0xd7   : > { %706 = vadd.xlane.f32.xlu1 %v12376_v11  ;;  %10976 = vmatprep.subr.bf16.mxu1 %v10975_v18 }
  0xda   : > { %10978 = vmatpush3.bf16.msra.mxu1 %v10975_v18 }
  0xdb   : > { %710 = vadd.xlane.f32.xlu1 %v12386_v17 }
  0xdf   : > { %714 = vadd.xlane.f32.xlu1 %v12390_v19 }
  0xe3   : > { %718 = vadd.xlane.f32.xlu1 %v12394_v20 }
  0xe7   : > { %722 = vadd.xlane.f32.xlu1 %v12398_v23 }
  0xeb   : > { %726 = vadd.xlane.f32.xlu1 %v12402_v24 }
  0xef   : > { %730 = vadd.xlane.f32.xlu1 %v12406_v25 }
  0xf3   : > { %734 = vadd.xlane.f32.xlu1 %v12410_v28 }
  0xf7   : > { %738 = vadd.xlane.f32.xlu1 %v12414_v29 }
  0xfb   : > { %742 = vadd.xlane.f32.xlu1 %v12450_v1 }
 0x149   : > { %v1121_v30 = vpop.xlane.xlu0 %1120 }
 0x14a   : > { %v1122_v33 = vmul.f32 0.03125, %v1121_v30 }
 0x14c   : > { %v1123_v34 = vadd.f32 1e-05, %v1122_v33  ;;  %v844_v47 = vpop.xlane.xlu1 %843  ;;  %v12498_v33 = vld [vmem:[%s12257_s20 + $0xb0] sm:$0xff] }
 0x14d   : > { %v685_v35 = vpop.xlane.xlu0 %684  ;;  %v906_v51 = vmul.f32 0.0078125, %v844_v47  ;;  %v1472_v47 = vld [vmem:[%s16530_s10] sm:$0xff] }
 0x14e   : > { %11252 = vrsqrt.f32 %v1123_v34  ;;  %v747_v36 = vmul.f32 0.0078125, %v685_v35  ;;  %v12502_v34 = vld [vmem:[%s12257_s20 + $0xc0] sm:$0xff]  ;;  %v12506_v35 = vld [vmem:[%s12257_s20 + $0xd0] sm:$0xff] }
 0x14f   : > { %v938_v60 = vadd.f32 1e-05, %v906_v51  ;;  %v1479_v51 = vld [vmem:[%s16530_s10 + $0x38] sm:$0xff] }
 0x150   : > { %v12418_v39 = vsub.f32 %v12277_v21, %v747_v36  ;;  %v12510_v36 = vld [vmem:[%s12257_s20 + $0xe0] sm:$0xff] }
 0x151   : > { %v689_v41 = vpop.xlane.xlu0 %688  ;;  %11254 = vrsqrt.f32 %v938_v60  ;;  %v1480_v60 = vld [vmem:[%s16530_s10 + $0x40] sm:$0xff] }
 0x152   : > { %v749_v42 = vmul.f32 0.0078125, %v689_v41  ;;  %v811_v45 = vmul.f32 %v12418_v39, %v12418_v39  ;;  %v12513_v41 = vld [vmem:[%s12257_s20 + $0xf0] sm:$0xff] }
 0x154   : > { %845 = vadd.xlane.f32.xlu0 %v811_v45  ;;  %v12423_v46 = vsub.f32 %v12285_v26, %v749_v42  ;;  %v1473_v42 = vld [vmem:[%s16530_s10 + $0x8] sm:$0xff]  ;;  %v1475_v45 = vld [vmem:[%s16530_s10 + $0x18] sm:$0xff] }
 0x155   : > { %v693_v48 = vpop.xlane.xlu0 %692 }
 0x156   : > { %v751_v49 = vmul.f32 0.0078125, %v693_v48  ;;  %v813_v50 = vmul.f32 %v12423_v46, %v12423_v46  ;;  %v10979_v48 = vpack.c.bf16 %v1475_v45, %v1473_v42  ;;  %v1495_v42 = vld [vmem:[%s16530_s10 + $0xb8] sm:$0xff] }
 0x158   : > { %v11253_v52 = vpop.eup %11252  ;;  %849 = vadd.xlane.f32.xlu0 %v813_v50  ;;  %v12428_v21 = vsub.f32 %v12293_v31, %v751_v49  ;;  %v1474_v49 = vld [vmem:[%s16530_s10 + $0x10] sm:$0xff]  ;;  %v1477_v50 = vld [vmem:[%s16530_s10 + $0x28] sm:$0xff]  ;;  %10980 = vmatprep.subr.bf16.mxu0 %v10979_v48 }
 0x159   : > { %v697_v55 = vpop.xlane.xlu0 %696  ;;  %v1125_v26 = vmul.f32 %v11253_v52, %v12267_v12  ;;  %v10981_v52 = vpack.c.bf16 %v1474_v49, %v1472_v47  ;;  %v12583_v47 = vpop.xlane.xlu1 %847  ;;  %v1492_v49 = vld [vmem:[%s16530_s10 + $0xa0] sm:$0xff] }
 0x15a   : > { %v753_v56 = vmul.f32 0.0078125, %v697_v55  ;;  %v815_v57 = vmul.f32 %v12428_v21, %v12428_v21  ;;  %v1476_v55 = vld [vmem:[%s16530_s10 + $0x20] sm:$0xff] }
 0x15b   : > { %v1132_v59 = vmul.f32 %v9104_v53, %v1125_v26  ;;  %v10983_v53 = vpack.c.bf16 %v1479_v51, %v1477_v50  ;;  %v1478_v26 = vld [vmem:[%s16530_s10 + $0x30] sm:$0xff]  ;;  %v1497_v51 = vld [vmem:[%s16530_s10 + $0xc8] sm:$0xff] }
 0x15c   : > { %853 = vadd.xlane.f32.xlu0 %v815_v57  ;;  %v12440_v31 = vsub.f32 %v12301_v37, %v753_v56  ;;  %v1481_v56 = vld [vmem:[%s16530_s10 + $0x48] sm:$0xff]  ;;  %v1483_v57 = vld [vmem:[%s16530_s10 + $0x58] sm:$0xff]  ;;  %v1494_v50 = vld [vmem:[%s16530_s10 + $0xb0] sm:$0xff] }
 0x15d   : > { %v701_v61 = vpop.xlane.xlu0 %700  ;;  %v1139_v62 = vadd.f32 %v9105_v58, %v1132_v59  ;;  %v10985_v58 = vpack.c.bf16 %v1478_v26, %v1476_v55  ;;  %v10987_v59 = vpack.c.bf16 %v1483_v57, %v1481_v56  ;;  %v1496_v26 = vld [vmem:[%s16530_s10 + $0xc0] sm:$0xff]  ;;  %v1498_v56 = vld [vmem:[%s16530_s10 + $0xd0] sm:$0xff]  ;;  %v1501_v57 = vld [vmem:[%s16530_s10 + $0xe8] sm:$0xff] }
 0x15e   : > { %v755_v63 = vmul.f32 0.0078125, %v701_v61  ;;  %v817_v12 = vmul.f32 %v12440_v31, %v12440_v31  ;;  %v1482_v61 = vld [vmem:[%s16530_s10 + $0x50] sm:$0xff] }
 0x15f   : > { %10075 = vmatmul.mubr.msk.f32.vlgmr.msra.gmra.mrb[0].mxu0 %vm1111_vm0, %v1139_v62  ;;  %v1485_v62 = vld [vmem:[%s16530_s10 + $0x68] sm:$0xff] }
 0x160   : > { %857 = vadd.xlane.f32.xlu0 %v817_v12  ;;  %v12446_v0 = vsub.f32 %v12311_v43, %v755_v63  ;;  %1580 = vmatprep.mubr.f32.mxu0 %v12089_v54  ;;  %v11255_v43 = vpop.eup %11254  ;;  %v12460_v54 = vld [vmem:[%s12257_s20 + $0x70] sm:$0xff]  ;;  %v1487_v63 = vld [vmem:[%s16530_s10 + $0x78] sm:$0xff]  ;;  %v10989_v12 = vpack.c.bf16 %v1482_v61, %v1480_v60  ;;  %v11005_v60 = vpack.c.bf16 %v1498_v56, %v1496_v26 }
 0x161   : > { %v842_v37 = vpop.xlane.xlu0 %841  ;;  %v1002_v6 = vmul.f32 %v11255_v43, %v12271_v16  ;;  %v12476_v16 = vld [vmem:[%s12257_s20 + $0x90] sm:$0xff]  ;;  %10982 = vmatpush1.bf16.msra.mxu0 %v10981_v52  ;;  %v1491_v43 = vld [vmem:[%s16530_s10 + $0x98] sm:$0xff] }
 0x162   : > { %v819_v2 = vmul.f32 %v12446_v0, %v12446_v0  ;;  %v905_v3 = vmul.f32 0.0078125, %v842_v37  ;;  %10984 = vmatprep.subr.bf16.mxu0 %v10983_v53  ;;  %v10991_v37 = vpack.c.bf16 %v1487_v63, %v1485_v62  ;;  %v1499_v52 = vld [vmem:[%s16530_s10 + $0xd8] sm:$0xff]  ;;  %v11001_v53 = vpack.c.bf16 %v1494_v50, %v1492_v49 }
 0x163   : > { %v1040_v10 = vmul.f32 %v12470_v8, %v1002_v6  ;;  %v11003_v55 = vpack.c.bf16 %v1499_v52, %v1497_v51 }
 0x164   : > { %861 = vadd.xlane.f32.xlu0 %v819_v2  ;;  %v937_v4 = vadd.f32 1e-05, %v905_v3  ;;  %v1484_v2 = vld [vmem:[%s16530_s10 + $0x60] sm:$0xff]  ;;  %v1486_v3 = vld [vmem:[%s16530_s10 + $0x70] sm:$0xff] }
 0x165   : > { %v12485_v18 = vadd.f32 %v12481_v14, %v1040_v10  ;;  %10986 = vmatpush1.bf16.msra.mxu0 %v10985_v58  ;;  %v10993_v6 = vpack.c.bf16 %v1486_v3, %v1484_v2  ;;  %v1488_v10 = vld [vmem:[%s16530_s10 + $0x80] sm:$0xff]  ;;  %v1503_v58 = vld [vmem:[%s16530_s10 + $0xf8] sm:$0xff] }
 0x166   : > { %11256 = vrsqrt.f32 %v937_v4  ;;  %10988 = vmatprep.subr.bf16.mxu0 %v10987_v59  ;;  %v1489_v4 = vld [vmem:[%s16530_s10 + $0x88] sm:$0xff]  ;;  %v852_v59 = vpop.xlane.xlu1 %851  ;;  %v11007_v61 = vpack.c.bf16 %v1503_v58, %v1501_v57 }
 0x167   : > { %16743 = vst [vmem:[#allocation9_spill] sm:$0xff] %v12485_v18 }
 0x168   : > { %704 = vadd.xlane.f32.xlu0 %v12456_v5 }
 0x169   : > { %10990 = vmatpush1.bf16.msra.mxu0 %v10989_v12  ;;  %v1500_v12 = vld [vmem:[%s16530_s10 + $0xe0] sm:$0xff] }
 0x16a   : > { %10992 = vmatprep.subr.bf16.mxu0 %v10991_v37  ;;  %v856_v62 = vpop.xlane.xlu1 %855  ;;  %v1502_v37 = vld [vmem:[%s16530_s10 + $0xf0] sm:$0xff] }
 0x16b   : > { %v11009_v2 = vpack.c.bf16 %v1502_v37, %v1500_v12 }
 0x16c   : > { %708 = vadd.xlane.f32.xlu0 %v12460_v54 }
 0x16d   : > { %10994 = vmatpush1.bf16.msra.mxu0 %v10993_v6 }
 0x16e   : > { %v860_v63 = vpop.xlane.xlu1 %859 }
 0x170   : > { %v11257_v9 = vpop.eup %11256  ;;  %712 = vadd.xlane.f32.xlu0 %v12465_v7 }
 0x171   : > { %v1001_v13 = vmul.f32 %v11257_v9, %v12306_v40  ;;  %v12492_v40 = vld [vmem:[%s12257_s20 + $0xa0] sm:$0xff]  ;;  %v10995_v9 = vpack.c.bf16 %v1491_v43, %v1489_v4  ;;  %s16374_s20 = scalar_lea.vmem [#allocation2], %s9098_s26  ;;  %s12027_s26 = sshll.u32 %s12093_s25, 4  ;;  %s12028_s26 = int_to_ptr.vmem [resolvable:$false] %s12027_s26 }
 0x172   : > { %v12615_v3 = vpop.xlane.xlu1 %863  ;;  %s9020_s1 = sshll.u32 %s16374_s20, 4  ;;  %s12029_s27 = scalar_lea.vmem %s12028_s26, 8192  ;;  %s16472_s1 = int_to_ptr.vmem [resolvable:$true] %s9020_s1 }
 0x173   : > { %v1039_v15 = vmul.f32 %v12470_v8, %v1001_v13  ;;  %v1490_v13 = vld [vmem:[%s16530_s10 + $0x90] sm:$0xff]  ;;  %10996 = vmatprep.subr.bf16.mxu0 %v10995_v9  ;;  %p12030_p0 = scmp.lt.s32.totalorder %s16472_s1, %s12028_s26 }
 0x174   : > { %716 = vadd.xlane.f32.xlu0 %v12476_v16  ;;  %v10997_v45 = vpack.c.bf16 %v1490_v13, %v1488_v10 }
 0x175   : > { %v12489_v30 = vadd.f32 %v12481_v14, %v1039_v15  ;;  %v1493_v15 = vld [vmem:[%s16530_s10 + $0xa8] sm:$0xff] }
 0x176   : > { %v10999_v48 = vpack.c.bf16 %v1495_v42, %v1493_v15  ;;  %10998 = vmatpush1.bf16.msra.mxu0 %v10997_v45  ;;  %v707_v4 = vpop.xlane.xlu1 %706 }
 0x177   : > { %16744 = vst [vmem:[#allocation10_spill] sm:$0xff] %v12489_v30  ;;  %10109 = vmatprep.mubr.f32.mxu1 %v12489_v30  ;;  %v758_v43 = vmul.f32 0.0078125, %v707_v4 }
 0x178   : > { %10110 = vmatmul.mubr.f32.vlgmr.msra.gmra.mrb[0].mxu1 %v12485_v18  ;;  %720 = vadd.xlane.f32.xlu0 %v12492_v40 }
 0x179   : > { %11000 = vmatprep.subr.bf16.mxu0 %v10999_v48  ;;  %v12618_v6 = vsub.f32 %v12376_v11, %v758_v43 }
 0x17a   : > { %11002 = vmatpush1.bf16.msra.mxu0 %v11001_v53  ;;  %v711_v9 = vpop.xlane.xlu1 %710 }
 0x17b   : > { %11004 = vmatprep.subr.bf16.mxu0 %v11003_v55  ;;  %v760_v10 = vmul.f32 0.0078125, %v711_v9  ;;  %v822_v13 = vmul.f32 %v12618_v6, %v12618_v6 }
 0x17c   : > { %724 = vadd.xlane.f32.xlu0 %v12498_v33 }
 0x17d   : > { %867 = vadd.xlane.f32.xlu1 %v822_v13  ;;  %v12623_v15 = vsub.f32 %v12386_v17, %v760_v10  ;;  %v908_v10 = vmul.f32 0.0078125, %v12583_v47 }
 0x17e   : > { %11006 = vmatpush1.bf16.msra.mxu0 %v11005_v60  ;;  %v715_v42 = vpop.xlane.xlu1 %714 }
 0x17f   : > { %11008 = vmatprep.subr.bf16.mxu0 %v11007_v61  ;;  %v824_v45 = vmul.f32 %v12623_v15, %v12623_v15  ;;  %v762_v48 = vmul.f32 0.0078125, %v715_v42  ;;  %v940_v42 = vadd.f32 1e-05, %v908_v10 }
 0x180   : > { %728 = vadd.xlane.f32.xlu0 %v12502_v34 }
 0x181   : > { %871 = vadd.xlane.f32.xlu1 %v824_v45  ;;  %v12628_v49 = vsub.f32 %v12390_v19, %v762_v48  ;;  %v910_v45 = vmul.f32 0.0078125, %v852_v59  ;;  %11258 = vrsqrt.f32 %v940_v42 }
 0x182   : > { %11010 = vmatpush1.bf16.msra.mxu0 %v11009_v2  ;;  %v719_v11 = vpop.xlane.xlu1 %718 }
 0x183   : > { %v764_v50 = vmul.f32 0.0078125, %v719_v11  ;;  %v826_v51 = vmul.f32 %v12628_v49, %v12628_v49  ;;  %v942_v48 = vadd.f32 1e-05, %v910_v45 }
 0x184   : > { %732 = vadd.xlane.f32.xlu0 %v12506_v35 }
 0x185   : > { %875 = vadd.xlane.f32.xlu1 %v826_v51  ;;  %v12633_v52 = vsub.f32 %v12394_v20, %v764_v50  ;;  %11260 = vrsqrt.f32 %v942_v48 }
 0x186   : > { %v723_v17 = vpop.xlane.xlu1 %722 }
 0x187   : > { %v766_v53 = vmul.f32 0.0078125, %v723_v17  ;;  %v828_v55 = vmul.f32 %v12633_v52, %v12633_v52 }
 0x188   : > { %736 = vadd.xlane.f32.xlu0 %v12510_v36 }
 0x189   : > { %879 = vadd.xlane.f32.xlu1 %v828_v55  ;;  %v12638_v26 = vsub.f32 %v12398_v23, %v766_v53  ;;  %v914_v53 = vmul.f32 0.0078125, %v860_v63 }
 0x18a   : > { %v727_v19 = vpop.xlane.xlu1 %726 }
 0x18b   : > { %v768_v56 = vmul.f32 0.0078125, %v727_v19  ;;  %v830_v57 = vmul.f32 %v12638_v26, %v12638_v26  ;;  %v946_v19 = vadd.f32 1e-05, %v914_v53 }
 0x18c   : > { %740 = vadd.xlane.f32.xlu0 %v12513_v41 }
 0x18d   : > { %883 = vadd.xlane.f32.xlu1 %v830_v57  ;;  %v12643_v58 = vsub.f32 %v12402_v24, %v768_v56  ;;  %v916_v56 = vmul.f32 0.0078125, %v12615_v3 }
 0x18e   : > { %v731_v20 = vpop.xlane.xlu1 %730 }
 0x18f   : > { %v770_v60 = vmul.f32 0.0078125, %v731_v20  ;;  %v832_v61 = vmul.f32 %v12643_v58, %v12643_v58  ;;  %v11259_v20 = vpop.eup %11258 }
 0x191   : > { %887 = vadd.xlane.f32.xlu1 %v832_v61  ;;  %v12648_v12 = vsub.f32 %v12406_v25, %v770_v60  ;;  %v948_v60 = vadd.f32 1e-05, %v916_v56 }
 0x192   : > { %v735_v23 = vpop.xlane.xlu1 %734 }
 0x193   : > { %v772_v37 = vmul.f32 0.0078125, %v735_v23  ;;  %v834_v2 = vmul.f32 %v12648_v12, %v12648_v12  ;;  %v1004_v23 = vmul.f32 %v11259_v20, %v12279_v22 }
 0x195   : > { %891 = vadd.xlane.f32.xlu1 %v834_v2  ;;  %v12653_v4 = vsub.f32 %v12410_v28, %v772_v37  ;;  %v912_v28 = vmul.f32 0.0078125, %v856_v62  ;;  %v11261_v37 = vpop.eup %11260 }
 0x196   : > { %v739_v24 = vpop.xlane.xlu1 %738 }
 0x197   : > { %v774_v43 = vmul.f32 0.0078125, %v739_v24  ;;  %v836_v9 = vmul.f32 %v12653_v4, %v12653_v4  ;;  %v944_v51 = vadd.f32 1e-05, %v912_v28  ;;  %v1006_v28 = vmul.f32 %v11261_v37, %v12287_v27 }
 0x199   : > { %895 = vadd.xlane.f32.xlu1 %v836_v9  ;;  %v12659_v25 = vsub.f32 %v12414_v29, %v774_v43 }
 0x19a   : > { %v743_v2 = vpop.xlane.xlu1 %742 }
 0x19b   : > { %v838_v13 = vmul.f32 %v12659_v25, %v12659_v25  ;;  %v776_v9 = vmul.f32 0.0078125, %v743_v2 }
 0x19d   : > { %899 = vadd.xlane.f32.xlu1 %v838_v13  ;;  %v1042_v13 = vmul.f32 %v12470_v8, %v1004_v23  ;;  %v12669_v22 = vsub.f32 %v12450_v1, %v776_v9  ;;  %v1044_v1 = vmul.f32 %v12470_v8, %v1006_v28 }
 0x19f   : > { %v12680_v27 = vadd.f32 %v12481_v14, %v1042_v13 }
 0x1a1   : > { %16746 = vst [vmem:[#allocation12_spill] sm:$0xff] %v12680_v27 }
 0x1e1   : > { %v846_v11 = vpop.xlane.xlu0 %845 }
 0x1e2   : > { %v907_v50 = vmul.f32 0.0078125, %v846_v11 }
 0x1e4   : > { %v939_v17 = vadd.f32 1e-05, %v907_v50 }
 0x1e5   : > { %v850_v47 = vpop.xlane.xlu0 %849 }
 0x1e6   : > { %11262 = vrsqrt.f32 %v939_v17  ;;  %v909_v55 = vmul.f32 0.0078125, %v850_v47 }
 0x1e7   : > { %11264 = vrsqrt.f32 %v944_v51  ;;  %v840_v51 = vmul.f32 %v12669_v22, %v12669_v22 }
 0x1e8   : > { %v941_v29 = vadd.f32 1e-05, %v909_v55 }
 0x1e9   : > { %v854_v57 = vpop.xlane.xlu0 %853  ;;  %903 = vadd.xlane.f32.xlu1 %v840_v51 }
 0x1ea   : > { %11266 = vrsqrt.f32 %v941_v29  ;;  %v911_v59 = vmul.f32 0.0078125, %v854_v57 }
 0x1eb   : > { %11268 = vrsqrt.f32 %v946_v19 }
 0x1ec   : > { %v943_v62 = vadd.f32 1e-05, %v911_v59 }
 0x1ed   : > { %v858_v61 = vpop.xlane.xlu0 %857 }
 0x1ee   : > { %11270 = vrsqrt.f32 %v943_v62  ;;  %v913_v63 = vmul.f32 0.0078125, %v858_v61  ;;  %v12695_v62 = vadd.f32 %v12481_v14, %v1044_v1 }
 0x1ef   : > { %11272 = vrsqrt.f32 %v948_v60 }
 0x1f0   : > { %v11263_v24 = vpop.eup %11262  ;;  %v945_v43 = vadd.f32 1e-05, %v913_v63  ;;  %16748 = vst [vmem:[#allocation14_spill] sm:$0xff] %v12695_v62 }
 0x1f1   : > { %v862_v10 = vpop.xlane.xlu0 %861  ;;  %v1003_v3 = vmul.f32 %v11263_v24, %v12418_v39  ;;  %v11265_v42 = vpop.eup %11264 }
 0x1f2   : > { %11274 = vrsqrt.f32 %v945_v43  ;;  %v915_v45 = vmul.f32 0.0078125, %v862_v10  ;;  %v1008_v53 = vmul.f32 %v11265_v42, %v12295_v32 }
 0x1f3   : > { %v1041_v48 = vmul.f32 %v12470_v8, %v1003_v3 }
 0x1f4   : > { %v11267_v11 = vpop.eup %11266  ;;  %v947_v50 = vadd.f32 1e-05, %v915_v45  ;;  %v1046_v20 = vmul.f32 %v12470_v8, %v1008_v53 }
 0x1f5   : > { %v12675_v17 = vadd.f32 %v12481_v14, %v1041_v48  ;;  %v1005_v39 = vmul.f32 %v11267_v11, %v12423_v46  ;;  %v705_v47 = vpop.xlane.xlu0 %704  ;;  %v11269_v29 = vpop.eup %11268 }
 0x1f6   : > { %11276 = vrsqrt.f32 %v947_v50  ;;  %v757_v55 = vmul.f32 0.0078125, %v705_v47  ;;  %v1010_v60 = vmul.f32 %v11269_v29, %v12303_v38  ;;  %v12710_v38 = vadd.f32 %v12481_v14, %v1046_v20 }
 0x1f7   : > { %16745 = vst [vmem:[#allocation11_spill] sm:$0xff] %v12675_v17  ;;  %10112 = vmatprep.mubr.f32.mxu1 %v12675_v17  ;;  %v1043_v19 = vmul.f32 %v12470_v8, %v1005_v39 }
 0x1f8   : > { %v11271_v56 = vpop.eup %11270  ;;  %10113 = vmatmul.mubr.f32.gmra.mrb[2].mxu1 %v12680_v27  ;;  %v12687_v46 = vsub.f32 %v12456_v5, %v757_v55  ;;  %16750 = vst [vmem:[#allocation16_spill] sm:$0xff] %v12710_v38  ;;  %v1048_v9 = vmul.f32 %v12470_v8, %v1010_v60 }
 0x1f9   : > { %v12690_v32 = vadd.f32 %v12481_v14, %v1043_v19  ;;  %v1007_v57 = vmul.f32 %v11271_v56, %v12428_v21  ;;  %v709_v59 = vpop.xlane.xlu0 %708  ;;  %v11273_v63 = vpop.eup %11272 }
 0x1fa   : > { %v759_v61 = vmul.f32 0.0078125, %v709_v59  ;;  %v821_v23 = vmul.f32 %v12687_v46, %v12687_v46  ;;  %v1012_v10 = vmul.f32 %v11273_v63, %v12313_v44  ;;  %v12728_v48 = vadd.f32 %v12481_v14, %v1048_v9 }
 0x1fb   : > { %16747 = vst [vmem:[#allocation13_spill] sm:$0xff] %v12690_v32  ;;  %10115 = vmatprep.mubr.f32.mxu1 %v12690_v32  ;;  %v1045_v5 = vmul.f32 %v12470_v8, %v1007_v57 }
 0x1fc   : > { %v11275_v37 = vpop.eup %11274  ;;  %10116 = vmatmul.mubr.f32.gmra.mrb[4].mxu1 %v12695_v62  ;;  %865 = vadd.xlane.f32.xlu0 %v821_v23  ;;  %v12704_v21 = vsub.f32 %v12460_v54, %v759_v61  ;;  %16752 = vst [vmem:[#allocation18_spill] sm:$0xff] %v12728_v48  ;;  %v1050_v11 = vmul.f32 %v12470_v8, %v1012_v10 }
 0x1fd   : > { %v12707_v2 = vadd.f32 %v12481_v14, %v1045_v5  ;;  %v1009_v24 = vmul.f32 %v11275_v37, %v12440_v31  ;;  %v713_v43 = vpop.xlane.xlu0 %712 }
 0x1fe   : > { %v823_v3 = vmul.f32 %v12704_v21, %v12704_v21  ;;  %v761_v13 = vmul.f32 0.0078125, %v713_v43  ;;  %v12743_v47 = vadd.f32 %v12481_v14, %v1050_v11 }
 0x1ff   : > { %16749 = vst [vmem:[#allocation15_spill] sm:$0xff] %v12707_v2  ;;  %10118 = vmatprep.mubr.f32.mxu1 %v12707_v2  ;;  %v1047_v54 = vmul.f32 %v12470_v8, %v1009_v24 }
 0x200   : > { %v11277_v42 = vpop.eup %11276  ;;  %10119 = vmatmul.mubr.f32.gmra.mrb[6].mxu1 %v12710_v38  ;;  %869 = vadd.xlane.f32.xlu0 %v823_v3  ;;  %v12721_v45 = vsub.f32 %v12465_v7, %v761_v13  ;;  %16754 = vst [vmem:[#allocation20_spill] sm:$0xff] %v12743_v47  ;;  %v9106_v13 = vld [vmem:[%s16527_s7] ss:$0 sm:$0xff] }
 0x201   : > { %v12724_v31 = vadd.f32 %v12481_v14, %v1047_v54  ;;  %v1011_v44 = vmul.f32 %v11277_v42, %v12446_v0  ;;  %v717_v28 = vpop.xlane.xlu0 %716 }
 0x202   : > { %v763_v50 = vmul.f32 0.0078125, %v717_v28  ;;  %v825_v51 = vmul.f32 %v12721_v45, %v12721_v45 }
 0x203   : > { %16751 = vst [vmem:[#allocation17_spill] sm:$0xff] %v12724_v31  ;;  %10121 = vmatprep.mubr.f32.mxu1 %v12724_v31  ;;  %v1049_v7 = vmul.f32 %v12470_v8, %v1011_v44  ;;  %v12785_v44 = vld [vmem:[%s16529_s9] ss:$0 sm:$0xff] }
 0x204   : > { %10122 = vmatmul.mubr.f32.gmra.mrb[8].mxu1 %v12728_v48  ;;  %873 = vadd.xlane.f32.xlu0 %v825_v51  ;;  %v12737_v39 = vsub.f32 %v12476_v16, %v763_v50 }
 0x205   : > { %v12740_v0 = vadd.f32 %v12481_v14, %v1049_v7  ;;  %v721_v53 = vpop.xlane.xlu0 %720 }
 0x206   : > { %v765_v1 = vmul.f32 0.0078125, %v721_v53  ;;  %v827_v55 = vmul.f32 %v12737_v39, %v12737_v39 }
 0x207   : > { %16753 = vst [vmem:[#allocation19_spill] sm:$0xff] %v12740_v0  ;;  %10124 = vmatprep.mubr.f32.mxu1 %v12740_v0 }
 0x208   : > { %10125 = vmatmul.mubr.f32.gmra.mrb[10].mxu1 %v12743_v47  ;;  %877 = vadd.xlane.f32.xlu0 %v827_v55  ;;  %v12750_v29 = vsub.f32 %v12492_v40, %v765_v1 }
 0x209   : > { %v725_v16 = vpop.xlane.xlu0 %724 }
 0x20a   : > { %v767_v19 = vmul.f32 0.0078125, %v725_v16  ;;  %v829_v56 = vmul.f32 %v12750_v29, %v12750_v29  ;;  %v868_v51 = vpop.xlane.xlu1 %867 }
 0x20b   : > { %v918_v55 = vmul.f32 0.0078125, %v868_v51 }
 0x20c   : > { %881 = vadd.xlane.f32.xlu0 %v829_v56  ;;  %v12755_v57 = vsub.f32 %v12498_v33, %v767_v19 }
 0x20d   : > { %v729_v20 = vpop.xlane.xlu0 %728  ;;  %v950_v19 = vadd.f32 1e-05, %v918_v55 }
 0x20e   : > { %v769_v59 = vmul.f32 0.0078125, %v729_v20  ;;  %v831_v60 = vmul.f32 %v12755_v57, %v12755_v57  ;;  %v872_v7 = vpop.xlane.xlu1 %871 }
 0x20f   : > { %v920_v56 = vmul.f32 0.0078125, %v872_v7  ;;  %11278 = vrsqrt.f32 %v950_v19 }
 0x210   : > { %885 = vadd.xlane.f32.xlu0 %v831_v60  ;;  %v12760_v61 = vsub.f32 %v12502_v34, %v769_v59 }
 0x211   : > { %v733_v40 = vpop.xlane.xlu0 %732  ;;  %v952_v20 = vadd.f32 1e-05, %v920_v56 }
 0x212   : > { %v771_v23 = vmul.f32 0.0078125, %v733_v40  ;;  %v833_v63 = vmul.f32 %v12760_v61, %v12760_v61  ;;  %v876_v53 = vpop.xlane.xlu1 %875 }
 0x213   : > { %v922_v59 = vmul.f32 0.0078125, %v876_v53  ;;  %11280 = vrsqrt.f32 %v952_v20 }
 0x214   : > { %889 = vadd.xlane.f32.xlu0 %v833_v63  ;;  %v12765_v5 = vsub.f32 %v12506_v35, %v771_v23 }
 0x215   : > { %v737_v33 = vpop.xlane.xlu0 %736  ;;  %v954_v63 = vadd.f32 1e-05, %v922_v59 }
 0x216   : > { %v773_v37 = vmul.f32 0.0078125, %v737_v33  ;;  %v835_v24 = vmul.f32 %v12765_v5, %v12765_v5  ;;  %v880_v1 = vpop.xlane.xlu1 %879 }
 0x217   : > { %v924_v33 = vmul.f32 0.0078125, %v880_v1 }
 0x218   : > { %893 = vadd.xlane.f32.xlu0 %v835_v24  ;;  %v12770_v43 = vsub.f32 %v12510_v36, %v773_v37 }
 0x219   : > { %v741_v34 = vpop.xlane.xlu0 %740 }
 0x21a   : > { %v775_v9 = vmul.f32 0.0078125, %v741_v34  ;;  %v837_v10 = vmul.f32 %v12770_v43, %v12770_v43  ;;  %v884_v16 = vpop.xlane.xlu1 %883 }
 0x21c   : > { %897 = vadd.xlane.f32.xlu0 %v837_v10  ;;  %v12775_v3 = vsub.f32 %v12513_v41, %v775_v9  ;;  %v956_v10 = vadd.f32 1e-05, %v924_v33 }
 0x21e   : > { %v839_v35 = vmul.f32 %v12775_v3, %v12775_v3  ;;  %v888_v60 = vpop.xlane.xlu1 %887 }
 0x220   : > { %901 = vadd.xlane.f32.xlu0 %v839_v35  ;;  %v926_v35 = vmul.f32 0.0078125, %v884_v16 }
 0x222   : > { %v892_v9 = vpop.xlane.xlu1 %891 }
 0x223   : > { %v930_v20 = vmul.f32 0.0078125, %v892_v9 }
 0x226   : > { %v896_v53 = vpop.xlane.xlu1 %895 }
 0x232   : > { %v1220_v54 = vpop.f32.mrb[0].mxu0 }
 0x233   : > { %v1221_v36 = vadd.f32 %v9106_v13, %v1220_v54  ;;  %v10076_v42 = vpop.f32.mrb[1].mxu0  ;;  %v11279_v54 = vpop.eup %11278 }
 0x234   : > { %v1014_v7 = vmul.f32 %v11279_v54, %v12618_v6  ;;  %v11281_v1 = vpop.eup %11280 }
 0x235   : > { %1581 = vmatmul.mubr.f32.vlgmr.msra.gmra.mrb[2].mxu0 %v1221_v36 }
 0x24b   : > { %v12787_v28 = vpop.f32.mrb[0].mxu1 }
 0x24c   : > { %v1313_v41 = vpop.f32.mrb[1].mxu1 }
 0x24d   : > { %v1314_v11 = vadd.f32 %v12785_v44, %v1313_v41  ;;  %v958_v41 = vadd.f32 1e-05, %v926_v35 }
 0x24f   : > { %v12790_v50 = vmul.f32 0.17677669, %v1314_v11  ;;  %v928_v11 = vmul.f32 0.0078125, %v888_v60 }
 0x251   : > { %16755 = vst [vmem:[#allocation21_spill] sm:$0xff] %v12790_v50  ;;  %10159 = vmatprep.mubr.msk.f32.mxu0 %vm1111_vm0, %v12790_v50  ;;  %v960_v56 = vadd.f32 1e-05, %v928_v11 }
 0x289   : > { %v866_v40 = vpop.xlane.xlu0 %865 }
 0x28a   : > { %v917_v23 = vmul.f32 0.0078125, %v866_v40  ;;  %v1052_v40 = vmul.f32 %v12470_v8, %v1014_v7 }
 0x28c   : > { %v949_v37 = vadd.f32 1e-05, %v917_v23  ;;  %v1016_v23 = vmul.f32 %v11281_v1, %v12623_v15 }
 0x28d   : > { %v870_v24 = vpop.xlane.xlu0 %869 }
 0x28e   : > { %11282 = vrsqrt.f32 %v949_v37  ;;  %v919_v34 = vmul.f32 0.0078125, %v870_v24  ;;  %v900_v37 = vpop.xlane.xlu1 %899  ;;  %v1054_v54 = vmul.f32 %v12470_v8, %v1016_v23 }
 0x28f   : > { %11284 = vrsqrt.f32 %v954_v63 }
 0x290   : > { %v951_v13 = vadd.f32 1e-05, %v919_v34  ;;  %v962_v34 = vadd.f32 1e-05, %v930_v20 }
 0x291   : > { %v874_v36 = vpop.xlane.xlu0 %873 }
 0x292   : > { %11286 = vrsqrt.f32 %v951_v13  ;;  %v921_v42 = vmul.f32 0.0078125, %v874_v36  ;;  %v12800_v13 = vadd.f32 %v12481_v14, %v1052_v40 }
 0x293   : > { %11288 = vrsqrt.f32 %v956_v10  ;;  %v932_v10 = vmul.f32 0.0078125, %v896_v53  ;;  %v934_v53 = vmul.f32 0.0078125, %v900_v37 }
 0x294   : > { %v953_v51 = vadd.f32 1e-05, %v921_v42  ;;  %16756 = vst [vmem:[#allocation22_spill] sm:$0xff] %v12800_v13 }
 0x295   : > { %v878_v55 = vpop.xlane.xlu0 %877  ;;  %v964_v7 = vadd.f32 1e-05, %v932_v10 }
 0x296   : > { %11290 = vrsqrt.f32 %v953_v51  ;;  %v923_v19 = vmul.f32 0.0078125, %v878_v55  ;;  %v12812_v55 = vadd.f32 %v12481_v14, %v1054_v54 }
 0x297   : > { %11292 = vrsqrt.f32 %v958_v41 }
 0x298   : > { %v11283_v16 = vpop.eup %11282  ;;  %v955_v59 = vadd.f32 1e-05, %v923_v19  ;;  %16758 = vst [vmem:[#allocation24_spill] sm:$0xff] %v12812_v55 }
 0x299   : > { %v11285_v63 = vpop.eup %11284  ;;  %v882_v33 = vpop.xlane.xlu0 %881  ;;  %v1013_v60 = vmul.f32 %v11283_v16, %v12687_v46 }
 0x29a   : > { %11294 = vrsqrt.f32 %v955_v59  ;;  %v925_v6 = vmul.f32 0.0078125, %v882_v33  ;;  %v1018_v15 = vmul.f32 %v11285_v63, %v12628_v49  ;;  %v966_v33 = vadd.f32 1e-05, %v934_v53 }
 0x29b   : > { %v1051_v24 = vmul.f32 %v12470_v8, %v1013_v60  ;;  %11296 = vrsqrt.f32 %v960_v56  ;;  %v904_v56 = vpop.xlane.xlu1 %903 }
 0x29c   : > { %v11287_v35 = vpop.eup %11286  ;;  %v957_v9 = vadd.f32 1e-05, %v925_v6  ;;  %v1056_v19 = vmul.f32 %v12470_v8, %v1018_v15  ;;  %v936_v60 = vmul.f32 0.0078125, %v904_v56 }
 0x29d   : > { %v11289_v36 = vpop.eup %11288  ;;  %v12805_v46 = vadd.f32 %v12481_v14, %v1051_v24  ;;  %v886_v42 = vpop.xlane.xlu0 %885  ;;  %v1015_v41 = vmul.f32 %v11287_v35, %v12704_v21 }
 0x29e   : > { %11298 = vrsqrt.f32 %v957_v9  ;;  %v927_v11 = vmul.f32 0.0078125, %v886_v42  ;;  %v1020_v21 = vmul.f32 %v11289_v36, %v12633_v52  ;;  %v12824_v37 = vadd.f32 %v12481_v14, %v1056_v19 }
 0x29f   : > { %16757 = vst [vmem:[#allocation23_spill] sm:$0xff] %v12805_v46  ;;  %10127 = vmatprep.mubr.f32.mxu1 %v12805_v46  ;;  %v1053_v51 = vmul.f32 %v12470_v8, %v1015_v41  ;;  %11300 = vrsqrt.f32 %v962_v34  ;;  %v968_v36 = vadd.f32 1e-05, %v936_v60 }
 0x2a0   : > { %v11291_v1 = vpop.eup %11290  ;;  %10128 = vmatmul.mubr.f32.gmra.mrb[12].mxu1 %v12800_v13  ;;  %v959_v49 = vadd.f32 1e-05, %v927_v11  ;;  %16760 = vst [vmem:[#allocation26_spill] sm:$0xff] %v12824_v37  ;;  %v1058_v24 = vmul.f32 %v12470_v8, %v1020_v21 }
 0x2a1   : > { %v11293_v20 = vpop.eup %11292  ;;  %v12817_v16 = vadd.f32 %v12481_v14, %v1053_v51  ;;  %v890_v59 = vpop.xlane.xlu0 %889  ;;  %v1017_v40 = vmul.f32 %v11291_v1, %v12721_v45 }
 0x2a2   : > { %11302 = vrsqrt.f32 %v959_v49  ;;  %v929_v23 = vmul.f32 0.0078125, %v890_v59  ;;  %v1022_v45 = vmul.f32 %v11293_v20, %v12638_v26  ;;  %v12836_v26 = vadd.f32 %v12481_v14, %v1058_v24 }
 0x2a3   : > { %16759 = vst [vmem:[#allocation25_spill] sm:$0xff] %v12817_v16  ;;  %10130 = vmatprep.mubr.f32.mxu1 %v12817_v16  ;;  %11304 = vrsqrt.f32 %v964_v7  ;;  %v1055_v63 = vmul.f32 %v12470_v8, %v1017_v40 }
 0x2a4   : > { %v11295_v6 = vpop.eup %11294  ;;  %10131 = vmatmul.mubr.f32.gmra.mrb[14].mxu1 %v12812_v55  ;;  %v961_v52 = vadd.f32 1e-05, %v929_v23  ;;  %16762 = vst [vmem:[#allocation28_spill] sm:$0xff] %v12836_v26  ;;  %v1060_v11 = vmul.f32 %v12470_v8, %v1022_v45 }
 0x2a5   : > { %v11297_v34 = vpop.eup %11296  ;;  %v894_v10 = vpop.xlane.xlu0 %893  ;;  %v12829_v35 = vadd.f32 %v12481_v14, %v1055_v63  ;;  %v1019_v9 = vmul.f32 %v11295_v6, %v12737_v39 }
 0x2a6   : > { %11306 = vrsqrt.f32 %v961_v52  ;;  %v931_v54 = vmul.f32 0.0078125, %v894_v10  ;;  %v1024_v51 = vmul.f32 %v11297_v34, %v12643_v58  ;;  %v12848_v58 = vadd.f32 %v12481_v14, %v1060_v11 }
 0x2a7   : > { %16761 = vst [vmem:[#allocation27_spill] sm:$0xff] %v12829_v35  ;;  %10133 = vmatprep.mubr.f32.mxu1 %v12829_v35  ;;  %11308 = vrsqrt.f32 %v966_v33  ;;  %v1057_v15 = vmul.f32 %v12470_v8, %v1019_v9 }
 0x2a8   : > { %v11299_v42 = vpop.eup %11298  ;;  %v963_v41 = vadd.f32 1e-05, %v931_v54  ;;  %10134 = vmatmul.mubr.f32.gmra.mrb[16].mxu1 %v12824_v37  ;;  %16764 = vst [vmem:[#allocation30_spill] sm:$0xff] %v12848_v58  ;;  %v1062_v20 = vmul.f32 %v12470_v8, %v1024_v51 }
 0x2a9   : > { %v11301_v39 = vpop.eup %11300  ;;  %v898_v7 = vpop.xlane.xlu0 %897  ;;  %v12841_v53 = vadd.f32 %v12481_v14, %v1057_v15  ;;  %v1021_v1 = vmul.f32 %v11299_v42, %v12750_v29 }
 0x2aa   : > { %11310 = vrsqrt.f32 %v963_v41  ;;  %v933_v49 = vmul.f32 0.0078125, %v898_v7  ;;  %v1026_v59 = vmul.f32 %v11301_v39, %v12648_v12  ;;  %v12860_v24 = vadd.f32 %v12481_v14, %v1062_v20 }
 0x2ab   : > { %16763 = vst [vmem:[#allocation29_spill] sm:$0xff] %v12841_v53  ;;  %10136 = vmatprep.mubr.f32.mxu1 %v12841_v53  ;;  %11312 = vrsqrt.f32 %v968_v36  ;;  %v1059_v19 = vmul.f32 %v12470_v8, %v1021_v1 }
 0x2ac   : > { %v11303_v21 = vpop.eup %11302  ;;  %v965_v56 = vadd.f32 1e-05, %v933_v49  ;;  %10137 = vmatmul.mubr.f32.gmra.mrb[18].mxu1 %v12836_v26  ;;  %16766 = vst [vmem:[#allocation32_spill] sm:$0xff] %v12860_v24  ;;  %v1064_v12 = vmul.f32 %v12470_v8, %v1026_v59 }
 0x2ad   : > { %v11305_v40 = vpop.eup %11304  ;;  %v902_v29 = vpop.xlane.xlu0 %901  ;;  %v12853_v23 = vadd.f32 %v12481_v14, %v1059_v19  ;;  %v1023_v63 = vmul.f32 %v11303_v21, %v12755_v57 }
 0x2ae   : > { %11314 = vrsqrt.f32 %v965_v56  ;;  %v935_v33 = vmul.f32 0.0078125, %v902_v29  ;;  %v1028_v45 = vmul.f32 %v11305_v40, %v12653_v4  ;;  %v12872_v15 = vadd.f32 %v12481_v14, %v1064_v12 }
 0x2af   : > { %16765 = vst [vmem:[#allocation31_spill] sm:$0xff] %v12853_v23  ;;  %10139 = vmatprep.mubr.f32.mxu1 %v12853_v23  ;;  %v1061_v60 = vmul.f32 %v12470_v8, %v1023_v63 }
 0x2b0   : > { %v11307_v6 = vpop.eup %11306  ;;  %v967_v52 = vadd.f32 1e-05, %v935_v33  ;;  %10140 = vmatmul.mubr.f32.gmra.mrb[20].mxu1 %v12848_v58  ;;  %16768 = vst [vmem:[#allocation34_spill] sm:$0xff] %v12872_v15  ;;  %v1066_v36 = vmul.f32 %v12470_v8, %v1028_v45 }
 0x2b1   : > { %v11309_v34 = vpop.eup %11308  ;;  %v12865_v57 = vadd.f32 %v12481_v14, %v1061_v60  ;;  %v1025_v10 = vmul.f32 %v11307_v6, %v12760_v61 }
 0x2b2   : > { %11316 = vrsqrt.f32 %v967_v52  ;;  %v1030_v4 = vmul.f32 %v11309_v34, %v12659_v25  ;;  %v12884_v39 = vadd.f32 %v12481_v14, %v1066_v36  ;;  %v1506_v34 = vlaneseq }
 0x2b3   : > { %16767 = vst [vmem:[#allocation33_spill] sm:$0xff] %v12865_v57  ;;  %10142 = vmatprep.mubr.f32.mxu1 %v12865_v57  ;;  %v1063_v9 = vmul.f32 %v12470_v8, %v1025_v10 }
 0x2b4   : > { %v11311_v54 = vpop.eup %11310  ;;  %10143 = vmatmul.mubr.f32.gmra.mrb[22].mxu1 %v12860_v24  ;;  %16770 = vst [vmem:[#allocation36_spill] sm:$0xff] %v12884_v39  ;;  %v1068_v7 = vmul.f32 %v12470_v8, %v1030_v4  ;;  %v1507_v10 = vshrl.u32 %v1506_v34, 7 }
 0x2b5   : > { %v11313_v42 = vpop.eup %11312  ;;  %v12877_v41 = vadd.f32 %v12481_v14, %v1063_v9  ;;  %v1027_v61 = vmul.f32 %v11311_v54, %v12765_v5 }
 0x2b6   : > { %v1032_v25 = vmul.f32 %v11313_v42, %v12669_v22  ;;  %v12896_v21 = vadd.f32 %v12481_v14, %v1068_v7  ;;  %v1508_v9 = vsub.s32 0, %v1507_v10  ;;  %v1512_v54 = vsub.s32 1, %v1507_v10 }
 0x2b7   : > { %16769 = vst [vmem:[#allocation35_spill] sm:$0xff] %v12877_v41  ;;  %10145 = vmatprep.mubr.f32.mxu1 %v12877_v41  ;;  %v1065_v11 = vmul.f32 %v12470_v8, %v1027_v61  ;;  %v1319_v61 = vadd.f32 %v12787_v28, %v12785_v44 }
 0x2b8   : > { %v11315_v51 = vpop.eup %11314  ;;  %10146 = vmatmul.mubr.f32.gmra.mrb[24].mxu1 %v12872_v15  ;;  %16772 = vst [vmem:[#allocation38_spill] sm:$0xff] %v12896_v21  ;;  %v1070_v56 = vmul.f32 %v12470_v8, %v1032_v25 }
 0x2b9   : > { %v12889_v1 = vadd.f32 %v12481_v14, %v1065_v11  ;;  %v1029_v49 = vmul.f32 %v11315_v51, %v12770_v43 }
 0x2ba   : > { %v12907_v59 = vadd.f32 %v12481_v14, %v1070_v56 }
 0x2bb   : > { %16771 = vst [vmem:[#allocation37_spill] sm:$0xff] %v12889_v1  ;;  %10148 = vmatprep.mubr.f32.mxu1 %v12889_v1  ;;  %v1067_v5 = vmul.f32 %v12470_v8, %v1029_v49  ;;  %v12929_v49 = vmul.f32 0.17677669, %v1319_v61 }
 0x2bc   : > { %v11317_v19 = vpop.eup %11316  ;;  %10149 = vmatmul.mubr.f32.gmra.mrb[26].mxu1 %v12884_v39  ;;  %16774 = vst [vmem:[#allocation40_spill] sm:$0xff] %v12907_v59 }
 0x2bd   : > { %v12900_v20 = vadd.f32 %v12481_v14, %v1067_v5  ;;  %v1031_v22 = vmul.f32 %v11317_v19, %v12775_v3 }
 0x2bf   : > { %16773 = vst [vmem:[#allocation39_spill] sm:$0xff] %v12900_v20  ;;  %10151 = vmatprep.mubr.f32.mxu1 %v12900_v20  ;;  %v1069_v43 = vmul.f32 %v12470_v8, %v1031_v22 }
 0x2c0   : > { %10152 = vmatmul.mubr.f32.gmra.mrb[28].mxu1 %v12896_v21 }
 0x2c1   : > { %v12910_v40 = vadd.f32 %v12481_v14, %v1069_v43  ;;  %v1504_v14 = vld [vmem:[%s16531_s11] sm:$0x3] }
 0x2c2   : > { %v1509_v36 = vrot.slane %v1504_v14, %v1508_v9  ;;  %v1513_v4 = vrot.slane %v1504_v14, %v1512_v54 }
 0x2c3   : > { %16775 = vst [vmem:[#allocation41_spill] sm:$0xff] %v12910_v40  ;;  %10154 = vmatprep.mubr.f32.mxu1 %v12910_v40 }
 0x2c4   : > { %10155 = vmatmul.mubr.f32.gmra.mrb[30].mxu1 %v12907_v59 }
 0x2cb   : > { %v10114_v29 = vpop.f32.mrb[2].mxu1 }
 0x2cc   : > { %v1323_v63 = vpop.f32.mrb[3].mxu1  ;;  %v1329_v5 = vadd.f32 %v10114_v29, %v12785_v44 }
 0x2cd   : > { %v1324_v7 = vadd.f32 %v12785_v44, %v1323_v63 }
 0x2ce   : > { %v12942_v56 = vmul.f32 0.17677669, %v1329_v5 }
 0x2cf   : > { %v10117_v33 = vpop.f32.mrb[4].mxu1  ;;  %v12934_v28 = vmul.f32 0.17677669, %v1324_v7 }
 0x2d0   : > { %v1333_v3 = vpop.f32.mrb[5].mxu1  ;;  %16779 = vst [vmem:[#allocation45_spill] sm:$0xff] %v12942_v56  ;;  %v1339_v22 = vadd.f32 %v10117_v33, %v12785_v44 }
 0x2d1   : > { %16778 = vst [vmem:[#allocation44_spill] sm:$0xff] %v12934_v28  ;;  %v1334_v19 = vadd.f32 %v12785_v44, %v1333_v3 }
 0x2d2   : > { %v12952_v63 = vmul.f32 0.17677669, %v1339_v22 }
 0x2d3   : > { %v10120_v60 = vpop.f32.mrb[6].mxu1  ;;  %v12945_v43 = vmul.f32 0.17677669, %v1334_v19 }
 0x2d4   : > { %v1343_v6 = vpop.f32.mrb[7].mxu1  ;;  %16781 = vst [vmem:[#allocation47_spill] sm:$0xff] %v12952_v63  ;;  %v1349_v3 = vadd.f32 %v10120_v60, %v12785_v44 }
 0x2d5   : > { %16780 = vst [vmem:[#allocation46_spill] sm:$0xff] %v12945_v43  ;;  %v1344_v29 = vadd.f32 %v12785_v44, %v1343_v6 }
 0x2d6   : > { %v12962_v33 = vmul.f32 0.17677669, %v1349_v3 }
 0x2d7   : > { %v10123_v52 = vpop.f32.mrb[8].mxu1  ;;  %v12955_v34 = vmul.f32 0.17677669, %v1344_v29 }
 0x2d8   : > { %v1353_v8 = vpop.f32.mrb[9].mxu1  ;;  %16783 = vst [vmem:[#allocation49_spill] sm:$0xff] %v12962_v33  ;;  %v1359_v6 = vadd.f32 %v10123_v52, %v12785_v44 }
 0x2d9   : > { %16782 = vst [vmem:[#allocation48_spill] sm:$0xff] %v12955_v34  ;;  %v1354_v10 = vadd.f32 %v12785_v44, %v1353_v8 }
 0x2da   : > { %v12972_v60 = vmul.f32 0.17677669, %v1359_v6 }
 0x2db   : > { %v10126_v12 = vpop.f32.mrb[10].mxu1  ;;  %v12965_v9 = vmul.f32 0.17677669, %v1354_v10 }
 0x2dc   : > { %v1363_v45 = vpop.f32.mrb[11].mxu1  ;;  %16785 = vst [vmem:[#allocation51_spill] sm:$0xff] %v12972_v60  ;;  %v1369_v8 = vadd.f32 %v10126_v12, %v12785_v44 }
 0x2dd   : > { %16784 = vst [vmem:[#allocation50_spill] sm:$0xff] %v12965_v9  ;;  %v1364_v14 = vadd.f32 %v12785_v44, %v1363_v45 }
 0x2de   : > { %v12981_v52 = vmul.f32 0.17677669, %v1369_v8 }
 0x2df   : > { %v12975_v54 = vmul.f32 0.17677669, %v1364_v14 }
 0x2e0   : > { %16787 = vst [vmem:[#allocation53_spill] sm:$0xff] %v12981_v52 }
 0x2e1   : > { %16786 = vst [vmem:[#allocation52_spill] sm:$0xff] %v12975_v54 }
 0x308   : > { %v1582_v42 = vpop.f32.mrb[2].mxu0 }
 0x309   : > { %v12919_v11 = vadd.f32 %v1582_v42, %v1509_v36  ;;  %v1584_v51 = vpop.f32.mrb[3].mxu0 }
 0x30a   : > { %v12922_v25 = vadd.f32 %v1584_v51, %v1513_v4 }
 0x30b   : > { %16776 = vst [vmem:[#allocation42_spill] sm:$0xff] %v12919_v11  ;;  %10157 = vmatprep.subr.msk.mxu0 %vm1111_vm0, %v12919_v11 }
 0x30c   : > { %16777 = vst [vmem:[#allocation43_spill] sm:$0xff] %v12922_v25  ;;  %10158 = vmatpush3.xpose.msk.msra.mxu0 %vm1111_vm0, %v12919_v11  ;;  %11107 = vmatprep.subr.mxu1 %v12922_v25 }
 0x30d   : > { %10207 = vmatprep.subr.mxu0 %v12922_v25  ;;  %11108 = vmatpush3.msra.mxu1 %v12922_v25 }
 0x30f   : > { %10160 = vmatmul.mubr.msk.f32.vlgmr.msra.gmra.mrb[4].mxu0 %vm1111_vm0, %v12929_v49 }
 0x310   : > { %10162 = vmatprep.mubr.msk.f32.mxu0 %vm1111_vm0, %v12934_v28  ;;  %10208 = vmatpush3.msra.mxu0 %v12922_v25 }
 0x313   : > { %10163 = vmatmul.mubr.msk.f32.gmra.mrb[6].mxu0 %vm1111_vm0, %v12942_v56 }
 0x314   : > { %10165 = vmatprep.mubr.msk.f32.mxu0 %vm1111_vm0, %v12945_v43 }
 0x317   : > { %10166 = vmatmul.mubr.msk.f32.gmra.mrb[8].mxu0 %vm1111_vm0, %v12952_v63 }
 0x318   : > { %10168 = vmatprep.mubr.msk.f32.mxu0 %vm1111_vm0, %v12955_v34 }
 0x31b   : > { %10169 = vmatmul.mubr.msk.f32.gmra.mrb[10].mxu0 %vm1111_vm0, %v12962_v33 }
 0x31c   : > { %10171 = vmatprep.mubr.msk.f32.mxu0 %vm1111_vm0, %v12965_v9 }
 0x31f   : > { %10172 = vmatmul.mubr.msk.f32.gmra.mrb[12].mxu0 %vm1111_vm0, %v12972_v60 }
 0x320   : > { %10174 = vmatprep.mubr.msk.f32.mxu0 %vm1111_vm0, %v12975_v54 }
 0x323   : > { %10175 = vmatmul.mubr.msk.f32.gmra.mrb[14].mxu0 %vm1111_vm0, %v12981_v52 }
 0x373   : > { %v10129_v45 = vpop.f32.mrb[12].mxu1 }
 0x374   : > { %v1379_v36 = vadd.f32 %v10129_v45, %v12785_v44  ;;  %v1373_v4 = vpop.f32.mrb[13].mxu1 }
 0x375   : > { %v1374_v42 = vadd.f32 %v12785_v44, %v1373_v4 }
 0x376   : > { %v12987_v12 = vmul.f32 0.17677669, %v1379_v36 }
 0x377   : > { %v12989_v61 = vmul.f32 0.17677669, %v1374_v42  ;;  %v10132_v51 = vpop.f32.mrb[14].mxu1 }
 0x378   : > { %16788 = vst [vmem:[#allocation54_spill] sm:$0xff] %v12987_v12  ;;  %v1389_v7 = vadd.f32 %v10132_v51, %v12785_v44  ;;  %v1383_v5 = vpop.f32.mrb[15].mxu1 }
 0x379   : > { %16789 = vst [vmem:[#allocation55_spill] sm:$0xff] %v12989_v61  ;;  %v1384_v19 = vadd.f32 %v12785_v44, %v1383_v5  ;;  %10177 = vmatprep.mubr.msk.f32.mxu0 %vm1111_vm0, %v12989_v61 }
 0x37a   : > { %v12995_v22 = vmul.f32 0.17677669, %v1389_v7  ;;  %10178 = vmatmul.mubr.msk.f32.gmra.mrb[16].mxu0 %vm1111_vm0, %v12987_v12 }
 0x37b   : > { %v12999_v29 = vmul.f32 0.17677669, %v1384_v19  ;;  %v10135_v3 = vpop.f32.mrb[16].mxu1 }
 0x37c   : > { %16790 = vst [vmem:[#allocation56_spill] sm:$0xff] %v12995_v22  ;;  %v1399_v10 = vadd.f32 %v10135_v3, %v12785_v44  ;;  %v1393_v6 = vpop.f32.mrb[17].mxu1 }
 0x37d   : > { %16791 = vst [vmem:[#allocation57_spill] sm:$0xff] %v12999_v29  ;;  %10180 = vmatprep.mubr.msk.f32.mxu0 %vm1111_vm0, %v12999_v29  ;;  %v1394_v14 = vadd.f32 %v12785_v44, %v1393_v6 }
 0x37e   : > { %10181 = vmatmul.mubr.msk.f32.gmra.mrb[18].mxu0 %vm1111_vm0, %v12995_v22  ;;  %v13007_v8 = vmul.f32 0.17677669, %v1399_v10 }
 0x37f   : > { %v13009_v45 = vmul.f32 0.17677669, %v1394_v14  ;;  %v10138_v36 = vpop.f32.mrb[18].mxu1 }
 0x380   : > { %16792 = vst [vmem:[#allocation58_spill] sm:$0xff] %v13007_v8  ;;  %v1409_v4 = vadd.f32 %v10138_v36, %v12785_v44  ;;  %v1403_v42 = vpop.f32.mrb[19].mxu1 }
 0x381   : > { %16793 = vst [vmem:[#allocation59_spill] sm:$0xff] %v13009_v45  ;;  %v1404_v51 = vadd.f32 %v12785_v44, %v1403_v42  ;;  %10183 = vmatprep.mubr.msk.f32.mxu0 %vm1111_vm0, %v13009_v45 }
 0x382   : > { %v13015_v7 = vmul.f32 0.17677669, %v1409_v4  ;;  %10184 = vmatmul.mubr.msk.f32.gmra.mrb[20].mxu0 %vm1111_vm0, %v13007_v8 }
 0x383   : > { %v13019_v5 = vmul.f32 0.17677669, %v1404_v51  ;;  %v10141_v19 = vpop.f32.mrb[20].mxu1 }
 0x384   : > { %16794 = vst [vmem:[#allocation60_spill] sm:$0xff] %v13015_v7  ;;  %v1419_v3 = vadd.f32 %v10141_v19, %v12785_v44  ;;  %v1413_v10 = vpop.f32.mrb[21].mxu1 }
 0x385   : > { %16795 = vst [vmem:[#allocation61_spill] sm:$0xff] %v13019_v5  ;;  %v1414_v6 = vadd.f32 %v12785_v44, %v1413_v10  ;;  %10186 = vmatprep.mubr.msk.f32.mxu0 %vm1111_vm0, %v13019_v5 }
 0x386   : > { %v13025_v14 = vmul.f32 0.17677669, %v1419_v3  ;;  %10187 = vmatmul.mubr.msk.f32.gmra.mrb[22].mxu0 %vm1111_vm0, %v13015_v7 }
 0x387   : > { %v13029_v36 = vmul.f32 0.17677669, %v1414_v6  ;;  %v10144_v4 = vpop.f32.mrb[22].mxu1 }
 0x388   : > { %16796 = vst [vmem:[#allocation62_spill] sm:$0xff] %v13025_v14  ;;  %v1429_v42 = vadd.f32 %v10144_v4, %v12785_v44  ;;  %v1423_v51 = vpop.f32.mrb[23].mxu1 }
 0x389   : > { %16797 = vst [vmem:[#allocation63_spill] sm:$0xff] %v13029_v36  ;;  %v1424_v40 = vadd.f32 %v12785_v44, %v1423_v51  ;;  %10189 = vmatprep.mubr.msk.f32.mxu0 %vm1111_vm0, %v13029_v36 }
 0x38a   : > { %v13035_v19 = vmul.f32 0.17677669, %v1429_v42  ;;  %10190 = vmatmul.mubr.msk.f32.gmra.mrb[24].mxu0 %vm1111_vm0, %v13025_v14 }
 0x38b   : > { %v13039_v3 = vmul.f32 0.17677669, %v1424_v40  ;;  %v10147_v10 = vpop.f32.mrb[24].mxu1 }
 0x38c   : > { %16798 = vst [vmem:[#allocation64_spill] sm:$0xff] %v13035_v19  ;;  %v1439_v6 = vadd.f32 %v10147_v10, %v12785_v44  ;;  %v1433_v59 = vpop.f32.mrb[25].mxu1 }
 0x38d   : > { %16799 = vst [vmem:[#allocation65_spill] sm:$0xff] %v13039_v3  ;;  %v1434_v20 = vadd.f32 %v12785_v44, %v1433_v59  ;;  %10192 = vmatprep.mubr.msk.f32.mxu0 %vm1111_vm0, %v13039_v3 }
 0x38e   : > { %v13045_v4 = vmul.f32 0.17677669, %v1439_v6  ;;  %10193 = vmatmul.mubr.msk.f32.gmra.mrb[26].mxu0 %vm1111_vm0, %v13035_v19 }
 0x38f   : > { %v13049_v42 = vmul.f32 0.17677669, %v1434_v20  ;;  %v10150_v51 = vpop.f32.mrb[26].mxu1 }
 0x390   : > { %16800 = vst [vmem:[#allocation66_spill] sm:$0xff] %v13045_v4  ;;  %v1449_v40 = vadd.f32 %v10150_v51, %v12785_v44  ;;  %v1443_v21 = vpop.f32.mrb[27].mxu1 }
 0x391   : > { %16801 = vst [vmem:[#allocation67_spill] sm:$0xff] %v13049_v42  ;;  %v1444_v1 = vadd.f32 %v12785_v44, %v1443_v21  ;;  %10195 = vmatprep.mubr.msk.f32.mxu0 %vm1111_vm0, %v13049_v42 }
 0x392   : > { %v13055_v59 = vmul.f32 0.17677669, %v1449_v40  ;;  %10196 = vmatmul.mubr.msk.f32.gmra.mrb[28].mxu0 %vm1111_vm0, %v13045_v4 }
 0x393   : > { %v13059_v10 = vmul.f32 0.17677669, %v1444_v1  ;;  %v10153_v6 = vpop.f32.mrb[28].mxu1 }
 0x394   : > { %16802 = vst [vmem:[#allocation68_spill] sm:$0xff] %v13055_v59  ;;  %v1459_v20 = vadd.f32 %v10153_v6, %v12785_v44  ;;  %v1453_v39 = vpop.f32.mrb[29].mxu1 }
 0x395   : > { %16803 = vst [vmem:[#allocation69_spill] sm:$0xff] %v13059_v10  ;;  %v1454_v41 = vadd.f32 %v12785_v44, %v1453_v39  ;;  %10198 = vmatprep.mubr.msk.f32.mxu0 %vm1111_vm0, %v13059_v10 }
 0x396   : > { %v13065_v21 = vmul.f32 0.17677669, %v1459_v20  ;;  %10199 = vmatmul.mubr.msk.f32.gmra.mrb[30].mxu0 %vm1111_vm0, %v13055_v59 }
 0x397   : > { %v13069_v51 = vmul.f32 0.17677669, %v1454_v41  ;;  %v10156_v40 = vpop.f32.mrb[30].mxu1 }
 0x398   : > { %16804 = vst [vmem:[#allocation70_spill] sm:$0xff] %v13065_v21  ;;  %v1469_v1 = vadd.f32 %v10156_v40, %v12785_v44  ;;  %v1463_v15 = vpop.f32.mrb[31].mxu1 }
 0x399   : > { %16805 = vst [vmem:[#allocation71_spill] sm:$0xff] %v13069_v51  ;;  %v1464_v57 = vadd.f32 %v12785_v44, %v1463_v15  ;;  %10201 = vmatprep.mubr.msk.f32.mxu0 %vm1111_vm0, %v13069_v51 }
 0x39a   : > { %v13075_v39 = vmul.f32 0.17677669, %v1469_v1  ;;  %10202 = vmatmul.mubr.msk.f32.gmra.mrb[32].mxu0 %vm1111_vm0, %v13065_v21 }
 0x39b   : > { %v13079_v6 = vmul.f32 0.17677669, %v1464_v57 }
 0x39c   : > { %16806 = vst [vmem:[#allocation72_spill] sm:$0xff] %v13075_v39 }
 0x39d   : > { %16807 = vst [vmem:[#allocation73_spill] sm:$0xff] %v13079_v6  ;;  %10204 = vmatprep.mubr.msk.f32.mxu0 %vm1111_vm0, %v13079_v6 }
 0x39e   : > { %10205 = vmatmul.mubr.msk.f32.gmra.mrb[34].mxu0 %vm1111_vm0, %v13075_v39 }
 0x3e2   : > { %v10161_v41 = vpop.f32.mrb[4].mxu0 }
 0x3e3   : > { %v1784_v20 = vpop.f32.mrb[5].mxu0  ;;  %v1947_v44 = vsel %vm1943_vm2, %v10161_v41, -inf }
 0x3e4   : > { %1948 = vmax.xlane.f32.xlu1 %v1947_v44  ;;  %v1944_v15 = vsel %vm1943_vm2, %v1784_v20, -inf }
 0x3e5   : > { %1945 = vmax.xlane.f32.xlu0 %v1944_v15 }
 0x3e6   : > { %v10164_v40 = vpop.f32.mrb[6].mxu0 }
 0x3e7   : > { %v1794_v1 = vpop.f32.mrb[7].mxu0  ;;  %v1953_v57 = vsel %vm1943_vm2, %v10164_v40, -inf }
 0x3e8   : > { %1954 = vmax.xlane.f32.xlu1 %v1953_v57  ;;  %v1950_v24 = vsel %vm1943_vm2, %v1794_v1, -inf }
 0x3e9   : > { %1951 = vmax.xlane.f32.xlu0 %v1950_v24 }
 0x3ea   : > { %v13089_v23 = vpop.f32.mrb[8].mxu0 }
 0x3eb   : > { %v13091_v58 = vpop.f32.mrb[9].mxu0  ;;  %v1959_v53 = vsel %vm1943_vm2, %v13089_v23, -inf }
 0x3ec   : > { %1960 = vmax.xlane.f32.xlu1 %v1959_v53  ;;  %v1956_v44 = vsel %vm1943_vm2, %v13091_v58, -inf }
 0x3ed   : > { %1957 = vmax.xlane.f32.xlu0 %v1956_v44 }
 0x3ee   : > { %v13097_v15 = vpop.f32.mrb[10].mxu0 }
 0x3ef   : > { %v13099_v26 = vpop.f32.mrb[11].mxu0  ;;  %v1965_v57 = vsel %vm1943_vm2, %v13097_v15, -inf }
 0x3f0   : > { %1966 = vmax.xlane.f32.xlu1 %v1965_v57  ;;  %v1962_v24 = vsel %vm1943_vm2, %v13099_v26, -inf }
 0x3f1   : > { %1963 = vmax.xlane.f32.xlu0 %v1962_v24 }
 0x3f2   : > { %v13105_v35 = vpop.f32.mrb[12].mxu0 }
 0x3f3   : > { %v13107_v37 = vpop.f32.mrb[13].mxu0  ;;  %v1971_v53 = vsel %vm1943_vm2, %v13105_v35, -inf }
 0x3f4   : > { %1972 = vmax.xlane.f32.xlu1 %v1971_v53  ;;  %v1968_v44 = vsel %vm1943_vm2, %v13107_v37, -inf }
 0x3f5   : > { %1969 = vmax.xlane.f32.xlu0 %v1968_v44 }
 0x3f6   : > { %v13113_v16 = vpop.f32.mrb[14].mxu0 }
 0x3f7   : > { %v13115_v55 = vpop.f32.mrb[15].mxu0  ;;  %v1977_v57 = vsel %vm1943_vm2, %v13113_v16, -inf }
 0x3f8   : > { %1978 = vmax.xlane.f32.xlu1 %v1977_v57  ;;  %v1974_v24 = vsel %vm1943_vm2, %v13115_v55, -inf }
 0x3f9   : > { %1975 = vmax.xlane.f32.xlu0 %v1974_v24 }
 0x44d   : > { %v13121_v46 = vpop.f32.mrb[16].mxu0 }
 0x44e   : > { %v13123_v13 = vpop.f32.mrb[17].mxu0 }
 0x451   : > { %v13125_v53 = vpop.f32.mrb[18].mxu0 }
 0x452   : > { %16808 = vst [vmem:[#allocation74_spill] sm:$0xff] %v13125_v53  ;;  %v13127_v0 = vpop.f32.mrb[19].mxu0 }
 0x455   : > { %v13129_v44 = vpop.f32.mrb[20].mxu0 }
 0x456   : > { %16809 = vst [vmem:[#allocation75_spill] sm:$0xff] %v13129_v44  ;;  %v13131_v47 = vpop.f32.mrb[21].mxu0 }
 0x457   : > { %16810 = vst [vmem:[#allocation76_spill] sm:$0xff] %v13131_v47 }
 0x459   : > { %v13133_v31 = vpop.f32.mrb[22].mxu0 }
 0x45a   : > { %16811 = vst [vmem:[#allocation77_spill] sm:$0xff] %v13133_v31  ;;  %v13135_v48 = vpop.f32.mrb[23].mxu0 }
 0x45b   : > { %16812 = vst [vmem:[#allocation78_spill] sm:$0xff] %v13135_v48 }
 0x45d   : > { %v13137_v57 = vpop.f32.mrb[24].mxu0 }
 0x45e   : > { %16813 = vst [vmem:[#allocation79_spill] sm:$0xff] %v13137_v57  ;;  %v13139_v2 = vpop.f32.mrb[25].mxu0 }
 0x45f   : > { %16814 = vst [vmem:[#allocation80_spill] sm:$0xff] %v13139_v2 }
 0x461   : > { %v13141_v24 = vpop.f32.mrb[26].mxu0 }
 0x462   : > { %16815 = vst [vmem:[#allocation81_spill] sm:$0xff] %v13141_v24  ;;  %v13143_v38 = vpop.f32.mrb[27].mxu0 }
 0x463   : > { %16816 = vst [vmem:[#allocation82_spill] sm:$0xff] %v13143_v38 }
 0x465   : > { %v13145_v32 = vpop.f32.mrb[28].mxu0 }
 0x466   : > { %16817 = vst [vmem:[#allocation83_spill] sm:$0xff] %v13145_v32  ;;  %v13147_v62 = vpop.f32.mrb[29].mxu0 }
 0x467   : > { %16818 = vst [vmem:[#allocation84_spill] sm:$0xff] %v13147_v62 }
 0x469   : > { %v13149_v17 = vpop.f32.mrb[30].mxu0 }
 0x46a   : > { %16819 = vst [vmem:[#allocation85_spill] sm:$0xff] %v13149_v17  ;;  %v13151_v27 = vpop.f32.mrb[31].mxu0 }
 0x46b   : > { %16820 = vst [vmem:[#allocation86_spill] sm:$0xff] %v13151_v27 }
 0x46d   : > { %v13153_v30 = vpop.f32.mrb[32].mxu0 }
 0x46e   : > { %16821 = vst [vmem:[#allocation87_spill] sm:$0xff] %v13153_v30  ;;  %v13155_v18 = vpop.f32.mrb[33].mxu0 }
 0x46f   : > { %16822 = vst [vmem:[#allocation88_spill] sm:$0xff] %v13155_v18 }
 0x471   : > { %v1949_v25 = vpop.xlane.xlu1 %1948  ;;  %v13157_v57 = vpop.f32.mrb[34].mxu0 }
 0x472   : > { %16823 = vst [vmem:[#allocation89_spill] sm:$0xff] %v13157_v57  ;;  %v2041_v31 = vsub.f32 %v10161_v41, %v1949_v25  ;;  %v1946_v2 = vpop.xlane.xlu0 %1945  ;;  %v13159_v24 = vpop.f32.mrb[35].mxu0 }
 0x473   : > { %v2040_v38 = vsub.f32 %v1784_v20, %v1946_v2 }
 0x474   : > { %v2074_v44 = vmul.f32 1.442695, %v2041_v31 }
 0x475   : > { %v2072_v32 = vmul.f32 1.442695, %v2040_v38  ;;  %v1955_v48 = vpop.xlane.xlu1 %1954 }
 0x476   : > { %11318 = vpow2.f32 %v2074_v44  ;;  %v2043_v62 = vsub.f32 %v10164_v40, %v1955_v48  ;;  %v1952_v17 = vpop.xlane.xlu0 %1951 }
 0x477   : > { %11320 = vpow2.f32 %v2072_v32  ;;  %v2042_v27 = vsub.f32 %v1794_v1, %v1952_v17 }
 0x478   : > { %v2078_v53 = vmul.f32 1.442695, %v2043_v62 }
 0x479   : > { %v2076_v30 = vmul.f32 1.442695, %v2042_v27  ;;  %v1961_v47 = vpop.xlane.xlu1 %1960 }
 0x47a   : > { %11322 = vpow2.f32 %v2078_v53  ;;  %v2045_v18 = vsub.f32 %v13089_v23, %v1961_v47  ;;  %v1958_v57 = vpop.xlane.xlu0 %1957 }
 0x47b   : > { %11324 = vpow2.f32 %v2076_v30  ;;  %v2044_v25 = vsub.f32 %v13091_v58, %v1958_v57 }
 0x47c   : > { %v2082_v41 = vmul.f32 1.442695, %v2045_v18 }
 0x47d   : > { %v2080_v2 = vmul.f32 1.442695, %v2044_v25  ;;  %v1967_v31 = vpop.xlane.xlu1 %1966 }
 0x47e   : > { %11326 = vpow2.f32 %v2082_v41  ;;  %v2047_v38 = vsub.f32 %v13097_v15, %v1967_v31  ;;  %v1964_v48 = vpop.xlane.xlu0 %1963 }
 0x47f   : > { %11328 = vpow2.f32 %v2080_v2  ;;  %v2046_v17 = vsub.f32 %v13099_v26, %v1964_v48 }
 0x480   : > { %v13165_v32 = vpop.eup %11318  ;;  %v2086_v27 = vmul.f32 1.442695, %v2047_v38 }
 0x481   : > { %v13167_v62 = vpop.eup %11320  ;;  %v2084_v47 = vmul.f32 1.442695, %v2046_v17  ;;  %v1973_v23 = vpop.xlane.xlu1 %1972  ;;  %v2139_v30 = vsel %vm1943_vm2, %v13165_v32, 0.0 }
 0x482   : > { %11330 = vpow2.f32 %v2086_v27  ;;  %v2049_v18 = vsub.f32 %v13105_v35, %v1973_v23  ;;  %v1970_v58 = vpop.xlane.xlu0 %1969  ;;  %2140 = vadd.xlane.f32.xlu1 %v2139_v30  ;;  %v2136_v20 = vsel %vm1943_vm2, %v13167_v62, 0.0 }
 0x483   : > { %11332 = vpow2.f32 %v2084_v47  ;;  %v2048_v26 = vsub.f32 %v13107_v37, %v1970_v58  ;;  %2137 = vadd.xlane.f32.xlu0 %v2136_v20 }
 0x484   : > { %v13175_v40 = vpop.eup %11322  ;;  %v2090_v1 = vmul.f32 1.442695, %v2049_v18 }
 0x485   : > { %v13177_v15 = vpop.eup %11324  ;;  %v2088_v53 = vmul.f32 1.442695, %v2048_v26  ;;  %v1979_v44 = vpop.xlane.xlu1 %1978  ;;  %v2145_v57 = vsel %vm1943_vm2, %v13175_v40, 0.0 }
 0x486   : > { %11334 = vpow2.f32 %v2090_v1  ;;  %v2051_v35 = vsub.f32 %v13113_v16, %v1979_v44  ;;  %v1976_v25 = vpop.xlane.xlu0 %1975  ;;  %2146 = vadd.xlane.f32.xlu1 %v2145_v57  ;;  %v2142_v41 = vsel %vm1943_vm2, %v13177_v15, 0.0  ;;  %v1983_v57 = vsel %vm1943_vm2, %v13121_v46, -inf }
 0x487   : > { %11336 = vpow2.f32 %v2088_v53  ;;  %v2050_v37 = vsub.f32 %v13115_v55, %v1976_v25  ;;  %2143 = vadd.xlane.f32.xlu0 %v2142_v41  ;;  %v1986_v25 = vsel %vm1943_vm2, %v13127_v0, -inf  ;;  %v16824_v41 = vld [vmem:[#allocation76_spill] sm:$0xff] }
 0x488   : > { %v13185_v2 = vpop.eup %11326  ;;  %v2094_v31 = vmul.f32 1.442695, %v2051_v35  ;;  %v1980_v35 = vsel %vm1943_vm2, %v13123_v13, -inf }
 0x489   : > { %v13187_v38 = vpop.eup %11328  ;;  %v2092_v48 = vmul.f32 1.442695, %v2050_v37  ;;  %v2151_v17 = vsel %vm1943_vm2, %v13185_v2, 0.0  ;;  %v1992_v37 = vsel %vm1943_vm2, %v16824_v41, -inf }
 0x48a   : > { %11338 = vpow2.f32 %v2094_v31  ;;  %2152 = vadd.xlane.f32.xlu1 %v2151_v17  ;;  %v2148_v16 = vsel %vm1943_vm2, %v13187_v38, 0.0 }
 0x48b   : > { %11340 = vpow2.f32 %v2092_v48  ;;  %2149 = vadd.xlane.f32.xlu0 %v2148_v16  ;;  %v16825_v48 = vld [vmem:[#allocation74_spill] sm:$0xff] }
 0x48c   : > { %v13193_v27 = vpop.eup %11330  ;;  %v1989_v17 = vsel %vm1943_vm2, %v16825_v48, -inf }
 0x48d   : > { %v13195_v55 = vpop.eup %11332  ;;  %v2157_v47 = vsel %vm1943_vm2, %v13193_v27, 0.0 }
 0x48e   : > { %2158 = vadd.xlane.f32.xlu1 %v2157_v47  ;;  %v2154_v23 = vsel %vm1943_vm2, %v13195_v55, 0.0  ;;  %v16826_v47 = vld [vmem:[#allocation78_spill] sm:$0xff] }
 0x48f   : > { %2155 = vadd.xlane.f32.xlu0 %v2154_v23  ;;  %v1998_v23 = vsel %vm1943_vm2, %v16826_v47, -inf }
 0x490   : > { %v13201_v30 = vpop.eup %11334 }
 0x491   : > { %v13203_v18 = vpop.eup %11336  ;;  %v2163_v58 = vsel %vm1943_vm2, %v13201_v30, 0.0 }
 0x492   : > { %2164 = vadd.xlane.f32.xlu1 %v2163_v58  ;;  %v2160_v20 = vsel %vm1943_vm2, %v13203_v18, 0.0 }
 0x493   : > { %2161 = vadd.xlane.f32.xlu0 %v2160_v20  ;;  %v16827_v20 = vld [vmem:[#allocation75_spill] sm:$0xff] }
 0x494   : > { %v13209_v26 = vpop.eup %11338 }
 0x495   : > { %v13211_v1 = vpop.eup %11340  ;;  %v2169_v53 = vsel %vm1943_vm2, %v13209_v26, 0.0 }
 0x496   : > { %2170 = vadd.xlane.f32.xlu1 %v2169_v53  ;;  %v2166_v44 = vsel %vm1943_vm2, %v13211_v1, 0.0  ;;  %v1995_v53 = vsel %vm1943_vm2, %v16827_v20, -inf }
 0x497   : > { %2167 = vadd.xlane.f32.xlu0 %v2166_v44 }
 0x4a7   : > { %2621 = vrot.lane.b32.xlu1 %v12790_v50, %s12090_s0 }
 0x4ab   : > { %2623 = vrot.lane.b32.xlu1 %v12929_v49, %s12090_s0 }
 0x4ad   : > { %2685 = vrot.lane.b32.xlu0 %v12919_v11, %s12090_s0 }
 0x4af   : > { %2625 = vrot.lane.b32.xlu1 %v12934_v28, %s12090_s0 }
 0x4b1   : > { %2627 = vrot.lane.b32.xlu0 %v12942_v56, %s12090_s0 }
 0x4b3   : > { %2629 = vrot.lane.b32.xlu1 %v12945_v43, %s12090_s0 }
 0x4b5   : > { %2631 = vrot.lane.b32.xlu0 %v12952_v63, %s12090_s0 }
 0x4b7   : > { %2633 = vrot.lane.b32.xlu1 %v12955_v34, %s12090_s0 }
 0x4b9   : > { %2635 = vrot.lane.b32.xlu0 %v12962_v33, %s12090_s0 }
 0x4bb   : > { %2637 = vrot.lane.b32.xlu1 %v12965_v9, %s12090_s0 }
 0x4bd   : > { %2639 = vrot.lane.b32.xlu0 %v12972_v60, %s12090_s0 }
 0x4bf   : > { %2641 = vrot.lane.b32.xlu1 %v12975_v54, %s12090_s0 }
 0x4c1   : > { %2643 = vrot.lane.b32.xlu0 %v12981_v52, %s12090_s0 }
 0x4c3   : > { %2645 = vrot.lane.b32.xlu1 %v12989_v61, %s12090_s0 }
 0x4c5   : > { %2647 = vrot.lane.b32.xlu0 %v12987_v12, %s12090_s0 }
 0x4c7   : > { %2649 = vrot.lane.b32.xlu1 %v12999_v29, %s12090_s0 }
 0x4c9   : > { %2651 = vrot.lane.b32.xlu0 %v12995_v22, %s12090_s0 }
 0x4cb   : > { %2653 = vrot.lane.b32.xlu1 %v13009_v45, %s12090_s0 }
 0x4cd   : > { %2655 = vrot.lane.b32.xlu0 %v13007_v8, %s12090_s0 }
 0x4cf   : > { %2657 = vrot.lane.b32.xlu1 %v13019_v5, %s12090_s0 }
 0x4d1   : > { %2659 = vrot.lane.b32.xlu0 %v13015_v7, %s12090_s0 }
 0x4d3   : > { %2661 = vrot.lane.b32.xlu1 %v13029_v36, %s12090_s0  ;;  %v16833_v36 = vld [vmem:[#allocation81_spill] sm:$0xff] }
 0x4d5   : > { %2663 = vrot.lane.b32.xlu0 %v13025_v14, %s12090_s0 }
 0x4d7   : > { %2665 = vrot.lane.b32.xlu1 %v13039_v3, %s12090_s0 }
 0x4d9   : > { %2667 = vrot.lane.b32.xlu0 %v13035_v19, %s12090_s0 }
 0x4db   : > { %2669 = vrot.lane.b32.xlu1 %v13049_v42, %s12090_s0 }
 0x4dd   : > { %2671 = vrot.lane.b32.xlu0 %v13045_v4, %s12090_s0 }
 0x4df   : > { %2673 = vrot.lane.b32.xlu1 %v13059_v10, %s12090_s0 }
 0x4e1   : > { %2675 = vrot.lane.b32.xlu0 %v13055_v59, %s12090_s0 }
 0x4e3   : > { %2677 = vrot.lane.b32.xlu1 %v13069_v51, %s12090_s0 }
 0x4e5   : > { %2679 = vrot.lane.b32.xlu0 %v13065_v21, %s12090_s0 }
 0x4e7   : > { %2681 = vrot.lane.b32.xlu1 %v13079_v6, %s12090_s0 }
 0x4e9   : > { %2683 = vrot.lane.b32.xlu0 %v13075_v39, %s12090_s0 }
 0x508   : > { %1984 = vmax.xlane.f32.xlu0 %v1983_v57  ;;  %v16828_v57 = vld [vmem:[#allocation80_spill] sm:$0xff] }
 0x50b   : > { %1981 = vmax.xlane.f32.xlu1 %v1980_v35  ;;  %v2004_v35 = vsel %vm1943_vm2, %v16828_v57, -inf }
 0x50c   : > { %1987 = vmax.xlane.f32.xlu0 %v1986_v25 }
 0x50f   : > { %1993 = vmax.xlane.f32.xlu1 %v1992_v37  ;;  %v2141_v31 = vpop.xlane.xlu1 %2140  ;;  %v16829_v37 = vld [vmem:[#allocation77_spill] sm:$0xff] }
 0x510   : > { %11342 = vrcp.f32 %v2141_v31  ;;  %v2138_v16 = vpop.xlane.xlu0 %2137  ;;  %1990 = vmax.xlane.f32.xlu0 %v1989_v17  ;;  %v2001_v31 = vsel %vm1943_vm2, %v16829_v37, -inf }
 0x511   : > { %11344 = vrcp.f32 %v2138_v16 }
 0x513   : > { %1999 = vmax.xlane.f32.xlu1 %v1998_v23  ;;  %v2147_v58 = vpop.xlane.xlu1 %2146  ;;  %v16830_v23 = vld [vmem:[#allocation82_spill] sm:$0xff] }
 0x514   : > { %11346 = vrcp.f32 %v2147_v58  ;;  %v2144_v44 = vpop.xlane.xlu0 %2143  ;;  %1996 = vmax.xlane.f32.xlu0 %v1995_v53  ;;  %v2010_v6 = vsel %vm1943_vm2, %v16830_v23, -inf }
 0x515   : > { %11348 = vrcp.f32 %v2144_v44  ;;  %v16831_v44 = vld [vmem:[#allocation79_spill] sm:$0xff] }
 0x516   : > { %v2007_v51 = vsel %vm1943_vm2, %v16831_v44, -inf }
 0x517   : > { %2005 = vmax.xlane.f32.xlu1 %v2004_v35  ;;  %v2153_v25 = vpop.xlane.xlu1 %2152 }
 0x518   : > { %11350 = vrcp.f32 %v2153_v25  ;;  %v2150_v17 = vpop.xlane.xlu0 %2149  ;;  %2002 = vmax.xlane.f32.xlu0 %v2001_v31 }
 0x519   : > { %11352 = vrcp.f32 %v2150_v17  ;;  %v16832_v17 = vld [vmem:[#allocation84_spill] sm:$0xff] }
 0x51a   : > { %v11343_v16 = vpop.eup %11342  ;;  %v2016_v42 = vsel %vm1943_vm2, %v16832_v17, -inf }
 0x51b   : > { %v11345_v58 = vpop.eup %11344  ;;  %2011 = vmax.xlane.f32.xlu1 %v2010_v6  ;;  %v2159_v53 = vpop.xlane.xlu1 %2158  ;;  %v2235_v25 = vmul.f32 %v11343_v16, %v13165_v32  ;;  %v16834_v16 = vld [vmem:[#allocation86_spill] sm:$0xff] }
 0x51c   : > { %11354 = vrcp.f32 %v2159_v53  ;;  %v2156_v35 = vpop.xlane.xlu0 %2155  ;;  %2008 = vmax.xlane.f32.xlu0 %v2007_v51  ;;  %v2233_v10 = vmul.f32 %v11345_v58, %v13167_v62  ;;  %v2013_v53 = vsel %vm1943_vm2, %v16833_v36, -inf }
 0x51d   : > { %11356 = vrcp.f32 %v2156_v35 }
 0x51e   : > { %v11347_v31 = vpop.eup %11346  ;;  %10209 = vmatprep.mubr.msk.f32.mxu0 %vm1943_vm2, %v2233_v10 }
 0x51f   : > { %v11349_v3 = vpop.eup %11348  ;;  %2017 = vmax.xlane.f32.xlu1 %v2016_v42  ;;  %10210 = vmatmul.mubr.msk.f32.vlgmr.msra.gmra.mrb[36].mxu0 %vm1943_vm2, %v2235_v25  ;;  %v2165_v6 = vpop.xlane.xlu1 %2164  ;;  %v2239_v62 = vmul.f32 %v11347_v31, %v13175_v40  ;;  %v2022_v42 = vsel %vm1943_vm2, %v16834_v16, -inf  ;;  %v16835_v25 = vld [vmem:[#allocation83_spill] sm:$0xff]  ;;  %v16836_v31 = vld [vmem:[#allocation88_spill] sm:$0xff] }
 0x520   : > { %11358 = vrcp.f32 %v2165_v6  ;;  %v2162_v51 = vpop.xlane.xlu0 %2161  ;;  %2014 = vmax.xlane.f32.xlu0 %v2013_v53  ;;  %v2237_v32 = vmul.f32 %v11349_v3, %v13177_v15  ;;  %v2019_v6 = vsel %vm1943_vm2, %v16835_v25, -inf }
 0x521   : > { %11360 = vrcp.f32 %v2162_v51  ;;  %v2028_v51 = vsel %vm1943_vm2, %v16836_v31, -inf }
 0x522   : > { %v11351_v10 = vpop.eup %11350  ;;  %10212 = vmatprep.mubr.msk.f32.mxu0 %vm1943_vm2, %v2237_v32 }
 0x523   : > { %v11353_v58 = vpop.eup %11352  ;;  %2023 = vmax.xlane.f32.xlu1 %v2022_v42  ;;  %10213 = vmatmul.mubr.msk.f32.gmra.mrb[38].mxu0 %vm1943_vm2, %v2239_v62  ;;  %v2171_v35 = vpop.xlane.xlu1 %2170  ;;  %v2243_v40 = vmul.f32 %v11351_v10, %v13185_v2  ;;  %v16837_v42 = vld [vmem:[#allocation85_spill] sm:$0xff] }
 0x524   : > { %11362 = vrcp.f32 %v2171_v35  ;;  %v2168_v53 = vpop.xlane.xlu0 %2167  ;;  %2020 = vmax.xlane.f32.xlu0 %v2019_v6  ;;  %v2241_v3 = vmul.f32 %v11353_v58, %v13187_v38  ;;  %v2025_v35 = vsel %vm1943_vm2, %v16837_v42, -inf  ;;  %v2034_v58 = vsel %vm1943_vm2, %v13159_v24, -inf }
 0x525   : > { %11364 = vrcp.f32 %v2168_v53 }
 0x526   : > { %v11355_v15 = vpop.eup %11354  ;;  %10215 = vmatprep.mubr.msk.f32.mxu0 %vm1943_vm2, %v2241_v3 }
 0x527   : > { %v11357_v32 = vpop.eup %11356  ;;  %2029 = vmax.xlane.f32.xlu1 %v2028_v51  ;;  %10216 = vmatmul.mubr.msk.f32.gmra.mrb[40].mxu0 %vm1943_vm2, %v2243_v40  ;;  %v2622_v62 = vpop.permute.xlu1 %2621  ;;  %v2247_v2 = vmul.f32 %v11355_v15, %v13193_v27  ;;  %v16838_v40 = vld [vmem:[#allocation87_spill] sm:$0xff] }
 0x528   : > { %v2686_v6 = vpop.permute.xlu0 %2685  ;;  %2026 = vmax.xlane.f32.xlu0 %v2025_v35  ;;  %v2245_v38 = vmul.f32 %v11357_v32, %v13195_v55  ;;  %v2031_v55 = vsel %vm1943_vm2, %v16838_v40, -inf }
 0x529   : > { %10257 = vmatprep.subr.msk.mxu0 %vm1111_vm0, %v2686_v6 }
 0x52a   : > { %v11359_v10 = vpop.eup %11358  ;;  %10218 = vmatprep.mubr.msk.f32.mxu0 %vm1943_vm2, %v2245_v38  ;;  %10258 = vmatpush3.xpose.msk.msra.mxu0 %vm1111_vm0, %v2686_v6  ;;  %v16839_v38 = vld [vmem:[#allocation89_spill] sm:$0xff] }
 0x52b   : > { %v11361_v53 = vpop.eup %11360  ;;  %2035 = vmax.xlane.f32.xlu1 %v2034_v58  ;;  %10219 = vmatmul.mubr.msk.f32.gmra.mrb[42].mxu0 %vm1943_vm2, %v2247_v2  ;;  %v2624_v3 = vpop.permute.xlu1 %2623  ;;  %v2251_v15 = vmul.f32 %v11359_v10, %v13201_v30  ;;  %v2037_v2 = vsel %vm1943_vm2, %v16839_v38, -inf }
 0x52c   : > { %v2628_v51 = vpop.permute.xlu0 %2627  ;;  %2032 = vmax.xlane.f32.xlu0 %v2031_v55  ;;  %v2249_v27 = vmul.f32 %v11361_v53, %v13203_v18 }
 0x52e   : > { %v11363_v32 = vpop.eup %11362  ;;  %10221 = vmatprep.mubr.msk.f32.mxu0 %vm1943_vm2, %v2249_v27 }
 0x52f   : > { %v11365_v35 = vpop.eup %11364  ;;  %10222 = vmatmul.mubr.msk.f32.gmra.mrb[44].mxu0 %vm1943_vm2, %v2251_v15  ;;  %v2626_v6 = vpop.permute.xlu1 %2625  ;;  %v2255_v55 = vmul.f32 %v11363_v32, %v13209_v26  ;;  %v16840_v26 = vld [vmem:[#allocation43_spill] sm:$0xff] }
 0x530   : > { %v2632_v58 = vpop.permute.xlu0 %2631  ;;  %2038 = vmax.xlane.f32.xlu0 %v2037_v2  ;;  %v2253_v5 = vmul.f32 %v11365_v35, %v13211_v1 }
 0x532   : > { %10224 = vmatprep.mubr.msk.f32.mxu0 %vm1943_vm2, %v2253_v5 }
 0x533   : > { %10225 = vmatmul.mubr.msk.f32.gmra.mrb[46].mxu0 %vm1943_vm2, %v2255_v55  ;;  %v2630_v30 = vpop.permute.xlu1 %2629 }
 0x534   : > { %v2636_v18 = vpop.permute.xlu0 %2635  ;;  %10259 = vmatprep.mubr.msk.f32.mxu0 %vm1111_vm0, %v2622_v62 }
 0x537   : > { %10260 = vmatmul.mubr.msk.f32.vlgmr.msra.gmra.mrb[48].mxu0 %vm1111_vm0, %v2624_v3  ;;  %v2634_v10 = vpop.permute.xlu1 %2633 }
 0x538   : > { %v2640_v53 = vpop.permute.xlu0 %2639  ;;  %10262 = vmatprep.mubr.msk.f32.mxu0 %vm1111_vm0, %v2626_v6 }
 0x53b   : > { %10263 = vmatmul.mubr.msk.f32.gmra.mrb[50].mxu0 %vm1111_vm0, %v2628_v51  ;;  %v2638_v27 = vpop.permute.xlu1 %2637 }
 0x53c   : > { %v2644_v1 = vpop.permute.xlu0 %2643  ;;  %3331 = vrot.lane.b32.xlu1 %v16840_v26, %s12090_s0  ;;  %10265 = vmatprep.mubr.msk.f32.mxu0 %vm1111_vm0, %v2630_v30  ;;  %s12023_s0 = scalar_lea.vmem %s16472_s1, 4096 }
 0x53d   : > { %p12024_p11 = scmp.ne.s32.totalorder %s16472_s1, %s12023_s0  ;;  %p12031_p1 = scmp.lt.s32.totalorder %s12029_s27, %s12023_s0 }
 0x53f   : > { %10266 = vmatmul.mubr.msk.f32.gmra.mrb[52].mxu0 %vm1111_vm0, %v2632_v58  ;;  %v2642_v5 = vpop.permute.xlu1 %2641  ;;  %p12025_p12 = pnand %p12024_p11, %p12239_p5  ;;  %p12032_p2 = por %p12031_p1, %p12030_p0 }
 0x540   : > { %v2648_v15 = vpop.permute.xlu0 %2647  ;;  %10268 = vmatprep.mubr.msk.f32.mxu0 %vm1111_vm0, %v2634_v10 }
 0x541   : > { %p12026_p13 = pneg %p12025_p12 }
 0x543   : > { %10269 = vmatmul.mubr.msk.f32.gmra.mrb[54].mxu0 %vm1111_vm0, %v2636_v18  ;;  %v2646_v62 = vpop.permute.xlu1 %2645  ;;  %p12033_p3 = pnand %p12032_p2, %p12026_p13 }
 0x544   : > { %v2652_v3 = vpop.permute.xlu0 %2651  ;;  %10271 = vmatprep.mubr.msk.f32.mxu0 %vm1111_vm0, %v2638_v27 }
 0x547   : > { %10272 = vmatmul.mubr.msk.f32.gmra.mrb[56].mxu0 %vm1111_vm0, %v2640_v53  ;;  %v2650_v51 = vpop.permute.xlu1 %2649 }
 0x548   : > { %v2656_v32 = vpop.permute.xlu0 %2655  ;;  %10274 = vmatprep.mubr.msk.f32.mxu0 %vm1111_vm0, %v2642_v5 }
 0x54b   : > { %10275 = vmatmul.mubr.msk.f32.gmra.mrb[58].mxu0 %vm1111_vm0, %v2644_v1  ;;  %v2654_v35 = vpop.permute.xlu1 %2653 }
 0x54c   : > { %10277 = vmatprep.mubr.msk.f32.mxu0 %vm1111_vm0, %v2646_v62  ;;  %v2660_v6 = vpop.permute.xlu0 %2659 }
 0x54f   : > { %10278 = vmatmul.mubr.msk.f32.gmra.mrb[60].mxu0 %vm1111_vm0, %v2648_v15  ;;  %v2658_v2 = vpop.permute.xlu1 %2657 }
 0x550   : > { %10280 = vmatprep.mubr.msk.f32.mxu0 %vm1111_vm0, %v2650_v51  ;;  %v2664_v55 = vpop.permute.xlu0 %2663 }
 0x553   : > { %10281 = vmatmul.mubr.msk.f32.gmra.mrb[62].mxu0 %vm1111_vm0, %v2652_v3  ;;  %v2662_v58 = vpop.permute.xlu1 %2661 }
 0x554   : > { %10283 = vmatprep.mubr.msk.f32.mxu0 %vm1111_vm0, %v2654_v35  ;;  %v2668_v18 = vpop.permute.xlu0 %2667 }
 0x557   : > { %10284 = vmatmul.mubr.msk.f32.gmra.mrb[64].mxu0 %vm1111_vm0, %v2656_v32  ;;  %v2666_v30 = vpop.permute.xlu1 %2665 }
 0x558   : > { %10286 = vmatprep.mubr.msk.f32.mxu0 %vm1111_vm0, %v2658_v2  ;;  %v2672_v53 = vpop.permute.xlu0 %2671 }
 0x55b   : > { %10287 = vmatmul.mubr.msk.f32.gmra.mrb[66].mxu0 %vm1111_vm0, %v2660_v6  ;;  %v2670_v10 = vpop.permute.xlu1 %2669 }
 0x55c   : > { %10289 = vmatprep.mubr.msk.f32.mxu0 %vm1111_vm0, %v2662_v58  ;;  %v2676_v1 = vpop.permute.xlu0 %2675 }
 0x55f   : > { %10290 = vmatmul.mubr.msk.f32.gmra.mrb[68].mxu0 %vm1111_vm0, %v2664_v55  ;;  %v2674_v27 = vpop.permute.xlu1 %2673 }
 0x560   : > { %10292 = vmatprep.mubr.msk.f32.mxu0 %vm1111_vm0, %v2666_v30  ;;  %v2680_v15 = vpop.permute.xlu0 %2679 }
 0x563   : > { %10293 = vmatmul.mubr.msk.f32.gmra.mrb[70].mxu0 %vm1111_vm0, %v2668_v18  ;;  %v2678_v5 = vpop.permute.xlu1 %2677 }
 0x564   : > { %10295 = vmatprep.mubr.msk.f32.mxu0 %vm1111_vm0, %v2670_v10  ;;  %v2684_v3 = vpop.permute.xlu0 %2683 }
 0x567   : > { %10296 = vmatmul.mubr.msk.f32.gmra.mrb[72].mxu0 %vm1111_vm0, %v2672_v53  ;;  %v2682_v62 = vpop.permute.xlu1 %2681 }
 0x568   : > { %10298 = vmatprep.mubr.msk.f32.mxu0 %vm1111_vm0, %v2674_v27 }
 0x56b   : > { %10299 = vmatmul.mubr.msk.f32.gmra.mrb[74].mxu0 %vm1111_vm0, %v2676_v1 }
 0x56c   : > { %10301 = vmatprep.mubr.msk.f32.mxu0 %vm1111_vm0, %v2678_v5 }
 0x56f   : > { %10302 = vmatmul.mubr.msk.f32.gmra.mrb[76].mxu0 %vm1111_vm0, %v2680_v15 }
 0x570   : > { %10304 = vmatprep.mubr.msk.f32.mxu0 %vm1111_vm0, %v2682_v62 }
 0x573   : > { %10305 = vmatmul.mubr.msk.f32.gmra.mrb[78].mxu0 %vm1111_vm0, %v2684_v3 }
 0x595   : > { %v1985_v51 = vpop.xlane.xlu0 %1984 }
 0x596   : > { %v2053_v32 = vsub.f32 %v13121_v46, %v1985_v51 }
 0x598   : > { %v2098_v35 = vmul.f32 1.442695, %v2053_v32  ;;  %v1982_v6 = vpop.xlane.xlu1 %1981 }
 0x599   : > { %v2052_v2 = vsub.f32 %v13123_v13, %v1982_v6  ;;  %v1988_v58 = vpop.xlane.xlu0 %1987 }
 0x59a   : > { %11366 = vpow2.f32 %v2098_v35  ;;  %v2054_v30 = vsub.f32 %v13127_v0, %v1988_v58 }
 0x59b   : > { %v2096_v55 = vmul.f32 1.442695, %v2052_v2 }
 0x59c   : > { %v1994_v18 = vpop.xlane.xlu1 %1993  ;;  %v2100_v27 = vmul.f32 1.442695, %v2054_v30 }
 0x59d   : > { %11368 = vpow2.f32 %v2096_v55  ;;  %v1991_v10 = vpop.xlane.xlu0 %1990  ;;  %v2056_v13 = vsub.f32 %v16824_v41, %v1994_v18 }
 0x59e   : > { %v2055_v53 = vsub.f32 %v16825_v48, %v1991_v10 }
 0x59f   : > { %v2104_v35 = vmul.f32 1.442695, %v2056_v13 }
 0x5a0   : > { %v2102_v1 = vmul.f32 1.442695, %v2055_v53  ;;  %v2000_v5 = vpop.xlane.xlu1 %1999 }
 0x5a1   : > { %v1997_v15 = vpop.xlane.xlu0 %1996  ;;  %v2058_v30 = vsub.f32 %v16826_v47, %v2000_v5 }
 0x5a2   : > { %11370 = vpow2.f32 %v2102_v1  ;;  %v2057_v46 = vsub.f32 %v16827_v20, %v1997_v15 }
 0x5a3   : > { %11372 = vpow2.f32 %v2100_v27 }
 0x5a4   : > { %v13388_v62 = vpop.eup %11366  ;;  %v2106_v3 = vmul.f32 1.442695, %v2057_v46  ;;  %v2006_v51 = vpop.xlane.xlu1 %2005 }
 0x5a5   : > { %v2003_v0 = vpop.xlane.xlu0 %2002  ;;  %v2175_v32 = vsel %vm1943_vm2, %v13388_v62, 0.0  ;;  %v2060_v46 = vsub.f32 %v16828_v57, %v2006_v51 }
 0x5a6   : > { %2176 = vadd.xlane.f32.xlu1 %v2175_v32  ;;  %11374 = vpow2.f32 %v2106_v3  ;;  %v2059_v6 = vsub.f32 %v16829_v37, %v2003_v0 }
 0x5a7   : > { %v13393_v48 = vpop.eup %11368  ;;  %11376 = vpow2.f32 %v2104_v35  ;;  %v2112_v35 = vmul.f32 1.442695, %v2060_v46 }
 0x5a8   : > { %v2012_v2 = vpop.xlane.xlu1 %2011  ;;  %v2172_v20 = vsel %vm1943_vm2, %v13393_v48, 0.0  ;;  %v2110_v18 = vmul.f32 1.442695, %v2059_v6 }
 0x5a9   : > { %v2009_v58 = vpop.xlane.xlu0 %2008 }
 0x5aa   : > { %v2061_v41 = vsub.f32 %v16831_v44, %v2009_v58  ;;  %2173 = vadd.xlane.f32.xlu1 %v2172_v20  ;;  %v2108_v44 = vmul.f32 1.442695, %v2058_v30 }
 0x5ac   : > { %v13399_v55 = vpop.eup %11370  ;;  %v2114_v10 = vmul.f32 1.442695, %v2061_v41  ;;  %v2018_v53 = vpop.xlane.xlu1 %2017 }
 0x5ad   : > { %v2015_v27 = vpop.xlane.xlu0 %2014  ;;  %v2181_v37 = vsel %vm1943_vm2, %v13399_v55, 0.0  ;;  %v13404_v1 = vpop.eup %11372 }
 0x5ae   : > { %11378 = vpow2.f32 %v2114_v10  ;;  %v2063_v15 = vsub.f32 %v16833_v36, %v2015_v27  ;;  %2182 = vadd.xlane.f32.xlu1 %v2181_v37  ;;  %v2178_v5 = vsel %vm1943_vm2, %v13404_v1, 0.0  ;;  %v2062_v36 = vsub.f32 %v16830_v23, %v2012_v2 }
 0x5af   : > { %11380 = vpow2.f32 %v2110_v18  ;;  %v2064_v18 = vsub.f32 %v16832_v17, %v2018_v53 }
 0x5b0   : > { %v2118_v13 = vmul.f32 1.442695, %v2063_v15  ;;  %v2024_v3 = vpop.xlane.xlu1 %2023  ;;  %v13410_v0 = vpop.eup %11374 }
 0x5b1   : > { %v2021_v47 = vpop.xlane.xlu0 %2020  ;;  %v2187_v51 = vsel %vm1943_vm2, %v13410_v0, 0.0  ;;  %v13416_v58 = vpop.eup %11376  ;;  %v2120_v17 = vmul.f32 1.442695, %v2064_v18  ;;  %v2066_v53 = vsub.f32 %v16834_v16, %v2024_v3 }
 0x5b2   : > { %11382 = vpow2.f32 %v2118_v13  ;;  %v2065_v32 = vsub.f32 %v16835_v25, %v2021_v47  ;;  %2179 = vadd.xlane.f32.xlu1 %v2178_v5  ;;  %v2116_v25 = vmul.f32 1.442695, %v2062_v36  ;;  %v2184_v37 = vsel %vm1943_vm2, %v13416_v58, 0.0 }
 0x5b3   : > { %11384 = vpow2.f32 %v2108_v44  ;;  %v2124_v3 = vmul.f32 1.442695, %v2066_v53 }
 0x5b4   : > { %v2122_v6 = vmul.f32 1.442695, %v2065_v32  ;;  %v2030_v20 = vpop.xlane.xlu1 %2029 }
 0x5b5   : > { %v2027_v57 = vpop.xlane.xlu0 %2026  ;;  %v2068_v36 = vsub.f32 %v16836_v31, %v2030_v20 }
 0x5b6   : > { %11386 = vpow2.f32 %v2122_v6  ;;  %v2067_v41 = vsub.f32 %v16837_v42, %v2027_v57  ;;  %2188 = vadd.xlane.f32.xlu1 %v2187_v51 }
 0x5b7   : > { %11388 = vpow2.f32 %v2112_v35 }
 0x5b8   : > { %v13419_v30 = vpop.eup %11378  ;;  %v2126_v10 = vmul.f32 1.442695, %v2067_v41  ;;  %v2036_v23 = vpop.xlane.xlu1 %2035 }
 0x5b9   : > { %v2033_v2 = vpop.xlane.xlu0 %2032  ;;  %v2199_v27 = vsel %vm1943_vm2, %v13419_v30, 0.0  ;;  %v13426_v15 = vpop.eup %11380  ;;  %v2070_v18 = vsub.f32 %v13159_v24, %v2036_v23 }
 0x5ba   : > { %11390 = vpow2.f32 %v2126_v10  ;;  %v2069_v42 = vsub.f32 %v16838_v40, %v2033_v2  ;;  %2200 = vadd.xlane.f32.xlu0 %v2199_v27  ;;  %2185 = vadd.xlane.f32.xlu1 %v2184_v37  ;;  %v2193_v40 = vsel %vm1943_vm2, %v13426_v15, 0.0 }
 0x5bb   : > { %11392 = vpow2.f32 %v2116_v25  ;;  %v2128_v25 = vmul.f32 1.442695, %v2068_v36  ;;  %v2132_v27 = vmul.f32 1.442695, %v2070_v18 }
 0x5bc   : > { %v13429_v44 = vpop.eup %11382  ;;  %v2130_v46 = vmul.f32 1.442695, %v2069_v42  ;;  %v13432_v13 = vpop.permute.xlu1 %3331 }
 0x5bd   : > { %v2039_v47 = vpop.xlane.xlu0 %2038  ;;  %10307 = vmatprep.subr.mxu1 %v13432_v13  ;;  %v2205_v5 = vsel %vm1943_vm2, %v13429_v44, 0.0  ;;  %v13439_v32 = vpop.eup %11384 }
 0x5be   : > { %11394 = vpow2.f32 %v2130_v46  ;;  %v2071_v35 = vsub.f32 %v16839_v38, %v2039_v47  ;;  %2206 = vadd.xlane.f32.xlu0 %v2205_v5  ;;  %2194 = vadd.xlane.f32.xlu1 %v2193_v40  ;;  %v2190_v51 = vsel %vm1943_vm2, %v13439_v32, 0.0 }
 0x5bf   : > { %11396 = vpow2.f32 %v2120_v17 }
 0x5c0   : > { %v13442_v16 = vpop.eup %11386  ;;  %v2134_v6 = vmul.f32 1.442695, %v2071_v35 }
 0x5c1   : > { %v2211_v57 = vsel %vm1943_vm2, %v13442_v16, 0.0  ;;  %v13449_v41 = vpop.eup %11388 }
 0x5c2   : > { %11398 = vpow2.f32 %v2134_v6  ;;  %2212 = vadd.xlane.f32.xlu0 %v2211_v57  ;;  %2191 = vadd.xlane.f32.xlu1 %v2190_v51  ;;  %v2196_v20 = vsel %vm1943_vm2, %v13449_v41, 0.0 }
 0x5c3   : > { %11400 = vpow2.f32 %v2124_v3 }
 0x5c4   : > { %v13451_v38 = vpop.eup %11390  ;;  %11402 = vpow2.f32 %v2128_v25 }
 0x5c5   : > { %v2217_v31 = vsel %vm1943_vm2, %v13451_v38, 0.0  ;;  %v13458_v10 = vpop.eup %11392  ;;  %11404 = vpow2.f32 %v2132_v27 }
 0x5c6   : > { %2218 = vadd.xlane.f32.xlu0 %v2217_v31  ;;  %2197 = vadd.xlane.f32.xlu1 %v2196_v20  ;;  %v2202_v24 = vsel %vm1943_vm2, %v13458_v10, 0.0 }
 0x5c8   : > { %v13460_v2 = vpop.eup %11394 }
 0x5c9   : > { %v2223_v37 = vsel %vm1943_vm2, %v13460_v2, 0.0  ;;  %v13466_v23 = vpop.eup %11396 }
 0x5ca   : > { %2224 = vadd.xlane.f32.xlu0 %v2223_v37  ;;  %2203 = vadd.xlane.f32.xlu1 %v2202_v24  ;;  %v2208_v53 = vsel %vm1943_vm2, %v13466_v23, 0.0 }
 0x5cc   : > { %v13468_v42 = vpop.eup %11398 }
 0x5cd   : > { %v2229_v17 = vsel %vm1943_vm2, %v13468_v42, 0.0  ;;  %v13474_v46 = vpop.eup %11400 }
 0x5ce   : > { %2230 = vadd.xlane.f32.xlu0 %v2229_v17  ;;  %2209 = vadd.xlane.f32.xlu1 %v2208_v53  ;;  %v2214_v47 = vsel %vm1943_vm2, %v13474_v46, 0.0  ;;  %v13478_v5 = vpop.eup %11402 }
 0x5cf   : > { %v2220_v40 = vsel %vm1943_vm2, %v13478_v5, 0.0  ;;  %v13482_v35 = vpop.eup %11404 }
 0x5d0   : > { %v2226_v3 = vsel %vm1943_vm2, %v13482_v35, 0.0 }
 0x5d2   : > { %2215 = vadd.xlane.f32.xlu1 %v2214_v47 }
 0x5d6   : > { %2221 = vadd.xlane.f32.xlu1 %v2220_v40 }
 0x5da   : > { %2227 = vadd.xlane.f32.xlu1 %v2226_v3 }
 0x5f2   : > { %v13486_v36 = vpop.f32.mrb[36].mxu0 }
 0x5f3   : > { %16841 = vst [vmem:[#allocation76_spill] sm:$0xff] %v13486_v36  ;;  %v13488_v6 = vpop.f32.mrb[37].mxu0 }
 0x5f4   : > { %16842 = vst [vmem:[#allocation74_spill] sm:$0xff] %v13488_v6 }
 0x5f6   : > { %v13490_v57 = vpop.f32.mrb[38].mxu0 }
 0x5f7   : > { %16843 = vst [vmem:[#allocation78_spill] sm:$0xff] %v13490_v57  ;;  %v13492_v51 = vpop.f32.mrb[39].mxu0 }
 0x5f8   : > { %16844 = vst [vmem:[#allocation75_spill] sm:$0xff] %v13492_v51 }
 0x5fa   : > { %v13494_v25 = vpop.f32.mrb[40].mxu0 }
 0x5fb   : > { %16845 = vst [vmem:[#allocation80_spill] sm:$0xff] %v13494_v25  ;;  %v13496_v18 = vpop.f32.mrb[41].mxu0 }
 0x5fc   : > { %16846 = vst [vmem:[#allocation77_spill] sm:$0xff] %v13496_v18 }
 0x5fe   : > { %v13498_v31 = vpop.f32.mrb[42].mxu0 }
 0x5ff   : > { %16847 = vst [vmem:[#allocation82_spill] sm:$0xff] %v13498_v31  ;;  %v13500_v20 = vpop.f32.mrb[43].mxu0 }
 0x600   : > { %16848 = vst [vmem:[#allocation79_spill] sm:$0xff] %v13500_v20 }
 0x602   : > { %v13502_v27 = vpop.f32.mrb[44].mxu0 }
 0x603   : > { %16849 = vst [vmem:[#allocation84_spill] sm:$0xff] %v13502_v27  ;;  %v13504_v37 = vpop.f32.mrb[45].mxu0 }
 0x604   : > { %16850 = vst [vmem:[#allocation81_spill] sm:$0xff] %v13504_v37 }
 0x606   : > { %v13506_v24 = vpop.f32.mrb[46].mxu0 }
 0x607   : > { %16851 = vst [vmem:[#allocation86_spill] sm:$0xff] %v13506_v24  ;;  %v13508_v17 = vpop.f32.mrb[47].mxu0 }
 0x608   : > { %16852 = vst [vmem:[#allocation83_spill] sm:$0xff] %v13508_v17 }
 0x60a   : > { %v13510_v53 = vpop.f32.mrb[48].mxu0 }
 0x60b   : > { %v13512_v47 = vpop.f32.mrb[49].mxu0  ;;  %v2981_v40 = vsel %vm1943_vm2, %v13510_v53, -inf }
 0x60c   : > { %2982 = vmax.xlane.f32.xlu0 %v2981_v40  ;;  %v2978_v3 = vsel %vm1943_vm2, %v13512_v47, -inf }
 0x60d   : > { %2979 = vmax.xlane.f32.xlu1 %v2978_v3 }
 0x60e   : > { %v13518_v26 = vpop.f32.mrb[50].mxu0 }
 0x60f   : > { %v13520_v27 = vpop.f32.mrb[51].mxu0  ;;  %v2987_v24 = vsel %vm1943_vm2, %v13518_v26, -inf }
 0x610   : > { %2988 = vmax.xlane.f32.xlu0 %v2987_v24  ;;  %v2984_v17 = vsel %vm1943_vm2, %v13520_v27, -inf }
 0x611   : > { %2985 = vmax.xlane.f32.xlu1 %v2984_v17 }
 0x612   : > { %v13526_v37 = vpop.f32.mrb[52].mxu0 }
 0x613   : > { %v13528_v31 = vpop.f32.mrb[53].mxu0  ;;  %v2993_v40 = vsel %vm1943_vm2, %v13526_v37, -inf }
 0x614   : > { %2994 = vmax.xlane.f32.xlu0 %v2993_v40  ;;  %v2990_v3 = vsel %vm1943_vm2, %v13528_v31, -inf }
 0x615   : > { %2991 = vmax.xlane.f32.xlu1 %v2990_v3 }
 0x616   : > { %v13534_v20 = vpop.f32.mrb[54].mxu0 }
 0x617   : > { %v13536_v25 = vpop.f32.mrb[55].mxu0  ;;  %v2999_v24 = vsel %vm1943_vm2, %v13534_v20, -inf }
 0x618   : > { %3000 = vmax.xlane.f32.xlu0 %v2999_v24  ;;  %v2996_v17 = vsel %vm1943_vm2, %v13536_v25, -inf }
 0x619   : > { %2997 = vmax.xlane.f32.xlu1 %v2996_v17 }
 0x61a   : > { %v13542_v18 = vpop.f32.mrb[56].mxu0 }
 0x61b   : > { %v13544_v57 = vpop.f32.mrb[57].mxu0  ;;  %v3005_v40 = vsel %vm1943_vm2, %v13542_v18, -inf }
 0x61c   : > { %3006 = vmax.xlane.f32.xlu0 %v3005_v40  ;;  %v3002_v3 = vsel %vm1943_vm2, %v13544_v57, -inf }
 0x61d   : > { %3003 = vmax.xlane.f32.xlu1 %v3002_v3 }
 0x61e   : > { %v13550_v51 = vpop.f32.mrb[58].mxu0 }
 0x61f   : > { %v13552_v36 = vpop.f32.mrb[59].mxu0  ;;  %v3011_v24 = vsel %vm1943_vm2, %v13550_v51, -inf }
 0x620   : > { %3012 = vmax.xlane.f32.xlu0 %v3011_v24  ;;  %v3008_v17 = vsel %vm1943_vm2, %v13552_v36, -inf }
 0x621   : > { %3009 = vmax.xlane.f32.xlu1 %v3008_v17 }
 0x622   : > { %v13558_v6 = vpop.f32.mrb[60].mxu0 }
 0x623   : > { %v13560_v39 = vpop.f32.mrb[61].mxu0  ;;  %v3017_v40 = vsel %vm1943_vm2, %v13558_v6, -inf }
 0x624   : > { %3018 = vmax.xlane.f32.xlu0 %v3017_v40  ;;  %v3014_v3 = vsel %vm1943_vm2, %v13560_v39, -inf }
 0x625   : > { %3015 = vmax.xlane.f32.xlu1 %v3014_v3 }
 0x626   : > { %v13566_v45 = vpop.f32.mrb[62].mxu0 }
 0x627   : > { %v13568_v21 = vpop.f32.mrb[63].mxu0  ;;  %v3023_v24 = vsel %vm1943_vm2, %v13566_v45, -inf }
 0x628   : > { %3024 = vmax.xlane.f32.xlu0 %v3023_v24  ;;  %v3020_v17 = vsel %vm1943_vm2, %v13568_v21, -inf }
 0x629   : > { %3021 = vmax.xlane.f32.xlu1 %v3020_v17 }
 0x62a   : > { %v13574_v29 = vpop.f32.mrb[64].mxu0 }
 0x62b   : > { %v13576_v59 = vpop.f32.mrb[65].mxu0  ;;  %v3029_v40 = vsel %vm1943_vm2, %v13574_v29, -inf }
 0x62c   : > { %3030 = vmax.xlane.f32.xlu0 %v3029_v40  ;;  %v3026_v3 = vsel %vm1943_vm2, %v13576_v59, -inf }
 0x62d   : > { %3027 = vmax.xlane.f32.xlu1 %v3026_v3 }
 0x62e   : > { %v13582_v61 = vpop.f32.mrb[66].mxu0 }
 0x62f   : > { %v13584_v4 = vpop.f32.mrb[67].mxu0  ;;  %v3035_v24 = vsel %vm1943_vm2, %v13582_v61, -inf }
 0x630   : > { %3036 = vmax.xlane.f32.xlu0 %v3035_v24  ;;  %v3032_v17 = vsel %vm1943_vm2, %v13584_v4, -inf }
 0x631   : > { %3033 = vmax.xlane.f32.xlu1 %v3032_v17 }
 0x632   : > { %v13590_v54 = vpop.f32.mrb[68].mxu0 }
 0x633   : > { %v13592_v19 = vpop.f32.mrb[69].mxu0  ;;  %v2177_v40 = vpop.xlane.xlu1 %2176  ;;  %v3041_v3 = vsel %vm1943_vm2, %v13590_v54, -inf }
 0x634   : > { %3042 = vmax.xlane.f32.xlu0 %v3041_v3  ;;  %v3038_v9 = vsel %vm1943_vm2, %v13592_v19, -inf  ;;  %11406 = vrcp.f32 %v2177_v40 }
 0x635   : > { %3039 = vmax.xlane.f32.xlu1 %v3038_v9 }
 0x636   : > { %v13598_v14 = vpop.f32.mrb[70].mxu0 }
 0x637   : > { %v13600_v24 = vpop.f32.mrb[71].mxu0  ;;  %v2174_v34 = vpop.xlane.xlu1 %2173  ;;  %v3047_v17 = vsel %vm1943_vm2, %v13598_v14, -inf }
 0x638   : > { %11408 = vrcp.f32 %v2174_v34  ;;  %3048 = vmax.xlane.f32.xlu0 %v3047_v17  ;;  %v3044_v7 = vsel %vm1943_vm2, %v13600_v24, -inf }
 0x639   : > { %3045 = vmax.xlane.f32.xlu1 %v3044_v7 }
 0x63a   : > { %v13606_v3 = vpop.f32.mrb[72].mxu0 }
 0x63b   : > { %v13608_v43 = vpop.f32.mrb[73].mxu0  ;;  %v2183_v9 = vpop.xlane.xlu1 %2182  ;;  %v3053_v40 = vsel %vm1943_vm2, %v13606_v3, -inf }
 0x63c   : > { %3054 = vmax.xlane.f32.xlu0 %v3053_v40  ;;  %11410 = vrcp.f32 %v2183_v9  ;;  %v3050_v17 = vsel %vm1943_vm2, %v13608_v43, -inf }
 0x63e   : > { %v13612_v8 = vpop.f32.mrb[74].mxu0  ;;  %v11407_v7 = vpop.eup %11406 }
 0x63f   : > { %v13614_v28 = vpop.f32.mrb[75].mxu0  ;;  %v2180_v34 = vpop.xlane.xlu1 %2179  ;;  %v3059_v40 = vsel %vm1943_vm2, %v13612_v8, -inf  ;;  %v2259_v33 = vmul.f32 %v11407_v7, %v13388_v62 }
 0x640   : > { %11412 = vrcp.f32 %v2180_v34  ;;  %3051 = vmax.xlane.f32.xlu0 %v3050_v17  ;;  %v3056_v56 = vsel %vm1943_vm2, %v13614_v28, -inf }
 0x642   : > { %v11409_v22 = vpop.eup %11408  ;;  %v13618_v12 = vpop.f32.mrb[76].mxu0 }
 0x643   : > { %v13620_v52 = vpop.f32.mrb[77].mxu0  ;;  %v2189_v60 = vpop.xlane.xlu1 %2188  ;;  %v2257_v9 = vmul.f32 %v11409_v22, %v13393_v48 }
 0x644   : > { %3060 = vmax.xlane.f32.xlu0 %v3059_v40  ;;  %11414 = vrcp.f32 %v2189_v60 }
 0x645   : > { %10227 = vmatprep.mubr.msk.f32.mxu1 %vm1943_vm2, %v2257_v9 }
 0x646   : > { %10228 = vmatmul.mubr.msk.f32.vlgmr.msra.gmra.mrb[32].mxu1 %vm1943_vm2, %v2259_v33  ;;  %v13628_v34 = vpop.f32.mrb[78].mxu0  ;;  %v11411_v22 = vpop.eup %11410  ;;  %v3065_v33 = vsel %vm1943_vm2, %v13618_v12, -inf }
 0x647   : > { %10308 = vmatpush3.msra.mxu1 %v13432_v13  ;;  %v2201_v17 = vpop.xlane.xlu0 %2200  ;;  %v13631_v63 = vpop.f32.mrb[79].mxu0  ;;  %v2263_v7 = vmul.f32 %v11411_v22, %v13399_v55 }
 0x648   : > { %v2186_v50 = vpop.xlane.xlu1 %2185  ;;  %3057 = vmax.xlane.f32.xlu0 %v3056_v56 }
 0x649   : > { %11416 = vrcp.f32 %v2186_v50  ;;  %v3062_v50 = vsel %vm1943_vm2, %v13620_v52, -inf }
 0x64a   : > { %v11413_v62 = vpop.eup %11412  ;;  %4365 = vrot.lane.b32.xlu1 %v12919_v11, %s12091_s21 }
 0x64b   : > { %v2261_v48 = vmul.f32 %v11413_v62, %v13404_v1  ;;  %v2207_v40 = vpop.xlane.xlu0 %2206  ;;  %v3071_v1 = vsel %vm1943_vm2, %v13628_v34, -inf }
 0x64c   : > { %v2195_v13 = vpop.xlane.xlu1 %2194  ;;  %3066 = vmax.xlane.f32.xlu0 %v3065_v33  ;;  %v3068_v33 = vsel %vm1943_vm2, %v13631_v63, -inf }
 0x64d   : > { %10230 = vmatprep.mubr.msk.f32.mxu1 %vm1943_vm2, %v2261_v48  ;;  %11418 = vrcp.f32 %v2195_v13 }
 0x64e   : > { %10231 = vmatmul.mubr.msk.f32.gmra.mrb[34].mxu1 %vm1943_vm2, %v2263_v7  ;;  %v11415_v60 = vpop.eup %11414 }
 0x64f   : > { %v2213_v11 = vpop.xlane.xlu0 %2212  ;;  %v2267_v62 = vmul.f32 %v11415_v60, %v13410_v0 }
 0x650   : > { %v2192_v56 = vpop.xlane.xlu1 %2191  ;;  %3063 = vmax.xlane.f32.xlu0 %v3062_v50 }
 0x651   : > { %11420 = vrcp.f32 %v2192_v56 }
 0x652   : > { %11422 = vrcp.f32 %v2201_v17 }
 0x653   : > { %v11417_v9 = vpop.eup %11416  ;;  %v2219_v13 = vpop.xlane.xlu0 %2218 }
 0x654   : > { %v2198_v55 = vpop.xlane.xlu1 %2197  ;;  %3072 = vmax.xlane.f32.xlu0 %v3071_v1  ;;  %v2265_v22 = vmul.f32 %v11417_v9, %v13416_v58 }
 0x655   : > { %11424 = vrcp.f32 %v2198_v55 }
 0x656   : > { %10233 = vmatprep.mubr.msk.f32.mxu1 %vm1943_vm2, %v2265_v22  ;;  %11426 = vrcp.f32 %v2207_v40 }
 0x657   : > { %10234 = vmatmul.mubr.msk.f32.gmra.mrb[36].mxu1 %vm1943_vm2, %v2267_v62  ;;  %v11419_v17 = vpop.eup %11418  ;;  %v2225_v9 = vpop.xlane.xlu0 %2224 }
 0x658   : > { %v2204_v48 = vpop.xlane.xlu1 %2203  ;;  %3069 = vmax.xlane.f32.xlu0 %v3068_v33  ;;  %v2271_v0 = vmul.f32 %v11419_v17, %v13426_v15 }
 0x659   : > { %11428 = vrcp.f32 %v2204_v48 }
 0x65a   : > { %11430 = vrcp.f32 %v2213_v11 }
 0x65b   : > { %v11421_v7 = vpop.eup %11420  ;;  %v2231_v62 = vpop.xlane.xlu0 %2230 }
 0x65c   : > { %v2210_v50 = vpop.xlane.xlu1 %2209  ;;  %v2269_v58 = vmul.f32 %v11421_v7, %v13439_v32  ;;  %v11423_v56 = vpop.eup %11422 }
 0x65d   : > { %11432 = vrcp.f32 %v2210_v50  ;;  %v2275_v11 = vmul.f32 %v11423_v56, %v13419_v30 }
 0x65e   : > { %10236 = vmatprep.mubr.msk.f32.mxu1 %vm1943_vm2, %v2269_v58  ;;  %11434 = vrcp.f32 %v2219_v13 }
 0x65f   : > { %v11425_v60 = vpop.eup %11424  ;;  %10237 = vmatmul.mubr.msk.f32.gmra.mrb[38].mxu1 %vm1943_vm2, %v2271_v0 }
 0x660   : > { %v2216_v40 = vpop.xlane.xlu1 %2215  ;;  %v2273_v1 = vmul.f32 %v11425_v60, %v13449_v41  ;;  %v11427_v55 = vpop.eup %11426 }
 0x661   : > { %11436 = vrcp.f32 %v2216_v40  ;;  %v2279_v33 = vmul.f32 %v11427_v55, %v13429_v44 }
 0x662   : > { %10239 = vmatprep.mubr.msk.f32.mxu1 %vm1943_vm2, %v2273_v1  ;;  %11438 = vrcp.f32 %v2225_v9 }
 0x663   : > { %v11429_v32 = vpop.eup %11428  ;;  %10240 = vmatmul.mubr.msk.f32.gmra.mrb[40].mxu1 %vm1943_vm2, %v2275_v11 }
 0x664   : > { %v2222_v15 = vpop.xlane.xlu1 %2221  ;;  %v2277_v22 = vmul.f32 %v11429_v32, %v13458_v10  ;;  %v11431_v48 = vpop.eup %11430 }
 0x665   : > { %11440 = vrcp.f32 %v2222_v15  ;;  %v2283_v17 = vmul.f32 %v11431_v48, %v13442_v16 }
 0x666   : > { %10242 = vmatprep.mubr.msk.f32.mxu1 %vm1943_vm2, %v2277_v22  ;;  %11442 = vrcp.f32 %v2231_v62 }
 0x667   : > { %v11433_v41 = vpop.eup %11432  ;;  %10243 = vmatmul.mubr.msk.f32.gmra.mrb[42].mxu1 %vm1943_vm2, %v2279_v33 }
 0x668   : > { %v2228_v30 = vpop.xlane.xlu1 %2227  ;;  %v2281_v13 = vmul.f32 %v11433_v41, %v13466_v23  ;;  %v11435_v7 = vpop.eup %11434 }
 0x669   : > { %11444 = vrcp.f32 %v2228_v30  ;;  %v2287_v50 = vmul.f32 %v11435_v7, %v13451_v38 }
 0x66a   : > { %10245 = vmatprep.mubr.msk.f32.mxu1 %vm1943_vm2, %v2281_v13 }
 0x66b   : > { %v11437_v10 = vpop.eup %11436  ;;  %10246 = vmatmul.mubr.msk.f32.gmra.mrb[44].mxu1 %vm1943_vm2, %v2283_v17 }
 0x66c   : > { %v2285_v44 = vmul.f32 %v11437_v10, %v13474_v46  ;;  %v11439_v58 = vpop.eup %11438 }
 0x66d   : > { %v2291_v16 = vmul.f32 %v11439_v58, %v13460_v2 }
 0x66e   : > { %10248 = vmatprep.mubr.msk.f32.mxu1 %vm1943_vm2, %v2285_v44 }
 0x66f   : > { %v11441_v0 = vpop.eup %11440  ;;  %10249 = vmatmul.mubr.msk.f32.gmra.mrb[46].mxu1 %vm1943_vm2, %v2287_v50 }
 0x670   : > { %v2289_v23 = vmul.f32 %v11441_v0, %v13478_v5  ;;  %v11443_v56 = vpop.eup %11442 }
 0x671   : > { %v2295_v38 = vmul.f32 %v11443_v56, %v13468_v42 }
 0x672   : > { %10251 = vmatprep.mubr.msk.f32.mxu1 %vm1943_vm2, %v2289_v23 }
 0x673   : > { %v11445_v60 = vpop.eup %11444  ;;  %10252 = vmatmul.mubr.msk.f32.gmra.mrb[48].mxu1 %vm1943_vm2, %v2291_v16 }
 0x674   : > { %v2293_v46 = vmul.f32 %v11445_v60, %v13482_v35 }
 0x676   : > { %10254 = vmatprep.mubr.msk.f32.mxu1 %vm1943_vm2, %v2293_v46 }
 0x677   : > { %10255 = vmatmul.mubr.msk.f32.gmra.mrb[50].mxu1 %vm1943_vm2, %v2295_v38 }
 0x699   : > { %v2983_v9 = vpop.xlane.xlu0 %2982 }
 0x69a   : > { %v3075_v40 = vsub.f32 %v13510_v53, %v2983_v9  ;;  %v2980_v5 = vpop.xlane.xlu1 %2979 }
 0x69b   : > { %v3074_v2 = vsub.f32 %v13512_v47, %v2980_v5 }
 0x69c   : > { %v3108_v1 = vmul.f32 1.442695, %v3075_v40 }
 0x69d   : > { %v3106_v11 = vmul.f32 1.442695, %v3074_v2  ;;  %v2989_v55 = vpop.xlane.xlu0 %2988 }
 0x69e   : > { %11446 = vpow2.f32 %v3108_v1  ;;  %v3077_v32 = vsub.f32 %v13518_v26, %v2989_v55  ;;  %v2986_v15 = vpop.xlane.xlu1 %2985 }
 0x69f   : > { %11448 = vpow2.f32 %v3106_v11  ;;  %v3076_v42 = vsub.f32 %v13520_v27, %v2986_v15 }
 0x6a0   : > { %v3112_v35 = vmul.f32 1.442695, %v3077_v32 }
 0x6a1   : > { %v3110_v22 = vmul.f32 1.442695, %v3076_v42  ;;  %v2995_v62 = vpop.xlane.xlu0 %2994 }
 0x6a2   : > { %11450 = vpow2.f32 %v3112_v35  ;;  %v3079_v33 = vsub.f32 %v13526_v37, %v2995_v62  ;;  %v2992_v53 = vpop.xlane.xlu1 %2991 }
 0x6a3   : > { %11452 = vpow2.f32 %v3110_v22  ;;  %v3078_v47 = vsub.f32 %v13528_v31, %v2992_v53 }
 0x6a4   : > { %v3116_v48 = vmul.f32 1.442695, %v3079_v33 }
 0x6a5   : > { %v3114_v41 = vmul.f32 1.442695, %v3078_v47  ;;  %v3001_v30 = vpop.xlane.xlu0 %3000 }
 0x6a6   : > { %11454 = vpow2.f32 %v3116_v48  ;;  %v3081_v26 = vsub.f32 %v13534_v20, %v3001_v30  ;;  %v2998_v13 = vpop.xlane.xlu1 %2997 }
 0x6a7   : > { %11456 = vpow2.f32 %v3114_v41  ;;  %v3080_v27 = vsub.f32 %v13536_v25, %v2998_v13 }
 0x6a8   : > { %v13689_v17 = vpop.eup %11446  ;;  %v3120_v7 = vmul.f32 1.442695, %v3081_v26 }
 0x6a9   : > { %v13691_v10 = vpop.eup %11448  ;;  %v3118_v37 = vmul.f32 1.442695, %v3080_v27  ;;  %v3007_v44 = vpop.xlane.xlu0 %3006  ;;  %v3173_v31 = vsel %vm1943_vm2, %v13689_v17, 0.0 }
 0x6aa   : > { %11458 = vpow2.f32 %v3120_v7  ;;  %v3083_v50 = vsub.f32 %v13542_v18, %v3007_v44  ;;  %3174 = vadd.xlane.f32.xlu0 %v3173_v31  ;;  %v3004_v58 = vpop.xlane.xlu1 %3003  ;;  %v3170_v20 = vsel %vm1943_vm2, %v13691_v10, 0.0 }
 0x6ab   : > { %11460 = vpow2.f32 %v3118_v37  ;;  %v3082_v25 = vsub.f32 %v13544_v57, %v3004_v58  ;;  %3171 = vadd.xlane.f32.xlu1 %v3170_v20 }
 0x6ac   : > { %v13699_v0 = vpop.eup %11450  ;;  %v3124_v23 = vmul.f32 1.442695, %v3083_v50 }
 0x6ad   : > { %v13701_v16 = vpop.eup %11452  ;;  %v3122_v56 = vmul.f32 1.442695, %v3082_v25  ;;  %v3013_v60 = vpop.xlane.xlu0 %3012  ;;  %v3179_v46 = vsel %vm1943_vm2, %v13699_v0, 0.0 }
 0x6ae   : > { %11462 = vpow2.f32 %v3124_v23  ;;  %v3085_v18 = vsub.f32 %v13550_v51, %v3013_v60  ;;  %3180 = vadd.xlane.f32.xlu0 %v3179_v46  ;;  %v3010_v38 = vpop.xlane.xlu1 %3009  ;;  %v3176_v9 = vsel %vm1943_vm2, %v13701_v16, 0.0 }
 0x6af   : > { %11464 = vpow2.f32 %v3122_v56  ;;  %v3084_v57 = vsub.f32 %v13552_v36, %v3010_v38  ;;  %3177 = vadd.xlane.f32.xlu1 %v3176_v9 }
 0x6b0   : > { %v13709_v40 = vpop.eup %11454  ;;  %v3128_v5 = vmul.f32 1.442695, %v3085_v18 }
 0x6b1   : > { %v13711_v2 = vpop.eup %11456  ;;  %v3126_v1 = vmul.f32 1.442695, %v3084_v57  ;;  %v3019_v11 = vpop.xlane.xlu0 %3018  ;;  %v3185_v55 = vsel %vm1943_vm2, %v13709_v40, 0.0 }
 0x6b2   : > { %11466 = vpow2.f32 %v3128_v5  ;;  %v3087_v51 = vsub.f32 %v13558_v6, %v3019_v11  ;;  %3186 = vadd.xlane.f32.xlu0 %v3185_v55  ;;  %v3016_v32 = vpop.xlane.xlu1 %3015  ;;  %v3182_v15 = vsel %vm1943_vm2, %v13711_v2, 0.0 }
 0x6b3   : > { %11468 = vpow2.f32 %v3126_v1  ;;  %v3086_v36 = vsub.f32 %v13560_v39, %v3016_v32  ;;  %3183 = vadd.xlane.f32.xlu1 %v3182_v15 }
 0x6b4   : > { %v13719_v42 = vpop.eup %11458  ;;  %v3132_v35 = vmul.f32 1.442695, %v3087_v51 }
 0x6b5   : > { %v13721_v22 = vpop.eup %11460  ;;  %v3130_v62 = vmul.f32 1.442695, %v3086_v36  ;;  %v3025_v33 = vpop.xlane.xlu0 %3024  ;;  %v3191_v53 = vsel %vm1943_vm2, %v13719_v42, 0.0 }
 0x6b6   : > { %11470 = vpow2.f32 %v3132_v35  ;;  %v3089_v6 = vsub.f32 %v13566_v45, %v3025_v33  ;;  %3192 = vadd.xlane.f32.xlu0 %v3191_v53  ;;  %v3022_v47 = vpop.xlane.xlu1 %3021  ;;  %v3188_v48 = vsel %vm1943_vm2, %v13721_v22, 0.0 }
 0x6b7   : > { %11472 = vpow2.f32 %v3130_v62  ;;  %v3088_v39 = vsub.f32 %v13568_v21, %v3022_v47  ;;  %3189 = vadd.xlane.f32.xlu1 %v3188_v48 }
 0x6b8   : > { %v13729_v41 = vpop.eup %11462  ;;  %v3136_v30 = vmul.f32 1.442695, %v3089_v6 }
 0x6b9   : > { %v13731_v26 = vpop.eup %11464  ;;  %v3134_v13 = vmul.f32 1.442695, %v3088_v39  ;;  %v3031_v27 = vpop.xlane.xlu0 %3030  ;;  %v3197_v7 = vsel %vm1943_vm2, %v13729_v41, 0.0 }
 0x6ba   : > { %11474 = vpow2.f32 %v3136_v30  ;;  %v3091_v45 = vsub.f32 %v13574_v29, %v3031_v27  ;;  %3198 = vadd.xlane.f32.xlu0 %v3197_v7  ;;  %v3028_v37 = vpop.xlane.xlu1 %3027  ;;  %v3194_v44 = vsel %vm1943_vm2, %v13731_v26, 0.0 }
 0x6bb   : > { %3195 = vadd.xlane.f32.xlu1 %v3194_v44  ;;  %11476 = vpow2.f32 %v3134_v13  ;;  %v3090_v50 = vsub.f32 %v13576_v59, %v3028_v37 }
 0x6bc   : > { %v13738_v21 = vpop.eup %11466  ;;  %v3140_v31 = vmul.f32 1.442695, %v3091_v45 }
 0x6bd   : > { %v13741_v58 = vpop.eup %11468  ;;  %v3037_v20 = vpop.xlane.xlu0 %3036  ;;  %v3203_v25 = vsel %vm1943_vm2, %v13738_v21, 0.0  ;;  %v3138_v46 = vmul.f32 1.442695, %v3090_v50 }
 0x6be   : > { %3204 = vadd.xlane.f32.xlu0 %v3203_v25  ;;  %v3034_v29 = vpop.xlane.xlu1 %3033  ;;  %v3200_v23 = vsel %vm1943_vm2, %v13741_v58, 0.0  ;;  %11478 = vpow2.f32 %v3140_v31  ;;  %v3093_v59 = vsub.f32 %v13582_v61, %v3037_v20 }
 0x6bf   : > { %v3092_v56 = vsub.f32 %v13584_v4, %v3034_v29  ;;  %3201 = vadd.xlane.f32.xlu1 %v3200_v23 }
 0x6c0   : > { %v13748_v60 = vpop.eup %11470  ;;  %v3144_v11 = vmul.f32 1.442695, %v3093_v59 }
 0x6c1   : > { %v13751_v18 = vpop.eup %11472  ;;  %v3142_v38 = vmul.f32 1.442695, %v3092_v56  ;;  %v3043_v9 = vpop.xlane.xlu0 %3042  ;;  %v3209_v57 = vsel %vm1943_vm2, %v13748_v60, 0.0 }
 0x6c2   : > { %3210 = vadd.xlane.f32.xlu0 %v3209_v57  ;;  %v3040_v5 = vpop.xlane.xlu1 %3039  ;;  %v3206_v1 = vsel %vm1943_vm2, %v13751_v18, 0.0  ;;  %v3095_v61 = vsub.f32 %v13590_v54, %v3043_v9 }
 0x6c3   : > { %11480 = vpow2.f32 %v3142_v38  ;;  %3207 = vadd.xlane.f32.xlu1 %v3206_v1  ;;  %v3094_v35 = vsub.f32 %v13592_v19, %v3040_v5 }
 0x6c4   : > { %v13757_v4 = vpop.eup %11474  ;;  %11482 = vpow2.f32 %v3138_v46  ;;  %v3148_v36 = vmul.f32 1.442695, %v3095_v61 }
 0x6c5   : > { %v3049_v55 = vpop.xlane.xlu0 %3048  ;;  %v3215_v51 = vsel %vm1943_vm2, %v13757_v4, 0.0  ;;  %v13762_v32 = vpop.eup %11476  ;;  %11484 = vpow2.f32 %v3144_v11  ;;  %v3146_v6 = vmul.f32 1.442695, %v3094_v35 }
 0x6c6   : > { %3216 = vadd.xlane.f32.xlu0 %v3215_v51  ;;  %v3046_v15 = vpop.xlane.xlu1 %3045  ;;  %v3212_v33 = vsel %vm1943_vm2, %v13762_v32, 0.0  ;;  %11486 = vpow2.f32 %v3148_v36  ;;  %v3097_v47 = vsub.f32 %v13598_v14, %v3049_v55 }
 0x6c7   : > { %11488 = vpow2.f32 %v3146_v6  ;;  %v3096_v7 = vsub.f32 %v13600_v24, %v3046_v15 }
 0x6c8   : > { %v13767_v53 = vpop.eup %11478  ;;  %v3152_v27 = vmul.f32 1.442695, %v3097_v47 }
 0x6c9   : > { %v3055_v62 = vpop.xlane.xlu0 %3054  ;;  %v3221_v19 = vsel %vm1943_vm2, %v13767_v53, 0.0  ;;  %v3150_v44 = vmul.f32 1.442695, %v3096_v7 }
 0x6ca   : > { %3213 = vadd.xlane.f32.xlu0 %v3212_v33  ;;  %v13769_v54 = vpop.permute.xlu1 %4365  ;;  %11490 = vpow2.f32 %v3152_v27  ;;  %v3099_v31 = vsub.f32 %v13606_v3, %v3055_v62 }
 0x6cb   : > { %10469 = vmatprep.subr.msk.mxu1 %vm1111_vm0, %v13769_v54  ;;  %11492 = vpow2.f32 %v3150_v44 }
 0x6cc   : > { %v3156_v24 = vmul.f32 1.442695, %v3099_v31 }
 0x6cd   : > { %v13774_v48 = vpop.eup %11480  ;;  %v3052_v39 = vpop.xlane.xlu0 %3051 }
 0x6ce   : > { %v13778_v30 = vpop.eup %11482  ;;  %3222 = vadd.xlane.f32.xlu0 %v3221_v19  ;;  %v3224_v13 = vsel %vm1943_vm2, %v13774_v48, 0.0  ;;  %v3098_v29 = vsub.f32 %v13608_v43, %v3052_v39  ;;  %11494 = vpow2.f32 %v3156_v24  ;;  %v16853_v24 = vld [vmem:[#allocation21_spill] sm:$0xff] }
 0x6cf   : > { %3225 = vadd.xlane.f32.xlu1 %v3224_v13  ;;  %v3218_v14 = vsel %vm1943_vm2, %v13778_v30, 0.0  ;;  %v13785_v37 = vpop.eup %11484 }
 0x6d0   : > { %v3227_v20 = vsel %vm1943_vm2, %v13785_v37, 0.0  ;;  %v13790_v25 = vpop.eup %11486  ;;  %v3154_v3 = vmul.f32 1.442695, %v3098_v29  ;;  %v16854_v29 = vld [vmem:[#allocation45_spill] sm:$0xff] }
 0x6d1   : > { %v3061_v45 = vpop.xlane.xlu0 %3060  ;;  %v3233_v56 = vsel %vm1943_vm2, %v13790_v25, 0.0  ;;  %v13795_v46 = vpop.eup %11488 }
 0x6d2   : > { %3219 = vadd.xlane.f32.xlu0 %v3218_v14  ;;  %v3101_v59 = vsub.f32 %v13612_v8, %v3061_v45  ;;  %v3230_v9 = vsel %vm1943_vm2, %v13795_v46, 0.0  ;;  %11496 = vpow2.f32 %v3154_v3  ;;  %v16855_v3 = vld [vmem:[#allocation47_spill] sm:$0xff] }
 0x6d4   : > { %v13800_v57 = vpop.eup %11490  ;;  %v3160_v43 = vmul.f32 1.442695, %v3101_v59 }
 0x6d5   : > { %v3058_v50 = vpop.xlane.xlu0 %3057  ;;  %v3239_v61 = vsel %vm1943_vm2, %v13800_v57, 0.0  ;;  %v13806_v55 = vpop.eup %11492 }
 0x6d6   : > { %3228 = vadd.xlane.f32.xlu0 %v3227_v20  ;;  %v3100_v1 = vsub.f32 %v13614_v28, %v3058_v50 }
 0x6d8   : > { %v3158_v8 = vmul.f32 1.442695, %v3100_v1  ;;  %v13811_v36 = vpop.eup %11494  ;;  %v16858_v1 = vld [vmem:[#allocation53_spill] sm:$0xff] }
 0x6d9   : > { %v3067_v23 = vpop.xlane.xlu0 %3066  ;;  %v3245_v62 = vsel %vm1943_vm2, %v13811_v36, 0.0 }
 0x6da   : > { %3234 = vadd.xlane.f32.xlu0 %v3233_v56  ;;  %v3103_v51 = vsub.f32 %v13618_v12, %v3067_v23 }
 0x6dc   : > { %v3164_v28 = vmul.f32 1.442695, %v3103_v51  ;;  %v13816_v33 = vpop.eup %11496  ;;  %v16860_v51 = vld [vmem:[#allocation56_spill] sm:$0xff] }
 0x6dd   : > { %v3064_v38 = vpop.xlane.xlu0 %3063  ;;  %v3242_v39 = vsel %vm1943_vm2, %v13816_v33, 0.0 }
 0x6de   : > { %v3102_v5 = vsub.f32 %v13620_v52, %v3064_v38  ;;  %3231 = vadd.xlane.f32.xlu0 %v3230_v9  ;;  %v3236_v52 = vsel %vm1943_vm2, %v13806_v55, 0.0  ;;  %v16856_v38 = vld [vmem:[#allocation49_spill] sm:$0xff] }
 0x6e0   : > { %v3162_v11 = vmul.f32 1.442695, %v3102_v5 }
 0x6e1   : > { %v3073_v15 = vpop.xlane.xlu0 %3072 }
 0x6e2   : > { %11498 = vpow2.f32 %v3162_v11  ;;  %3240 = vadd.xlane.f32.xlu0 %v3239_v61  ;;  %v3105_v35 = vsub.f32 %v13628_v34, %v3073_v15 }
 0x6e3   : > { %11500 = vpow2.f32 %v3160_v43  ;;  %v16857_v43 = vld [vmem:[#allocation51_spill] sm:$0xff] }
 0x6e4   : > { %11502 = vpow2.f32 %v3158_v8  ;;  %v3168_v12 = vmul.f32 1.442695, %v3105_v35  ;;  %v16859_v8 = vld [vmem:[#allocation54_spill] sm:$0xff] }
 0x6e5   : > { %11504 = vpow2.f32 %v3164_v28  ;;  %v3070_v31 = vpop.xlane.xlu0 %3069  ;;  %v16861_v28 = vld [vmem:[#allocation44_spill] sm:$0xff]  ;;  %v16862_v35 = vld [vmem:[#allocation58_spill] sm:$0xff] }
 0x6e6   : > { %3237 = vadd.xlane.f32.xlu0 %v3236_v52  ;;  %11506 = vpow2.f32 %v3168_v12  ;;  %v3104_v50 = vsub.f32 %v13631_v63, %v3070_v31 }
 0x6e8   : > { %v3166_v20 = vmul.f32 1.442695, %v3104_v50  ;;  %v16865_v50 = vld [vmem:[#allocation48_spill] sm:$0xff] }
 0x6ea   : > { %3246 = vadd.xlane.f32.xlu0 %v3245_v62  ;;  %11508 = vpow2.f32 %v3166_v20  ;;  %v16866_v20 = vld [vmem:[#allocation62_spill] sm:$0xff] }
 0x6ec   : > { %v13818_v6 = vpop.eup %11498 }
 0x6ed   : > { %v3254_v47 = vsel %vm1943_vm2, %v13818_v6, 0.0  ;;  %v13824_v19 = vpop.eup %11500 }
 0x6ee   : > { %3255 = vadd.xlane.f32.xlu1 %v3254_v47  ;;  %3243 = vadd.xlane.f32.xlu0 %v3242_v39  ;;  %v3251_v34 = vsel %vm1943_vm2, %v13824_v19, 0.0  ;;  %v13828_v13 = vpop.eup %11502  ;;  %v16863_v39 = vld [vmem:[#allocation46_spill] sm:$0xff] }
 0x6ef   : > { %v3248_v27 = vsel %vm1943_vm2, %v13828_v13, 0.0  ;;  %v13832_v7 = vpop.eup %11504 }
 0x6f0   : > { %v3257_v45 = vsel %vm1943_vm2, %v13832_v7, 0.0  ;;  %v13836_v14 = vpop.eup %11506 }
 0x6f1   : > { %v3263_v44 = vsel %vm1943_vm2, %v13836_v14, 0.0 }
 0x6f2   : > { %3252 = vadd.xlane.f32.xlu0 %v3251_v34  ;;  %v16864_v34 = vld [vmem:[#allocation60_spill] sm:$0xff] }
 0x6f4   : > { %v13853_v59 = vpop.eup %11508 }
 0x6f5   : > { %v3260_v5 = vsel %vm1943_vm2, %v13853_v59, 0.0 }
 0x6f6   : > { %3249 = vadd.xlane.f32.xlu0 %v3248_v27 }
 0x6fa   : > { %3258 = vadd.xlane.f32.xlu0 %v3257_v45 }
 0x6fe   : > { %3264 = vadd.xlane.f32.xlu0 %v3263_v44 }
 0x6ff   : > { %4303 = vrot.lane.b32.xlu1 %v12929_v49, %s12091_s21 }
 0x714   : > { %4301 = vrot.lane.b32.xlu0 %v16853_v24, %s12091_s21 }
 0x718   : > { %4307 = vrot.lane.b32.xlu0 %v16854_v29, %s12091_s21 }
 0x719   : > { %v13847_v23 = vpop.f32.mrb[32].mxu1 }
 0x71a   : > { %v13849_v56 = vpop.f32.mrb[33].mxu1 }
 0x71c   : > { %4311 = vrot.lane.b32.xlu0 %v16855_v3, %s12091_s21 }
 0x720   : > { %4315 = vrot.lane.b32.xlu0 %v16856_v38, %s12091_s21  ;;  %v16869_v38 = vld [vmem:[#allocation52_spill] sm:$0xff] }
 0x721   : > { %v13857_v63 = vpop.f32.mrb[34].mxu1 }
 0x722   : > { %v13859_v9 = vpop.f32.mrb[35].mxu1 }
 0x723   : > { %3261 = vadd.xlane.f32.xlu1 %v3260_v5 }
 0x724   : > { %4319 = vrot.lane.b32.xlu0 %v16857_v43, %s12091_s21 }
 0x728   : > { %4323 = vrot.lane.b32.xlu0 %v16858_v1, %s12091_s21 }
 0x72a   : > { %v13867_v11 = vpop.f32.mrb[36].mxu1 }
 0x72b   : > { %v13869_v61 = vpop.f32.mrb[37].mxu1 }
 0x72c   : > { %4327 = vrot.lane.b32.xlu0 %v16859_v8, %s12091_s21 }
 0x730   : > { %4331 = vrot.lane.b32.xlu0 %v16860_v51, %s12091_s21  ;;  %v16868_v51 = vld [vmem:[#allocation64_spill] sm:$0xff] }
 0x732   : > { %v13875_v15 = vpop.f32.mrb[38].mxu1 }
 0x733   : > { %v13877_v52 = vpop.f32.mrb[39].mxu1 }
 0x734   : > { %4305 = vrot.lane.b32.xlu1 %v16861_v28, %s12091_s21  ;;  %4335 = vrot.lane.b32.xlu0 %v16862_v35, %s12091_s21 }
 0x736   : > { %v13883_v62 = vpop.f32.mrb[40].mxu1 }
 0x737   : > { %v13885_v12 = vpop.f32.mrb[41].mxu1  ;;  %v3175_v47 = vpop.xlane.xlu0 %3174 }
 0x738   : > { %11510 = vrcp.f32 %v3175_v47  ;;  %4309 = vrot.lane.b32.xlu1 %v16863_v39, %s12091_s21  ;;  %4339 = vrot.lane.b32.xlu0 %v16864_v34, %s12091_s21  ;;  %v3172_v27 = vpop.xlane.xlu1 %3171 }
 0x739   : > { %11512 = vrcp.f32 %v3172_v27  ;;  %v16867_v27 = vld [vmem:[#allocation50_spill] sm:$0xff] }
 0x73a   : > { %v13891_v45 = vpop.f32.mrb[42].mxu1 }
 0x73b   : > { %v13893_v44 = vpop.f32.mrb[43].mxu1  ;;  %v3181_v31 = vpop.xlane.xlu0 %3180 }
 0x73c   : > { %11514 = vrcp.f32 %v3181_v31  ;;  %4313 = vrot.lane.b32.xlu1 %v16865_v50, %s12091_s21  ;;  %4343 = vrot.lane.b32.xlu0 %v16866_v20, %s12091_s21  ;;  %v3178_v5 = vpop.xlane.xlu1 %3177 }
 0x73d   : > { %11516 = vrcp.f32 %v3178_v5 }
 0x73e   : > { %v13899_v47 = vpop.f32.mrb[44].mxu1 }
 0x73f   : > { %v13901_v35 = vpop.f32.mrb[45].mxu1  ;;  %v3187_v34 = vpop.xlane.xlu0 %3186 }
 0x740   : > { %11518 = vrcp.f32 %v3187_v34  ;;  %4317 = vrot.lane.b32.xlu1 %v16867_v27, %s12091_s21  ;;  %4347 = vrot.lane.b32.xlu0 %v16868_v51, %s12091_s21  ;;  %v3184_v31 = vpop.xlane.xlu1 %3183  ;;  %v16870_v34 = vld [vmem:[#allocation66_spill] sm:$0xff] }
 0x741   : > { %11520 = vrcp.f32 %v3184_v31 }
 0x742   : > { %v11511_v8 = vpop.eup %11510  ;;  %v13907_v1 = vpop.f32.mrb[46].mxu1 }
 0x743   : > { %v11513_v20 = vpop.eup %11512  ;;  %v13909_v43 = vpop.f32.mrb[47].mxu1  ;;  %v3269_v51 = vmul.f32 %v11511_v8, %v13689_v17 }
 0x744   : > { %v3193_v5 = vpop.xlane.xlu0 %3192  ;;  %4321 = vrot.lane.b32.xlu1 %v16869_v38, %s12091_s21  ;;  %4351 = vrot.lane.b32.xlu0 %v16870_v34, %s12091_s21  ;;  %v3190_v27 = vpop.xlane.xlu1 %3189  ;;  %v3267_v50 = vmul.f32 %v11513_v20, %v13691_v10  ;;  %v16871_v10 = vld [vmem:[#allocation55_spill] sm:$0xff]  ;;  %v16872_v20 = vld [vmem:[#allocation68_spill] sm:$0xff] }
 0x745   : > { %11522 = vrcp.f32 %v3193_v5 }
 0x746   : > { %11524 = vrcp.f32 %v3190_v27  ;;  %v11515_v31 = vpop.eup %11514  ;;  %v13917_v3 = vpop.f32.mrb[48].mxu1  ;;  %10309 = vmatprep.mubr.msk.f32.mxu1 %vm1943_vm2, %v3267_v50 }
 0x747   : > { %v11517_v39 = vpop.eup %11516  ;;  %v13920_v29 = vpop.f32.mrb[49].mxu1  ;;  %10310 = vmatmul.mubr.msk.f32.vlgmr.msra.gmra.mrb[52].mxu1 %vm1943_vm2, %v3269_v51  ;;  %v3273_v50 = vmul.f32 %v11515_v31, %v13699_v0  ;;  %v16874_v0 = vld [vmem:[#allocation70_spill] sm:$0xff] }
 0x748   : > { %v3199_v5 = vpop.xlane.xlu0 %3198  ;;  %10470 = vmatpush3.xpose.msk.msra.mxu1 %vm1111_vm0, %v13769_v54  ;;  %4325 = vrot.lane.b32.xlu1 %v16871_v10, %s12091_s21  ;;  %v3196_v17 = vpop.xlane.xlu1 %3195  ;;  %v3271_v8 = vmul.f32 %v11517_v39, %v13701_v16  ;;  %v16873_v16 = vld [vmem:[#allocation57_spill] sm:$0xff] }
 0x749   : > { %11526 = vrcp.f32 %v3199_v5  ;;  %4355 = vrot.lane.b32.xlu0 %v16872_v20, %s12091_s21 }
 0x74a   : > { %11528 = vrcp.f32 %v3196_v17  ;;  %v11519_v27 = vpop.eup %11518  ;;  %v13931_v34 = vpop.f32.mrb[50].mxu1  ;;  %10312 = vmatprep.mubr.msk.f32.mxu1 %vm1943_vm2, %v3271_v8 }
 0x74b   : > { %v11521_v51 = vpop.eup %11520  ;;  %v13934_v5 = vpop.f32.mrb[51].mxu1  ;;  %10313 = vmatmul.mubr.msk.f32.gmra.mrb[54].mxu1 %vm1943_vm2, %v3273_v50  ;;  %v3277_v31 = vmul.f32 %v11519_v27, %v13709_v40  ;;  %v16875_v50 = vld [vmem:[#allocation59_spill] sm:$0xff] }
 0x74c   : > { %v3205_v54 = vpop.xlane.xlu0 %3204  ;;  %4329 = vrot.lane.b32.xlu1 %v16873_v16, %s12091_s21  ;;  %v3202_v39 = vpop.xlane.xlu1 %3201  ;;  %v3275_v17 = vmul.f32 %v11521_v51, %v13711_v2  ;;  %v16876_v51 = vld [vmem:[#allocation72_spill] sm:$0xff] }
 0x74d   : > { %11530 = vrcp.f32 %v3205_v54  ;;  %4359 = vrot.lane.b32.xlu0 %v16874_v0, %s12091_s21 }
 0x74e   : > { %11532 = vrcp.f32 %v3202_v39  ;;  %10315 = vmatprep.mubr.msk.f32.mxu1 %vm1943_vm2, %v3275_v17 }
 0x74f   : > { %v11523_v8 = vpop.eup %11522  ;;  %10316 = vmatmul.mubr.msk.f32.gmra.mrb[56].mxu1 %vm1943_vm2, %v3277_v31 }
 0x750   : > { %v11525_v20 = vpop.eup %11524  ;;  %v3211_v10 = vpop.xlane.xlu0 %3210  ;;  %4333 = vrot.lane.b32.xlu1 %v16875_v50, %s12091_s21  ;;  %v3281_v40 = vmul.f32 %v11523_v8, %v13719_v42  ;;  %v16878_v8 = vld [vmem:[#allocation63_spill] sm:$0xff] }
 0x751   : > { %11534 = vrcp.f32 %v3211_v10  ;;  %v3208_v54 = vpop.xlane.xlu1 %3207  ;;  %v3279_v2 = vmul.f32 %v11525_v20, %v13721_v22  ;;  %4363 = vrot.lane.b32.xlu0 %v16876_v51, %s12091_s21  ;;  %v16877_v10 = vld [vmem:[#allocation61_spill] sm:$0xff] }
 0x752   : > { %11536 = vrcp.f32 %v3208_v54 }
 0x753   : > { %v11527_v27 = vpop.eup %11526  ;;  %10318 = vmatprep.mubr.msk.f32.mxu1 %vm1943_vm2, %v3279_v2 }
 0x754   : > { %v11529_v39 = vpop.eup %11528  ;;  %v3217_v17 = vpop.xlane.xlu0 %3216  ;;  %10319 = vmatmul.mubr.msk.f32.gmra.mrb[58].mxu1 %vm1943_vm2, %v3281_v40  ;;  %4337 = vrot.lane.b32.xlu1 %v16877_v10, %s12091_s21  ;;  %v3285_v22 = vmul.f32 %v11527_v27, %v13729_v41  ;;  %v16879_v27 = vld [vmem:[#allocation65_spill] sm:$0xff] }
 0x755   : > { %v3283_v31 = vmul.f32 %v11529_v39, %v13731_v26  ;;  %11538 = vrcp.f32 %v3217_v17 }
 0x757   : > { %v11531_v20 = vpop.eup %11530  ;;  %10321 = vmatprep.mubr.msk.f32.mxu1 %vm1943_vm2, %v3283_v31 }
 0x758   : > { %v11533_v54 = vpop.eup %11532  ;;  %v3214_v42 = vpop.xlane.xlu0 %3213  ;;  %10322 = vmatmul.mubr.msk.f32.gmra.mrb[60].mxu1 %vm1943_vm2, %v3285_v22  ;;  %4341 = vrot.lane.b32.xlu1 %v16878_v8, %s12091_s21  ;;  %v3289_v40 = vmul.f32 %v11531_v20, %v13738_v21 }
 0x759   : > { %11540 = vrcp.f32 %v3214_v42  ;;  %v3287_v2 = vmul.f32 %v11533_v54, %v13741_v58  ;;  %v16880_v58 = vld [vmem:[#allocation67_spill] sm:$0xff] }
 0x75b   : > { %v11535_v51 = vpop.eup %11534  ;;  %10324 = vmatprep.mubr.msk.f32.mxu1 %vm1943_vm2, %v3287_v2 }
 0x75c   : > { %v11537_v41 = vpop.eup %11536  ;;  %v3223_v26 = vpop.xlane.xlu0 %3222  ;;  %10325 = vmatmul.mubr.msk.f32.gmra.mrb[62].mxu1 %vm1943_vm2, %v3289_v40  ;;  %4345 = vrot.lane.b32.xlu1 %v16879_v27, %s12091_s21  ;;  %v3293_v31 = vmul.f32 %v11535_v51, %v13748_v60  ;;  %v16882_v40 = vld [vmem:[#allocation71_spill] sm:$0xff] }
 0x75d   : > { %v3226_v39 = vpop.xlane.xlu1 %3225  ;;  %v3291_v17 = vmul.f32 %v11537_v41, %v13751_v18  ;;  %11542 = vrcp.f32 %v3223_v26  ;;  %v16881_v18 = vld [vmem:[#allocation69_spill] sm:$0xff] }
 0x75e   : > { %11544 = vrcp.f32 %v3226_v39 }
 0x75f   : > { %10327 = vmatprep.mubr.msk.f32.mxu1 %vm1943_vm2, %v3291_v17  ;;  %v11539_v22 = vpop.eup %11538  ;;  %v16883_v17 = vld [vmem:[#allocation73_spill] sm:$0xff] }
 0x760   : > { %v3220_v21 = vpop.xlane.xlu0 %3219  ;;  %10328 = vmatmul.mubr.msk.f32.gmra.mrb[64].mxu1 %vm1943_vm2, %v3293_v31  ;;  %4349 = vrot.lane.b32.xlu1 %v16880_v58, %s12091_s21  ;;  %v3297_v60 = vmul.f32 %v11539_v22, %v13757_v4 }
 0x761   : > { %11546 = vrcp.f32 %v3220_v21 }
 0x763   : > { %v11541_v20 = vpop.eup %11540 }
 0x764   : > { %v3229_v54 = vpop.xlane.xlu0 %3228  ;;  %v3295_v42 = vmul.f32 %v11541_v20, %v13762_v32  ;;  %4353 = vrot.lane.b32.xlu1 %v16881_v18, %s12091_s21 }
 0x765   : > { %11548 = vrcp.f32 %v3229_v54 }
 0x766   : > { %10330 = vmatprep.mubr.msk.f32.mxu1 %vm1943_vm2, %v3295_v42 }
 0x767   : > { %10331 = vmatmul.mubr.msk.f32.gmra.mrb[66].mxu1 %vm1943_vm2, %v3297_v60  ;;  %v11543_v2 = vpop.eup %11542 }
 0x768   : > { %v3235_v51 = vpop.xlane.xlu0 %3234  ;;  %4357 = vrot.lane.b32.xlu1 %v16882_v40, %s12091_s21  ;;  %v11545_v41 = vpop.eup %11544  ;;  %v3301_v4 = vmul.f32 %v11543_v2, %v13767_v53 }
 0x769   : > { %11550 = vrcp.f32 %v3235_v51  ;;  %v3303_v31 = vmul.f32 %v11545_v41, %v13774_v48 }
 0x76b   : > { %v11547_v26 = vpop.eup %11546 }
 0x76c   : > { %v3232_v39 = vpop.xlane.xlu0 %3231  ;;  %v3299_v32 = vmul.f32 %v11547_v26, %v13778_v30  ;;  %4361 = vrot.lane.b32.xlu1 %v16883_v17, %s12091_s21 }
 0x76d   : > { %11552 = vrcp.f32 %v3232_v39 }
 0x76e   : > { %10333 = vmatprep.mubr.msk.f32.mxu1 %vm1943_vm2, %v3299_v32  ;;  %v3655_v32 = vld [vmem:[%s16532_s12 + $0x20] sm:$0xff] }
 0x76f   : > { %v11549_v21 = vpop.eup %11548  ;;  %10334 = vmatmul.mubr.msk.f32.gmra.mrb[68].mxu1 %vm1943_vm2, %v3301_v4 }
 0x770   : > { %v3241_v22 = vpop.xlane.xlu0 %3240  ;;  %10336 = vmatprep.mubr.msk.f32.mxu1 %vm1943_vm2, %v3303_v31  ;;  %v3305_v20 = vmul.f32 %v11549_v21, %v13785_v37  ;;  %v3658_v21 = vld [vmem:[%s16532_s12 + $0x38] sm:$0xff] }
 0x771   : > { %11554 = vrcp.f32 %v3241_v22 }
 0x773   : > { %10337 = vmatmul.mubr.msk.f32.gmra.mrb[70].mxu1 %vm1943_vm2, %v3305_v20  ;;  %v11551_v54 = vpop.eup %11550 }
 0x774   : > { %v3238_v30 = vpop.xlane.xlu0 %3237  ;;  %v3309_v48 = vmul.f32 %v11551_v54, %v13790_v25  ;;  %v3656_v25 = vld [vmem:[%s16532_s12 + $0x28] sm:$0xff] }
 0x775   : > { %11556 = vrcp.f32 %v3238_v30  ;;  %v11011_v31 = vpack.c.bf16 %v3656_v25, %v3655_v32 }
 0x777   : > { %v11553_v42 = vpop.eup %11552  ;;  %11012 = vmatprep.subr.bf16.mxu0 %v11011_v31 }
 0x778   : > { %v3247_v53 = vpop.xlane.xlu0 %3246  ;;  %v3307_v60 = vmul.f32 %v11553_v42, %v13795_v46  ;;  %v3657_v46 = vld [vmem:[%s16532_s12 + $0x30] sm:$0xff]  ;;  %11014 = vmatpush3.bf16.msra.mxu0 %v11011_v31 }
 0x779   : > { %11558 = vrcp.f32 %v3247_v53 }
 0x77a   : > { %10339 = vmatprep.mubr.msk.f32.mxu1 %vm1943_vm2, %v3307_v60 }
 0x77b   : > { %10340 = vmatmul.mubr.msk.f32.gmra.mrb[72].mxu1 %vm1943_vm2, %v3309_v48  ;;  %v11555_v37 = vpop.eup %11554  ;;  %v3256_v41 = vpop.xlane.xlu1 %3255 }
 0x77c   : > { %v3244_v51 = vpop.xlane.xlu0 %3243  ;;  %v3313_v4 = vmul.f32 %v11555_v37, %v13800_v57 }
 0x77d   : > { %11560 = vrcp.f32 %v3244_v51 }
 0x77e   : > { %11562 = vrcp.f32 %v3256_v41 }
 0x77f   : > { %v11557_v2 = vpop.eup %11556  ;;  %v4304_v32 = vpop.permute.xlu1 %4303 }
 0x780   : > { %v3253_v26 = vpop.xlane.xlu0 %3252  ;;  %v3311_v39 = vmul.f32 %v11557_v2, %v13806_v55  ;;  %v11015_v55 = vpack.c.bf16 %v3658_v21, %v3657_v46 }
 0x781   : > { %11564 = vrcp.f32 %v3253_v26 }
 0x782   : > { %10342 = vmatprep.mubr.msk.f32.mxu1 %vm1943_vm2, %v3311_v39  ;;  %11016 = vmatprep.subr.bf16.mxu0 %v11015_v55 }
 0x783   : > { %10343 = vmatmul.mubr.msk.f32.gmra.mrb[74].mxu1 %vm1943_vm2, %v3313_v4  ;;  %v11559_v20 = vpop.eup %11558  ;;  %11018 = vmatpush3.bf16.msra.mxu0 %v11015_v55 }
 0x784   : > { %v3250_v22 = vpop.xlane.xlu0 %3249  ;;  %v3317_v42 = vmul.f32 %v11559_v20, %v13811_v36 }
 0x785   : > { %11566 = vrcp.f32 %v3250_v22 }
 0x787   : > { %v11561_v30 = vpop.eup %11560 }
 0x788   : > { %v3259_v57 = vpop.xlane.xlu0 %3258  ;;  %v3315_v54 = vmul.f32 %v11561_v30, %v13816_v33  ;;  %v11563_v53 = vpop.eup %11562 }
 0x789   : > { %11568 = vrcp.f32 %v3259_v57  ;;  %v3323_v2 = vmul.f32 %v11563_v53, %v13818_v6 }
 0x78a   : > { %10345 = vmatprep.mubr.msk.f32.mxu1 %vm1943_vm2, %v3315_v54 }
 0x78b   : > { %10346 = vmatmul.mubr.msk.f32.gmra.mrb[76].mxu1 %vm1943_vm2, %v3317_v42  ;;  %v11565_v60 = vpop.eup %11564 }
 0x78c   : > { %v3321_v37 = vmul.f32 %v11565_v60, %v13824_v19  ;;  %v3265_v41 = vpop.xlane.xlu0 %3264 }
 0x78d   : > { %11570 = vrcp.f32 %v3265_v41 }
 0x78f   : > { %v11567_v48 = vpop.eup %11566 }
 0x790   : > { %v3319_v51 = vmul.f32 %v11567_v48, %v13828_v13  ;;  %v4302_v26 = vpop.permute.xlu0 %4301 }
 0x792   : > { %10348 = vmatprep.mubr.msk.f32.mxu1 %vm1943_vm2, %v3319_v51 }
 0x793   : > { %v11569_v33 = vpop.eup %11568  ;;  %10349 = vmatmul.mubr.msk.f32.gmra.mrb[78].mxu1 %vm1943_vm2, %v3321_v37 }
 0x794   : > { %10351 = vmatprep.mubr.msk.f32.mxu1 %vm1943_vm2, %v3323_v2  ;;  %v3325_v36 = vmul.f32 %v11569_v33, %v13832_v7  ;;  %v4308_v39 = vpop.permute.xlu0 %4307 }
 0x797   : > { %10352 = vmatmul.mubr.msk.f32.gmra.mrb[80].mxu1 %vm1943_vm2, %v3325_v36  ;;  %v11571_v4 = vpop.eup %11570 }
 0x798   : > { %v4312_v13 = vpop.permute.xlu0 %4311  ;;  %v3329_v7 = vmul.f32 %v11571_v4, %v13836_v14 }
 0x79c   : > { %v4316_v46 = vpop.permute.xlu0 %4315 }
 0x7a0   : > { %v4320_v21 = vpop.permute.xlu0 %4319 }
 0x7a4   : > { %v4324_v30 = vpop.permute.xlu0 %4323 }
 0x7a8   : > { %v4328_v54 = vpop.permute.xlu0 %4327 }
 0x7ac   : > { %v4332_v42 = vpop.permute.xlu0 %4331 }
 0x7b0   : > { %v3262_v19 = vpop.xlane.xlu1 %3261  ;;  %v4336_v60 = vpop.permute.xlu0 %4335 }
 0x7b1   : > { %11572 = vrcp.f32 %v3262_v19 }
 0x7b4   : > { %v4306_v25 = vpop.permute.xlu1 %4305  ;;  %v4340_v51 = vpop.permute.xlu0 %4339 }
 0x7b8   : > { %v4310_v6 = vpop.permute.xlu1 %4309  ;;  %v4344_v2 = vpop.permute.xlu0 %4343 }
 0x7bb   : > { %v11573_v31 = vpop.eup %11572 }
 0x7bc   : > { %v4314_v55 = vpop.permute.xlu1 %4313  ;;  %v3327_v22 = vmul.f32 %v11573_v31, %v13853_v59  ;;  %v4348_v36 = vpop.permute.xlu0 %4347 }
 0x7be   : > { %10354 = vmatprep.mubr.msk.f32.mxu1 %vm1943_vm2, %v3327_v22 }
 0x7bf   : > { %10355 = vmatmul.mubr.msk.f32.gmra.mrb[82].mxu1 %vm1943_vm2, %v3329_v7 }
 0x7c0   : > { %10471 = vmatprep.mubr.msk.f32.mxu1 %vm1111_vm0, %v4302_v26  ;;  %v4318_v20 = vpop.permute.xlu1 %4317  ;;  %v4352_v26 = vpop.permute.xlu0 %4351 }
 0x7c3   : > { %10472 = vmatmul.mubr.msk.f32.vlgmr.msra.gmra.mrb[84].mxu1 %vm1111_vm0, %v4304_v32  ;;  %v2618_v32 = vld [vmem:[%s16532_s12 + $0x8] sm:$0xff] }
 0x7c4   : > { %10474 = vmatprep.mubr.msk.f32.mxu1 %vm1111_vm0, %v4306_v25  ;;  %v4322_v57 = vpop.permute.xlu1 %4321  ;;  %v4356_v25 = vpop.permute.xlu0 %4355 }
 0x7c7   : > { %10475 = vmatmul.mubr.msk.f32.gmra.mrb[86].mxu1 %vm1111_vm0, %v4308_v39  ;;  %v2617_v39 = vld [vmem:[%s16532_s12] sm:$0xff] }
 0x7c8   : > { %10477 = vmatprep.mubr.msk.f32.mxu1 %vm1111_vm0, %v4310_v6  ;;  %v4326_v59 = vpop.permute.xlu1 %4325  ;;  %v4360_v6 = vpop.permute.xlu0 %4359 }
 0x7cb   : > { %10478 = vmatmul.mubr.msk.f32.gmra.mrb[88].mxu1 %vm1111_vm0, %v4312_v13  ;;  %v11019_v13 = vpack.c.bf16 %v2618_v32, %v2617_v39 }
 0x7cc   : > { %10480 = vmatprep.mubr.msk.f32.mxu1 %vm1111_vm0, %v4314_v55  ;;  %v4330_v14 = vpop.permute.xlu1 %4329  ;;  %v4364_v31 = vpop.permute.xlu0 %4363  ;;  %v2620_v55 = vld [vmem:[%s16532_s12 + $0x18] sm:$0xff] }
 0x7cd   : > { %11020 = vmatprep.subr.bf16.mxu0 %v11019_v13 }
 0x7cf   : > { %10481 = vmatmul.mubr.msk.f32.gmra.mrb[90].mxu1 %vm1111_vm0, %v4316_v46 }
 0x7d0   : > { %10483 = vmatprep.mubr.msk.f32.mxu1 %vm1111_vm0, %v4318_v20  ;;  %v4334_v53 = vpop.permute.xlu1 %4333 }
 0x7d3   : > { %10484 = vmatmul.mubr.msk.f32.gmra.mrb[92].mxu1 %vm1111_vm0, %v4320_v21  ;;  %v2619_v21 = vld [vmem:[%s16532_s12 + $0x10] sm:$0xff] }
 0x7d4   : > { %10486 = vmatprep.mubr.msk.f32.mxu1 %vm1111_vm0, %v4322_v57  ;;  %v4338_v48 = vpop.permute.xlu1 %4337  ;;  %v11023_v20 = vpack.c.bf16 %v2620_v55, %v2619_v21 }
 0x7d7   : > { %10487 = vmatmul.mubr.msk.f32.gmra.mrb[94].mxu1 %vm1111_vm0, %v4324_v30 }
 0x7d8   : > { %10489 = vmatprep.mubr.msk.f32.mxu1 %vm1111_vm0, %v4326_v59  ;;  %v4342_v37 = vpop.permute.xlu1 %4341 }
 0x7db   : > { %10490 = vmatmul.mubr.msk.f32.gmra.mrb[96].mxu1 %vm1111_vm0, %v4328_v54 }
 0x7dc   : > { %10492 = vmatprep.mubr.msk.f32.mxu1 %vm1111_vm0, %v4330_v14  ;;  %v4346_v33 = vpop.permute.xlu1 %4345 }
 0x7df   : > { %10493 = vmatmul.mubr.msk.f32.gmra.mrb[98].mxu1 %vm1111_vm0, %v4332_v42 }
 0x7e0   : > { %10495 = vmatprep.mubr.msk.f32.mxu1 %vm1111_vm0, %v4334_v53  ;;  %v4350_v41 = vpop.permute.xlu1 %4349 }
 0x7e3   : > { %10496 = vmatmul.mubr.msk.f32.gmra.mrb[100].mxu1 %vm1111_vm0, %v4336_v60 }
 0x7e4   : > { %10498 = vmatprep.mubr.msk.f32.mxu1 %vm1111_vm0, %v4338_v48  ;;  %v4354_v19 = vpop.permute.xlu1 %4353 }
 0x7e7   : > { %10499 = vmatmul.mubr.msk.f32.gmra.mrb[102].mxu1 %vm1111_vm0, %v4340_v51 }
 0x7e8   : > { %10501 = vmatprep.mubr.msk.f32.mxu1 %vm1111_vm0, %v4342_v37  ;;  %v4358_v46 = vpop.permute.xlu1 %4357 }
 0x7eb   : > { %10502 = vmatmul.mubr.msk.f32.gmra.mrb[104].mxu1 %vm1111_vm0, %v4344_v2 }
 0x7ec   : > { %10504 = vmatprep.mubr.msk.f32.mxu1 %vm1111_vm0, %v4346_v33  ;;  %v4362_v4 = vpop.permute.xlu1 %4361 }
 0x7ef   : > { %10505 = vmatmul.mubr.msk.f32.gmra.mrb[106].mxu1 %vm1111_vm0, %v4348_v36 }
 0x7f0   : > { %10507 = vmatprep.mubr.msk.f32.mxu1 %vm1111_vm0, %v4350_v41 }
 0x7f3   : > { %10508 = vmatmul.mubr.msk.f32.gmra.mrb[108].mxu1 %vm1111_vm0, %v4352_v26 }
 0x7f4   : > { %10510 = vmatprep.mubr.msk.f32.mxu1 %vm1111_vm0, %v4354_v19 }
 0x7f7   : > { %10511 = vmatmul.mubr.msk.f32.gmra.mrb[110].mxu1 %vm1111_vm0, %v4356_v25 }
 0x7f8   : > { %10513 = vmatprep.mubr.msk.f32.mxu1 %vm1111_vm0, %v4358_v46 }
 0x7fb   : > { %10514 = vmatmul.mubr.msk.f32.gmra.mrb[112].mxu1 %vm1111_vm0, %v4360_v6 }
 0x7fc   : > { %10516 = vmatprep.mubr.msk.f32.mxu1 %vm1111_vm0, %v4362_v4 }
 0x7ff   : > { %10517 = vmatmul.mubr.msk.f32.gmra.mrb[114].mxu1 %vm1111_vm0, %v4364_v31 }
 0x81a   : > { %v10311_v22 = vpop.f32.mrb[52].mxu1 }
 0x81b   : > { %v3496_v7 = vpop.f32.mrb[53].mxu1 }
 0x81c   : > { %10365 = vmatprep.mubr.msk.f32.mxu0 %vm1111_vm0, %v3496_v7 }
 0x81d   : > { %10366 = vmatmul.mubr.msk.f32.vlgmr.msra.gmra.mrb[80].mxu0 %vm1111_vm0, %v10311_v22 }
 0x81e   : > { %v10314_v30 = vpop.f32.mrb[54].mxu1  ;;  %11022 = vmatpush3.bf16.msra.mxu0 %v11019_v13 }
 0x81f   : > { %v3506_v57 = vpop.f32.mrb[55].mxu1  ;;  %11024 = vmatprep.subr.bf16.mxu0 %v11023_v20 }
 0x820   : > { %10368 = vmatprep.mubr.msk.f32.mxu0 %vm1111_vm0, %v3506_v57 }
 0x821   : > { %10369 = vmatmul.mubr.msk.f32.gmra.mrb[82].mxu0 %vm1111_vm0, %v10314_v30  ;;  %v16884_v30 = vld [vmem:[#allocation74_spill] sm:$0xff] }
 0x822   : > { %v10317_v54 = vpop.f32.mrb[56].mxu1  ;;  %11026 = vmatpush3.bf16.msra.mxu0 %v11023_v20 }
 0x823   : > { %v3516_v59 = vpop.f32.mrb[57].mxu1 }
 0x824   : > { %10371 = vmatprep.mubr.msk.f32.mxu0 %vm1111_vm0, %v3516_v59 }
 0x825   : > { %10372 = vmatmul.mubr.msk.f32.gmra.mrb[84].mxu0 %vm1111_vm0, %v10317_v54 }
 0x827   : > { %v10320_v14 = vpop.f32.mrb[58].mxu1 }
 0x828   : > { %v3526_v42 = vpop.f32.mrb[59].mxu1 }
 0x829   : > { %10374 = vmatprep.mubr.msk.f32.mxu0 %vm1111_vm0, %v3526_v42  ;;  %v16885_v42 = vld [vmem:[#allocation76_spill] sm:$0xff] }
 0x82a   : > { %10375 = vmatmul.mubr.msk.f32.gmra.mrb[86].mxu0 %vm1111_vm0, %v10320_v14 }
 0x82b   : > { %v10323_v53 = vpop.f32.mrb[60].mxu1 }
 0x82c   : > { %v3536_v60 = vpop.f32.mrb[61].mxu1 }
 0x82d   : > { %10377 = vmatprep.mubr.msk.f32.mxu0 %vm1111_vm0, %v3536_v60 }
 0x82e   : > { %10378 = vmatmul.mubr.msk.f32.gmra.mrb[88].mxu0 %vm1111_vm0, %v10323_v53  ;;  %v16886_v53 = vld [vmem:[#allocation75_spill] sm:$0xff] }
 0x82f   : > { %v10326_v48 = vpop.f32.mrb[62].mxu1 }
 0x830   : > { %v3546_v51 = vpop.f32.mrb[63].mxu1 }
 0x831   : > { %10380 = vmatprep.mubr.msk.f32.mxu0 %vm1111_vm0, %v3546_v51 }
 0x832   : > { %10381 = vmatmul.mubr.msk.f32.gmra.mrb[90].mxu0 %vm1111_vm0, %v10326_v48 }
 0x833   : > { %v10329_v37 = vpop.f32.mrb[64].mxu1 }
 0x834   : > { %v3556_v2 = vpop.f32.mrb[65].mxu1 }
 0x835   : > { %10383 = vmatprep.mubr.msk.f32.mxu0 %vm1111_vm0, %v3556_v2  ;;  %v16887_v2 = vld [vmem:[#allocation78_spill] sm:$0xff] }
 0x836   : > { %10384 = vmatmul.mubr.msk.f32.gmra.mrb[92].mxu0 %vm1111_vm0, %v10329_v37 }
 0x83a   : > { %v10332_v33 = vpop.f32.mrb[66].mxu1 }
 0x83b   : > { %v3566_v36 = vpop.f32.mrb[67].mxu1 }
 0x83c   : > { %10386 = vmatprep.mubr.msk.f32.mxu0 %vm1111_vm0, %v3566_v36 }
 0x83d   : > { %10387 = vmatmul.mubr.msk.f32.gmra.mrb[94].mxu0 %vm1111_vm0, %v10332_v33  ;;  %v16888_v33 = vld [vmem:[#allocation77_spill] sm:$0xff] }
 0x842   : > { %v10335_v41 = vpop.f32.mrb[68].mxu1 }
 0x843   : > { %v3576_v26 = vpop.f32.mrb[69].mxu1 }
 0x844   : > { %10389 = vmatprep.mubr.msk.f32.mxu0 %vm1111_vm0, %v3576_v26 }
 0x845   : > { %10390 = vmatmul.mubr.msk.f32.gmra.mrb[96].mxu0 %vm1111_vm0, %v10335_v41 }
 0x846   : > { %v10338_v39 = vpop.f32.mrb[70].mxu1 }
 0x847   : > { %v3586_v32 = vpop.f32.mrb[71].mxu1 }
 0x848   : > { %10392 = vmatprep.mubr.msk.f32.mxu0 %vm1111_vm0, %v3586_v32  ;;  %v16889_v32 = vld [vmem:[#allocation80_spill] sm:$0xff] }
 0x849   : > { %10393 = vmatmul.mubr.msk.f32.gmra.mrb[98].mxu0 %vm1111_vm0, %v10338_v39 }
 0x84e   : > { %v10341_v13 = vpop.f32.mrb[72].mxu1 }
 0x84f   : > { %v3596_v19 = vpop.f32.mrb[73].mxu1 }
 0x850   : > { %10395 = vmatprep.mubr.msk.f32.mxu0 %vm1111_vm0, %v3596_v19 }
 0x851   : > { %10396 = vmatmul.mubr.msk.f32.gmra.mrb[100].mxu0 %vm1111_vm0, %v10341_v13  ;;  %v16890_v13 = vld [vmem:[#allocation79_spill] sm:$0xff] }
 0x856   : > { %v10344_v25 = vpop.f32.mrb[74].mxu1 }
 0x857   : > { %v3606_v46 = vpop.f32.mrb[75].mxu1 }
 0x858   : > { %10398 = vmatprep.mubr.msk.f32.mxu0 %vm1111_vm0, %v3606_v46 }
 0x859   : > { %10399 = vmatmul.mubr.msk.f32.gmra.mrb[102].mxu0 %vm1111_vm0, %v10344_v25 }
 0x85e   : > { %v10347_v6 = vpop.f32.mrb[76].mxu1 }
 0x85f   : > { %v3616_v4 = vpop.f32.mrb[77].mxu1 }
 0x860   : > { %10401 = vmatprep.mubr.msk.f32.mxu0 %vm1111_vm0, %v3616_v4  ;;  %v16891_v4 = vld [vmem:[#allocation82_spill] sm:$0xff] }
 0x861   : > { %10402 = vmatmul.mubr.msk.f32.gmra.mrb[104].mxu0 %vm1111_vm0, %v10347_v6 }
 0x866   : > { %v10350_v31 = vpop.f32.mrb[78].mxu1 }
 0x867   : > { %v3626_v21 = vpop.f32.mrb[79].mxu1 }
 0x868   : > { %10404 = vmatprep.mubr.msk.f32.mxu0 %vm1111_vm0, %v3626_v21 }
 0x869   : > { %10405 = vmatmul.mubr.msk.f32.gmra.mrb[106].mxu0 %vm1111_vm0, %v10350_v31  ;;  %v16892_v31 = vld [vmem:[#allocation81_spill] sm:$0xff] }
 0x86a   : > { %v10353_v55 = vpop.f32.mrb[80].mxu1 }
 0x86b   : > { %v3636_v22 = vpop.f32.mrb[81].mxu1 }
 0x86c   : > { %10407 = vmatprep.mubr.msk.f32.mxu0 %vm1111_vm0, %v3636_v22 }
 0x86d   : > { %10408 = vmatmul.mubr.msk.f32.gmra.mrb[108].mxu0 %vm1111_vm0, %v10353_v55 }
 0x892   : > { %v10356_v7 = vpop.f32.mrb[82].mxu1 }
 0x893   : > { %v3646_v20 = vpop.f32.mrb[83].mxu1 }
 0x894   : > { %10410 = vmatprep.mubr.msk.f32.mxu0 %vm1111_vm0, %v3646_v20  ;;  %v16893_v20 = vld [vmem:[#allocation84_spill] sm:$0xff] }
 0x895   : > { %10411 = vmatmul.mubr.msk.f32.gmra.mrb[110].mxu0 %vm1111_vm0, %v10356_v7 }
 0x896   : > { %10421 = vmatprep.mubr.msk.f32.mxu0 %vm1111_vm0, %v16884_v30  ;;  %v14105_v57 = vpop.f32.mrb[84].mxu1  ;;  %v16894_v30 = vld [vmem:[#allocation83_spill] sm:$0xff] }
 0x897   : > { %v14107_v54 = vpop.f32.mrb[85].mxu1  ;;  %v4661_v59 = vsel %vm1943_vm2, %v14105_v57, -inf }
 0x898   : > { %4662 = vmax.xlane.f32.xlu0 %v4661_v59  ;;  %v4658_v14 = vsel %vm1943_vm2, %v14107_v54, -inf }
 0x899   : > { %4659 = vmax.xlane.f32.xlu1 %v4658_v14  ;;  %10422 = vmatmul.mubr.msk.f32.vlgmr.msra.gmra.mrb[80].mxu0 %vm1111_vm0, %v16885_v42 }
 0x89a   : > { %10424 = vmatprep.mubr.msk.f32.mxu0 %vm1111_vm0, %v16886_v53  ;;  %v14117_v60 = vpop.f32.mrb[86].mxu1 }
 0x89b   : > { %v14119_v48 = vpop.f32.mrb[87].mxu1  ;;  %v4667_v51 = vsel %vm1943_vm2, %v14117_v60, -inf }
 0x89c   : > { %v4664_v37 = vsel %vm1943_vm2, %v14119_v48, -inf }
 0x89d   : > { %10425 = vmatmul.mubr.msk.f32.gmra.mrb[82].mxu0 %vm1111_vm0, %v16887_v2  ;;  %4668 = vmax.xlane.f32.xlu1 %v4667_v51  ;;  %v16895_v51 = vld [vmem:[#allocation86_spill] sm:$0xff] }
 0x89e   : > { %4665 = vmax.xlane.f32.xlu0 %v4664_v37  ;;  %10427 = vmatprep.mubr.msk.f32.mxu0 %vm1111_vm0, %v16888_v33  ;;  %v14129_v36 = vpop.f32.mrb[88].mxu1 }
 0x89f   : > { %v14131_v41 = vpop.f32.mrb[89].mxu1  ;;  %v4673_v26 = vsel %vm1943_vm2, %v14129_v36, -inf }
 0x8a0   : > { %v4670_v39 = vsel %vm1943_vm2, %v14131_v41, -inf }
 0x8a1   : > { %10428 = vmatmul.mubr.msk.f32.gmra.mrb[84].mxu0 %vm1111_vm0, %v16889_v32  ;;  %4674 = vmax.xlane.f32.xlu1 %v4673_v26 }
 0x8a2   : > { %4671 = vmax.xlane.f32.xlu0 %v4670_v39  ;;  %10430 = vmatprep.mubr.msk.f32.mxu0 %vm1111_vm0, %v16890_v13  ;;  %v14141_v19 = vpop.f32.mrb[90].mxu1 }
 0x8a3   : > { %v14143_v25 = vpop.f32.mrb[91].mxu1  ;;  %v4679_v46 = vsel %vm1943_vm2, %v14141_v19, -inf }
 0x8a4   : > { %v4676_v6 = vsel %vm1943_vm2, %v14143_v25, -inf }
 0x8a5   : > { %10431 = vmatmul.mubr.msk.f32.gmra.mrb[86].mxu0 %vm1111_vm0, %v16891_v4  ;;  %4680 = vmax.xlane.f32.xlu1 %v4679_v46 }
 0x8a6   : > { %4677 = vmax.xlane.f32.xlu0 %v4676_v6  ;;  %10433 = vmatprep.mubr.msk.f32.mxu0 %vm1111_vm0, %v16892_v31  ;;  %v14153_v21 = vpop.f32.mrb[92].mxu1 }
 0x8a7   : > { %v14155_v55 = vpop.f32.mrb[93].mxu1  ;;  %v4685_v22 = vsel %vm1943_vm2, %v14153_v21, -inf }
 0x8a8   : > { %v4682_v7 = vsel %vm1943_vm2, %v14155_v55, -inf }
 0x8a9   : > { %10434 = vmatmul.mubr.msk.f32.gmra.mrb[88].mxu0 %vm1111_vm0, %v16893_v20  ;;  %4686 = vmax.xlane.f32.xlu1 %v4685_v22 }
 0x8aa   : > { %4683 = vmax.xlane.f32.xlu0 %v4682_v7  ;;  %10436 = vmatprep.mubr.msk.f32.mxu0 %vm1111_vm0, %v16894_v30  ;;  %v14165_v59 = vpop.f32.mrb[94].mxu1 }
 0x8ab   : > { %v14167_v14 = vpop.f32.mrb[95].mxu1  ;;  %v4691_v42 = vsel %vm1943_vm2, %v14165_v59, -inf }
 0x8ac   : > { %v4688_v53 = vsel %vm1943_vm2, %v14167_v14, -inf }
 0x8ad   : > { %10437 = vmatmul.mubr.msk.f32.gmra.mrb[90].mxu0 %vm1111_vm0, %v16895_v51  ;;  %4692 = vmax.xlane.f32.xlu1 %v4691_v42 }
 0x8ae   : > { %4689 = vmax.xlane.f32.xlu0 %v4688_v53  ;;  %10439 = vmatprep.mubr.msk.f32.mxu0 %vm1111_vm0, %v13849_v56  ;;  %v14177_v37 = vpop.f32.mrb[96].mxu1 }
 0x8af   : > { %v14179_v2 = vpop.f32.mrb[97].mxu1  ;;  %v4697_v33 = vsel %vm1943_vm2, %v14177_v37, -inf }
 0x8b0   : > { %v4694_v26 = vsel %vm1943_vm2, %v14179_v2, -inf }
 0x8b1   : > { %10440 = vmatmul.mubr.msk.f32.gmra.mrb[92].mxu0 %vm1111_vm0, %v13847_v23  ;;  %4698 = vmax.xlane.f32.xlu1 %v4697_v33 }
 0x8b2   : > { %4695 = vmax.xlane.f32.xlu0 %v4694_v26  ;;  %10442 = vmatprep.mubr.msk.f32.mxu0 %vm1111_vm0, %v13859_v9  ;;  %v14189_v39 = vpop.f32.mrb[98].mxu1 }
 0x8b3   : > { %v14191_v56 = vpop.f32.mrb[99].mxu1  ;;  %v4703_v32 = vsel %vm1943_vm2, %v14189_v39, -inf }
 0x8b4   : > { %v4700_v13 = vsel %vm1943_vm2, %v14191_v56, -inf }
 0x8b5   : > { %10443 = vmatmul.mubr.msk.f32.gmra.mrb[94].mxu0 %vm1111_vm0, %v13857_v63  ;;  %4704 = vmax.xlane.f32.xlu1 %v4703_v32 }
 0x8b6   : > { %4701 = vmax.xlane.f32.xlu0 %v4700_v13  ;;  %10445 = vmatprep.mubr.msk.f32.mxu0 %vm1111_vm0, %v13869_v61  ;;  %v14201_v23 = vpop.f32.mrb[100].mxu1 }
 0x8b7   : > { %v14203_v9 = vpop.f32.mrb[101].mxu1  ;;  %v4709_v46 = vsel %vm1943_vm2, %v14201_v23, -inf }
 0x8b8   : > { %v4706_v6 = vsel %vm1943_vm2, %v14203_v9, -inf }
 0x8b9   : > { %10446 = vmatmul.mubr.msk.f32.gmra.mrb[96].mxu0 %vm1111_vm0, %v13867_v11  ;;  %4710 = vmax.xlane.f32.xlu1 %v4709_v46 }
 0x8ba   : > { %4707 = vmax.xlane.f32.xlu0 %v4706_v6  ;;  %10448 = vmatprep.mubr.msk.f32.mxu0 %vm1111_vm0, %v13877_v52  ;;  %v14213_v63 = vpop.f32.mrb[102].mxu1 }
 0x8bb   : > { %v14215_v61 = vpop.f32.mrb[103].mxu1  ;;  %v4715_v4 = vsel %vm1943_vm2, %v14213_v63, -inf }
 0x8bc   : > { %v4712_v31 = vsel %vm1943_vm2, %v14215_v61, -inf }
 0x8bd   : > { %10449 = vmatmul.mubr.msk.f32.gmra.mrb[98].mxu0 %vm1111_vm0, %v13875_v15  ;;  %4716 = vmax.xlane.f32.xlu1 %v4715_v4 }
 0x8be   : > { %4713 = vmax.xlane.f32.xlu0 %v4712_v31  ;;  %10451 = vmatprep.mubr.msk.f32.mxu0 %vm1111_vm0, %v13885_v12  ;;  %v14225_v11 = vpop.f32.mrb[104].mxu1 }
 0x8bf   : > { %v14227_v52 = vpop.f32.mrb[105].mxu1  ;;  %v4721_v22 = vsel %vm1943_vm2, %v14225_v11, -inf }
 0x8c0   : > { %v4718_v7 = vsel %vm1943_vm2, %v14227_v52, -inf }
 0x8c1   : > { %10452 = vmatmul.mubr.msk.f32.gmra.mrb[100].mxu0 %vm1111_vm0, %v13883_v62  ;;  %4722 = vmax.xlane.f32.xlu1 %v4721_v22 }
 0x8c2   : > { %4719 = vmax.xlane.f32.xlu0 %v4718_v7  ;;  %10454 = vmatprep.mubr.msk.f32.mxu0 %vm1111_vm0, %v13893_v44  ;;  %v14237_v15 = vpop.f32.mrb[106].mxu1 }
 0x8c3   : > { %v14239_v12 = vpop.f32.mrb[107].mxu1  ;;  %v4727_v20 = vsel %vm1943_vm2, %v14237_v15, -inf }
 0x8c4   : > { %v4724_v30 = vsel %vm1943_vm2, %v14239_v12, -inf }
 0x8c5   : > { %10455 = vmatmul.mubr.msk.f32.gmra.mrb[102].mxu0 %vm1111_vm0, %v13891_v45  ;;  %4728 = vmax.xlane.f32.xlu1 %v4727_v20 }
 0x8c6   : > { %4725 = vmax.xlane.f32.xlu0 %v4724_v30  ;;  %10457 = vmatprep.mubr.msk.f32.mxu0 %vm1111_vm0, %v13901_v35  ;;  %v14249_v62 = vpop.f32.mrb[108].mxu1 }
 0x8c7   : > { %v14251_v44 = vpop.f32.mrb[109].mxu1  ;;  %v4733_v42 = vsel %vm1943_vm2, %v14249_v62, -inf }
 0x8c8   : > { %v4730_v53 = vsel %vm1943_vm2, %v14251_v44, -inf }
 0x8c9   : > { %10458 = vmatmul.mubr.msk.f32.gmra.mrb[104].mxu0 %vm1111_vm0, %v13899_v47  ;;  %4734 = vmax.xlane.f32.xlu1 %v4733_v42 }
 0x8ca   : > { %4731 = vmax.xlane.f32.xlu0 %v4730_v53  ;;  %10460 = vmatprep.mubr.msk.f32.mxu0 %vm1111_vm0, %v13909_v43  ;;  %v14261_v45 = vpop.f32.mrb[110].mxu1 }
 0x8cb   : > { %v14263_v35 = vpop.f32.mrb[111].mxu1  ;;  %v4739_v51 = vsel %vm1943_vm2, %v14261_v45, -inf }
 0x8cc   : > { %v4736_v33 = vsel %vm1943_vm2, %v14263_v35, -inf }
 0x8cd   : > { %10461 = vmatmul.mubr.msk.f32.gmra.mrb[106].mxu0 %vm1111_vm0, %v13907_v1  ;;  %4740 = vmax.xlane.f32.xlu1 %v4739_v51 }
 0x8ce   : > { %4737 = vmax.xlane.f32.xlu0 %v4736_v33  ;;  %10463 = vmatprep.mubr.msk.f32.mxu0 %vm1111_vm0, %v13920_v29  ;;  %v14273_v47 = vpop.f32.mrb[112].mxu1 }
 0x8cf   : > { %v14275_v43 = vpop.f32.mrb[113].mxu1  ;;  %v4745_v26 = vsel %vm1943_vm2, %v14273_v47, -inf }
 0x8d0   : > { %v4742_v32 = vsel %vm1943_vm2, %v14275_v43, -inf }
 0x8d1   : > { %10464 = vmatmul.mubr.msk.f32.gmra.mrb[108].mxu0 %vm1111_vm0, %v13917_v3  ;;  %4746 = vmax.xlane.f32.xlu1 %v4745_v26 }
 0x8d2   : > { %4743 = vmax.xlane.f32.xlu0 %v4742_v32  ;;  %10466 = vmatprep.mubr.msk.f32.mxu0 %vm1111_vm0, %v13934_v5  ;;  %v14285_v1 = vpop.f32.mrb[114].mxu1 }
 0x8d3   : > { %v14287_v29 = vpop.f32.mrb[115].mxu1  ;;  %v4751_v13 = vsel %vm1943_vm2, %v14285_v1, -inf }
 0x8d4   : > { %v4748_v46 = vsel %vm1943_vm2, %v14287_v29, -inf }
 0x8d5   : > { %10467 = vmatmul.mubr.msk.f32.gmra.mrb[110].mxu0 %vm1111_vm0, %v13931_v34  ;;  %4752 = vmax.xlane.f32.xlu1 %v4751_v13 }
 0x8d6   : > { %4749 = vmax.xlane.f32.xlu0 %v4748_v46 }
 0x925   : > { %v4663_v3 = vpop.xlane.xlu0 %4662 }
 0x926   : > { %v4755_v6 = vsub.f32 %v14105_v57, %v4663_v3  ;;  %v4660_v4 = vpop.xlane.xlu1 %4659 }
 0x927   : > { %v4754_v5 = vsub.f32 %v14107_v54, %v4660_v4 }
 0x928   : > { %v4788_v31 = vmul.f32 1.442695, %v4755_v6 }
 0x929   : > { %v4786_v22 = vmul.f32 1.442695, %v4754_v5 }
 0x92a   : > { %11574 = vpow2.f32 %v4788_v31  ;;  %v4669_v7 = vpop.xlane.xlu1 %4668 }
 0x92b   : > { %11576 = vpow2.f32 %v4786_v22  ;;  %v4666_v20 = vpop.xlane.xlu0 %4665  ;;  %v4757_v30 = vsub.f32 %v14117_v60, %v4669_v7 }
 0x92c   : > { %v4756_v42 = vsub.f32 %v14119_v48, %v4666_v20 }
 0x92d   : > { %v4792_v53 = vmul.f32 1.442695, %v4757_v30 }
 0x92e   : > { %v4790_v34 = vmul.f32 1.442695, %v4756_v42  ;;  %v4675_v51 = vpop.xlane.xlu1 %4674 }
 0x92f   : > { %11578 = vpow2.f32 %v4792_v53  ;;  %v4672_v33 = vpop.xlane.xlu0 %4671  ;;  %v4759_v57 = vsub.f32 %v14129_v36, %v4675_v51 }
 0x930   : > { %11580 = vpow2.f32 %v4790_v34  ;;  %v4758_v54 = vsub.f32 %v14131_v41, %v4672_v33 }
 0x931   : > { %v4796_v26 = vmul.f32 1.442695, %v4759_v57 }
 0x932   : > { %v4794_v32 = vmul.f32 1.442695, %v4758_v54  ;;  %v4681_v13 = vpop.xlane.xlu1 %4680 }
 0x933   : > { %11582 = vpow2.f32 %v4796_v26  ;;  %v4678_v46 = vpop.xlane.xlu0 %4677  ;;  %v4761_v3 = vsub.f32 %v14141_v19, %v4681_v13 }
 0x934   : > { %v14302_v60 = vpop.eup %11574  ;;  %11584 = vpow2.f32 %v4794_v32  ;;  %v4760_v48 = vsub.f32 %v14143_v25, %v4678_v46 }
 0x935   : > { %v14305_v6 = vpop.eup %11576  ;;  %v4800_v4 = vmul.f32 1.442695, %v4761_v3  ;;  %v4853_v36 = vsel %vm1943_vm2, %v14302_v60, 0.0 }
 0x936   : > { %v4798_v5 = vmul.f32 1.442695, %v4760_v48  ;;  %4854 = vadd.xlane.f32.xlu1 %v4853_v36  ;;  %v4687_v41 = vpop.xlane.xlu1 %4686  ;;  %v4850_v31 = vsel %vm1943_vm2, %v14305_v6, 0.0 }
 0x937   : > { %11586 = vpow2.f32 %v4800_v4  ;;  %v4684_v22 = vpop.xlane.xlu0 %4683  ;;  %v4763_v19 = vsub.f32 %v14153_v21, %v4687_v41  ;;  %4851 = vadd.xlane.f32.xlu0 %v4850_v31 }
 0x938   : > { %11588 = vpow2.f32 %v4798_v5  ;;  %v4762_v25 = vsub.f32 %v14155_v55, %v4684_v22 }
 0x939   : > { %v14313_v7 = vpop.eup %11578  ;;  %v4804_v20 = vmul.f32 1.442695, %v4763_v19 }
 0x93a   : > { %v14315_v30 = vpop.eup %11580  ;;  %v4802_v42 = vmul.f32 1.442695, %v4762_v25  ;;  %v4693_v53 = vpop.xlane.xlu1 %4692  ;;  %v4859_v34 = vsel %vm1943_vm2, %v14313_v7, 0.0 }
 0x93b   : > { %11590 = vpow2.f32 %v4804_v20  ;;  %v4690_v51 = vpop.xlane.xlu0 %4689  ;;  %v4765_v33 = vsub.f32 %v14165_v59, %v4693_v53  ;;  %v4856_v21 = vsel %vm1943_vm2, %v14315_v30, 0.0  ;;  %4860 = vadd.xlane.f32.xlu1 %v4859_v34 }
 0x93c   : > { %11592 = vpow2.f32 %v4802_v42  ;;  %v4764_v55 = vsub.f32 %v14167_v14, %v4690_v51  ;;  %4857 = vadd.xlane.f32.xlu0 %v4856_v21 }
 0x93d   : > { %v14323_v57 = vpop.eup %11582  ;;  %v4808_v54 = vmul.f32 1.442695, %v4765_v33 }
 0x93e   : > { %v14325_v26 = vpop.eup %11584  ;;  %v4806_v32 = vmul.f32 1.442695, %v4764_v55  ;;  %v4699_v13 = vpop.xlane.xlu1 %4698  ;;  %v4865_v46 = vsel %vm1943_vm2, %v14323_v57, 0.0 }
 0x93f   : > { %11594 = vpow2.f32 %v4808_v54  ;;  %v4696_v59 = vpop.xlane.xlu0 %4695  ;;  %v4767_v3 = vsub.f32 %v14177_v37, %v4699_v13  ;;  %v4862_v48 = vsel %vm1943_vm2, %v14325_v26, 0.0  ;;  %4866 = vadd.xlane.f32.xlu1 %v4865_v46 }
 0x940   : > { %11596 = vpow2.f32 %v4806_v32  ;;  %v4766_v14 = vsub.f32 %v14179_v2, %v4696_v59  ;;  %4863 = vadd.xlane.f32.xlu0 %v4862_v48 }
 0x941   : > { %v14333_v4 = vpop.eup %11586  ;;  %v4812_v36 = vmul.f32 1.442695, %v4767_v3 }
 0x942   : > { %v14335_v5 = vpop.eup %11588  ;;  %v4810_v41 = vmul.f32 1.442695, %v4766_v14  ;;  %v4705_v31 = vpop.xlane.xlu1 %4704  ;;  %v4871_v22 = vsel %vm1943_vm2, %v14333_v4, 0.0 }
 0x943   : > { %11598 = vpow2.f32 %v4812_v36  ;;  %v4702_v37 = vpop.xlane.xlu0 %4701  ;;  %v4769_v19 = vsub.f32 %v14189_v39, %v4705_v31  ;;  %v4868_v25 = vsel %vm1943_vm2, %v14335_v5, 0.0  ;;  %4872 = vadd.xlane.f32.xlu1 %v4871_v22 }
 0x944   : > { %11600 = vpow2.f32 %v4810_v41  ;;  %v4768_v2 = vsub.f32 %v14191_v56, %v4702_v37  ;;  %4869 = vadd.xlane.f32.xlu0 %v4868_v25 }
 0x945   : > { %v14343_v20 = vpop.eup %11590  ;;  %v4816_v42 = vmul.f32 1.442695, %v4769_v19 }
 0x946   : > { %v14345_v53 = vpop.eup %11592  ;;  %v4814_v34 = vmul.f32 1.442695, %v4768_v2  ;;  %v4711_v51 = vpop.xlane.xlu1 %4710  ;;  %v4877_v33 = vsel %vm1943_vm2, %v14343_v20, 0.0 }
 0x947   : > { %11602 = vpow2.f32 %v4816_v42  ;;  %v4708_v39 = vpop.xlane.xlu0 %4707  ;;  %v4771_v21 = vsub.f32 %v14201_v23, %v4711_v51  ;;  %v4874_v55 = vsel %vm1943_vm2, %v14345_v53, 0.0  ;;  %4878 = vadd.xlane.f32.xlu1 %v4877_v33 }
 0x948   : > { %4875 = vadd.xlane.f32.xlu0 %v4874_v55  ;;  %11604 = vpow2.f32 %v4814_v34  ;;  %v4770_v54 = vsub.f32 %v14203_v9, %v4708_v39 }
 0x949   : > { %v14352_v56 = vpop.eup %11594  ;;  %v4820_v32 = vmul.f32 1.442695, %v4771_v21 }
 0x94a   : > { %v14355_v13 = vpop.eup %11596  ;;  %v4717_v46 = vpop.xlane.xlu1 %4716  ;;  %v4883_v59 = vsel %vm1943_vm2, %v14352_v56, 0.0  ;;  %v4818_v48 = vmul.f32 1.442695, %v4770_v54 }
 0x94b   : > { %v4880_v23 = vsel %vm1943_vm2, %v14355_v13, 0.0  ;;  %4884 = vadd.xlane.f32.xlu1 %v4883_v59  ;;  %11606 = vpow2.f32 %v4820_v32  ;;  %v4773_v14 = vsub.f32 %v14213_v63, %v4717_v46  ;;  %v4714_v9 = vpop.xlane.xlu0 %4713 }
 0x94c   : > { %4881 = vadd.xlane.f32.xlu0 %v4880_v23  ;;  %11608 = vpow2.f32 %v4818_v48  ;;  %v4772_v19 = vsub.f32 %v14215_v61, %v4714_v9 }
 0x94d   : > { %v14361_v3 = vpop.eup %11598  ;;  %v4824_v25 = vmul.f32 1.442695, %v4773_v14 }
 0x94e   : > { %v14364_v36 = vpop.eup %11600  ;;  %v4889_v41 = vsel %vm1943_vm2, %v14361_v3, 0.0  ;;  %v4723_v22 = vpop.xlane.xlu1 %4722  ;;  %v4822_v34 = vmul.f32 1.442695, %v4772_v19 }
 0x94f   : > { %v4886_v31 = vsel %vm1943_vm2, %v14364_v36, 0.0  ;;  %4890 = vadd.xlane.f32.xlu1 %v4889_v41  ;;  %v4720_v42 = vpop.xlane.xlu0 %4719  ;;  %11610 = vpow2.f32 %v4824_v25  ;;  %v4775_v51 = vsub.f32 %v14225_v11, %v4723_v22 }
 0x950   : > { %4887 = vadd.xlane.f32.xlu0 %v4886_v31  ;;  %11612 = vpow2.f32 %v4822_v34 }
 0x951   : > { %v14370_v37 = vpop.eup %11602  ;;  %v4828_v61 = vmul.f32 1.442695, %v4775_v51 }
 0x952   : > { %v4895_v63 = vsel %vm1943_vm2, %v14370_v37, 0.0  ;;  %v14375_v2 = vpop.eup %11604  ;;  %v4729_v33 = vpop.xlane.xlu1 %4728 }
 0x953   : > { %4896 = vadd.xlane.f32.xlu1 %v4895_v63  ;;  %v4892_v39 = vsel %vm1943_vm2, %v14375_v2, 0.0  ;;  %v4777_v55 = vsub.f32 %v14237_v15, %v4729_v33  ;;  %v4726_v54 = vpop.xlane.xlu0 %4725  ;;  %11614 = vpow2.f32 %v4828_v61  ;;  %v16896_v63 = vld [vmem:[#allocation43_spill] sm:$0xff] }
 0x954   : > { %v4776_v11 = vsub.f32 %v14239_v12, %v4726_v54 }
 0x955   : > { %v14380_v21 = vpop.eup %11606  ;;  %v4832_v59 = vmul.f32 1.442695, %v4777_v55 }
 0x956   : > { %v4901_v32 = vsel %vm1943_vm2, %v14380_v21, 0.0  ;;  %v14385_v46 = vpop.eup %11608  ;;  %v4735_v23 = vpop.xlane.xlu1 %4734  ;;  %v4830_v9 = vmul.f32 1.442695, %v4776_v11 }
 0x957   : > { %4893 = vadd.xlane.f32.xlu1 %v4892_v39  ;;  %v4898_v48 = vsel %vm1943_vm2, %v14385_v46, 0.0  ;;  %11616 = vpow2.f32 %v4832_v59  ;;  %v4779_v15 = vsub.f32 %v14249_v62, %v4735_v23  ;;  %v4732_v41 = vpop.xlane.xlu0 %4731 }
 0x958   : > { %11618 = vpow2.f32 %v4830_v9  ;;  %v4778_v12 = vsub.f32 %v14251_v44, %v4732_v41 }
 0x959   : > { %v14390_v14 = vpop.eup %11610  ;;  %v4836_v19 = vmul.f32 1.442695, %v4779_v15 }
 0x95a   : > { %v4907_v31 = vsel %vm1943_vm2, %v14390_v14, 0.0  ;;  %v14395_v22 = vpop.eup %11612  ;;  %v4741_v25 = vpop.xlane.xlu1 %4740  ;;  %v4834_v33 = vmul.f32 1.442695, %v4778_v12 }
 0x95b   : > { %4902 = vadd.xlane.f32.xlu1 %v4901_v32  ;;  %v4904_v34 = vsel %vm1943_vm2, %v14395_v22, 0.0  ;;  %v4738_v62 = vpop.xlane.xlu0 %4737  ;;  %11620 = vpow2.f32 %v4836_v19  ;;  %v4781_v39 = vsub.f32 %v14261_v45, %v4741_v25 }
 0x95c   : > { %11622 = vpow2.f32 %v4834_v33  ;;  %v4780_v54 = vsub.f32 %v14263_v35, %v4738_v62 }
 0x95d   : > { %v14402_v51 = vpop.eup %11614  ;;  %v4840_v32 = vmul.f32 1.442695, %v4781_v39 }
 0x95e   : > { %v4913_v61 = vsel %vm1943_vm2, %v14402_v51, 0.0  ;;  %v4747_v55 = vpop.xlane.xlu1 %4746  ;;  %v4838_v45 = vmul.f32 1.442695, %v4780_v54 }
 0x95f   : > { %4899 = vadd.xlane.f32.xlu1 %v4898_v48  ;;  %v4744_v11 = vpop.xlane.xlu0 %4743  ;;  %v4774_v48 = vsub.f32 %v14227_v52, %v4720_v42  ;;  %11624 = vpow2.f32 %v4840_v32  ;;  %v4783_v9 = vsub.f32 %v14273_v47, %v4747_v55 }
 0x960   : > { %v4782_v12 = vsub.f32 %v14275_v43, %v4744_v11  ;;  %11626 = vpow2.f32 %v4838_v45 }
 0x961   : > { %v14407_v44 = vpop.eup %11616  ;;  %v4826_v35 = vmul.f32 1.442695, %v4774_v48  ;;  %v4844_v25 = vmul.f32 1.442695, %v4783_v9 }
 0x962   : > { %v4919_v59 = vsel %vm1943_vm2, %v14407_v44, 0.0  ;;  %v14412_v23 = vpop.eup %11618  ;;  %v4753_v15 = vpop.xlane.xlu1 %4752  ;;  %v4842_v47 = vmul.f32 1.442695, %v4782_v12  ;;  %v16897_v12 = vld [vmem:[#allocation42_spill] sm:$0xff] }
 0x963   : > { %4908 = vadd.xlane.f32.xlu1 %v4907_v31  ;;  %v4916_v41 = vsel %vm1943_vm2, %v14412_v23, 0.0  ;;  %v4750_v19 = vpop.xlane.xlu0 %4749  ;;  %v4785_v52 = vsub.f32 %v14285_v1, %v4753_v15  ;;  %11628 = vpow2.f32 %v4826_v35 }
 0x964   : > { %v4784_v62 = vsub.f32 %v14287_v29, %v4750_v19  ;;  %11630 = vpow2.f32 %v4844_v25  ;;  %v16898_v19 = vld [vmem:[#allocation45_spill] sm:$0xff]  ;;  %v16899_v25 = vld [vmem:[#allocation46_spill] sm:$0xff] }
 0x965   : > { %v14418_v31 = vpop.eup %11620  ;;  %v4848_v33 = vmul.f32 1.442695, %v4785_v52  ;;  %11632 = vpow2.f32 %v4842_v47  ;;  %v16900_v52 = vld [vmem:[#allocation47_spill] sm:$0xff]  ;;  %v16905_v47 = vld [vmem:[#allocation53_spill] sm:$0xff] }
 0x966   : > { %5010 = vrot.lane.b32.xlu0 %v16896_v63, %s12091_s21  ;;  %v4925_v42 = vsel %vm1943_vm2, %v14418_v31, 0.0  ;;  %s12092_s21 = smov 32  }
 0x967   : > { %4905 = vadd.xlane.f32.xlu1 %v4904_v34  ;;  %v14424_v34 = vpop.eup %11622  ;;  %11634 = vpow2.f32 %v4848_v33  ;;  %v16907_v33 = vld [vmem:[#allocation54_spill] sm:$0xff] }
 0x968   : > { %v4922_v43 = vsel %vm1943_vm2, %v14424_v34, 0.0 }
 0x969   : > { %v14429_v39 = vpop.eup %11624 }
 0x96a   : > { %v4931_v1 = vsel %vm1943_vm2, %v14429_v39, 0.0  ;;  %v14433_v55 = vpop.eup %11626 }
 0x96b   : > { %4914 = vadd.xlane.f32.xlu1 %v4913_v61  ;;  %v4846_v61 = vmul.f32 1.442695, %v4784_v62  ;;  %v4928_v54 = vsel %vm1943_vm2, %v14433_v55, 0.0  ;;  %v16906_v62 = vld [vmem:[#allocation55_spill] sm:$0xff] }
 0x96d   : > { %11636 = vpow2.f32 %v4846_v61  ;;  %v14435_v29 = vpop.eup %11628 }
 0x96e   : > { %v14439_v32 = vpop.eup %11630  ;;  %v4910_v11 = vsel %vm1943_vm2, %v14435_v29, 0.0 }
 0x96f   : > { %4920 = vadd.xlane.f32.xlu1 %v4919_v59  ;;  %v14443_v59 = vpop.eup %11632  ;;  %v4937_v48 = vsel %vm1943_vm2, %v14439_v32, 0.0 }
 0x970   : > { %v4934_v9 = vsel %vm1943_vm2, %v14443_v59, 0.0 }
 0x971   : > { %v14447_v45 = vpop.eup %11634 }
 0x973   : > { %4917 = vadd.xlane.f32.xlu1 %v4916_v41  ;;  %v4943_v41 = vsel %vm1943_vm2, %v14447_v45, 0.0 }
 0x977   : > { %4926 = vadd.xlane.f32.xlu1 %v4925_v42  ;;  %v14451_v15 = vpop.eup %11636  ;;  %v16903_v42 = vld [vmem:[#allocation50_spill] sm:$0xff] }
 0x978   : > { %v4940_v35 = vsel %vm1943_vm2, %v14451_v15, 0.0 }
 0x97b   : > { %4923 = vadd.xlane.f32.xlu1 %v4922_v43  ;;  %v16908_v43 = vld [vmem:[#allocation56_spill] sm:$0xff] }
 0x97f   : > { %4932 = vadd.xlane.f32.xlu1 %v4931_v1 }
 0x983   : > { %4929 = vadd.xlane.f32.xlu1 %v4928_v54  ;;  %v16910_v54 = vld [vmem:[#allocation60_spill] sm:$0xff] }
 0x985   : > { %4911 = vadd.xlane.f32.xlu0 %v4910_v11 }
 0x987   : > { %4938 = vadd.xlane.f32.xlu1 %v4937_v48  ;;  %v16911_v48 = vld [vmem:[#allocation62_spill] sm:$0xff] }
 0x989   : > { %4935 = vadd.xlane.f32.xlu0 %v4934_v9 }
 0x98b   : > { %4944 = vadd.xlane.f32.xlu1 %v4943_v41 }
 0x98d   : > { %4941 = vadd.xlane.f32.xlu0 %v4940_v35 }
 0x99c   : > { %5691 = vrot.lane.b32.xlu1 %v16853_v24, %s12092_s21  ;;  %v16901_v24 = vld [vmem:[#allocation48_spill] sm:$0xff] }
 0x9a0   : > { %5693 = vrot.lane.b32.xlu1 %v12929_v49, %s12092_s21  ;;  %v16902_v49 = vld [vmem:[#allocation49_spill] sm:$0xff] }
 0x9a3   : > { %5755 = vrot.lane.b32.xlu0 %v16897_v12, %s12092_s21 }
 0x9a4   : > { %5695 = vrot.lane.b32.xlu1 %v16861_v28, %s12092_s21  ;;  %v16904_v28 = vld [vmem:[#allocation51_spill] sm:$0xff] }
 0x9a7   : > { %5697 = vrot.lane.b32.xlu0 %v16898_v19, %s12092_s21  ;;  %v16913_v19 = vld [vmem:[#allocation66_spill] sm:$0xff] }
 0x9a8   : > { %5699 = vrot.lane.b32.xlu1 %v16899_v25, %s12092_s21 }
 0x9ab   : > { %5701 = vrot.lane.b32.xlu0 %v16900_v52, %s12092_s21  ;;  %v16914_v52 = vld [vmem:[#allocation68_spill] sm:$0xff] }
 0x9ac   : > { %5703 = vrot.lane.b32.xlu1 %v16901_v24, %s12092_s21 }
 0x9af   : > { %5705 = vrot.lane.b32.xlu0 %v16902_v49, %s12092_s21 }
 0x9b0   : > { %5707 = vrot.lane.b32.xlu1 %v16903_v42, %s12092_s21  ;;  %v16915_v42 = vld [vmem:[#allocation72_spill] sm:$0xff] }
 0x9b3   : > { %5709 = vrot.lane.b32.xlu0 %v16904_v28, %s12092_s21 }
 0x9b4   : > { %5711 = vrot.lane.b32.xlu1 %v16869_v38, %s12092_s21  ;;  %v16909_v38 = vld [vmem:[#allocation58_spill] sm:$0xff] }
 0x9b7   : > { %5713 = vrot.lane.b32.xlu0 %v16905_v47, %s12092_s21 }
 0x9b8   : > { %5715 = vrot.lane.b32.xlu1 %v16906_v62, %s12092_s21 }
 0x9bb   : > { %5717 = vrot.lane.b32.xlu0 %v16907_v33, %s12092_s21 }
 0x9bc   : > { %5719 = vrot.lane.b32.xlu1 %v16873_v16, %s12092_s21 }
 0x9bf   : > { %5721 = vrot.lane.b32.xlu0 %v16908_v43, %s12092_s21 }
 0x9c0   : > { %5723 = vrot.lane.b32.xlu1 %v16875_v50, %s12092_s21 }
 0x9c3   : > { %5725 = vrot.lane.b32.xlu0 %v16909_v38, %s12092_s21  ;;  %v4855_v61 = vpop.xlane.xlu1 %4854 }
 0x9c4   : > { %v4852_v1 = vpop.xlane.xlu0 %4851  ;;  %5727 = vrot.lane.b32.xlu1 %v16877_v10, %s12092_s21  ;;  %v16912_v10 = vld [vmem:[#allocation64_spill] sm:$0xff] }
 0x9c5   : > { %11638 = vrcp.f32 %v4852_v1 }
 0x9c6   : > { %11640 = vrcp.f32 %v4855_v61 }
 0x9c7   : > { %5729 = vrot.lane.b32.xlu0 %v16910_v54, %s12092_s21 }
 0x9c8   : > { %5731 = vrot.lane.b32.xlu1 %v16878_v8, %s12092_s21  ;;  %v4861_v16 = vpop.xlane.xlu1 %4860 }
 0x9c9   : > { %v4858_v11 = vpop.xlane.xlu0 %4857 }
 0x9ca   : > { %11642 = vrcp.f32 %v4858_v11 }
 0x9cb   : > { %5733 = vrot.lane.b32.xlu0 %v16911_v48, %s12092_s21  ;;  %11644 = vrcp.f32 %v4861_v16 }
 0x9cc   : > { %5735 = vrot.lane.b32.xlu1 %v16879_v27, %s12092_s21  ;;  %v4867_v50 = vpop.xlane.xlu1 %4866 }
 0x9cd   : > { %v4864_v9 = vpop.xlane.xlu0 %4863 }
 0x9ce   : > { %11646 = vrcp.f32 %v4864_v9 }
 0x9cf   : > { %v11639_v41 = vpop.eup %11638  ;;  %5737 = vrot.lane.b32.xlu0 %v16912_v10, %s12092_s21  ;;  %11648 = vrcp.f32 %v4867_v50 }
 0x9d0   : > { %5739 = vrot.lane.b32.xlu1 %v16880_v58, %s12092_s21  ;;  %v4873_v35 = vpop.xlane.xlu1 %4872  ;;  %v4947_v8 = vmul.f32 %v11639_v41, %v14305_v6  ;;  %v11641_v49 = vpop.eup %11640 }
 0x9d1   : > { %v4870_v12 = vpop.xlane.xlu0 %4869  ;;  %v4949_v62 = vmul.f32 %v11641_v49, %v14302_v60 }
 0x9d2   : > { %10521 = vmatprep.mubr.msk.f32.mxu1 %vm1943_vm2, %v4947_v8  ;;  %11650 = vrcp.f32 %v4870_v12  ;;  %v5335_v12 = vld [vmem:[%s16532_s12 + $0x48] sm:$0xff] }
 0x9d3   : > { %5741 = vrot.lane.b32.xlu0 %v16913_v19, %s12092_s21  ;;  %11652 = vrcp.f32 %v4873_v35 }
 0x9d4   : > { %5743 = vrot.lane.b32.xlu1 %v16881_v18, %s12092_s21  ;;  %v4879_v27 = vpop.xlane.xlu1 %4878  ;;  %v11643_v28 = vpop.eup %11642 }
 0x9d5   : > { %v4876_v25 = vpop.xlane.xlu0 %4875 }
 0x9d6   : > { %11654 = vrcp.f32 %v4876_v25 }
 0x9d7   : > { %5745 = vrot.lane.b32.xlu0 %v16914_v52, %s12092_s21  ;;  %11656 = vrcp.f32 %v4879_v27  ;;  %v5337_v27 = vld [vmem:[%s16532_s12 + $0x58] sm:$0xff] }
 0x9d8   : > { %5747 = vrot.lane.b32.xlu1 %v16882_v40, %s12092_s21  ;;  %v4885_v58 = vpop.xlane.xlu1 %4884 }
 0x9d9   : > { %v4882_v6 = vpop.xlane.xlu0 %4881 }
 0x9da   : > { %11658 = vrcp.f32 %v4882_v6 }
 0x9db   : > { %5749 = vrot.lane.b32.xlu0 %v16874_v0, %s12092_s21  ;;  %v11645_v0 = vpop.eup %11644  ;;  %11660 = vrcp.f32 %v4885_v58 }
 0x9dc   : > { %5751 = vrot.lane.b32.xlu1 %v16883_v17, %s12092_s21  ;;  %v4891_v18 = vpop.xlane.xlu1 %4890  ;;  %v4951_v17 = vmul.f32 %v11643_v28, %v14315_v30  ;;  %v11647_v33 = vpop.eup %11646  ;;  %v4953_v38 = vmul.f32 %v11645_v0, %v14313_v7 }
 0x9dd   : > { %v4888_v24 = vpop.xlane.xlu0 %4887  ;;  %v11649_v61 = vpop.eup %11648  ;;  %v4955_v1 = vmul.f32 %v11647_v33, %v14325_v26 }
 0x9de   : > { %v11651_v60 = vpop.eup %11650  ;;  %11662 = vrcp.f32 %v4888_v24  ;;  %v4957_v30 = vmul.f32 %v11649_v61, %v14323_v57 }
 0x9df   : > { %5753 = vrot.lane.b32.xlu0 %v16915_v42, %s12092_s21  ;;  %v11653_v16 = vpop.eup %11652  ;;  %v4959_v11 = vmul.f32 %v11651_v60, %v14335_v5  ;;  %11664 = vrcp.f32 %v4891_v18 }
 0x9e0   : > { %v4897_v40 = vpop.xlane.xlu1 %4896  ;;  %v11655_v48 = vpop.eup %11654  ;;  %v4961_v26 = vmul.f32 %v11653_v16, %v14333_v4 }
 0x9e1   : > { %v5011_v47 = vpop.permute.xlu0 %5010  ;;  %v11657_v50 = vpop.eup %11656  ;;  %v4963_v9 = vmul.f32 %v11655_v48, %v14345_v53  ;;  %v5334_v53 = vld [vmem:[%s16532_s12 + $0x40] sm:$0xff] }
 0x9e2   : > { %10519 = vmatprep.subr.mxu1 %v5011_v47  ;;  %v4965_v5 = vmul.f32 %v11657_v50, %v14343_v20  ;;  %v5336_v20 = vld [vmem:[%s16532_s12 + $0x50] sm:$0xff]  ;;  %v11027_v19 = vpack.c.bf16 %v5335_v12, %v5334_v53 }
 0x9e3   : > { %10520 = vmatpush3.msra.mxu1 %v5011_v47  ;;  %v11031_v58 = vpack.c.bf16 %v5337_v27, %v5336_v20 }
 0x9e4   : > { %10522 = vmatmul.mubr.msk.f32.vlgmr.msra.gmra.mrb[116].mxu1 %vm1943_vm2, %v4949_v62  ;;  %v4894_v43 = vpop.xlane.xlu1 %4893  ;;  %v11659_v41 = vpop.eup %11658  ;;  %11028 = vmatprep.subr.bf16.mxu0 %v11027_v19 }
 0x9e5   : > { %10524 = vmatprep.mubr.msk.f32.mxu1 %vm1943_vm2, %v4951_v17  ;;  %11666 = vrcp.f32 %v4894_v43  ;;  %v11661_v10 = vpop.eup %11660  ;;  %v4967_v35 = vmul.f32 %v11659_v41, %v14355_v13  ;;  %11030 = vmatpush3.bf16.msra.mxu0 %v11027_v19 }
 0x9e6   : > { %11668 = vrcp.f32 %v4897_v40  ;;  %v4969_v13 = vmul.f32 %v11661_v10, %v14352_v56  ;;  %11032 = vmatprep.subr.bf16.mxu0 %v11031_v58 }
 0x9e8   : > { %10525 = vmatmul.mubr.msk.f32.gmra.mrb[118].mxu1 %vm1943_vm2, %v4953_v38  ;;  %v4903_v54 = vpop.xlane.xlu1 %4902  ;;  %v11663_v8 = vpop.eup %11662 }
 0x9e9   : > { %10527 = vmatprep.mubr.msk.f32.mxu1 %vm1943_vm2, %v4955_v1  ;;  %v11665_v25 = vpop.eup %11664  ;;  %v4971_v52 = vmul.f32 %v11663_v8, %v14364_v36  ;;  %11034 = vmatpush3.bf16.msra.mxu0 %v11031_v58 }
 0x9ea   : > { %v4973_v56 = vmul.f32 %v11665_v25, %v14361_v3 }
 0x9ec   : > { %10528 = vmatmul.mubr.msk.f32.gmra.mrb[120].mxu1 %vm1943_vm2, %v4957_v30  ;;  %v4900_v7 = vpop.xlane.xlu1 %4899 }
 0x9ed   : > { %10530 = vmatprep.mubr.msk.f32.mxu1 %vm1943_vm2, %v4959_v11  ;;  %11670 = vrcp.f32 %v4900_v7 }
 0x9ee   : > { %11672 = vrcp.f32 %v4903_v54 }
 0x9ef   : > { %v11667_v6 = vpop.eup %11666 }
 0x9f0   : > { %10531 = vmatmul.mubr.msk.f32.gmra.mrb[122].mxu1 %vm1943_vm2, %v4961_v26  ;;  %v4909_v57 = vpop.xlane.xlu1 %4908  ;;  %v11669_v24 = vpop.eup %11668  ;;  %v4975_v49 = vmul.f32 %v11667_v6, %v14375_v2 }
 0x9f1   : > { %10533 = vmatprep.mubr.msk.f32.mxu1 %vm1943_vm2, %v4963_v9  ;;  %v4977_v28 = vmul.f32 %v11669_v24, %v14370_v37 }
 0x9f4   : > { %10534 = vmatmul.mubr.msk.f32.gmra.mrb[124].mxu1 %vm1943_vm2, %v4965_v5  ;;  %v4906_v4 = vpop.xlane.xlu1 %4905 }
 0x9f5   : > { %10536 = vmatprep.mubr.msk.f32.mxu1 %vm1943_vm2, %v4967_v35  ;;  %11674 = vrcp.f32 %v4906_v4 }
 0x9f6   : > { %11676 = vrcp.f32 %v4909_v57 }
 0x9f7   : > { %v11671_v42 = vpop.eup %11670 }
 0x9f8   : > { %10537 = vmatmul.mubr.msk.f32.gmra.mrb[126].mxu1 %vm1943_vm2, %v4969_v13  ;;  %v4915_v18 = vpop.xlane.xlu1 %4914  ;;  %v11673_v40 = vpop.eup %11672  ;;  %v4979_v47 = vmul.f32 %v11671_v42, %v14385_v46 }
 0x9f9   : > { %10539 = vmatprep.mubr.msk.f32.mxu1 %vm1943_vm2, %v4971_v52  ;;  %v4981_v2 = vmul.f32 %v11673_v40, %v14380_v21  ;;  %11678 = vrcp.f32 %v4915_v18 }
 0x9fc   : > { %10540 = vmatmul.mubr.msk.f32.gmra.mrb[128].mxu1 %vm1943_vm2, %v4973_v56  ;;  %v4921_v36 = vpop.xlane.xlu1 %4920 }
 0x9fd   : > { %10542 = vmatprep.mubr.msk.f32.mxu1 %vm1943_vm2, %v4975_v49 }
 0x9ff   : > { %v11675_v62 = vpop.eup %11674 }
 0xa00   : > { %10543 = vmatmul.mubr.msk.f32.gmra.mrb[130].mxu1 %vm1943_vm2, %v4977_v28  ;;  %v4918_v3 = vpop.xlane.xlu1 %4917  ;;  %v11677_v0 = vpop.eup %11676  ;;  %v4983_v17 = vmul.f32 %v11675_v62, %v14395_v22 }
 0xa01   : > { %10545 = vmatprep.mubr.msk.f32.mxu1 %vm1943_vm2, %v4979_v47  ;;  %v4985_v37 = vmul.f32 %v11677_v0, %v14390_v14  ;;  %11680 = vrcp.f32 %v4918_v3 }
 0xa03   : > { %v11679_v54 = vpop.eup %11678 }
 0xa04   : > { %10546 = vmatmul.mubr.msk.f32.gmra.mrb[132].mxu1 %vm1943_vm2, %v4981_v2  ;;  %v4927_v33 = vpop.xlane.xlu1 %4926  ;;  %v4989_v7 = vmul.f32 %v11679_v54, %v14402_v51 }
 0xa05   : > { %10548 = vmatprep.mubr.msk.f32.mxu1 %vm1943_vm2, %v4983_v17 }
 0xa08   : > { %10549 = vmatmul.mubr.msk.f32.gmra.mrb[134].mxu1 %vm1943_vm2, %v4985_v37  ;;  %v4924_v46 = vpop.xlane.xlu1 %4923 }
 0xa0b   : > { %v11681_v30 = vpop.eup %11680 }
 0xa0c   : > { %v4933_v43 = vpop.xlane.xlu1 %4932  ;;  %v4991_v9 = vmul.f32 %v11681_v30, %v14412_v23 }
 0xa10   : > { %v4930_v38 = vpop.xlane.xlu1 %4929 }
 0xa12   : > { %v4912_v61 = vpop.xlane.xlu0 %4911 }
 0xa13   : > { %11682 = vrcp.f32 %v4912_v61 }
 0xa14   : > { %v4939_v21 = vpop.xlane.xlu1 %4938  ;;  %11684 = vrcp.f32 %v4921_v36 }
 0xa15   : > { %11686 = vrcp.f32 %v4924_v46 }
 0xa16   : > { %v4936_v1 = vpop.xlane.xlu0 %4935  ;;  %11688 = vrcp.f32 %v4927_v33 }
 0xa17   : > { %11690 = vrcp.f32 %v4930_v38 }
 0xa18   : > { %v4945_v22 = vpop.xlane.xlu1 %4944  ;;  %11692 = vrcp.f32 %v4933_v43 }
 0xa19   : > { %11694 = vrcp.f32 %v4936_v1 }
 0xa1a   : > { %v4942_v60 = vpop.xlane.xlu0 %4941  ;;  %11696 = vrcp.f32 %v4939_v21 }
 0xa1b   : > { %11698 = vrcp.f32 %v4942_v60 }
 0xa1c   : > { %v5692_v14 = vpop.permute.xlu1 %5691  ;;  %11700 = vrcp.f32 %v4945_v22 }
 0xa1d   : > { %v11683_v16 = vpop.eup %11682 }
 0xa1e   : > { %v5756_v11 = vpop.permute.xlu0 %5755  ;;  %v4987_v48 = vmul.f32 %v11683_v16, %v14435_v29  ;;  %v11685_v26 = vpop.eup %11684 }
 0xa1f   : > { %10625 = vmatprep.subr.msk.mxu1 %vm1111_vm0, %v5756_v11  ;;  %v11687_v41 = vpop.eup %11686  ;;  %v4993_v29 = vmul.f32 %v11685_v26, %v14407_v44 }
 0xa20   : > { %10551 = vmatprep.mubr.msk.f32.mxu1 %vm1943_vm2, %v4987_v48  ;;  %10626 = vmatpush3.xpose.msk.msra.mxu1 %vm1111_vm0, %v5756_v11  ;;  %v5694_v50 = vpop.permute.xlu1 %5693  ;;  %v11689_v5 = vpop.eup %11688  ;;  %v4995_v10 = vmul.f32 %v11687_v41, %v14424_v34 }
 0xa21   : > { %10552 = vmatmul.mubr.msk.f32.gmra.mrb[136].mxu1 %vm1943_vm2, %v4989_v7  ;;  %v11691_v35 = vpop.eup %11690  ;;  %v4997_v23 = vmul.f32 %v11689_v5, %v14418_v31 }
 0xa22   : > { %v5698_v57 = vpop.permute.xlu0 %5697  ;;  %10554 = vmatprep.mubr.msk.f32.mxu1 %vm1943_vm2, %v4991_v9  ;;  %v11693_v4 = vpop.eup %11692  ;;  %v4999_v12 = vmul.f32 %v11691_v35, %v14433_v55 }
 0xa23   : > { %v11695_v20 = vpop.eup %11694  ;;  %v5001_v44 = vmul.f32 %v11693_v4, %v14429_v39 }
 0xa24   : > { %v5696_v51 = vpop.permute.xlu1 %5695  ;;  %v11697_v34 = vpop.eup %11696  ;;  %v5003_v27 = vmul.f32 %v11695_v20, %v14443_v59 }
 0xa25   : > { %10555 = vmatmul.mubr.msk.f32.gmra.mrb[138].mxu1 %vm1943_vm2, %v4993_v29  ;;  %v11699_v25 = vpop.eup %11698  ;;  %v5005_v31 = vmul.f32 %v11697_v34, %v14439_v32 }
 0xa26   : > { %v5702_v8 = vpop.permute.xlu0 %5701  ;;  %10557 = vmatprep.mubr.msk.f32.mxu1 %vm1943_vm2, %v4995_v10  ;;  %v11701_v55 = vpop.eup %11700  ;;  %v5007_v58 = vmul.f32 %v11699_v25, %v14451_v15 }
 0xa27   : > { %v5009_v39 = vmul.f32 %v11701_v55, %v14447_v45 }
 0xa28   : > { %v5700_v53 = vpop.permute.xlu1 %5699 }
 0xa29   : > { %10558 = vmatmul.mubr.msk.f32.gmra.mrb[140].mxu1 %vm1943_vm2, %v4997_v23 }
 0xa2a   : > { %10560 = vmatprep.mubr.msk.f32.mxu1 %vm1943_vm2, %v4999_v12  ;;  %v5706_v13 = vpop.permute.xlu0 %5705 }
 0xa2c   : > { %v5704_v19 = vpop.permute.xlu1 %5703 }
 0xa2d   : > { %10561 = vmatmul.mubr.msk.f32.gmra.mrb[142].mxu1 %vm1943_vm2, %v5001_v44 }
 0xa2e   : > { %10563 = vmatprep.mubr.msk.f32.mxu1 %vm1943_vm2, %v5003_v27  ;;  %v5710_v6 = vpop.permute.xlu0 %5709 }
 0xa30   : > { %v5708_v52 = vpop.permute.xlu1 %5707 }
 0xa31   : > { %10564 = vmatmul.mubr.msk.f32.gmra.mrb[144].mxu1 %vm1943_vm2, %v5005_v31 }
 0xa32   : > { %10566 = vmatprep.mubr.msk.f32.mxu1 %vm1943_vm2, %v5007_v58  ;;  %v5714_v18 = vpop.permute.xlu0 %5713 }
 0xa34   : > { %v5712_v59 = vpop.permute.xlu1 %5711 }
 0xa35   : > { %10567 = vmatmul.mubr.msk.f32.gmra.mrb[146].mxu1 %vm1943_vm2, %v5009_v39 }
 0xa36   : > { %10627 = vmatprep.mubr.msk.f32.mxu1 %vm1111_vm0, %v5692_v14  ;;  %v5718_v15 = vpop.permute.xlu0 %5717 }
 0xa38   : > { %v5716_v32 = vpop.permute.xlu1 %5715 }
 0xa39   : > { %10628 = vmatmul.mubr.msk.f32.vlgmr.msra.gmra.mrb[148].mxu1 %vm1111_vm0, %v5694_v50 }
 0xa3a   : > { %10630 = vmatprep.mubr.msk.f32.mxu1 %vm1111_vm0, %v5696_v51  ;;  %v5722_v45 = vpop.permute.xlu0 %5721 }
 0xa3c   : > { %v5720_v56 = vpop.permute.xlu1 %5719 }
 0xa3d   : > { %10631 = vmatmul.mubr.msk.f32.gmra.mrb[150].mxu1 %vm1111_vm0, %v5698_v57 }
 0xa3e   : > { %10633 = vmatprep.mubr.msk.f32.mxu1 %vm1111_vm0, %v5700_v53  ;;  %v5726_v49 = vpop.permute.xlu0 %5725 }
 0xa40   : > { %v5724_v24 = vpop.permute.xlu1 %5723 }
 0xa41   : > { %10634 = vmatmul.mubr.msk.f32.gmra.mrb[152].mxu1 %vm1111_vm0, %v5702_v8 }
 0xa42   : > { %10636 = vmatprep.mubr.msk.f32.mxu1 %vm1111_vm0, %v5704_v19  ;;  %v5730_v36 = vpop.permute.xlu0 %5729 }
 0xa44   : > { %v5728_v42 = vpop.permute.xlu1 %5727 }
 0xa45   : > { %10637 = vmatmul.mubr.msk.f32.gmra.mrb[154].mxu1 %vm1111_vm0, %v5706_v13 }
 0xa46   : > { %10639 = vmatprep.mubr.msk.f32.mxu1 %vm1111_vm0, %v5708_v52  ;;  %v5734_v40 = vpop.permute.xlu0 %5733 }
 0xa48   : > { %v5732_v28 = vpop.permute.xlu1 %5731 }
 0xa49   : > { %10640 = vmatmul.mubr.msk.f32.gmra.mrb[156].mxu1 %vm1111_vm0, %v5710_v6 }
 0xa4a   : > { %10642 = vmatprep.mubr.msk.f32.mxu1 %vm1111_vm0, %v5712_v59  ;;  %v5738_v62 = vpop.permute.xlu0 %5737 }
 0xa4c   : > { %v5736_v47 = vpop.permute.xlu1 %5735 }
 0xa4d   : > { %10643 = vmatmul.mubr.msk.f32.gmra.mrb[158].mxu1 %vm1111_vm0, %v5714_v18 }
 0xa4e   : > { %10645 = vmatprep.mubr.msk.f32.mxu1 %vm1111_vm0, %v5716_v32  ;;  %v5742_v2 = vpop.permute.xlu0 %5741 }
 0xa50   : > { %v5740_v3 = vpop.permute.xlu1 %5739 }
 0xa51   : > { %10646 = vmatmul.mubr.msk.f32.gmra.mrb[160].mxu1 %vm1111_vm0, %v5718_v15 }
 0xa52   : > { %10648 = vmatprep.mubr.msk.f32.mxu1 %vm1111_vm0, %v5720_v56  ;;  %v5746_v17 = vpop.permute.xlu0 %5745 }
 0xa54   : > { %v5744_v0 = vpop.permute.xlu1 %5743 }
 0xa55   : > { %10649 = vmatmul.mubr.msk.f32.gmra.mrb[162].mxu1 %vm1111_vm0, %v5722_v45 }
 0xa56   : > { %10651 = vmatprep.mubr.msk.f32.mxu1 %vm1111_vm0, %v5724_v24  ;;  %v5750_v37 = vpop.permute.xlu0 %5749 }
 0xa58   : > { %v5748_v33 = vpop.permute.xlu1 %5747 }
 0xa59   : > { %10652 = vmatmul.mubr.msk.f32.gmra.mrb[164].mxu1 %vm1111_vm0, %v5726_v49 }
 0xa5a   : > { %10654 = vmatprep.mubr.msk.f32.mxu1 %vm1111_vm0, %v5728_v42  ;;  %v5754_v43 = vpop.permute.xlu0 %5753 }
 0xa5c   : > { %v5752_v46 = vpop.permute.xlu1 %5751 }
 0xa5d   : > { %10655 = vmatmul.mubr.msk.f32.gmra.mrb[166].mxu1 %vm1111_vm0, %v5730_v36 }
 0xa5e   : > { %10657 = vmatprep.mubr.msk.f32.mxu1 %vm1111_vm0, %v5732_v28 }
 0xa61   : > { %10658 = vmatmul.mubr.msk.f32.gmra.mrb[168].mxu1 %vm1111_vm0, %v5734_v40 }
 0xa62   : > { %10660 = vmatprep.mubr.msk.f32.mxu1 %vm1111_vm0, %v5736_v47 }
 0xa65   : > { %10661 = vmatmul.mubr.msk.f32.gmra.mrb[170].mxu1 %vm1111_vm0, %v5738_v62 }
 0xa66   : > { %10663 = vmatprep.mubr.msk.f32.mxu1 %vm1111_vm0, %v5740_v3 }
 0xa69   : > { %10664 = vmatmul.mubr.msk.f32.gmra.mrb[172].mxu1 %vm1111_vm0, %v5742_v2 }
 0xa6a   : > { %10666 = vmatprep.mubr.msk.f32.mxu1 %vm1111_vm0, %v5744_v0 }
 0xa6d   : > { %10667 = vmatmul.mubr.msk.f32.gmra.mrb[174].mxu1 %vm1111_vm0, %v5746_v17 }
 0xa6e   : > { %10669 = vmatprep.mubr.msk.f32.mxu1 %vm1111_vm0, %v5748_v33 }
 0xa71   : > { %10670 = vmatmul.mubr.msk.f32.gmra.mrb[176].mxu1 %vm1111_vm0, %v5750_v37 }
 0xa72   : > { %10672 = vmatprep.mubr.msk.f32.mxu1 %vm1111_vm0, %v5752_v46 }
 0xa75   : > { %10673 = vmatmul.mubr.msk.f32.gmra.mrb[178].mxu1 %vm1111_vm0, %v5754_v43 }
 0xab7   : > { %v10523_v38 = vpop.f32.mrb[116].mxu1 }
 0xab8   : > { %v5175_v61 = vpop.f32.mrb[117].mxu1 }
 0xab9   : > { %10577 = vmatprep.mubr.msk.f32.mxu0 %vm1111_vm0, %v5175_v61 }
 0xaba   : > { %10578 = vmatmul.mubr.msk.f32.vlgmr.msra.gmra.mrb[80].mxu0 %vm1111_vm0, %v10523_v38 }
 0xabb   : > { %v10526_v21 = vpop.f32.mrb[118].mxu1 }
 0xabc   : > { %v5185_v1 = vpop.f32.mrb[119].mxu1 }
 0xabd   : > { %10580 = vmatprep.mubr.msk.f32.mxu0 %vm1111_vm0, %v5185_v1 }
 0xabe   : > { %10581 = vmatmul.mubr.msk.f32.gmra.mrb[82].mxu0 %vm1111_vm0, %v10526_v21 }
 0xabf   : > { %v10529_v22 = vpop.f32.mrb[120].mxu1 }
 0xac0   : > { %v5195_v60 = vpop.f32.mrb[121].mxu1 }
 0xac1   : > { %10583 = vmatprep.mubr.msk.f32.mxu0 %vm1111_vm0, %v5195_v60 }
 0xac2   : > { %10584 = vmatmul.mubr.msk.f32.gmra.mrb[84].mxu0 %vm1111_vm0, %v10529_v22 }
 0xac3   : > { %v10532_v54 = vpop.f32.mrb[122].mxu1 }
 0xac4   : > { %v5205_v30 = vpop.f32.mrb[123].mxu1 }
 0xac5   : > { %10586 = vmatprep.mubr.msk.f32.mxu0 %vm1111_vm0, %v5205_v30 }
 0xac6   : > { %10587 = vmatmul.mubr.msk.f32.gmra.mrb[86].mxu0 %vm1111_vm0, %v10532_v54 }
 0xac7   : > { %v10535_v14 = vpop.f32.mrb[124].mxu1 }
 0xac8   : > { %v5215_v16 = vpop.f32.mrb[125].mxu1 }
 0xac9   : > { %10589 = vmatprep.mubr.msk.f32.mxu0 %vm1111_vm0, %v5215_v16 }
 0xaca   : > { %10590 = vmatmul.mubr.msk.f32.gmra.mrb[88].mxu0 %vm1111_vm0, %v10535_v14 }
 0xacb   : > { %v10538_v11 = vpop.f32.mrb[126].mxu1 }
 0xacc   : > { %v5225_v48 = vpop.f32.mrb[127].mxu1 }
 0xacd   : > { %10592 = vmatprep.mubr.msk.f32.mxu0 %vm1111_vm0, %v5225_v48 }
 0xace   : > { %10593 = vmatmul.mubr.msk.f32.gmra.mrb[90].mxu0 %vm1111_vm0, %v10538_v11 }
 0xacf   : > { %v10541_v7 = vpop.f32.mrb[128].mxu1 }
 0xad0   : > { %v5235_v26 = vpop.f32.mrb[129].mxu1 }
 0xad1   : > { %10595 = vmatprep.mubr.msk.f32.mxu0 %vm1111_vm0, %v5235_v26 }
 0xad2   : > { %10596 = vmatmul.mubr.msk.f32.gmra.mrb[92].mxu0 %vm1111_vm0, %v10541_v7 }
 0xad3   : > { %v10544_v50 = vpop.f32.mrb[130].mxu1 }
 0xad4   : > { %v5245_v9 = vpop.f32.mrb[131].mxu1 }
 0xad5   : > { %10598 = vmatprep.mubr.msk.f32.mxu0 %vm1111_vm0, %v5245_v9 }
 0xad6   : > { %10599 = vmatmul.mubr.msk.f32.gmra.mrb[94].mxu0 %vm1111_vm0, %v10544_v50 }
 0xad7   : > { %v10547_v41 = vpop.f32.mrb[132].mxu1 }
 0xad8   : > { %v5255_v57 = vpop.f32.mrb[133].mxu1 }
 0xad9   : > { %10601 = vmatprep.mubr.msk.f32.mxu0 %vm1111_vm0, %v5255_v57 }
 0xada   : > { %10602 = vmatmul.mubr.msk.f32.gmra.mrb[96].mxu0 %vm1111_vm0, %v10547_v41 }
 0xadb   : > { %v10550_v29 = vpop.f32.mrb[134].mxu1 }
 0xadc   : > { %v5265_v5 = vpop.f32.mrb[135].mxu1 }
 0xadd   : > { %10604 = vmatprep.mubr.msk.f32.mxu0 %vm1111_vm0, %v5265_v5 }
 0xade   : > { %10605 = vmatmul.mubr.msk.f32.gmra.mrb[98].mxu0 %vm1111_vm0, %v10550_v29 }
 0xaf4   : > { %v10553_v51 = vpop.f32.mrb[136].mxu1 }
 0xaf5   : > { %v5275_v10 = vpop.f32.mrb[137].mxu1 }
 0xaf6   : > { %10607 = vmatprep.mubr.msk.f32.mxu0 %vm1111_vm0, %v5275_v10 }
 0xaf7   : > { %10608 = vmatmul.mubr.msk.f32.gmra.mrb[100].mxu0 %vm1111_vm0, %v10553_v51 }
 0xaf8   : > { %v10556_v35 = vpop.f32.mrb[138].mxu1 }
 0xaf9   : > { %v5285_v8 = vpop.f32.mrb[139].mxu1 }
 0xafa   : > { %10610 = vmatprep.mubr.msk.f32.mxu0 %vm1111_vm0, %v5285_v8 }
 0xafb   : > { %10611 = vmatmul.mubr.msk.f32.gmra.mrb[102].mxu0 %vm1111_vm0, %v10556_v35 }
 0xafc   : > { %v10559_v23 = vpop.f32.mrb[140].mxu1 }
 0xafd   : > { %v5295_v4 = vpop.f32.mrb[141].mxu1 }
 0xafe   : > { %10613 = vmatprep.mubr.msk.f32.mxu0 %vm1111_vm0, %v5295_v4 }
 0xaff   : > { %10614 = vmatmul.mubr.msk.f32.gmra.mrb[104].mxu0 %vm1111_vm0, %v10559_v23 }
 0xb00   : > { %v10562_v53 = vpop.f32.mrb[142].mxu1 }
 0xb01   : > { %v5305_v12 = vpop.f32.mrb[143].mxu1 }
 0xb02   : > { %10616 = vmatprep.mubr.msk.f32.mxu0 %vm1111_vm0, %v5305_v12 }
 0xb03   : > { %10617 = vmatmul.mubr.msk.f32.gmra.mrb[106].mxu0 %vm1111_vm0, %v10562_v53 }
 0xb04   : > { %v10565_v20 = vpop.f32.mrb[144].mxu1 }
 0xb05   : > { %v5315_v44 = vpop.f32.mrb[145].mxu1 }
 0xb06   : > { %10619 = vmatprep.mubr.msk.f32.mxu0 %vm1111_vm0, %v5315_v44 }
 0xb07   : > { %10620 = vmatmul.mubr.msk.f32.gmra.mrb[108].mxu0 %vm1111_vm0, %v10565_v20 }
 0xb08   : > { %v10568_v34 = vpop.f32.mrb[146].mxu1 }
 0xb09   : > { %v5325_v13 = vpop.f32.mrb[147].mxu1 }
 0xb0a   : > { %10622 = vmatprep.mubr.msk.f32.mxu0 %vm1111_vm0, %v5325_v13 }
 0xb0b   : > { %10623 = vmatmul.mubr.msk.f32.gmra.mrb[110].mxu0 %vm1111_vm0, %v10568_v34 }
 0xb0c   : > { %v14665_v19 = vpop.f32.mrb[148].mxu1 }
 0xb0d   : > { %v14667_v27 = vpop.f32.mrb[149].mxu1  ;;  %v6051_v25 = vsel %vm1943_vm2, %v14665_v19, -inf }
 0xb0e   : > { %6052 = vmax.xlane.f32.xlu0 %v6051_v25  ;;  %v6048_v31 = vsel %vm1943_vm2, %v14667_v27, -inf }
 0xb0f   : > { %6049 = vmax.xlane.f32.xlu1 %v6048_v31 }
 0xb10   : > { %v14673_v55 = vpop.f32.mrb[150].mxu1 }
 0xb11   : > { %v14675_v52 = vpop.f32.mrb[151].mxu1  ;;  %v6057_v59 = vsel %vm1943_vm2, %v14673_v55, -inf }
 0xb12   : > { %v6054_v58 = vsel %vm1943_vm2, %v14675_v52, -inf }
 0xb13   : > { %6055 = vmax.xlane.f32.xlu0 %v6054_v58 }
 0xb14   : > { %v14679_v6 = vpop.f32.mrb[152].mxu1 }
 0xb15   : > { %v14681_v39 = vpop.f32.mrb[153].mxu1  ;;  %v6063_v56 = vsel %vm1943_vm2, %v14679_v6, -inf }
 0xb16   : > { %v6060_v18 = vsel %vm1943_vm2, %v14681_v39, -inf }
 0xb17   : > { %6058 = vmax.xlane.f32.xlu0 %v6057_v59  ;;  %6061 = vmax.xlane.f32.xlu1 %v6060_v18 }
 0xb18   : > { %v14687_v32 = vpop.f32.mrb[154].mxu1 }
 0xb19   : > { %v14689_v15 = vpop.f32.mrb[155].mxu1  ;;  %v6069_v42 = vsel %vm1943_vm2, %v14687_v32, -inf }
 0xb1a   : > { %v6066_v45 = vsel %vm1943_vm2, %v14689_v15, -inf }
 0xb1b   : > { %6064 = vmax.xlane.f32.xlu0 %v6063_v56  ;;  %6067 = vmax.xlane.f32.xlu1 %v6066_v45 }
 0xb1c   : > { %v14695_v24 = vpop.f32.mrb[156].mxu1 }
 0xb1d   : > { %v14697_v49 = vpop.f32.mrb[157].mxu1  ;;  %v6075_v47 = vsel %vm1943_vm2, %v14695_v24, -inf }
 0xb1e   : > { %v6072_v36 = vsel %vm1943_vm2, %v14697_v49, -inf }
 0xb1f   : > { %6070 = vmax.xlane.f32.xlu0 %v6069_v42  ;;  %6073 = vmax.xlane.f32.xlu1 %v6072_v36 }
 0xb20   : > { %v14703_v28 = vpop.f32.mrb[158].mxu1 }
 0xb21   : > { %v14705_v40 = vpop.f32.mrb[159].mxu1  ;;  %v6081_v0 = vsel %vm1943_vm2, %v14703_v28, -inf }
 0xb22   : > { %v6078_v62 = vsel %vm1943_vm2, %v14705_v40, -inf }
 0xb23   : > { %6076 = vmax.xlane.f32.xlu0 %v6075_v47  ;;  %6079 = vmax.xlane.f32.xlu1 %v6078_v62 }
 0xb24   : > { %v14711_v3 = vpop.f32.mrb[160].mxu1 }
 0xb25   : > { %v14713_v2 = vpop.f32.mrb[161].mxu1  ;;  %v6087_v46 = vsel %vm1943_vm2, %v14711_v3, -inf }
 0xb26   : > { %v6084_v17 = vsel %vm1943_vm2, %v14713_v2, -inf }
 0xb27   : > { %6082 = vmax.xlane.f32.xlu0 %v6081_v0  ;;  %6085 = vmax.xlane.f32.xlu1 %v6084_v17 }
 0xb28   : > { %v14719_v33 = vpop.f32.mrb[162].mxu1 }
 0xb29   : > { %v14721_v37 = vpop.f32.mrb[163].mxu1  ;;  %v6093_v21 = vsel %vm1943_vm2, %v14719_v33, -inf }
 0xb2a   : > { %v6090_v43 = vsel %vm1943_vm2, %v14721_v37, -inf }
 0xb2b   : > { %6088 = vmax.xlane.f32.xlu0 %v6087_v46  ;;  %6091 = vmax.xlane.f32.xlu1 %v6090_v43 }
 0xb2c   : > { %v14727_v38 = vpop.f32.mrb[164].mxu1 }
 0xb2d   : > { %v14729_v61 = vpop.f32.mrb[165].mxu1  ;;  %v6099_v54 = vsel %vm1943_vm2, %v14727_v38, -inf }
 0xb2e   : > { %v6096_v1 = vsel %vm1943_vm2, %v14729_v61, -inf }
 0xb2f   : > { %6094 = vmax.xlane.f32.xlu0 %v6093_v21  ;;  %6097 = vmax.xlane.f32.xlu1 %v6096_v1 }
 0xb30   : > { %v14735_v22 = vpop.f32.mrb[166].mxu1 }
 0xb31   : > { %v14737_v60 = vpop.f32.mrb[167].mxu1  ;;  %v6105_v11 = vsel %vm1943_vm2, %v14735_v22, -inf }
 0xb32   : > { %v6102_v30 = vsel %vm1943_vm2, %v14737_v60, -inf }
 0xb33   : > { %6100 = vmax.xlane.f32.xlu0 %v6099_v54  ;;  %6103 = vmax.xlane.f32.xlu1 %v6102_v30 }
 0xb34   : > { %v14743_v14 = vpop.f32.mrb[168].mxu1 }
 0xb35   : > { %v14745_v16 = vpop.f32.mrb[169].mxu1  ;;  %v6111_v50 = vsel %vm1943_vm2, %v14743_v14, -inf }
 0xb36   : > { %v6108_v48 = vsel %vm1943_vm2, %v14745_v16, -inf }
 0xb37   : > { %6106 = vmax.xlane.f32.xlu0 %v6105_v11  ;;  %6109 = vmax.xlane.f32.xlu1 %v6108_v48 }
 0xb38   : > { %v14751_v7 = vpop.f32.mrb[170].mxu1 }
 0xb39   : > { %v14753_v26 = vpop.f32.mrb[171].mxu1  ;;  %v6117_v29 = vsel %vm1943_vm2, %v14751_v7, -inf }
 0xb3a   : > { %v6114_v9 = vsel %vm1943_vm2, %v14753_v26, -inf }
 0xb3b   : > { %6112 = vmax.xlane.f32.xlu0 %v6111_v50  ;;  %6115 = vmax.xlane.f32.xlu1 %v6114_v9 }
 0xb3c   : > { %v14759_v41 = vpop.f32.mrb[172].mxu1 }
 0xb3d   : > { %v14761_v57 = vpop.f32.mrb[173].mxu1  ;;  %v6123_v35 = vsel %vm1943_vm2, %v14759_v41, -inf }
 0xb3e   : > { %v6120_v5 = vsel %vm1943_vm2, %v14761_v57, -inf }
 0xb3f   : > { %6118 = vmax.xlane.f32.xlu0 %v6117_v29  ;;  %6121 = vmax.xlane.f32.xlu1 %v6120_v5 }
 0xb40   : > { %v14767_v51 = vpop.f32.mrb[174].mxu1 }
 0xb41   : > { %v14769_v10 = vpop.f32.mrb[175].mxu1  ;;  %v6129_v53 = vsel %vm1943_vm2, %v14767_v51, -inf }
 0xb42   : > { %v6126_v8 = vsel %vm1943_vm2, %v14769_v10, -inf }
 0xb43   : > { %6124 = vmax.xlane.f32.xlu0 %v6123_v35  ;;  %6127 = vmax.xlane.f32.xlu1 %v6126_v8 }
 0xb44   : > { %v14775_v23 = vpop.f32.mrb[176].mxu1 }
 0xb45   : > { %v14777_v4 = vpop.f32.mrb[177].mxu1  ;;  %v6135_v34 = vsel %vm1943_vm2, %v14775_v23, -inf }
 0xb46   : > { %v6132_v12 = vsel %vm1943_vm2, %v14777_v4, -inf }
 0xb47   : > { %6130 = vmax.xlane.f32.xlu0 %v6129_v53  ;;  %6133 = vmax.xlane.f32.xlu1 %v6132_v12 }
 0xb48   : > { %v14783_v20 = vpop.f32.mrb[178].mxu1 }
 0xb49   : > { %v14785_v44 = vpop.f32.mrb[179].mxu1  ;;  %v6141_v25 = vsel %vm1943_vm2, %v14783_v20, -inf }
 0xb4a   : > { %v6138_v13 = vsel %vm1943_vm2, %v14785_v44, -inf }
 0xb4b   : > { %6136 = vmax.xlane.f32.xlu0 %v6135_v34  ;;  %6139 = vmax.xlane.f32.xlu1 %v6138_v13 }
 0xb4f   : > { %6142 = vmax.xlane.f32.xlu0 %v6141_v25 }
 0xb9b   : > { %v6053_v31 = vpop.xlane.xlu0 %6052 }
 0xb9c   : > { %v6145_v58 = vsub.f32 %v14665_v19, %v6053_v31  ;;  %v6050_v59 = vpop.xlane.xlu1 %6049 }
 0xb9d   : > { %v6144_v18 = vsub.f32 %v14667_v27, %v6050_v59 }
 0xb9e   : > { %v6178_v56 = vmul.f32 1.442695, %v6145_v58 }
 0xb9f   : > { %v6176_v45 = vmul.f32 1.442695, %v6144_v18 }
 0xba0   : > { %11702 = vpow2.f32 %v6178_v56  ;;  %v6056_v42 = vpop.xlane.xlu0 %6055 }
 0xba1   : > { %11704 = vpow2.f32 %v6176_v45  ;;  %v6146_v36 = vsub.f32 %v14675_v52, %v6056_v42 }
 0xba3   : > { %v6180_v47 = vmul.f32 1.442695, %v6146_v36 }
 0xba4   : > { %v6059_v62 = vpop.xlane.xlu0 %6058  ;;  %v6062_v0 = vpop.xlane.xlu1 %6061 }
 0xba5   : > { %11706 = vpow2.f32 %v6180_v47  ;;  %v6147_v17 = vsub.f32 %v14673_v55, %v6059_v62  ;;  %v6148_v46 = vsub.f32 %v14681_v39, %v6062_v0 }
 0xba7   : > { %v6182_v43 = vmul.f32 1.442695, %v6147_v17  ;;  %v6184_v19 = vmul.f32 1.442695, %v6148_v46 }
 0xba8   : > { %v6065_v21 = vpop.xlane.xlu0 %6064  ;;  %v6068_v1 = vpop.xlane.xlu1 %6067 }
 0xba9   : > { %11708 = vpow2.f32 %v6182_v43  ;;  %v6149_v27 = vsub.f32 %v14679_v6, %v6065_v21  ;;  %v6150_v54 = vsub.f32 %v14689_v15, %v6068_v1 }
 0xbaa   : > { %v14800_v30 = vpop.eup %11702  ;;  %11710 = vpow2.f32 %v6184_v19 }
 0xbab   : > { %v14802_v52 = vpop.eup %11704  ;;  %v6186_v11 = vmul.f32 1.442695, %v6149_v27  ;;  %v6188_v48 = vmul.f32 1.442695, %v6150_v54  ;;  %v6243_v55 = vsel %vm1943_vm2, %v14800_v30, 0.0 }
 0xbac   : > { %v6071_v39 = vpop.xlane.xlu0 %6070  ;;  %6244 = vadd.xlane.f32.xlu0 %v6243_v55  ;;  %v6074_v50 = vpop.xlane.xlu1 %6073  ;;  %v6240_v9 = vsel %vm1943_vm2, %v14802_v52, 0.0 }
 0xbad   : > { %11712 = vpow2.f32 %v6186_v11  ;;  %v6151_v6 = vsub.f32 %v14687_v32, %v6071_v39  ;;  %v6152_v15 = vsub.f32 %v14697_v49, %v6074_v50  ;;  %6241 = vadd.xlane.f32.xlu1 %v6240_v9 }
 0xbae   : > { %11714 = vpow2.f32 %v6188_v48 }
 0xbaf   : > { %v14810_v29 = vpop.eup %11706  ;;  %v6190_v5 = vmul.f32 1.442695, %v6151_v6  ;;  %v6192_v35 = vmul.f32 1.442695, %v6152_v15 }
 0xbb0   : > { %v6077_v8 = vpop.xlane.xlu0 %6076  ;;  %v6080_v53 = vpop.xlane.xlu1 %6079  ;;  %v6246_v12 = vsel %vm1943_vm2, %v14810_v29, 0.0 }
 0xbb1   : > { %11716 = vpow2.f32 %v6190_v5  ;;  %v6153_v34 = vsub.f32 %v14695_v24, %v6077_v8  ;;  %v6154_v13 = vsub.f32 %v14705_v40, %v6080_v53  ;;  %6247 = vadd.xlane.f32.xlu1 %v6246_v12 }
 0xbb2   : > { %11718 = vpow2.f32 %v6192_v35 }
 0xbb3   : > { %v14816_v32 = vpop.eup %11708  ;;  %v6194_v49 = vmul.f32 1.442695, %v6153_v34  ;;  %v6196_v25 = vmul.f32 1.442695, %v6154_v13 }
 0xbb4   : > { %v14818_v31 = vpop.eup %11710  ;;  %v6083_v58 = vpop.xlane.xlu0 %6082  ;;  %v6249_v18 = vsel %vm1943_vm2, %v14816_v32, 0.0 }
 0xbb5   : > { %v6086_v59 = vpop.xlane.xlu1 %6085  ;;  %11720 = vpow2.f32 %v6194_v49  ;;  %v6155_v56 = vsub.f32 %v14703_v28, %v6083_v58  ;;  %6250 = vadd.xlane.f32.xlu0 %v6249_v18  ;;  %v6252_v40 = vsel %vm1943_vm2, %v14818_v31, 0.0 }
 0xbb6   : > { %v6156_v24 = vsub.f32 %v14713_v2, %v6086_v59  ;;  %11722 = vpow2.f32 %v6196_v25  ;;  %6253 = vadd.xlane.f32.xlu1 %v6252_v40 }
 0xbb7   : > { %v14826_v45 = vpop.eup %11712  ;;  %v6198_v42 = vmul.f32 1.442695, %v6155_v56 }
 0xbb8   : > { %v6200_v36 = vmul.f32 1.442695, %v6156_v24  ;;  %v14828_v47 = vpop.eup %11714  ;;  %v6089_v62 = vpop.xlane.xlu0 %6088  ;;  %v6255_v17 = vsel %vm1943_vm2, %v14826_v45, 0.0 }
 0xbb9   : > { %v6092_v0 = vpop.xlane.xlu1 %6091  ;;  %11724 = vpow2.f32 %v6198_v42  ;;  %v6157_v28 = vsub.f32 %v14711_v3, %v6089_v62  ;;  %6256 = vadd.xlane.f32.xlu0 %v6255_v17  ;;  %v6258_v2 = vsel %vm1943_vm2, %v14828_v47, 0.0 }
 0xbba   : > { %11726 = vpow2.f32 %v6200_v36  ;;  %6259 = vadd.xlane.f32.xlu1 %v6258_v2  ;;  %v6158_v19 = vsub.f32 %v14721_v37, %v6092_v0 }
 0xbbb   : > { %v14835_v46 = vpop.eup %11716  ;;  %v6202_v43 = vmul.f32 1.442695, %v6157_v28 }
 0xbbc   : > { %v14838_v21 = vpop.eup %11718  ;;  %v6095_v1 = vpop.xlane.xlu0 %6094  ;;  %v6261_v27 = vsel %vm1943_vm2, %v14835_v46, 0.0  ;;  %v6204_v48 = vmul.f32 1.442695, %v6158_v19 }
 0xbbd   : > { %11728 = vpow2.f32 %v6202_v43  ;;  %v6159_v3 = vsub.f32 %v14719_v33, %v6095_v1  ;;  %6262 = vadd.xlane.f32.xlu0 %v6261_v27  ;;  %v6264_v54 = vsel %vm1943_vm2, %v14838_v21, 0.0  ;;  %v6098_v37 = vpop.xlane.xlu1 %6097 }
 0xbbe   : > { %6265 = vadd.xlane.f32.xlu1 %v6264_v54  ;;  %v6160_v5 = vsub.f32 %v14729_v61, %v6098_v37 }
 0xbbf   : > { %v14845_v11 = vpop.eup %11720  ;;  %v6206_v55 = vmul.f32 1.442695, %v6159_v3 }
 0xbc0   : > { %v14847_v39 = vpop.eup %11722  ;;  %v6101_v50 = vpop.xlane.xlu0 %6100  ;;  %v6267_v9 = vsel %vm1943_vm2, %v14845_v11, 0.0  ;;  %v6208_v49 = vmul.f32 1.442695, %v6160_v5 }
 0xbc1   : > { %11730 = vpow2.f32 %v6206_v55  ;;  %v6161_v6 = vsub.f32 %v14727_v38, %v6101_v50  ;;  %6268 = vadd.xlane.f32.xlu0 %v6267_v9  ;;  %v6270_v33 = vsel %vm1943_vm2, %v14847_v39, 0.0  ;;  %v14863_v34 = vpop.xlane.xlu1 %6103 }
 0xbc2   : > { %6271 = vadd.xlane.f32.xlu1 %v6270_v33  ;;  %11732 = vpow2.f32 %v6204_v48 }
 0xbc3   : > { %v14854_v15 = vpop.eup %11724  ;;  %v6210_v35 = vmul.f32 1.442695, %v6161_v6 }
 0xbc4   : > { %v14857_v8 = vpop.eup %11726  ;;  %v6107_v53 = vpop.xlane.xlu0 %6106  ;;  %v6273_v12 = vsel %vm1943_vm2, %v14854_v15, 0.0 }
 0xbc5   : > { %6274 = vadd.xlane.f32.xlu0 %v6273_v12  ;;  %v6276_v38 = vsel %vm1943_vm2, %v14857_v8, 0.0  ;;  %11734 = vpow2.f32 %v6210_v35  ;;  %v6163_v61 = vsub.f32 %v14735_v22, %v6107_v53  ;;  %v6110_v24 = vpop.xlane.xlu1 %6109 }
 0xbc6   : > { %6277 = vadd.xlane.f32.xlu1 %v6276_v38  ;;  %11736 = vpow2.f32 %v6208_v49  ;;  %v6164_v22 = vsub.f32 %v14745_v16, %v6110_v24 }
 0xbc7   : > { %v14865_v13 = vpop.eup %11728  ;;  %v6214_v18 = vmul.f32 1.442695, %v6163_v61 }
 0xbc8   : > { %v6113_v25 = vpop.xlane.xlu0 %6112  ;;  %v6279_v58 = vsel %vm1943_vm2, %v14865_v13, 0.0 }
 0xbc9   : > { %6280 = vadd.xlane.f32.xlu0 %v6279_v58  ;;  %v6165_v56 = vsub.f32 %v14743_v14, %v6113_v25  ;;  %11738 = vpow2.f32 %v6214_v18  ;;  %v6116_v28 = vpop.xlane.xlu1 %6115  ;;  %v6216_v14 = vmul.f32 1.442695, %v6164_v22 }
 0xbca   : > { %v6166_v16 = vsub.f32 %v14753_v26, %v6116_v28 }
 0xbcb   : > { %v14870_v59 = vpop.eup %11730  ;;  %v6218_v36 = vmul.f32 1.442695, %v6165_v56 }
 0xbcc   : > { %v6285_v40 = vsel %vm1943_vm2, %v14870_v59, 0.0  ;;  %v14875_v42 = vpop.eup %11732  ;;  %v6119_v62 = vpop.xlane.xlu0 %6118 }
 0xbcd   : > { %6286 = vadd.xlane.f32.xlu0 %v6285_v40  ;;  %v6282_v0 = vsel %vm1943_vm2, %v14875_v42, 0.0  ;;  %11740 = vpow2.f32 %v6218_v36  ;;  %v6167_v2 = vsub.f32 %v14751_v7, %v6119_v62  ;;  %v6122_v27 = vpop.xlane.xlu1 %6121  ;;  %v6220_v7 = vmul.f32 1.442695, %v6166_v16 }
 0xbce   : > { %11742 = vpow2.f32 %v6216_v14 }
 0xbcf   : > { %v14880_v17 = vpop.eup %11734  ;;  %v6222_v1 = vmul.f32 1.442695, %v6167_v2 }
 0xbd0   : > { %v6291_v43 = vsel %vm1943_vm2, %v14880_v17, 0.0  ;;  %v14885_v19 = vpop.eup %11736  ;;  %v6125_v3 = vpop.xlane.xlu0 %6124 }
 0xbd1   : > { %6283 = vadd.xlane.f32.xlu0 %v6282_v0  ;;  %v6288_v54 = vsel %vm1943_vm2, %v14885_v19, 0.0  ;;  %11744 = vpow2.f32 %v6222_v1  ;;  %v6169_v55 = vsub.f32 %v14759_v41, %v6125_v3  ;;  %v6128_v50 = vpop.xlane.xlu1 %6127 }
 0xbd2   : > { %11746 = vpow2.f32 %v6220_v7  ;;  %v6170_v41 = vsub.f32 %v14769_v10, %v6128_v50 }
 0xbd3   : > { %v14892_v48 = vpop.eup %11738  ;;  %v6226_v9 = vmul.f32 1.442695, %v6169_v55 }
 0xbd4   : > { %v6297_v37 = vsel %vm1943_vm2, %v14892_v48, 0.0  ;;  %v6131_v6 = vpop.xlane.xlu0 %6130  ;;  %v6228_v61 = vmul.f32 1.442695, %v6170_v41 }
 0xbd5   : > { %6292 = vadd.xlane.f32.xlu0 %v6291_v43  ;;  %11748 = vpow2.f32 %v6226_v9  ;;  %v6134_v53 = vpop.xlane.xlu1 %6133  ;;  %v6171_v25 = vsub.f32 %v14767_v51, %v6131_v6 }
 0xbd6   : > { %v6172_v56 = vsub.f32 %v14777_v4, %v6134_v53 }
 0xbd7   : > { %6400 = vrot.lane.b32.xlu1 %v16896_v63, %s12092_s21  ;;  %v14897_v26 = vpop.eup %11740  ;;  %v6168_v63 = vsub.f32 %v14761_v57, %v6122_v27  ;;  %v6162_v57 = vsub.f32 %v14737_v60, %v14863_v34  ;;  %v6230_v40 = vmul.f32 1.442695, %v6171_v25 }
 0xbd8   : > { %v6303_v33 = vsel %vm1943_vm2, %v14897_v26, 0.0  ;;  %v14902_v5 = vpop.eup %11742  ;;  %v6137_v49 = vpop.xlane.xlu0 %6136  ;;  %v6232_v51 = vmul.f32 1.442695, %v6172_v56 }
 0xbd9   : > { %6289 = vadd.xlane.f32.xlu0 %v6288_v54  ;;  %v6224_v35 = vmul.f32 1.442695, %v6168_v63  ;;  %v6300_v12 = vsel %vm1943_vm2, %v14902_v5, 0.0  ;;  %v6212_v10 = vmul.f32 1.442695, %v6162_v57  ;;  %v6140_v24 = vpop.xlane.xlu1 %6139  ;;  %v6173_v60 = vsub.f32 %v14775_v23, %v6137_v49 }
 0xbda   : > { %v6174_v62 = vsub.f32 %v14785_v44, %v6140_v24 }
 0xbdb   : > { %v14907_v38 = vpop.eup %11744  ;;  %11750 = vpow2.f32 %v6224_v35  ;;  %v6234_v0 = vmul.f32 1.442695, %v6173_v60 }
 0xbdc   : > { %v6309_v58 = vsel %vm1943_vm2, %v14907_v38, 0.0  ;;  %v14914_v18 = vpop.eup %11746  ;;  %11752 = vpow2.f32 %v6228_v61  ;;  %v6143_v34 = vpop.xlane.xlu0 %6142  ;;  %v6236_v23 = vmul.f32 1.442695, %v6174_v62  ;;  %v6727_v62 = vld [vmem:[%s16532_s12 + $0x78] sm:$0xff] }
 0xbdd   : > { %6298 = vadd.xlane.f32.xlu0 %v6297_v37  ;;  %v6306_v22 = vsel %vm1943_vm2, %v14914_v18, 0.0  ;;  %11754 = vpow2.f32 %v6212_v10  ;;  %v6175_v4 = vsub.f32 %v14783_v20, %v6143_v34  ;;  %v6724_v34 = vld [vmem:[%s16532_s12 + $0x60] sm:$0xff] }
 0xbde   : > { %11756 = vpow2.f32 %v6230_v40 }
 0xbdf   : > { %v14920_v36 = vpop.eup %11748  ;;  %11758 = vpow2.f32 %v6232_v51  ;;  %v6238_v2 = vmul.f32 1.442695, %v6175_v4  ;;  %v6726_v51 = vld [vmem:[%s16532_s12 + $0x70] sm:$0xff] }
 0xbe0   : > { %v6315_v28 = vsel %vm1943_vm2, %v14920_v36, 0.0  ;;  %11760 = vpow2.f32 %v6234_v0 }
 0xbe1   : > { %6304 = vadd.xlane.f32.xlu0 %v6303_v33  ;;  %11762 = vpow2.f32 %v6236_v23 }
 0xbe2   : > { %11764 = vpow2.f32 %v6238_v2 }
 0xbe5   : > { %6301 = vadd.xlane.f32.xlu0 %v6300_v12  ;;  %v14926_v14 = vpop.eup %11750 }
 0xbe6   : > { %v6312_v43 = vsel %vm1943_vm2, %v14926_v14, 0.0  ;;  %v14930_v16 = vpop.eup %11752 }
 0xbe7   : > { %v14932_v44 = vpop.eup %11754  ;;  %v6318_v20 = vsel %vm1943_vm2, %v14930_v16, 0.0 }
 0xbe8   : > { %v14936_v1 = vpop.eup %11756  ;;  %v6294_v27 = vsel %vm1943_vm2, %v14932_v44, 0.0 }
 0xbe9   : > { %6310 = vadd.xlane.f32.xlu0 %v6309_v58  ;;  %v14940_v3 = vpop.eup %11758  ;;  %v6321_v54 = vsel %vm1943_vm2, %v14936_v1, 0.0 }
 0xbea   : > { %v14944_v7 = vpop.eup %11760  ;;  %v6324_v55 = vsel %vm1943_vm2, %v14940_v3, 0.0 }
 0xbeb   : > { %v14948_v37 = vpop.eup %11762  ;;  %v6327_v50 = vsel %vm1943_vm2, %v14944_v7, 0.0 }
 0xbec   : > { %v14952_v63 = vpop.eup %11764  ;;  %v6330_v9 = vsel %vm1943_vm2, %v14948_v37, 0.0 }
 0xbed   : > { %6307 = vadd.xlane.f32.xlu0 %v6306_v22  ;;  %v6333_v6 = vsel %vm1943_vm2, %v14952_v63, 0.0 }
 0xbf1   : > { %6316 = vadd.xlane.f32.xlu0 %v6315_v28 }
 0xbf5   : > { %6313 = vadd.xlane.f32.xlu0 %v6312_v43  ;;  %v11039_v43 = vpack.c.bf16 %v6727_v62, %v6726_v51 }
 0xbf9   : > { %6319 = vadd.xlane.f32.xlu0 %v6318_v20 }
 0xbfb   : > { %6295 = vadd.xlane.f32.xlu1 %v6294_v27 }
 0xbfd   : > { %6322 = vadd.xlane.f32.xlu0 %v6321_v54 }
 0xbff   : > { %6325 = vadd.xlane.f32.xlu1 %v6324_v55 }
 0xc01   : > { %6328 = vadd.xlane.f32.xlu0 %v6327_v50 }
 0xc03   : > { %6331 = vadd.xlane.f32.xlu1 %v6330_v9 }
 0xc05   : > { %6334 = vadd.xlane.f32.xlu0 %v6333_v6 }
 0xc39   : > { %v6245_v35 = vpop.xlane.xlu0 %6244 }
 0xc3a   : > { %v6242_v33 = vpop.xlane.xlu1 %6241 }
 0xc3b   : > { %11766 = vrcp.f32 %v6242_v33 }
 0xc3c   : > { %11768 = vrcp.f32 %v6245_v35 }
 0xc3e   : > { %v6248_v41 = vpop.xlane.xlu1 %6247 }
 0xc3f   : > { %11770 = vrcp.f32 %v6248_v41 }
 0xc42   : > { %v6251_v53 = vpop.xlane.xlu0 %6250 }
 0xc43   : > { %v6254_v12 = vpop.xlane.xlu1 %6253  ;;  %11772 = vrcp.f32 %v6251_v53 }
 0xc44   : > { %11774 = vrcp.f32 %v6254_v12 }
 0xc45   : > { %v11767_v57 = vpop.eup %11766 }
 0xc46   : > { %v6257_v49 = vpop.xlane.xlu0 %6256  ;;  %v6337_v61 = vmul.f32 %v11767_v57, %v14802_v52  ;;  %v6725_v52 = vld [vmem:[%s16532_s12 + $0x68] sm:$0xff]  ;;  %v11769_v22 = vpop.eup %11768 }
 0xc47   : > { %v6260_v25 = vpop.xlane.xlu1 %6259  ;;  %11776 = vrcp.f32 %v6257_v49  ;;  %v11035_v28 = vpack.c.bf16 %v6725_v52, %v6724_v34  ;;  %v6339_v2 = vmul.f32 %v11769_v22, %v14800_v30 }
 0xc48   : > { %10677 = vmatprep.mubr.msk.f32.mxu0 %vm1943_vm2, %v6337_v61  ;;  %11778 = vrcp.f32 %v6260_v25 }
 0xc49   : > { %v11771_v0 = vpop.eup %11770 }
 0xc4a   : > { %v6263_v58 = vpop.xlane.xlu0 %6262  ;;  %v6341_v27 = vmul.f32 %v11771_v0, %v14810_v29 }
 0xc4b   : > { %v6266_v10 = vpop.xlane.xlu1 %6265  ;;  %11780 = vrcp.f32 %v6263_v58 }
 0xc4c   : > { %11782 = vrcp.f32 %v6266_v10 }
 0xc4d   : > { %v11773_v20 = vpop.eup %11772 }
 0xc4e   : > { %v6269_v56 = vpop.xlane.xlu0 %6268  ;;  %v11775_v54 = vpop.eup %11774  ;;  %v6343_v50 = vmul.f32 %v11773_v20, %v14816_v32 }
 0xc4f   : > { %v6272_v24 = vpop.xlane.xlu1 %6271  ;;  %11784 = vrcp.f32 %v6269_v56  ;;  %v6345_v9 = vmul.f32 %v11775_v54, %v14818_v31 }
 0xc50   : > { %11786 = vrcp.f32 %v6272_v24 }
 0xc51   : > { %v11777_v30 = vpop.eup %11776 }
 0xc52   : > { %v6275_v40 = vpop.xlane.xlu0 %6274  ;;  %v11779_v6 = vpop.eup %11778  ;;  %v6347_v33 = vmul.f32 %v11777_v30, %v14826_v45 }
 0xc53   : > { %v6278_v60 = vpop.xlane.xlu1 %6277  ;;  %11788 = vrcp.f32 %v6275_v40  ;;  %v6349_v41 = vmul.f32 %v11779_v6, %v14828_v47 }
 0xc54   : > { %11790 = vrcp.f32 %v6278_v60 }
 0xc55   : > { %v11781_v35 = vpop.eup %11780 }
 0xc56   : > { %v6281_v4 = vpop.xlane.xlu0 %6280  ;;  %v11783_v53 = vpop.eup %11782  ;;  %v6351_v31 = vmul.f32 %v11781_v35, %v14835_v46 }
 0xc57   : > { %v6401_v23 = vpop.permute.xlu1 %6400  ;;  %11792 = vrcp.f32 %v6281_v4  ;;  %v6353_v57 = vmul.f32 %v11783_v53, %v14838_v21 }
 0xc58   : > { %10675 = vmatprep.subr.mxu0 %v6401_v23 }
 0xc59   : > { %10676 = vmatpush3.msra.mxu0 %v6401_v23  ;;  %v11785_v12 = vpop.eup %11784 }
 0xc5a   : > { %10678 = vmatmul.mubr.msk.f32.vlgmr.msra.gmra.mrb[112].mxu0 %vm1943_vm2, %v6339_v2  ;;  %v6287_v55 = vpop.xlane.xlu0 %6286  ;;  %11036 = vmatprep.subr.bf16.mxu0 %v11035_v28  ;;  %v11787_v49 = vpop.eup %11786  ;;  %v6355_v47 = vmul.f32 %v11785_v12, %v14845_v11 }
 0xc5b   : > { %10680 = vmatprep.mubr.msk.f32.mxu0 %vm1943_vm2, %v6341_v27  ;;  %11038 = vmatpush3.bf16.msra.mxu0 %v11035_v28  ;;  %v6357_v25 = vmul.f32 %v11787_v49, %v14847_v39 }
 0xc5c   : > { %11040 = vmatprep.subr.bf16.mxu0 %v11039_v43 }
 0xc5d   : > { %v11789_v61 = vpop.eup %11788 }
 0xc5e   : > { %10681 = vmatmul.mubr.msk.f32.gmra.mrb[114].mxu0 %vm1943_vm2, %v6343_v50  ;;  %v6284_v29 = vpop.xlane.xlu0 %6283  ;;  %v11791_v58 = vpop.eup %11790  ;;  %v6359_v21 = vmul.f32 %v11789_v61, %v14854_v15 }
 0xc5f   : > { %10683 = vmatprep.mubr.msk.f32.mxu0 %vm1943_vm2, %v6345_v9  ;;  %11042 = vmatpush3.bf16.msra.mxu0 %v11039_v43  ;;  %11794 = vrcp.f32 %v6284_v29  ;;  %v6361_v56 = vmul.f32 %v11791_v58, %v14857_v8 }
 0xc60   : > { %11796 = vrcp.f32 %v6287_v55 }
 0xc61   : > { %v11793_v10 = vpop.eup %11792 }
 0xc62   : > { %10684 = vmatmul.mubr.msk.f32.gmra.mrb[116].mxu0 %vm1943_vm2, %v6347_v33  ;;  %v6293_v32 = vpop.xlane.xlu0 %6292  ;;  %v6363_v11 = vmul.f32 %v11793_v10, %v14865_v13 }
 0xc63   : > { %10686 = vmatprep.mubr.msk.f32.mxu0 %vm1943_vm2, %v6349_v41 }
 0xc66   : > { %10687 = vmatmul.mubr.msk.f32.gmra.mrb[118].mxu0 %vm1943_vm2, %v6351_v31  ;;  %v6290_v45 = vpop.xlane.xlu0 %6289 }
 0xc67   : > { %10689 = vmatprep.mubr.msk.f32.mxu0 %vm1943_vm2, %v6353_v57  ;;  %11798 = vrcp.f32 %v6290_v45 }
 0xc68   : > { %11800 = vrcp.f32 %v6293_v32 }
 0xc69   : > { %v11795_v24 = vpop.eup %11794 }
 0xc6a   : > { %10690 = vmatmul.mubr.msk.f32.gmra.mrb[120].mxu0 %vm1943_vm2, %v6355_v47  ;;  %v6299_v46 = vpop.xlane.xlu0 %6298  ;;  %v11797_v39 = vpop.eup %11796  ;;  %v6365_v60 = vmul.f32 %v11795_v24, %v14875_v42 }
 0xc6b   : > { %10692 = vmatprep.mubr.msk.f32.mxu0 %vm1943_vm2, %v6357_v25  ;;  %v6367_v15 = vmul.f32 %v11797_v39, %v14870_v59  ;;  %11802 = vrcp.f32 %v6299_v46 }
 0xc6e   : > { %10693 = vmatmul.mubr.msk.f32.gmra.mrb[122].mxu0 %vm1943_vm2, %v6359_v21  ;;  %v6305_v40 = vpop.xlane.xlu0 %6304 }
 0xc6f   : > { %10695 = vmatprep.mubr.msk.f32.mxu0 %vm1943_vm2, %v6361_v56 }
 0xc71   : > { %v11799_v34 = vpop.eup %11798 }
 0xc72   : > { %10696 = vmatmul.mubr.msk.f32.gmra.mrb[124].mxu0 %vm1943_vm2, %v6363_v11  ;;  %v6302_v52 = vpop.xlane.xlu0 %6301  ;;  %v11801_v8 = vpop.eup %11800  ;;  %v6369_v22 = vmul.f32 %v11799_v34, %v14885_v19 }
 0xc73   : > { %10698 = vmatprep.mubr.msk.f32.mxu0 %vm1943_vm2, %v6365_v60  ;;  %v6371_v13 = vmul.f32 %v11801_v8, %v14880_v17  ;;  %11804 = vrcp.f32 %v6302_v52 }
 0xc75   : > { %v11803_v19 = vpop.eup %11802 }
 0xc76   : > { %10699 = vmatmul.mubr.msk.f32.gmra.mrb[126].mxu0 %vm1943_vm2, %v6367_v15  ;;  %v6311_v51 = vpop.xlane.xlu0 %6310  ;;  %v6375_v20 = vmul.f32 %v11803_v19, %v14892_v48 }
 0xc77   : > { %10701 = vmatprep.mubr.msk.f32.mxu0 %vm1943_vm2, %v6369_v22 }
 0xc7a   : > { %10702 = vmatmul.mubr.msk.f32.gmra.mrb[128].mxu0 %vm1943_vm2, %v6371_v13  ;;  %v6308_v42 = vpop.xlane.xlu0 %6307 }
 0xc7d   : > { %v11805_v23 = vpop.eup %11804 }
 0xc7e   : > { %v6317_v62 = vpop.xlane.xlu0 %6316  ;;  %v6377_v54 = vmul.f32 %v11805_v23, %v14902_v5 }
 0xc82   : > { %v6314_v0 = vpop.xlane.xlu0 %6313 }
 0xc86   : > { %v6320_v59 = vpop.xlane.xlu0 %6319 }
 0xc88   : > { %v6296_v4 = vpop.xlane.xlu1 %6295 }
 0xc89   : > { %11806 = vrcp.f32 %v6296_v4 }
 0xc8a   : > { %11808 = vrcp.f32 %v6305_v40  ;;  %v6323_v28 = vpop.xlane.xlu0 %6322 }
 0xc8b   : > { %11810 = vrcp.f32 %v6308_v42 }
 0xc8c   : > { %11812 = vrcp.f32 %v6311_v51  ;;  %v6326_v17 = vpop.xlane.xlu1 %6325 }
 0xc8d   : > { %11814 = vrcp.f32 %v6314_v0 }
 0xc8e   : > { %11816 = vrcp.f32 %v6317_v62  ;;  %v6329_v50 = vpop.xlane.xlu0 %6328 }
 0xc8f   : > { %11818 = vrcp.f32 %v6320_v59 }
 0xc90   : > { %11820 = vrcp.f32 %v6323_v28  ;;  %v15069_v28 = vld [vmem:[%s16533_s13] ss:$0 sm:$0xff] }
 0xc91   : > { %11822 = vrcp.f32 %v6326_v17 }
 0xc92   : > { %11824 = vrcp.f32 %v6329_v50  ;;  %v6335_v5 = vpop.xlane.xlu0 %6334 }
 0xc93   : > { %v11807_v2 = vpop.eup %11806 }
 0xc94   : > { %v6373_v43 = vmul.f32 %v11807_v2, %v14932_v44  ;;  %v11809_v27 = vpop.eup %11808  ;;  %v6332_v44 = vpop.xlane.xlu1 %6331 }
 0xc95   : > { %v11811_v55 = vpop.eup %11810  ;;  %v6379_v30 = vmul.f32 %v11809_v27, %v14897_v26  ;;  %11826 = vrcp.f32 %v6332_v44 }
 0xc96   : > { %10704 = vmatprep.mubr.msk.f32.mxu0 %vm1943_vm2, %v6373_v43  ;;  %v11813_v9 = vpop.eup %11812  ;;  %v6381_v6 = vmul.f32 %v11811_v55, %v14914_v18  ;;  %11828 = vrcp.f32 %v6335_v5  ;;  %v16922_v5 = vld [vmem:[#allocation11_spill] sm:$0xff] }
 0xc97   : > { %10705 = vmatmul.mubr.msk.f32.gmra.mrb[130].mxu0 %vm1943_vm2, %v6375_v20  ;;  %v11815_v48 = vpop.eup %11814  ;;  %v6383_v29 = vmul.f32 %v11813_v9, %v14907_v38  ;;  %v16916_v20 = vld [vmem:[#allocation9_spill] sm:$0xff] }
 0xc98   : > { %10707 = vmatprep.mubr.msk.f32.mxu0 %vm1943_vm2, %v6377_v54  ;;  %v11817_v33 = vpop.eup %11816  ;;  %v6385_v35 = vmul.f32 %v11815_v48, %v14926_v14  ;;  %v16918_v54 = vld [vmem:[#allocation10_spill] sm:$0xff] }
 0xc99   : > { %v11819_v41 = vpop.eup %11818  ;;  %v6387_v26 = vmul.f32 %v11817_v33, %v14920_v36 }
 0xc9a   : > { %v11821_v18 = vpop.eup %11820  ;;  %v6389_v53 = vmul.f32 %v11819_v41, %v14930_v16 }
 0xc9b   : > { %10708 = vmatmul.mubr.msk.f32.gmra.mrb[132].mxu0 %vm1943_vm2, %v6379_v30  ;;  %v11823_v32 = vpop.eup %11822  ;;  %v6391_v38 = vmul.f32 %v11821_v18, %v14936_v1  ;;  %v16924_v18 = vld [vmem:[#allocation14_spill] sm:$0xff] }
 0xc9c   : > { %10710 = vmatprep.mubr.msk.f32.mxu0 %vm1943_vm2, %v6381_v6  ;;  %v11825_v31 = vpop.eup %11824  ;;  %v6393_v14 = vmul.f32 %v11823_v32, %v14940_v3  ;;  %v16920_v6 = vld [vmem:[#allocation12_spill] sm:$0xff]  ;;  %v16926_v32 = vld [vmem:[#allocation13_spill] sm:$0xff] }
 0xc9d   : > { %v6395_v36 = vmul.f32 %v11825_v31, %v14944_v7 }
 0xc9f   : > { %10711 = vmatmul.mubr.msk.f32.gmra.mrb[134].mxu0 %vm1943_vm2, %v6383_v29  ;;  %v11827_v12 = vpop.eup %11826 }
 0xca0   : > { %10713 = vmatprep.mubr.msk.f32.mxu0 %vm1943_vm2, %v6385_v35  ;;  %v11829_v57 = vpop.eup %11828  ;;  %v6397_v16 = vmul.f32 %v11827_v12, %v14948_v37 }
 0xca1   : > { %v6399_v49 = vmul.f32 %v11829_v57, %v14952_v63  ;;  %v16928_v57 = vld [vmem:[#allocation16_spill] sm:$0xff] }
 0xca3   : > { %10714 = vmatmul.mubr.msk.f32.gmra.mrb[136].mxu0 %vm1943_vm2, %v6387_v26 }
 0xca4   : > { %10716 = vmatprep.mubr.msk.f32.mxu0 %vm1943_vm2, %v6389_v53 }
 0xca7   : > { %10717 = vmatmul.mubr.msk.f32.gmra.mrb[138].mxu0 %vm1943_vm2, %v6391_v38 }
 0xca8   : > { %10719 = vmatprep.mubr.msk.f32.mxu0 %vm1943_vm2, %v6393_v14 }
 0xcab   : > { %10720 = vmatmul.mubr.msk.f32.gmra.mrb[140].mxu0 %vm1943_vm2, %v6395_v36 }
 0xcac   : > { %10722 = vmatprep.mubr.msk.f32.mxu0 %vm1943_vm2, %v6397_v16 }
 0xcaf   : > { %10723 = vmatmul.mubr.msk.f32.gmra.mrb[142].mxu0 %vm1943_vm2, %v6399_v49  ;;  %v16930_v49 = vld [vmem:[#allocation15_spill] sm:$0xff] }
 0xd2d   : > { %v10679_v1 = vpop.f32.mrb[112].mxu0 }
 0xd2e   : > { %v6565_v3 = vpop.f32.mrb[113].mxu0 }
 0xd2f   : > { %10733 = vmatprep.mubr.msk.f32.mxu0 %vm1111_vm0, %v6565_v3 }
 0xd30   : > { %10734 = vmatmul.mubr.msk.f32.vlgmr.msra.gmra.mrb[80].mxu0 %vm1111_vm0, %v10679_v1 }
 0xd31   : > { %v10682_v45 = vpop.f32.mrb[114].mxu0 }
 0xd32   : > { %v6575_v47 = vpop.f32.mrb[115].mxu0 }
 0xd33   : > { %10736 = vmatprep.mubr.msk.f32.mxu0 %vm1111_vm0, %v6575_v47 }
 0xd34   : > { %10737 = vmatmul.mubr.msk.f32.gmra.mrb[82].mxu0 %vm1111_vm0, %v10682_v45 }
 0xd35   : > { %v10685_v7 = vpop.f32.mrb[116].mxu0 }
 0xd36   : > { %v6585_v37 = vpop.f32.mrb[117].mxu0 }
 0xd37   : > { %10739 = vmatprep.mubr.msk.f32.mxu0 %vm1111_vm0, %v6585_v37  ;;  %v16932_v37 = vld [vmem:[#allocation18_spill] sm:$0xff] }
 0xd38   : > { %10740 = vmatmul.mubr.msk.f32.gmra.mrb[84].mxu0 %vm1111_vm0, %v10685_v7 }
 0xd39   : > { %v10688_v63 = vpop.f32.mrb[118].mxu0 }
 0xd3a   : > { %v6595_v61 = vpop.f32.mrb[119].mxu0 }
 0xd3b   : > { %10742 = vmatprep.mubr.msk.f32.mxu0 %vm1111_vm0, %v6595_v61  ;;  %v16934_v61 = vld [vmem:[#allocation17_spill] sm:$0xff] }
 0xd3c   : > { %10743 = vmatmul.mubr.msk.f32.gmra.mrb[86].mxu0 %vm1111_vm0, %v10688_v63 }
 0xd3d   : > { %v10691_v25 = vpop.f32.mrb[120].mxu0 }
 0xd3e   : > { %v6605_v58 = vpop.f32.mrb[121].mxu0 }
 0xd3f   : > { %10745 = vmatprep.mubr.msk.f32.mxu0 %vm1111_vm0, %v6605_v58 }
 0xd40   : > { %10746 = vmatmul.mubr.msk.f32.gmra.mrb[88].mxu0 %vm1111_vm0, %v10691_v25 }
 0xd41   : > { %v10694_v46 = vpop.f32.mrb[122].mxu0 }
 0xd42   : > { %v6615_v21 = vpop.f32.mrb[123].mxu0 }
 0xd43   : > { %10748 = vmatprep.mubr.msk.f32.mxu0 %vm1111_vm0, %v6615_v21 }
 0xd44   : > { %10749 = vmatmul.mubr.msk.f32.gmra.mrb[90].mxu0 %vm1111_vm0, %v10694_v46 }
 0xd45   : > { %v10697_v10 = vpop.f32.mrb[124].mxu0 }
 0xd46   : > { %v6625_v56 = vpop.f32.mrb[125].mxu0 }
 0xd47   : > { %10751 = vmatprep.mubr.msk.f32.mxu0 %vm1111_vm0, %v6625_v56  ;;  %v16936_v56 = vld [vmem:[#allocation20_spill] sm:$0xff] }
 0xd48   : > { %10752 = vmatmul.mubr.msk.f32.gmra.mrb[92].mxu0 %vm1111_vm0, %v10697_v10 }
 0xd49   : > { %v10700_v24 = vpop.f32.mrb[126].mxu0 }
 0xd4a   : > { %v6635_v40 = vpop.f32.mrb[127].mxu0 }
 0xd4b   : > { %10754 = vmatprep.mubr.msk.f32.mxu0 %vm1111_vm0, %v6635_v40  ;;  %v16938_v40 = vld [vmem:[#allocation19_spill] sm:$0xff] }
 0xd4c   : > { %10755 = vmatmul.mubr.msk.f32.gmra.mrb[94].mxu0 %vm1111_vm0, %v10700_v24 }
 0xd4d   : > { %v10703_v11 = vpop.f32.mrb[128].mxu0 }
 0xd4e   : > { %v6645_v39 = vpop.f32.mrb[129].mxu0 }
 0xd4f   : > { %10757 = vmatprep.mubr.msk.f32.mxu0 %vm1111_vm0, %v6645_v39 }
 0xd50   : > { %10758 = vmatmul.mubr.msk.f32.gmra.mrb[96].mxu0 %vm1111_vm0, %v10703_v11 }
 0xd6a   : > { %v10706_v60 = vpop.f32.mrb[130].mxu0 }
 0xd6b   : > { %v6655_v34 = vpop.f32.mrb[131].mxu0 }
 0xd6c   : > { %10760 = vmatprep.mubr.msk.f32.mxu0 %vm1111_vm0, %v6655_v34 }
 0xd6d   : > { %10761 = vmatmul.mubr.msk.f32.gmra.mrb[98].mxu0 %vm1111_vm0, %v10706_v60 }
 0xd6e   : > { %v10709_v52 = vpop.f32.mrb[132].mxu0 }
 0xd6f   : > { %v6665_v15 = vpop.f32.mrb[133].mxu0 }
 0xd70   : > { %10763 = vmatprep.mubr.msk.f32.mxu0 %vm1111_vm0, %v6665_v15  ;;  %v16940_v15 = vld [vmem:[#allocation22_spill] sm:$0xff] }
 0xd71   : > { %10764 = vmatmul.mubr.msk.f32.gmra.mrb[100].mxu0 %vm1111_vm0, %v10709_v52 }
 0xd72   : > { %v10712_v8 = vpop.f32.mrb[134].mxu0 }
 0xd73   : > { %v6675_v22 = vpop.f32.mrb[135].mxu0 }
 0xd74   : > { %10766 = vmatprep.mubr.msk.f32.mxu0 %vm1111_vm0, %v6675_v22  ;;  %v16942_v22 = vld [vmem:[#allocation23_spill] sm:$0xff] }
 0xd75   : > { %10767 = vmatmul.mubr.msk.f32.gmra.mrb[102].mxu0 %vm1111_vm0, %v10712_v8 }
 0xd76   : > { %v10715_v51 = vpop.f32.mrb[136].mxu0 }
 0xd77   : > { %v6685_v13 = vpop.f32.mrb[137].mxu0 }
 0xd78   : > { %10769 = vmatprep.mubr.msk.f32.mxu0 %vm1111_vm0, %v6685_v13 }
 0xd79   : > { %10770 = vmatmul.mubr.msk.f32.gmra.mrb[104].mxu0 %vm1111_vm0, %v10715_v51 }
 0xd7a   : > { %v10718_v42 = vpop.f32.mrb[138].mxu0 }
 0xd7b   : > { %v6695_v62 = vpop.f32.mrb[139].mxu0 }
 0xd7c   : > { %10772 = vmatprep.mubr.msk.f32.mxu0 %vm1111_vm0, %v6695_v62 }
 0xd7d   : > { %10773 = vmatmul.mubr.msk.f32.gmra.mrb[106].mxu0 %vm1111_vm0, %v10718_v42 }
 0xd7e   : > { %v10721_v0 = vpop.f32.mrb[140].mxu0 }
 0xd7f   : > { %v6705_v4 = vpop.f32.mrb[141].mxu0 }
 0xd80   : > { %10775 = vmatprep.mubr.msk.f32.mxu0 %vm1111_vm0, %v6705_v4  ;;  %v16944_v4 = vld [vmem:[#allocation24_spill] sm:$0xff] }
 0xd81   : > { %10776 = vmatmul.mubr.msk.f32.gmra.mrb[108].mxu0 %vm1111_vm0, %v10721_v0 }
 0xd82   : > { %v10724_v59 = vpop.f32.mrb[142].mxu0 }
 0xd83   : > { %v6715_v19 = vpop.f32.mrb[143].mxu0 }
 0xd84   : > { %10778 = vmatprep.mubr.msk.f32.mxu0 %vm1111_vm0, %v6715_v19  ;;  %v16946_v19 = vld [vmem:[#allocation25_spill] sm:$0xff] }
 0xd85   : > { %10779 = vmatmul.mubr.msk.f32.gmra.mrb[110].mxu0 %vm1111_vm0, %v10724_v59 }
 0xe03   : > { %v10735_v23 = vpop.f32.mrb[80].mxu0 }
 0xe04   : > { %v7089_v2 = vadd.f32 %v10735_v23, %v15069_v28  ;;  %v6890_v17 = vpop.f32.mrb[81].mxu0 }
 0xe05   : > { %v7088_v43 = vadd.f32 %v15069_v28, %v6890_v17 }
 0xe06   : > { %v15074_v27 = vadd.f32 %v7089_v2, %v16916_v20 }
 0xe07   : > { %v15077_v55 = vadd.f32 %v7088_v43, %v16918_v54  ;;  %v10738_v50 = vpop.f32.mrb[82].mxu0  ;;  %v16948_v54 = vld [vmem:[#allocation26_spill] sm:$0xff] }
 0xe08   : > { %16917 = vst [vmem:[#allocation88_spill] sm:$0xff] %v15074_v27  ;;  %v7091_v30 = vadd.f32 %v10738_v50, %v15069_v28  ;;  %7156 = vadd.xlane.f32.xlu0 %v15074_v27  ;;  %v6900_v9 = vpop.f32.mrb[83].mxu0 }
 0xe09   : > { %16919 = vst [vmem:[#allocation85_spill] sm:$0xff] %v15077_v55  ;;  %v7090_v44 = vadd.f32 %v15069_v28, %v6900_v9  ;;  %7154 = vadd.xlane.f32.xlu1 %v15077_v55 }
 0xe0a   : > { %v15084_v48 = vadd.f32 %v7091_v30, %v16920_v6  ;;  %v16950_v30 = vld [vmem:[#allocation27_spill] sm:$0xff] }
 0xe0b   : > { %v15087_v29 = vadd.f32 %v7090_v44, %v16922_v5  ;;  %v10741_v33 = vpop.f32.mrb[84].mxu0 }
 0xe0c   : > { %16921 = vst [vmem:[#allocation87_spill] sm:$0xff] %v15084_v48  ;;  %v7093_v35 = vadd.f32 %v10741_v33, %v15069_v28  ;;  %7160 = vadd.xlane.f32.xlu0 %v15084_v48  ;;  %v6910_v41 = vpop.f32.mrb[85].mxu0 }
 0xe0d   : > { %16923 = vst [vmem:[#allocation89_spill] sm:$0xff] %v15087_v29  ;;  %v7092_v26 = vadd.f32 %v15069_v28, %v6910_v41  ;;  %7158 = vadd.xlane.f32.xlu1 %v15087_v29 }
 0xe0e   : > { %v15094_v53 = vadd.f32 %v7093_v35, %v16924_v18  ;;  %v16952_v35 = vld [vmem:[#allocation28_spill] sm:$0xff] }
 0xe0f   : > { %v15097_v38 = vadd.f32 %v7092_v26, %v16926_v32  ;;  %v10744_v31 = vpop.f32.mrb[86].mxu0  ;;  %v16954_v26 = vld [vmem:[#allocation29_spill] sm:$0xff] }
 0xe10   : > { %16925 = vst [vmem:[#allocation21_spill] sm:$0xff] %v15094_v53  ;;  %v7095_v14 = vadd.f32 %v10744_v31, %v15069_v28  ;;  %7164 = vadd.xlane.f32.xlu0 %v15094_v53  ;;  %v6920_v12 = vpop.f32.mrb[87].mxu0 }
 0xe11   : > { %16927 = vst [vmem:[#allocation44_spill] sm:$0xff] %v15097_v38  ;;  %v7094_v36 = vadd.f32 %v15069_v28, %v6920_v12  ;;  %7162 = vadd.xlane.f32.xlu1 %v15097_v38 }
 0xe12   : > { %v15104_v16 = vadd.f32 %v7095_v14, %v16928_v57 }
 0xe13   : > { %v15107_v1 = vadd.f32 %v7094_v36, %v16930_v49  ;;  %v10747_v3 = vpop.f32.mrb[88].mxu0  ;;  %v16956_v36 = vld [vmem:[#allocation30_spill] sm:$0xff]  ;;  %v16958_v49 = vld [vmem:[#allocation31_spill] sm:$0xff] }
 0xe14   : > { %16929 = vst [vmem:[#allocation52_spill] sm:$0xff] %v15104_v16  ;;  %v7097_v45 = vadd.f32 %v10747_v3, %v15069_v28  ;;  %7168 = vadd.xlane.f32.xlu0 %v15104_v16  ;;  %v6930_v47 = vpop.f32.mrb[89].mxu0 }
 0xe15   : > { %16931 = vst [vmem:[#allocation57_spill] sm:$0xff] %v15107_v1  ;;  %v7096_v7 = vadd.f32 %v15069_v28, %v6930_v47  ;;  %7166 = vadd.xlane.f32.xlu1 %v15107_v1 }
 0xe16   : > { %v15114_v63 = vadd.f32 %v7097_v45, %v16932_v37 }
 0xe17   : > { %v15117_v25 = vadd.f32 %v7096_v7, %v16934_v61  ;;  %v10750_v58 = vpop.f32.mrb[90].mxu0  ;;  %v16960_v61 = vld [vmem:[#allocation32_spill] sm:$0xff] }
 0xe18   : > { %16933 = vst [vmem:[#allocation70_spill] sm:$0xff] %v15114_v63  ;;  %v7099_v46 = vadd.f32 %v10750_v58, %v15069_v28  ;;  %7172 = vadd.xlane.f32.xlu0 %v15114_v63  ;;  %v6940_v21 = vpop.f32.mrb[91].mxu0 }
 0xe19   : > { %16935 = vst [vmem:[#allocation59_spill] sm:$0xff] %v15117_v25  ;;  %v7098_v10 = vadd.f32 %v15069_v28, %v6940_v21  ;;  %7170 = vadd.xlane.f32.xlu1 %v15117_v25 }
 0xe1a   : > { %v15124_v24 = vadd.f32 %v7099_v46, %v16936_v56  ;;  %v16962_v46 = vld [vmem:[#allocation33_spill] sm:$0xff] }
 0xe1b   : > { %v15127_v11 = vadd.f32 %v7098_v10, %v16938_v40  ;;  %v10753_v39 = vpop.f32.mrb[92].mxu0 }
 0xe1c   : > { %16937 = vst [vmem:[#allocation61_spill] sm:$0xff] %v15124_v24  ;;  %v7101_v60 = vadd.f32 %v10753_v39, %v15069_v28  ;;  %7176 = vadd.xlane.f32.xlu0 %v15124_v24  ;;  %v6950_v34 = vpop.f32.mrb[93].mxu0 }
 0xe1d   : > { %16939 = vst [vmem:[#allocation63_spill] sm:$0xff] %v15127_v11  ;;  %v7100_v52 = vadd.f32 %v15069_v28, %v6950_v34  ;;  %7174 = vadd.xlane.f32.xlu1 %v15127_v11 }
 0xe1e   : > { %v15134_v8 = vadd.f32 %v7101_v60, %v16940_v15  ;;  %v16964_v60 = vld [vmem:[#allocation34_spill] sm:$0xff] }
 0xe1f   : > { %v15137_v51 = vadd.f32 %v7100_v52, %v16942_v22  ;;  %v10756_v13 = vpop.f32.mrb[94].mxu0  ;;  %v16966_v52 = vld [vmem:[#allocation35_spill] sm:$0xff] }
 0xe20   : > { %16941 = vst [vmem:[#allocation65_spill] sm:$0xff] %v15134_v8  ;;  %v7103_v42 = vadd.f32 %v10756_v13, %v15069_v28  ;;  %7180 = vadd.xlane.f32.xlu0 %v15134_v8  ;;  %v6960_v62 = vpop.f32.mrb[95].mxu0 }
 0xe21   : > { %16943 = vst [vmem:[#allocation67_spill] sm:$0xff] %v15137_v51  ;;  %v7102_v0 = vadd.f32 %v15069_v28, %v6960_v62  ;;  %7178 = vadd.xlane.f32.xlu1 %v15137_v51 }
 0xe22   : > { %v15144_v59 = vadd.f32 %v7103_v42, %v16944_v4 }
 0xe23   : > { %v15147_v23 = vadd.f32 %v7102_v0, %v16946_v19  ;;  %v10759_v2 = vpop.f32.mrb[96].mxu0  ;;  %v16968_v0 = vld [vmem:[#allocation36_spill] sm:$0xff]  ;;  %v16970_v19 = vld [vmem:[#allocation37_spill] sm:$0xff] }
 0xe24   : > { %16945 = vst [vmem:[#allocation69_spill] sm:$0xff] %v15144_v59  ;;  %v7105_v17 = vadd.f32 %v10759_v2, %v15069_v28  ;;  %7184 = vadd.xlane.f32.xlu0 %v15144_v59  ;;  %v6970_v43 = vpop.f32.mrb[97].mxu0 }
 0xe25   : > { %16947 = vst [vmem:[#allocation71_spill] sm:$0xff] %v15147_v23  ;;  %v7104_v20 = vadd.f32 %v15069_v28, %v6970_v43  ;;  %7182 = vadd.xlane.f32.xlu1 %v15147_v23 }
 0xe26   : > { %v15154_v50 = vadd.f32 %v7105_v17, %v16948_v54 }
 0xe27   : > { %v15157_v9 = vadd.f32 %v7104_v20, %v16950_v30  ;;  %v16972_v30 = vld [vmem:[#allocation38_spill] sm:$0xff] }
 0xe28   : > { %16949 = vst [vmem:[#allocation73_spill] sm:$0xff] %v15154_v50  ;;  %7188 = vadd.xlane.f32.xlu0 %v15154_v50 }
 0xe29   : > { %16951 = vst [vmem:[#allocation74_spill] sm:$0xff] %v15157_v9  ;;  %7186 = vadd.xlane.f32.xlu1 %v15157_v9 }
 0xe40   : > { %v10762_v44 = vpop.f32.mrb[98].mxu0 }
 0xe41   : > { %v7107_v6 = vadd.f32 %v10762_v44, %v15069_v28  ;;  %v6980_v5 = vpop.f32.mrb[99].mxu0 }
 0xe42   : > { %v7106_v33 = vadd.f32 %v15069_v28, %v6980_v5 }
 0xe43   : > { %v15164_v41 = vadd.f32 %v7107_v6, %v16952_v35  ;;  %v16974_v6 = vld [vmem:[#allocation39_spill] sm:$0xff] }
 0xe44   : > { %v15167_v18 = vadd.f32 %v7106_v33, %v16954_v26  ;;  %v10765_v32 = vpop.f32.mrb[100].mxu0 }
 0xe45   : > { %16953 = vst [vmem:[#allocation76_spill] sm:$0xff] %v15164_v41  ;;  %v7109_v31 = vadd.f32 %v10765_v32, %v15069_v28  ;;  %7192 = vadd.xlane.f32.xlu0 %v15164_v41  ;;  %v6990_v14 = vpop.f32.mrb[101].mxu0 }
 0xe46   : > { %16955 = vst [vmem:[#allocation75_spill] sm:$0xff] %v15167_v18  ;;  %v7108_v12 = vadd.f32 %v15069_v28, %v6990_v14  ;;  %7190 = vadd.xlane.f32.xlu1 %v15167_v18 }
 0xe47   : > { %v15174_v57 = vadd.f32 %v7109_v31, %v16956_v36  ;;  %v16976_v31 = vld [vmem:[#allocation40_spill] sm:$0xff] }
 0xe48   : > { %v15177_v3 = vadd.f32 %v7108_v12, %v16958_v49  ;;  %v10768_v45 = vpop.f32.mrb[102].mxu0  ;;  %v16978_v12 = vld [vmem:[#allocation41_spill] sm:$0xff] }
 0xe49   : > { %16957 = vst [vmem:[#allocation78_spill] sm:$0xff] %v15174_v57  ;;  %v7111_v47 = vadd.f32 %v10768_v45, %v15069_v28  ;;  %7196 = vadd.xlane.f32.xlu0 %v15174_v57  ;;  %v7000_v7 = vpop.f32.mrb[103].mxu0  ;;  %v7582_v49 = vld [vmem:[%s16536_s16] sm:$0xff]  ;;  %v7584_v45 = vld [vmem:[%s16536_s16 + $0x10] sm:$0xff] }
 0xe4a   : > { %16959 = vst [vmem:[#allocation77_spill] sm:$0xff] %v15177_v3  ;;  %v7110_v37 = vadd.f32 %v15069_v28, %v7000_v7  ;;  %7194 = vadd.xlane.f32.xlu1 %v15177_v3  ;;  %v7585_v7 = vld [vmem:[%s16536_s16 + $0x18] sm:$0xff] }
 0xe4b   : > { %v15184_v58 = vadd.f32 %v7111_v47, %v16960_v61  ;;  %v7586_v61 = vld [vmem:[%s16536_s16 + $0x20] sm:$0xff] }
 0xe4c   : > { %v15187_v21 = vadd.f32 %v7110_v37, %v16962_v46  ;;  %v10771_v10 = vpop.f32.mrb[104].mxu0  ;;  %v11047_v37 = vpack.c.bf16 %v7585_v7, %v7584_v45  ;;  %v7587_v46 = vld [vmem:[%s16536_s16 + $0x28] sm:$0xff] }
 0xe4d   : > { %16961 = vst [vmem:[#allocation80_spill] sm:$0xff] %v15184_v58  ;;  %v7113_v56 = vadd.f32 %v10771_v10, %v15069_v28  ;;  %7200 = vadd.xlane.f32.xlu0 %v15184_v58  ;;  %v7010_v40 = vpop.f32.mrb[105].mxu0  ;;  %v11051_v10 = vpack.c.bf16 %v7587_v46, %v7586_v61 }
 0xe4e   : > { %16963 = vst [vmem:[#allocation79_spill] sm:$0xff] %v15187_v21  ;;  %v7112_v39 = vadd.f32 %v15069_v28, %v7010_v40  ;;  %7198 = vadd.xlane.f32.xlu1 %v15187_v21 }
 0xe4f   : > { %v15194_v34 = vadd.f32 %v7113_v56, %v16964_v60 }
 0xe50   : > { %v15197_v15 = vadd.f32 %v7112_v39, %v16966_v52  ;;  %v10774_v22 = vpop.f32.mrb[106].mxu0 }
 0xe51   : > { %16965 = vst [vmem:[#allocation82_spill] sm:$0xff] %v15194_v34  ;;  %v7115_v13 = vadd.f32 %v10774_v22, %v15069_v28  ;;  %7204 = vadd.xlane.f32.xlu0 %v15194_v34  ;;  %v7020_v42 = vpop.f32.mrb[107].mxu0 }
 0xe52   : > { %16967 = vst [vmem:[#allocation81_spill] sm:$0xff] %v15197_v15  ;;  %v7114_v62 = vadd.f32 %v15069_v28, %v7020_v42  ;;  %7202 = vadd.xlane.f32.xlu1 %v15197_v15 }
 0xe53   : > { %v15204_v4 = vadd.f32 %v7115_v13, %v16968_v0 }
 0xe54   : > { %v15207_v2 = vadd.f32 %v7114_v62, %v16970_v19  ;;  %v10777_v17 = vpop.f32.mrb[108].mxu0 }
 0xe55   : > { %16969 = vst [vmem:[#allocation84_spill] sm:$0xff] %v15204_v4  ;;  %v7117_v43 = vadd.f32 %v10777_v17, %v15069_v28  ;;  %7208 = vadd.xlane.f32.xlu0 %v15204_v4  ;;  %v7030_v20 = vpop.f32.mrb[109].mxu0 }
 0xe56   : > { %16971 = vst [vmem:[#allocation83_spill] sm:$0xff] %v15207_v2  ;;  %v7116_v54 = vadd.f32 %v15069_v28, %v7030_v20  ;;  %7206 = vadd.xlane.f32.xlu1 %v15207_v2 }
 0xe57   : > { %v15214_v44 = vadd.f32 %v7117_v43, %v16972_v30 }
 0xe58   : > { %v15217_v5 = vadd.f32 %v7116_v54, %v16974_v6  ;;  %v10780_v33 = vpop.f32.mrb[110].mxu0 }
 0xe59   : > { %16973 = vst [vmem:[#allocation86_spill] sm:$0xff] %v15214_v44  ;;  %v7119_v35 = vadd.f32 %v10780_v33, %v15069_v28  ;;  %7212 = vadd.xlane.f32.xlu0 %v15214_v44  ;;  %v7040_v26 = vpop.f32.mrb[111].mxu0 }
 0xe5a   : > { %16975 = vst [vmem:[#allocation43_spill] sm:$0xff] %v15217_v5  ;;  %v7118_v32 = vadd.f32 %v15069_v28, %v7040_v26  ;;  %7210 = vadd.xlane.f32.xlu1 %v15217_v5  ;;  %v7583_v28 = vld [vmem:[%s16536_s16 + $0x8] sm:$0xff] }
 0xe5b   : > { %v15224_v14 = vadd.f32 %v7119_v35, %v16976_v31  ;;  %v11043_v47 = vpack.c.bf16 %v7583_v28, %v7582_v49 }
 0xe5c   : > { %v15227_v36 = vadd.f32 %v7118_v32, %v16978_v12 }
 0xe5d   : > { %16977 = vst [vmem:[#allocation42_spill] sm:$0xff] %v15224_v14  ;;  %7216 = vadd.xlane.f32.xlu0 %v15224_v14  ;;  %11044 = vmatprep.subr.bf16.mxu1 %v11043_v47 }
 0xe5e   : > { %16979 = vst [vmem:[#allocation45_spill] sm:$0xff] %v15227_v36  ;;  %7214 = vadd.xlane.f32.xlu1 %v15227_v36  ;;  %11046 = vmatpush3.bf16.msra.mxu1 %v11043_v47 }
 0xe5f   : > { %11048 = vmatprep.subr.bf16.mxu1 %v11047_v37 }
 0xe62   : > { %11050 = vmatpush3.bf16.msra.mxu1 %v11047_v37 }
 0xe63   : > { %11052 = vmatprep.subr.bf16.mxu1 %v11051_v10 }
 0xe66   : > { %11054 = vmatpush3.bf16.msra.mxu1 %v11051_v10 }
 0xe95   : > { %v7157_v56 = vpop.xlane.xlu0 %7156 }
 0xe96   : > { %v7219_v40 = vmul.f32 0.0078125, %v7157_v56  ;;  %v7155_v39 = vpop.xlane.xlu1 %7154 }
 0xe97   : > { %v7218_v60 = vmul.f32 0.0078125, %v7155_v39 }
 0xe98   : > { %v15250_v52 = vsub.f32 %v15074_v27, %v7219_v40 }
 0xe99   : > { %v15253_v22 = vsub.f32 %v15077_v55, %v7218_v60  ;;  %v7161_v13 = vpop.xlane.xlu0 %7160 }
 0xe9a   : > { %v7221_v42 = vmul.f32 0.0078125, %v7161_v13  ;;  %v7159_v62 = vpop.xlane.xlu1 %7158  ;;  %v7283_v0 = vmul.f32 %v15250_v52, %v15250_v52 }
 0xe9b   : > { %v7220_v19 = vmul.f32 0.0078125, %v7159_v62  ;;  %v7282_v17 = vmul.f32 %v15253_v22, %v15253_v22 }
 0xe9c   : > { %v15260_v43 = vsub.f32 %v15084_v48, %v7221_v42  ;;  %7316 = vadd.xlane.f32.xlu0 %v7283_v0 }
 0xe9d   : > { %v15263_v20 = vsub.f32 %v15087_v29, %v7220_v19  ;;  %v7165_v54 = vpop.xlane.xlu0 %7164  ;;  %7314 = vadd.xlane.f32.xlu1 %v7282_v17 }
 0xe9e   : > { %v7223_v30 = vmul.f32 0.0078125, %v7165_v54  ;;  %v7163_v6 = vpop.xlane.xlu1 %7162  ;;  %v7285_v33 = vmul.f32 %v15260_v43, %v15260_v43  ;;  %v7588_v54 = vld [vmem:[%s16536_s16 + $0x30] sm:$0xff] }
 0xe9f   : > { %v7222_v35 = vmul.f32 0.0078125, %v7163_v6  ;;  %v7284_v26 = vmul.f32 %v15263_v20, %v15263_v20 }
 0xea0   : > { %v15270_v32 = vsub.f32 %v15094_v53, %v7223_v30  ;;  %7320 = vadd.xlane.f32.xlu0 %v7285_v33  ;;  %v7589_v30 = vld [vmem:[%s16536_s16 + $0x38] sm:$0xff] }
 0xea1   : > { %v15273_v31 = vsub.f32 %v15097_v38, %v7222_v35  ;;  %v7169_v12 = vpop.xlane.xlu0 %7168  ;;  %7318 = vadd.xlane.f32.xlu1 %v7284_v26  ;;  %v11055_v35 = vpack.c.bf16 %v7589_v30, %v7588_v54  ;;  %v7592_v54 = vld [vmem:[%s16536_s16 + $0x50] sm:$0xff]  ;;  %v7593_v30 = vld [vmem:[%s16536_s16 + $0x58] sm:$0xff] }
 0xea2   : > { %v7225_v49 = vmul.f32 0.0078125, %v7169_v12  ;;  %v7167_v28 = vpop.xlane.xlu1 %7166  ;;  %v7287_v45 = vmul.f32 %v15270_v32, %v15270_v32 }
 0xea3   : > { %v7224_v47 = vmul.f32 0.0078125, %v7167_v28  ;;  %v7286_v7 = vmul.f32 %v15273_v31, %v15273_v31  ;;  %11056 = vmatprep.subr.bf16.mxu1 %v11055_v35 }
 0xea4   : > { %v15280_v37 = vsub.f32 %v15104_v16, %v7225_v49  ;;  %7324 = vadd.xlane.f32.xlu0 %v7287_v45  ;;  %11058 = vmatpush3.bf16.msra.mxu1 %v11055_v35  ;;  %v11063_v35 = vpack.c.bf16 %v7593_v30, %v7592_v54  ;;  %v7596_v30 = vld [vmem:[%s16536_s16 + $0x70] sm:$0xff] }
 0xea5   : > { %v15283_v61 = vsub.f32 %v15107_v1, %v7224_v47  ;;  %v7173_v46 = vpop.xlane.xlu0 %7172  ;;  %7322 = vadd.xlane.f32.xlu1 %v7286_v7  ;;  %v7590_v7 = vld [vmem:[%s16536_s16 + $0x40] sm:$0xff] }
 0xea6   : > { %v7227_v10 = vmul.f32 0.0078125, %v7173_v46  ;;  %v7171_v56 = vpop.xlane.xlu1 %7170  ;;  %v7289_v40 = vmul.f32 %v15280_v37, %v15280_v37  ;;  %v7591_v46 = vld [vmem:[%s16536_s16 + $0x48] sm:$0xff] }
 0xea7   : > { %v7226_v39 = vmul.f32 0.0078125, %v7171_v56  ;;  %v7288_v60 = vmul.f32 %v15283_v61, %v15283_v61 }
 0xea8   : > { %v15290_v13 = vsub.f32 %v15114_v63, %v7227_v10  ;;  %7328 = vadd.xlane.f32.xlu0 %v7289_v40  ;;  %v11059_v40 = vpack.c.bf16 %v7591_v46, %v7590_v7 }
 0xea9   : > { %v15293_v42 = vsub.f32 %v15117_v25, %v7226_v39  ;;  %v7177_v62 = vpop.xlane.xlu0 %7176  ;;  %7326 = vadd.xlane.f32.xlu1 %v7288_v60 }
 0xeaa   : > { %v7229_v0 = vmul.f32 0.0078125, %v7177_v62  ;;  %v7175_v19 = vpop.xlane.xlu1 %7174  ;;  %v7291_v17 = vmul.f32 %v15290_v13, %v15290_v13  ;;  %11060 = vmatprep.subr.bf16.mxu1 %v11059_v40 }
 0xeab   : > { %v7228_v6 = vmul.f32 0.0078125, %v7175_v19  ;;  %v7290_v33 = vmul.f32 %v15293_v42, %v15293_v42  ;;  %11062 = vmatpush3.bf16.msra.mxu1 %v11059_v40 }
 0xeac   : > { %v15306_v26 = vsub.f32 %v15124_v24, %v7229_v0  ;;  %7332 = vadd.xlane.f32.xlu0 %v7291_v17  ;;  %11064 = vmatprep.subr.bf16.mxu1 %v11063_v35 }
 0xead   : > { %v15309_v12 = vsub.f32 %v15127_v11, %v7228_v6  ;;  %v7181_v49 = vpop.xlane.xlu0 %7180  ;;  %7330 = vadd.xlane.f32.xlu1 %v7290_v33 }
 0xeae   : > { %v7231_v28 = vmul.f32 0.0078125, %v7181_v49  ;;  %v7179_v45 = vpop.xlane.xlu1 %7178  ;;  %v7293_v47 = vmul.f32 %v15306_v26, %v15306_v26 }
 0xeaf   : > { %v7230_v10 = vmul.f32 0.0078125, %v7179_v45  ;;  %v7292_v56 = vmul.f32 %v15309_v12, %v15309_v12  ;;  %11066 = vmatpush3.bf16.msra.mxu1 %v11063_v35 }
 0xeb0   : > { %v15322_v39 = vsub.f32 %v15134_v8, %v7231_v28  ;;  %7336 = vadd.xlane.f32.xlu0 %v7293_v47 }
 0xeb1   : > { %v15325_v60 = vsub.f32 %v15137_v51, %v7230_v10  ;;  %v7185_v62 = vpop.xlane.xlu0 %7184  ;;  %7334 = vadd.xlane.f32.xlu1 %v7292_v56  ;;  %v7594_v10 = vld [vmem:[%s16536_s16 + $0x60] sm:$0xff]  ;;  %v7595_v56 = vld [vmem:[%s16536_s16 + $0x68] sm:$0xff] }
 0xeb2   : > { %v7233_v0 = vmul.f32 0.0078125, %v7185_v62  ;;  %v7183_v19 = vpop.xlane.xlu1 %7182  ;;  %v7295_v17 = vmul.f32 %v15322_v39, %v15322_v39 }
 0xeb3   : > { %v7232_v6 = vmul.f32 0.0078125, %v7183_v19  ;;  %v7294_v33 = vmul.f32 %v15325_v60, %v15325_v60 }
 0xeb4   : > { %v15338_v49 = vsub.f32 %v15144_v59, %v7233_v0  ;;  %7340 = vadd.xlane.f32.xlu0 %v7295_v17  ;;  %v11067_v0 = vpack.c.bf16 %v7595_v56, %v7594_v10 }
 0xeb5   : > { %v15341_v28 = vsub.f32 %v15147_v23, %v7232_v6  ;;  %v7189_v45 = vpop.xlane.xlu0 %7188  ;;  %7338 = vadd.xlane.f32.xlu1 %v7294_v33  ;;  %v7597_v6 = vld [vmem:[%s16536_s16 + $0x78] sm:$0xff] }
 0xeb6   : > { %v7235_v47 = vmul.f32 0.0078125, %v7189_v45  ;;  %v7187_v7 = vpop.xlane.xlu1 %7186  ;;  %v7297_v46 = vmul.f32 %v15338_v49, %v15338_v49  ;;  %11068 = vmatprep.subr.bf16.mxu1 %v11067_v0  ;;  %v11071_v35 = vpack.c.bf16 %v7597_v6, %v7596_v30 }
 0xeb7   : > { %v7234_v40 = vmul.f32 0.0078125, %v7187_v7  ;;  %v7296_v62 = vmul.f32 %v15341_v28, %v15341_v28  ;;  %11070 = vmatpush3.bf16.msra.mxu1 %v11067_v0 }
 0xeb8   : > { %v15354_v19 = vsub.f32 %v15154_v50, %v7235_v47  ;;  %7344 = vadd.xlane.f32.xlu0 %v7297_v46  ;;  %11072 = vmatprep.subr.bf16.mxu1 %v11071_v35 }
 0xeb9   : > { %v15357_v17 = vsub.f32 %v15157_v9, %v7234_v40  ;;  %7342 = vadd.xlane.f32.xlu1 %v7296_v62 }
 0xeba   : > { %v7299_v54 = vmul.f32 %v15354_v19, %v15354_v19 }
 0xebb   : > { %v7298_v33 = vmul.f32 %v15357_v17, %v15357_v17  ;;  %11074 = vmatpush3.bf16.msra.mxu1 %v11071_v35 }
 0xebc   : > { %7348 = vadd.xlane.f32.xlu0 %v7299_v54 }
 0xebd   : > { %7346 = vadd.xlane.f32.xlu1 %v7298_v33 }
 0xed2   : > { %v7193_v45 = vpop.xlane.xlu0 %7192 }
 0xed3   : > { %v7237_v47 = vmul.f32 0.0078125, %v7193_v45  ;;  %v7191_v7 = vpop.xlane.xlu1 %7190 }
 0xed4   : > { %v7236_v46 = vmul.f32 0.0078125, %v7191_v7 }
 0xed5   : > { %v15370_v10 = vsub.f32 %v15164_v41, %v7237_v47 }
 0xed6   : > { %v15373_v56 = vsub.f32 %v15167_v18, %v7236_v46  ;;  %v7197_v40 = vpop.xlane.xlu0 %7196 }
 0xed7   : > { %v7239_v62 = vmul.f32 0.0078125, %v7197_v40  ;;  %v7195_v0 = vpop.xlane.xlu1 %7194  ;;  %v7301_v30 = vmul.f32 %v15370_v10, %v15370_v10 }
 0xed8   : > { %v7238_v54 = vmul.f32 0.0078125, %v7195_v0  ;;  %v7300_v6 = vmul.f32 %v15373_v56, %v15373_v56 }
 0xed9   : > { %v15380_v33 = vsub.f32 %v15174_v57, %v7239_v62  ;;  %7352 = vadd.xlane.f32.xlu0 %v7301_v30 }
 0xeda   : > { %v15383_v35 = vsub.f32 %v15177_v3, %v7238_v54  ;;  %v7201_v45 = vpop.xlane.xlu0 %7200  ;;  %7350 = vadd.xlane.f32.xlu1 %v7300_v6 }
 0xedb   : > { %v7241_v47 = vmul.f32 0.0078125, %v7201_v45  ;;  %v7199_v7 = vpop.xlane.xlu1 %7198  ;;  %v7303_v46 = vmul.f32 %v15380_v33, %v15380_v33 }
 0xedc   : > { %v7240_v40 = vmul.f32 0.0078125, %v7199_v7  ;;  %v7302_v0 = vmul.f32 %v15383_v35, %v15383_v35 }
 0xedd   : > { %v15390_v18 = vsub.f32 %v15184_v58, %v7241_v47  ;;  %7356 = vadd.xlane.f32.xlu0 %v7303_v46 }
 0xede   : > { %v15393_v62 = vsub.f32 %v15187_v21, %v7240_v40  ;;  %v7205_v30 = vpop.xlane.xlu0 %7204  ;;  %7354 = vadd.xlane.f32.xlu1 %v7302_v0 }
 0xedf   : > { %v7243_v54 = vmul.f32 0.0078125, %v7205_v30  ;;  %v7203_v6 = vpop.xlane.xlu1 %7202  ;;  %v7305_v45 = vmul.f32 %v15390_v18, %v15390_v18 }
 0xee0   : > { %v7242_v3 = vmul.f32 0.0078125, %v7203_v6  ;;  %v7304_v7 = vmul.f32 %v15393_v62, %v15393_v62 }
 0xee1   : > { %v15400_v57 = vsub.f32 %v15194_v34, %v7243_v54  ;;  %7360 = vadd.xlane.f32.xlu0 %v7305_v45 }
 0xee2   : > { %v15403_v47 = vsub.f32 %v15197_v15, %v7242_v3  ;;  %v7209_v46 = vpop.xlane.xlu0 %7208  ;;  %7358 = vadd.xlane.f32.xlu1 %v7304_v7 }
 0xee3   : > { %v7245_v40 = vmul.f32 0.0078125, %v7209_v46  ;;  %v7207_v0 = vpop.xlane.xlu1 %7206  ;;  %v7307_v30 = vmul.f32 %v15400_v57, %v15400_v57 }
 0xee4   : > { %v7244_v21 = vmul.f32 0.0078125, %v7207_v0  ;;  %v7306_v6 = vmul.f32 %v15403_v47, %v15403_v47 }
 0xee5   : > { %v15410_v58 = vsub.f32 %v15204_v4, %v7245_v40  ;;  %7364 = vadd.xlane.f32.xlu0 %v7307_v30 }
 0xee6   : > { %v15413_v54 = vsub.f32 %v15207_v2, %v7244_v21  ;;  %v7213_v3 = vpop.xlane.xlu0 %7212  ;;  %7362 = vadd.xlane.f32.xlu1 %v7306_v6 }
 0xee7   : > { %v7247_v45 = vmul.f32 0.0078125, %v7213_v3  ;;  %v7211_v7 = vpop.xlane.xlu1 %7210  ;;  %v7309_v46 = vmul.f32 %v15410_v58, %v15410_v58 }
 0xee8   : > { %v7246_v15 = vmul.f32 0.0078125, %v7211_v7  ;;  %v7308_v0 = vmul.f32 %v15413_v54, %v15413_v54 }
 0xee9   : > { %v15420_v34 = vsub.f32 %v15214_v44, %v7247_v45  ;;  %7368 = vadd.xlane.f32.xlu0 %v7309_v46 }
 0xeea   : > { %v15423_v40 = vsub.f32 %v15217_v5, %v7246_v15  ;;  %v7217_v21 = vpop.xlane.xlu0 %7216  ;;  %7366 = vadd.xlane.f32.xlu1 %v7308_v0 }
 0xeeb   : > { %v7249_v30 = vmul.f32 0.0078125, %v7217_v21  ;;  %v7215_v6 = vpop.xlane.xlu1 %7214  ;;  %v7311_v3 = vmul.f32 %v15420_v34, %v15420_v34 }
 0xeec   : > { %v7248_v2 = vmul.f32 0.0078125, %v7215_v6  ;;  %v7310_v7 = vmul.f32 %v15423_v40, %v15423_v40 }
 0xeed   : > { %v15430_v4 = vsub.f32 %v15224_v14, %v7249_v30  ;;  %7372 = vadd.xlane.f32.xlu0 %v7311_v3 }
 0xeee   : > { %v15433_v45 = vsub.f32 %v15227_v36, %v7248_v2  ;;  %7370 = vadd.xlane.f32.xlu1 %v7310_v7 }
 0xeef   : > { %v7313_v15 = vmul.f32 %v15430_v4, %v15430_v4 }
 0xef0   : > { %v7312_v46 = vmul.f32 %v15433_v45, %v15433_v45 }
 0xef1   : > { %7376 = vadd.xlane.f32.xlu0 %v7313_v15 }
 0xef2   : > { %7374 = vadd.xlane.f32.xlu1 %v7312_v46 }
 0xf29   : > { %v7317_v0 = vpop.xlane.xlu0 %7316 }
 0xf2a   : > { %v7379_v21 = vmul.f32 0.0078125, %v7317_v0  ;;  %v7315_v6 = vpop.xlane.xlu1 %7314 }
 0xf2b   : > { %v7378_v5 = vmul.f32 0.0078125, %v7315_v6 }
 0xf2c   : > { %v7411_v44 = vadd.f32 1e-05, %v7379_v21 }
 0xf2d   : > { %v7410_v30 = vadd.f32 1e-05, %v7378_v5  ;;  %v7321_v14 = vpop.xlane.xlu0 %7320 }
 0xf2e   : > { %11830 = vrsqrt.f32 %v7411_v44  ;;  %v7381_v3 = vmul.f32 0.0078125, %v7321_v14  ;;  %v7319_v2 = vpop.xlane.xlu1 %7318 }
 0xf2f   : > { %11832 = vrsqrt.f32 %v7410_v30  ;;  %v7380_v7 = vmul.f32 0.0078125, %v7319_v2  ;;  %v15442_v30 = vld [vmem:[%s16534_s14] ss:$0 sm:$0xff] }
 0xf30   : > { %v7413_v36 = vadd.f32 1e-05, %v7381_v3 }
 0xf31   : > { %v7412_v41 = vadd.f32 1e-05, %v7380_v7  ;;  %v7325_v9 = vpop.xlane.xlu0 %7324  ;;  %v15449_v7 = vld [vmem:[%s16535_s15] ss:$0 sm:$0xff] }
 0xf32   : > { %11834 = vrsqrt.f32 %v7413_v36  ;;  %v7383_v50 = vmul.f32 0.0078125, %v7325_v9  ;;  %v7323_v23 = vpop.xlane.xlu1 %7322 }
 0xf33   : > { %11836 = vrsqrt.f32 %v7412_v41  ;;  %v7382_v15 = vmul.f32 0.0078125, %v7323_v23 }
 0xf34   : > { %v7415_v46 = vadd.f32 1e-05, %v7383_v50 }
 0xf35   : > { %v7414_v0 = vadd.f32 1e-05, %v7382_v15  ;;  %v7329_v59 = vpop.xlane.xlu0 %7328 }
 0xf36   : > { %11838 = vrsqrt.f32 %v7415_v46  ;;  %v7385_v21 = vmul.f32 0.0078125, %v7329_v59  ;;  %v7327_v5 = vpop.xlane.xlu1 %7326 }
 0xf37   : > { %11840 = vrsqrt.f32 %v7414_v0  ;;  %v7384_v44 = vmul.f32 0.0078125, %v7327_v5 }
 0xf38   : > { %v11831_v14 = vpop.eup %11830  ;;  %v7417_v6 = vadd.f32 1e-05, %v7385_v21 }
 0xf39   : > { %v11833_v36 = vpop.eup %11832  ;;  %v7475_v9 = vmul.f32 %v11831_v14, %v15250_v52  ;;  %v7416_v41 = vadd.f32 1e-05, %v7384_v44  ;;  %v7333_v23 = vpop.xlane.xlu0 %7332 }
 0xf3a   : > { %11842 = vrsqrt.f32 %v7417_v6  ;;  %v7387_v50 = vmul.f32 0.0078125, %v7333_v23  ;;  %v7331_v3 = vpop.xlane.xlu1 %7330  ;;  %v7474_v59 = vmul.f32 %v11833_v36, %v15253_v22 }
 0xf3b   : > { %11844 = vrsqrt.f32 %v7416_v41  ;;  %v7386_v2 = vmul.f32 0.0078125, %v7331_v3  ;;  %v7513_v15 = vmul.f32 %v15442_v30, %v7475_v9 }
 0xf3c   : > { %v11835_v46 = vpop.eup %11834  ;;  %v7419_v0 = vadd.f32 1e-05, %v7387_v50  ;;  %v7512_v52 = vmul.f32 %v15442_v30, %v7474_v59 }
 0xf3d   : > { %v11837_v21 = vpop.eup %11836  ;;  %v7418_v5 = vadd.f32 1e-05, %v7386_v2  ;;  %v7337_v44 = vpop.xlane.xlu0 %7336  ;;  %v7477_v14 = vmul.f32 %v11835_v46, %v15260_v43  ;;  %v7551_v9 = vadd.f32 %v15449_v7, %v7513_v15 }
 0xf3e   : > { %11846 = vrsqrt.f32 %v7419_v0  ;;  %v7389_v22 = vmul.f32 0.0078125, %v7337_v44  ;;  %v7335_v6 = vpop.xlane.xlu1 %7334  ;;  %v7550_v36 = vadd.f32 %v15449_v7, %v7512_v52  ;;  %v7476_v41 = vmul.f32 %v11837_v21, %v15263_v20 }
 0xf3f   : > { %11848 = vrsqrt.f32 %v7418_v5  ;;  %v7388_v23 = vmul.f32 0.0078125, %v7335_v6  ;;  %v7515_v50 = vmul.f32 %v15442_v30, %v7477_v14 }
 0xf40   : > { %v11839_v3 = vpop.eup %11838  ;;  %v7421_v59 = vadd.f32 1e-05, %v7389_v22  ;;  %10813 = vmatprep.mubr.f32.mxu1 %v7550_v36  ;;  %v7514_v2 = vmul.f32 %v15442_v30, %v7476_v41 }
 0xf41   : > { %v11841_v51 = vpop.eup %11840  ;;  %v7420_v43 = vadd.f32 1e-05, %v7388_v23  ;;  %v7341_v46 = vpop.xlane.xlu0 %7340  ;;  %10814 = vmatmul.mubr.f32.vlgmr.msra.gmra.mrb[180].mxu1 %v7551_v9  ;;  %v7479_v0 = vmul.f32 %v11839_v3, %v15270_v32  ;;  %v7553_v44 = vadd.f32 %v15449_v7, %v7515_v50 }
 0xf42   : > { %11850 = vrsqrt.f32 %v7421_v59  ;;  %v7391_v52 = vmul.f32 0.0078125, %v7341_v46  ;;  %v7339_v20 = vpop.xlane.xlu1 %7338  ;;  %v7552_v21 = vadd.f32 %v15449_v7, %v7514_v2  ;;  %v7478_v15 = vmul.f32 %v11841_v51, %v15273_v31 }
 0xf43   : > { %11852 = vrsqrt.f32 %v7420_v43  ;;  %v7390_v5 = vmul.f32 0.0078125, %v7339_v20  ;;  %v7517_v14 = vmul.f32 %v15442_v30, %v7479_v0 }
 0xf44   : > { %v11843_v22 = vpop.eup %11842  ;;  %v7423_v6 = vadd.f32 1e-05, %v7391_v52  ;;  %10816 = vmatprep.mubr.f32.mxu1 %v7552_v21  ;;  %v7516_v36 = vmul.f32 %v15442_v30, %v7478_v15 }
 0xf45   : > { %v11845_v41 = vpop.eup %11844  ;;  %v7422_v32 = vadd.f32 1e-05, %v7390_v5  ;;  %v7345_v23 = vpop.xlane.xlu0 %7344  ;;  %10817 = vmatmul.mubr.f32.gmra.mrb[182].mxu1 %v7553_v44  ;;  %v7481_v9 = vmul.f32 %v11843_v22, %v15280_v37  ;;  %v7555_v2 = vadd.f32 %v15449_v7, %v7517_v14 }
 0xf46   : > { %11854 = vrsqrt.f32 %v7423_v6  ;;  %v7393_v3 = vmul.f32 0.0078125, %v7345_v23  ;;  %v7343_v51 = vpop.xlane.xlu1 %7342  ;;  %v7554_v31 = vadd.f32 %v15449_v7, %v7516_v36  ;;  %v7480_v50 = vmul.f32 %v11845_v41, %v15283_v61 }
 0xf47   : > { %11856 = vrsqrt.f32 %v7422_v32  ;;  %v7392_v59 = vmul.f32 0.0078125, %v7343_v51  ;;  %v7519_v43 = vmul.f32 %v15442_v30, %v7481_v9 }
 0xf48   : > { %v11847_v46 = vpop.eup %11846  ;;  %v7425_v0 = vadd.f32 1e-05, %v7393_v3  ;;  %10819 = vmatprep.mubr.f32.mxu1 %v7554_v31  ;;  %v7518_v52 = vmul.f32 %v15442_v30, %v7480_v50 }
 0xf49   : > { %v11849_v20 = vpop.eup %11848  ;;  %v7424_v37 = vadd.f32 1e-05, %v7392_v59  ;;  %v7349_v21 = vpop.xlane.xlu0 %7348  ;;  %10820 = vmatmul.mubr.f32.gmra.mrb[184].mxu1 %v7555_v2  ;;  %v7483_v15 = vmul.f32 %v11847_v46, %v15290_v13  ;;  %v7557_v6 = vadd.f32 %v15449_v7, %v7519_v43 }
 0xf4a   : > { %11858 = vrsqrt.f32 %v7425_v0  ;;  %v7395_v5 = vmul.f32 0.0078125, %v7349_v21  ;;  %v7347_v61 = vpop.xlane.xlu1 %7346  ;;  %v7556_v44 = vadd.f32 %v15449_v7, %v7518_v52  ;;  %v7482_v14 = vmul.f32 %v11849_v20, %v15293_v42 }
 0xf4b   : > { %11860 = vrsqrt.f32 %v7424_v37  ;;  %v7394_v22 = vmul.f32 0.0078125, %v7347_v61  ;;  %v7521_v36 = vmul.f32 %v15442_v30, %v7483_v15 }
 0xf4c   : > { %v11851_v41 = vpop.eup %11850  ;;  %v7427_v32 = vadd.f32 1e-05, %v7395_v5  ;;  %10822 = vmatprep.mubr.f32.mxu1 %v7556_v44  ;;  %v7520_v23 = vmul.f32 %v15442_v30, %v7482_v14 }
 0xf4d   : > { %v11853_v9 = vpop.eup %11852  ;;  %v7426_v13 = vadd.f32 1e-05, %v7394_v22  ;;  %10823 = vmatmul.mubr.f32.gmra.mrb[186].mxu1 %v7557_v6  ;;  %v7485_v3 = vmul.f32 %v11851_v41, %v15306_v26  ;;  %v7559_v31 = vadd.f32 %v15449_v7, %v7521_v36 }
 0xf4e   : > { %11862 = vrsqrt.f32 %v7427_v32  ;;  %v7558_v51 = vadd.f32 %v15449_v7, %v7520_v23  ;;  %v7484_v42 = vmul.f32 %v11853_v9, %v15309_v12 }
 0xf4f   : > { %11864 = vrsqrt.f32 %v7426_v13  ;;  %v7523_v50 = vmul.f32 %v15442_v30, %v7485_v3 }
 0xf50   : > { %v11855_v59 = vpop.eup %11854  ;;  %10825 = vmatprep.mubr.f32.mxu1 %v7558_v51  ;;  %v7522_v2 = vmul.f32 %v15442_v30, %v7484_v42 }
 0xf51   : > { %v11857_v43 = vpop.eup %11856  ;;  %10826 = vmatmul.mubr.f32.gmra.mrb[188].mxu1 %v7559_v31  ;;  %v7487_v46 = vmul.f32 %v11855_v59, %v15322_v39  ;;  %v7561_v52 = vadd.f32 %v15449_v7, %v7523_v50 }
 0xf52   : > { %v7560_v26 = vadd.f32 %v15449_v7, %v7522_v2  ;;  %v7486_v0 = vmul.f32 %v11857_v43, %v15325_v60 }
 0xf53   : > { %v7525_v12 = vmul.f32 %v15442_v30, %v7487_v46 }
 0xf54   : > { %v11859_v20 = vpop.eup %11858  ;;  %10828 = vmatprep.mubr.f32.mxu1 %v7560_v26  ;;  %v7524_v37 = vmul.f32 %v15442_v30, %v7486_v0 }
 0xf55   : > { %v11861_v21 = vpop.eup %11860  ;;  %10829 = vmatmul.mubr.f32.gmra.mrb[190].mxu1 %v7561_v52  ;;  %v7489_v15 = vmul.f32 %v11859_v20, %v15338_v49  ;;  %v7563_v61 = vadd.f32 %v15449_v7, %v7525_v12 }
 0xf56   : > { %v7562_v5 = vadd.f32 %v15449_v7, %v7524_v37  ;;  %v7488_v39 = vmul.f32 %v11861_v21, %v15341_v28 }
 0xf57   : > { %v7527_v60 = vmul.f32 %v15442_v30, %v7489_v15 }
 0xf58   : > { %v11863_v44 = vpop.eup %11862  ;;  %10831 = vmatprep.mubr.f32.mxu1 %v7562_v5  ;;  %v7526_v14 = vmul.f32 %v15442_v30, %v7488_v39 }
 0xf59   : > { %v11865_v22 = vpop.eup %11864  ;;  %10832 = vmatmul.mubr.f32.gmra.mrb[192].mxu1 %v7563_v61  ;;  %v7491_v6 = vmul.f32 %v11863_v44, %v15354_v19  ;;  %v7565_v41 = vadd.f32 %v15449_v7, %v7527_v60 }
 0xf5a   : > { %v7564_v36 = vadd.f32 %v15449_v7, %v7526_v14  ;;  %v7490_v49 = vmul.f32 %v11865_v22, %v15357_v17 }
 0xf5b   : > { %v7529_v28 = vmul.f32 %v15442_v30, %v7491_v6 }
 0xf5c   : > { %10834 = vmatprep.mubr.f32.mxu1 %v7564_v36  ;;  %v7528_v32 = vmul.f32 %v15442_v30, %v7490_v49 }
 0xf5d   : > { %10835 = vmatmul.mubr.f32.gmra.mrb[194].mxu1 %v7565_v41  ;;  %v7567_v9 = vadd.f32 %v15449_v7, %v7529_v28 }
 0xf5e   : > { %v7566_v23 = vadd.f32 %v15449_v7, %v7528_v32 }
 0xf60   : > { %10837 = vmatprep.mubr.f32.mxu1 %v7566_v23 }
 0xf61   : > { %10838 = vmatmul.mubr.f32.gmra.mrb[196].mxu1 %v7567_v9 }
 0xf66   : > { %v7353_v13 = vpop.xlane.xlu0 %7352 }
 0xf67   : > { %v7397_v19 = vmul.f32 0.0078125, %v7353_v13  ;;  %v7351_v3 = vpop.xlane.xlu1 %7350 }
 0xf68   : > { %v7396_v51 = vmul.f32 0.0078125, %v7351_v3 }
 0xf69   : > { %v7429_v42 = vadd.f32 1e-05, %v7397_v19 }
 0xf6a   : > { %v7428_v17 = vadd.f32 1e-05, %v7396_v51  ;;  %v7357_v31 = vpop.xlane.xlu0 %7356 }
 0xf6b   : > { %11866 = vrsqrt.f32 %v7429_v42  ;;  %v7399_v50 = vmul.f32 0.0078125, %v7357_v31  ;;  %v7355_v59 = vpop.xlane.xlu1 %7354 }
 0xf6c   : > { %11868 = vrsqrt.f32 %v7428_v17  ;;  %v7398_v2 = vmul.f32 0.0078125, %v7355_v59 }
 0xf6d   : > { %v7431_v43 = vadd.f32 1e-05, %v7399_v50 }
 0xf6e   : > { %v7430_v46 = vadd.f32 1e-05, %v7398_v2  ;;  %v7361_v26 = vpop.xlane.xlu0 %7360 }
 0xf6f   : > { %11870 = vrsqrt.f32 %v7431_v43  ;;  %v7401_v0 = vmul.f32 0.0078125, %v7361_v26  ;;  %v7359_v52 = vpop.xlane.xlu1 %7358 }
 0xf70   : > { %11872 = vrsqrt.f32 %v7430_v46  ;;  %v7400_v12 = vmul.f32 0.0078125, %v7359_v52 }
 0xf71   : > { %v7433_v20 = vadd.f32 1e-05, %v7401_v0 }
 0xf72   : > { %v7432_v37 = vadd.f32 1e-05, %v7400_v12  ;;  %v7365_v21 = vpop.xlane.xlu0 %7364 }
 0xf73   : > { %11874 = vrsqrt.f32 %v7433_v20  ;;  %v7403_v15 = vmul.f32 0.0078125, %v7365_v21  ;;  %v7363_v5 = vpop.xlane.xlu1 %7362 }
 0xf74   : > { %11876 = vrsqrt.f32 %v7432_v37  ;;  %v7402_v39 = vmul.f32 0.0078125, %v7363_v5 }
 0xf75   : > { %v11867_v61 = vpop.eup %11866  ;;  %v7435_v60 = vadd.f32 1e-05, %v7403_v15 }
 0xf76   : > { %v11869_v44 = vpop.eup %11868  ;;  %v7434_v14 = vadd.f32 1e-05, %v7402_v39  ;;  %v7369_v22 = vpop.xlane.xlu0 %7368  ;;  %v7493_v6 = vmul.f32 %v11867_v61, %v15370_v10 }
 0xf77   : > { %11878 = vrsqrt.f32 %v7435_v60  ;;  %v7405_v36 = vmul.f32 0.0078125, %v7369_v22  ;;  %v7367_v49 = vpop.xlane.xlu1 %7366  ;;  %v7492_v41 = vmul.f32 %v11869_v44, %v15373_v56 }
 0xf78   : > { %11880 = vrsqrt.f32 %v7434_v14  ;;  %v7404_v28 = vmul.f32 0.0078125, %v7367_v49  ;;  %v7531_v32 = vmul.f32 %v15442_v30, %v7493_v6 }
 0xf79   : > { %v11871_v23 = vpop.eup %11870  ;;  %v7437_v9 = vadd.f32 1e-05, %v7405_v36  ;;  %v7530_v13 = vmul.f32 %v15442_v30, %v7492_v41 }
 0xf7a   : > { %v11873_v19 = vpop.eup %11872  ;;  %v7436_v3 = vadd.f32 1e-05, %v7404_v28  ;;  %v7373_v51 = vpop.xlane.xlu0 %7372  ;;  %v7495_v42 = vmul.f32 %v11871_v23, %v15380_v33  ;;  %v7569_v59 = vadd.f32 %v15449_v7, %v7531_v32 }
 0xf7b   : > { %11882 = vrsqrt.f32 %v7437_v9  ;;  %v7407_v10 = vmul.f32 0.0078125, %v7373_v51  ;;  %v7371_v17 = vpop.xlane.xlu1 %7370  ;;  %v7568_v31 = vadd.f32 %v15449_v7, %v7530_v13  ;;  %v7494_v56 = vmul.f32 %v11873_v19, %v15383_v35 }
 0xf7c   : > { %11884 = vrsqrt.f32 %v7436_v3  ;;  %v7406_v50 = vmul.f32 0.0078125, %v7371_v17  ;;  %v7533_v2 = vmul.f32 %v15442_v30, %v7495_v42 }
 0xf7d   : > { %v11875_v43 = vpop.eup %11874  ;;  %v7439_v46 = vadd.f32 1e-05, %v7407_v10  ;;  %10840 = vmatprep.mubr.f32.mxu1 %v7568_v31  ;;  %v7532_v26 = vmul.f32 %v15442_v30, %v7494_v56 }
 0xf7e   : > { %v11877_v0 = vpop.eup %11876  ;;  %v7438_v33 = vadd.f32 1e-05, %v7406_v50  ;;  %v7377_v52 = vpop.xlane.xlu0 %7376  ;;  %10841 = vmatmul.mubr.f32.gmra.mrb[198].mxu1 %v7569_v59  ;;  %v7497_v12 = vmul.f32 %v11875_v43, %v15390_v18  ;;  %v7571_v5 = vadd.f32 %v15449_v7, %v7533_v2 }
 0xf7f   : > { %11886 = vrsqrt.f32 %v7439_v46  ;;  %v7409_v20 = vmul.f32 0.0078125, %v7377_v52  ;;  %v7375_v35 = vpop.xlane.xlu1 %7374  ;;  %v7570_v37 = vadd.f32 %v15449_v7, %v7532_v26  ;;  %v7496_v21 = vmul.f32 %v11877_v0, %v15393_v62 }
 0xf80   : > { %11888 = vrsqrt.f32 %v7438_v33  ;;  %v7408_v15 = vmul.f32 0.0078125, %v7375_v35  ;;  %v7535_v39 = vmul.f32 %v15442_v30, %v7497_v12  ;;  %v8698_v12 = vld [vmem:[%s16538_s18 + $0x20] sm:$0xff] }
 0xf81   : > { %v11879_v61 = vpop.eup %11878  ;;  %v7441_v60 = vadd.f32 1e-05, %v7409_v20  ;;  %10843 = vmatprep.mubr.f32.mxu1 %v7570_v37  ;;  %v7534_v44 = vmul.f32 %v15442_v30, %v7496_v21  ;;  %v8699_v20 = vld [vmem:[%s16538_s18 + $0x28] sm:$0xff]  ;;  %v8700_v37 = vld [vmem:[%s16538_s18 + $0x30] sm:$0xff]  ;;  %v8701_v21 = vld [vmem:[%s16538_s18 + $0x38] sm:$0xff] }
 0xf82   : > { %v11881_v14 = vpop.eup %11880  ;;  %v7440_v18 = vadd.f32 1e-05, %v7408_v15  ;;  %10844 = vmatmul.mubr.f32.gmra.mrb[200].mxu1 %v7571_v5  ;;  %v7499_v22 = vmul.f32 %v11879_v61, %v15400_v57  ;;  %v7573_v36 = vadd.f32 %v15449_v7, %v7535_v39  ;;  %v11083_v35 = vpack.c.bf16 %v8699_v20, %v8698_v12  ;;  %v8702_v5 = vld [vmem:[%s16538_s18 + $0x40] sm:$0xff]  ;;  %v8703_v39 = vld [vmem:[%s16538_s18 + $0x48] sm:$0xff] }
 0xf83   : > { %11890 = vrsqrt.f32 %v7441_v60  ;;  %v7572_v6 = vadd.f32 %v15449_v7, %v7534_v44  ;;  %v7498_v62 = vmul.f32 %v11881_v14, %v15403_v47  ;;  %v11087_v15 = vpack.c.bf16 %v8701_v21, %v8700_v37  ;;  %v8704_v60 = vld [vmem:[%s16538_s18 + $0x50] sm:$0xff]  ;;  %v8705_v44 = vld [vmem:[%s16538_s18 + $0x58] sm:$0xff] }
 0xf84   : > { %11892 = vrsqrt.f32 %v7440_v18  ;;  %v7537_v49 = vmul.f32 %v15442_v30, %v7499_v22  ;;  %v11091_v61 = vpack.c.bf16 %v8703_v39, %v8702_v5  ;;  %v11095_v14 = vpack.c.bf16 %v8705_v44, %v8704_v60  ;;  %v8706_v18 = vld [vmem:[%s16538_s18 + $0x60] sm:$0xff]  ;;  %v8707_v22 = vld [vmem:[%s16538_s18 + $0x68] sm:$0xff] }
 0xf85   : > { %v11883_v41 = vpop.eup %11882  ;;  %10846 = vmatprep.mubr.f32.mxu1 %v7572_v6  ;;  %v7536_v28 = vmul.f32 %v15442_v30, %v7498_v62  ;;  %v11099_v6 = vpack.c.bf16 %v8707_v22, %v8706_v18  ;;  %v8708_v62 = vld [vmem:[%s16538_s18 + $0x70] sm:$0xff] }
 0xf86   : > { %v11885_v32 = vpop.eup %11884  ;;  %10847 = vmatmul.mubr.f32.gmra.mrb[202].mxu1 %v7573_v36  ;;  %v7501_v23 = vmul.f32 %v11883_v41, %v15410_v58  ;;  %v7575_v13 = vadd.f32 %v15449_v7, %v7537_v49  ;;  %v8709_v36 = vld [vmem:[%s16538_s18 + $0x78] sm:$0xff]  ;;  %v15596_v41 = vld [vmem:[%s16537_s17] ss:$0 sm:$0xff] }
 0xf87   : > { %v7574_v57 = vadd.f32 %v15449_v7, %v7536_v28  ;;  %v7500_v9 = vmul.f32 %v11885_v32, %v15413_v54  ;;  %v11103_v49 = vpack.c.bf16 %v8709_v36, %v8708_v62 }
 0xf88   : > { %v7539_v47 = vmul.f32 %v15442_v30, %v7501_v23 }
 0xf89   : > { %v11887_v19 = vpop.eup %11886  ;;  %10849 = vmatprep.mubr.f32.mxu1 %v7574_v57  ;;  %v7538_v3 = vmul.f32 %v15442_v30, %v7500_v9 }
 0xf8a   : > { %v11889_v51 = vpop.eup %11888  ;;  %10850 = vmatmul.mubr.f32.gmra.mrb[204].mxu1 %v7575_v13  ;;  %v7503_v42 = vmul.f32 %v11887_v19, %v15420_v34  ;;  %v7577_v17 = vadd.f32 %v15449_v7, %v7539_v47 }
 0xf8b   : > { %v7576_v10 = vadd.f32 %v15449_v7, %v7538_v3  ;;  %v7502_v58 = vmul.f32 %v11889_v51, %v15423_v40 }
 0xf8c   : > { %v7541_v54 = vmul.f32 %v15442_v30, %v7503_v42 }
 0xf8d   : > { %v11891_v31 = vpop.eup %11890  ;;  %10852 = vmatprep.mubr.f32.mxu1 %v7576_v10  ;;  %v7540_v56 = vmul.f32 %v15442_v30, %v7502_v58 }
 0xf8e   : > { %v11893_v50 = vpop.eup %11892  ;;  %10853 = vmatmul.mubr.f32.gmra.mrb[206].mxu1 %v7577_v17  ;;  %v7505_v59 = vmul.f32 %v11891_v31, %v15430_v4  ;;  %v7579_v43 = vadd.f32 %v15449_v7, %v7541_v54  ;;  %v8694_v4 = vld [vmem:[%s16538_s18] sm:$0xff] }
 0xf8f   : > { %v7578_v2 = vadd.f32 %v15449_v7, %v7540_v56  ;;  %v7504_v34 = vmul.f32 %v11893_v50, %v15433_v45  ;;  %v8695_v45 = vld [vmem:[%s16538_s18 + $0x8] sm:$0xff] }
 0xf90   : > { %v7543_v40 = vmul.f32 %v15442_v30, %v7505_v59  ;;  %v11075_v33 = vpack.c.bf16 %v8695_v45, %v8694_v4 }
 0xf91   : > { %10855 = vmatprep.mubr.f32.mxu1 %v7578_v2  ;;  %v7542_v46 = vmul.f32 %v15442_v30, %v7504_v34  ;;  %v8696_v30 = vld [vmem:[%s16538_s18 + $0x10] sm:$0xff] }
 0xf92   : > { %10856 = vmatmul.mubr.f32.gmra.mrb[208].mxu1 %v7579_v43  ;;  %v7581_v0 = vadd.f32 %v15449_v7, %v7543_v40  ;;  %11076 = vmatprep.subr.bf16.mxu1 %v11075_v33 }
 0xf93   : > { %v7580_v26 = vadd.f32 %v15449_v7, %v7542_v46  ;;  %11078 = vmatpush3.bf16.msra.mxu1 %v11075_v33  ;;  %v8697_v7 = vld [vmem:[%s16538_s18 + $0x18] sm:$0xff] }
 0xf94   : > { %v11079_v52 = vpack.c.bf16 %v8697_v7, %v8696_v30 }
 0xf95   : > { %10858 = vmatprep.mubr.f32.mxu1 %v7580_v26 }
 0xf96   : > { %10859 = vmatmul.mubr.f32.gmra.mrb[210].mxu1 %v7581_v0  ;;  %11080 = vmatprep.subr.bf16.mxu1 %v11079_v52 }
 0xf97   : > { %11082 = vmatpush3.bf16.msra.mxu1 %v11079_v52 }
 0xf98   : > { %11084 = vmatprep.subr.bf16.mxu1 %v11083_v35 }
 0xf9b   : > { %11086 = vmatpush3.bf16.msra.mxu1 %v11083_v35 }
 0xf9c   : > { %11088 = vmatprep.subr.bf16.mxu1 %v11087_v15 }
 0xf9f   : > { %11090 = vmatpush3.bf16.msra.mxu1 %v11087_v15 }
 0xfa0   : > { %11092 = vmatprep.subr.bf16.mxu1 %v11091_v61 }
 0xfa3   : > { %11094 = vmatpush3.bf16.msra.mxu1 %v11091_v61 }
 0xfa4   : > { %11096 = vmatprep.subr.bf16.mxu1 %v11095_v14 }
 0xfa7   : > { %11098 = vmatpush3.bf16.msra.mxu1 %v11095_v14 }
 0xfa8   : > { %11100 = vmatprep.subr.bf16.mxu1 %v11099_v6 }
 0xfab   : > { %11102 = vmatpush3.bf16.msra.mxu1 %v11099_v6 }
 0xfac   : > { %11104 = vmatprep.subr.bf16.mxu1 %v11103_v49 }
 0xfaf   : > { %11106 = vmatpush3.bf16.msra.mxu1 %v11103_v49 }
0x1014   : > { %v10815_v28 = vpop.f32.mrb[180].mxu1 }
0x1015   : > { %v7677_v32 = vadd.f32 %v10815_v28, %v15596_v41  ;;  %v7671_v23 = vpop.f32.mrb[181].mxu1 }
0x1016   : > { %v7672_v47 = vadd.f32 %v15596_v41, %v7671_v23 }
0x1017   : > { %v15599_v57 = vmul.f32 0.70710677, %v7677_v32  ;;  %v15626_v12 = vmul.f32 0.5, %v7677_v32 }
0x1018   : > { %v10818_v9 = vpop.f32.mrb[182].mxu1  ;;  %v15603_v42 = vmul.f32 0.70710677, %v7672_v47  ;;  %v15628_v20 = vmul.f32 0.5, %v7672_v47 }
0x1019   : > { %v7895_v13 = vand.u32 2147483647, %v15599_v57  ;;  %v7681_v19 = vpop.f32.mrb[183].mxu1  ;;  %v7687_v10 = vadd.f32 %v10818_v9, %v15596_v41  ;;  %vm8535_vm3 = vcmp.ge.f32.partialorder %v15599_v57, 0.0 }
0x101a   : > { %v7682_v17 = vadd.f32 %v15596_v41, %v7681_v19  ;;  %v7894_v56 = vand.u32 2147483647, %v15603_v42  ;;  %vm8534_vm4 = vcmp.ge.f32.partialorder %v15603_v42, 0.0 }
0x101b   : > { %v7927_v3 = vmul.f32 0.3275911, %v7895_v13  ;;  %v15608_v50 = vmul.f32 0.70710677, %v7687_v10  ;;  %v8343_v43 = vsub.f32 0.0, %v7895_v13  ;;  %v15637_v6 = vmul.f32 0.5, %v7687_v10 }
0x101c   : > { %v10821_v58 = vpop.f32.mrb[184].mxu1  ;;  %v15610_v2 = vmul.f32 0.70710677, %v7682_v17  ;;  %v7926_v26 = vmul.f32 0.3275911, %v7894_v56  ;;  %v8342_v0 = vsub.f32 0.0, %v7894_v56 }
0x101d   : > { %v7959_v51 = vadd.f32 1.0, %v7927_v3  ;;  %v7691_v54 = vpop.f32.mrb[185].mxu1  ;;  %v15613_v34 = vadd.f32 %v10821_v58, %v15596_v41  ;;  %v7897_v4 = vand.u32 2147483647, %v15608_v50  ;;  %v8375_v7 = vmul.f32 %v8343_v43, %v7895_v13 }
0x101e   : > { %v15616_v40 = vadd.f32 %v15596_v41, %v7691_v54  ;;  %v7896_v33 = vand.u32 2147483647, %v15610_v2  ;;  %v7958_v21 = vadd.f32 1.0, %v7926_v26  ;;  %v8374_v15 = vmul.f32 %v8342_v0, %v7894_v56 }
0x101f   : > { %11894 = vrcp.f32 %v7959_v51  ;;  %v15621_v30 = vmul.f32 0.70710677, %v15613_v34  ;;  %v7929_v5 = vmul.f32 0.3275911, %v7897_v4  ;;  %v8345_v39 = vsub.f32 0.0, %v7897_v4 }
0x1020   : > { %v10824_v31 = vpop.f32.mrb[186].mxu1  ;;  %v15624_v52 = vmul.f32 0.70710677, %v15616_v40  ;;  %v8344_v44 = vsub.f32 0.0, %v7896_v33  ;;  %v8408_v22 = vmul.f32 1.442695, %v8375_v7  ;;  %11896 = vrcp.f32 %v7958_v21 }
0x1021   : > { %v7701_v59 = vpop.f32.mrb[187].mxu1  ;;  %v15631_v35 = vadd.f32 %v10824_v31, %v15596_v41  ;;  %v7899_v14 = vand.u32 2147483647, %v15621_v30  ;;  %v7928_v28 = vmul.f32 0.3275911, %v7896_v33  ;;  %v8377_v9 = vmul.f32 %v8345_v39, %v7897_v4 }
0x1022   : > { %v7898_v62 = vand.u32 2147483647, %v15624_v52  ;;  %v15641_v36 = vadd.f32 %v15596_v41, %v7701_v59  ;;  %v8406_v23 = vmul.f32 1.442695, %v8374_v15  ;;  %v15646_v13 = vmul.f32 0.5, %v7682_v17 }
0x1023   : > { %v15644_v32 = vmul.f32 0.70710677, %v15631_v35  ;;  %v7961_v3 = vadd.f32 1.0, %v7929_v5  ;;  %v8376_v51 = vmul.f32 %v8344_v44, %v7896_v33  ;;  %v8347_v10 = vsub.f32 0.0, %v7899_v14 }
0x1024   : > { %v10827_v46 = vpop.f32.mrb[188].mxu1  ;;  %11898 = vpow2.f32 %v8408_v22  ;;  %v7931_v54 = vmul.f32 0.3275911, %v7899_v14  ;;  %v8346_v31 = vsub.f32 0.0, %v7898_v62  ;;  %v15654_v56 = vmul.f32 0.70710677, %v15641_v36 }
0x1025   : > { %v7711_v45 = vpop.f32.mrb[189].mxu1  ;;  %v7960_v43 = vadd.f32 1.0, %v7928_v28  ;;  %v7901_v17 = vand.u32 2147483647, %v15644_v32  ;;  %v15658_v26 = vadd.f32 %v10827_v46, %v15596_v41  ;;  %11900 = vpow2.f32 %v8406_v23 }
0x1026   : > { %v8412_v4 = vmul.f32 1.442695, %v8377_v9  ;;  %v7930_v33 = vmul.f32 0.3275911, %v7898_v62  ;;  %v15663_v7 = vadd.f32 %v15596_v41, %v7711_v45  ;;  %11902 = vrcp.f32 %v7961_v3 }
0x1027   : > { %v8410_v5 = vmul.f32 1.442695, %v8376_v51  ;;  %v8379_v39 = vmul.f32 %v8347_v10, %v7899_v14  ;;  %v8378_v44 = vmul.f32 %v8346_v31, %v7898_v62  ;;  %v7900_v46 = vand.u32 2147483647, %v15654_v56 }
0x1028   : > { %v10830_v61 = vpop.f32.mrb[190].mxu1  ;;  %11904 = vrcp.f32 %v7960_v43  ;;  %v8349_v28 = vsub.f32 0.0, %v7901_v17  ;;  %v15673_v45 = vmul.f32 0.70710677, %v15658_v26  ;;  %v7962_v9 = vadd.f32 1.0, %v7930_v33 }
0x1029   : > { %v15633_v37 = vpop.eup %11894  ;;  %v7721_v18 = vpop.f32.mrb[191].mxu1  ;;  %v15670_v22 = vadd.f32 %v10830_v61, %v15596_v41  ;;  %11906 = vpow2.f32 %v8412_v4  ;;  %v8416_v61 = vmul.f32 1.442695, %v8379_v39  ;;  %v7933_v3 = vmul.f32 0.3275911, %v7901_v17 }
0x102a   : > { %v8055_v60 = vmul.f32 1.0614054, %v15633_v37  ;;  %16980 = vst [vmem:[#allocation46_spill] sm:$0xff] %v15673_v45  ;;  %v15681_v14 = vadd.f32 %v15596_v41, %v7721_v18  ;;  %11908 = vpow2.f32 %v8410_v5  ;;  %v15686_v10 = vpop.eup %11896  ;;  %v7932_v31 = vmul.f32 0.3275911, %v7900_v46 }
0x102b   : > { %v8381_v4 = vmul.f32 %v8349_v28, %v7901_v17  ;;  %v8348_v33 = vsub.f32 0.0, %v7900_v46  ;;  %v7903_v18 = vand.u32 2147483647, %v15673_v45  ;;  %v15693_v5 = vmul.f32 0.5, %v15613_v34 }
0x102c   : > { %v8087_v49 = vadd.f32 -1.4531521, %v8055_v60  ;;  %v15648_v47 = vpop.f32.mrb[192].mxu1  ;;  %v7963_v60 = vadd.f32 1.0, %v7931_v54  ;;  %v8414_v54 = vmul.f32 1.442695, %v8378_v44 }
0x102d   : > { %v15651_v58 = vpop.f32.mrb[193].mxu1  ;;  %v15701_v44 = vmul.f32 0.5, %v15616_v40  ;;  %v7965_v17 = vadd.f32 1.0, %v7933_v3  ;;  %v8420_v24 = vmul.f32 1.442695, %v8381_v4  ;;  %v15742_v29 = vmul.f32 0.5, %v15658_v26 }
0x102e   : > { %v8119_v19 = vmul.f32 %v15633_v37, %v8087_v49  ;;  %11910 = vrcp.f32 %v7963_v60  ;;  %v15745_v55 = vmul.f32 0.5, %v15663_v7  ;;  %vm8536_vm5 = vcmp.ge.f32.partialorder %v15610_v2, 0.0 }
0x102f   : > { %11912 = vrcp.f32 %v7962_v9  ;;  %v15708_v9 = vadd.f32 %v15648_v47, %v15596_v41  ;;  %v15723_v47 = vmul.f32 0.5, %v15631_v35  ;;  %v15735_v35 = vmul.f32 0.5, %v15641_v36  ;;  %16986 = vst [vmem:[#allocation53_spill] sm:$0xff] %v15742_v29 }
0x1030   : > { %v8151_v59 = vadd.f32 1.4214138, %v8119_v19  ;;  %v15660_v0 = vpop.f32.mrb[194].mxu1  ;;  %v15678_v19 = vmul.f32 0.70710677, %v15663_v7  ;;  %11914 = vpow2.f32 %v8416_v61  ;;  %v8351_v61 = vsub.f32 0.0, %v7903_v18 }
0x1031   : > { %v15665_v21 = vpop.f32.mrb[195].mxu1  ;;  %11916 = vpow2.f32 %v8414_v54  ;;  %v15714_v3 = vmul.f32 0.70710677, %v15708_v9  ;;  %v15718_v54 = vadd.f32 %v15596_v41, %v15651_v58  ;;  %16984 = vst [vmem:[#allocation50_spill] sm:$0xff] %v15723_v47  ;;  %16987 = vst [vmem:[#allocation55_spill] sm:$0xff] %v15745_v55  ;;  %vm8537_vm6 = vcmp.ge.f32.partialorder %v15608_v50, 0.0 }
0x1032   : > { %v8183_v15 = vmul.f32 %v15633_v37, %v8151_v59  ;;  %v15689_v59 = vmul.f32 0.70710677, %v15670_v22  ;;  %v7902_v39 = vand.u32 2147483647, %v15678_v19  ;;  %11918 = vrcp.f32 %v7965_v17 }
0x1033   : > { %16983 = vst [vmem:[#allocation49_spill] sm:$0xff] %v15714_v3  ;;  %v15730_v25 = vmul.f32 0.70710677, %v15718_v54  ;;  %v8383_v17 = vmul.f32 %v8351_v61, %v7903_v18  ;;  %vm8538_vm7 = vcmp.ge.f32.partialorder %v15624_v52, 0.0  ;;  %vm8539_vm8 = vcmp.ge.f32.partialorder %v15621_v30, 0.0 }
0x1034   : > { %v8215_v49 = vadd.f32 -0.28449672, %v8183_v15  ;;  %v15675_v23 = vpop.f32.mrb[196].mxu1  ;;  %16981 = vst [vmem:[#allocation47_spill] sm:$0xff] %v15689_v59  ;;  %v11899_v15 = vpop.eup %11898  ;;  %v7905_v34 = vand.u32 2147483647, %v15689_v59 }
0x1035   : > { %v15684_v51 = vpop.f32.mrb[197].mxu1  ;;  %v15703_v28 = vpop.eup %11900  ;;  %v7934_v4 = vmul.f32 0.3275911, %v7902_v39  ;;  %16985 = vst [vmem:[#allocation51_spill] sm:$0xff] %v15730_v25  ;;  %v8424_v27 = vmul.f32 1.442695, %v8383_v17 }
0x1036   : > { %v8247_v62 = vmul.f32 %v15633_v37, %v8215_v49  ;;  %v15697_v49 = vmul.f32 0.70710677, %v15681_v14  ;;  %v15710_v8 = vpop.eup %11902  ;;  %vm8540_vm9 = vcmp.ge.f32.partialorder %v15654_v56, 0.0  ;;  %vm8541_vm10 = vcmp.ge.f32.partialorder %v15644_v32, 0.0 }
0x1037   : > { %v7966_v36 = vadd.f32 1.0, %v7934_v4  ;;  %vm8542_vm11 = vcmp.ge.f32.partialorder %v15678_v19, 0.0 }
0x1038   : > { %v8279_v43 = vadd.f32 0.2548296, %v8247_v62  ;;  %16982 = vst [vmem:[#allocation48_spill] sm:$0xff] %v15697_v49  ;;  %v7964_v62 = vadd.f32 1.0, %v7932_v31  ;;  %v7904_v40 = vand.u32 2147483647, %v15697_v49  ;;  %v15720_v31 = vpop.eup %11904 }
0x1039   : > { %v17019_v19 = vld [vmem:[#allocation55_spill] sm:$0xff] }
0x103a   : > { %v8311_v60 = vmul.f32 %v15633_v37, %v8279_v43  ;;  %v8380_v37 = vmul.f32 %v8348_v33, %v7900_v46  ;;  %v8350_v43 = vsub.f32 0.0, %v7902_v39  ;;  %v15725_v46 = vpop.eup %11906  ;;  %11920 = vrcp.f32 %v7964_v62 }
0x103b   : > { %v8353_v33 = vsub.f32 0.0, %v7905_v34  ;;  %v15732_v58 = vpop.eup %11908  ;;  %11922 = vpow2.f32 %v8420_v24  ;;  %v8352_v53 = vsub.f32 0.0, %v7904_v40  ;;  %v7747_v62 = vadd.f32 %v15660_v0, %v15596_v41 }
0x103c   : > { %v8471_v11 = vmul.f32 %v11899_v15, %v8311_v60  ;;  %v7935_v15 = vmul.f32 0.3275911, %v7903_v18  ;;  %v7907_v60 = vand.u32 2147483647, %v15714_v3  ;;  %v15737_v1 = vpop.eup %11910  ;;  %v8418_v16 = vmul.f32 1.442695, %v8380_v37 }
0x103d   : > { %v8382_v38 = vmul.f32 %v8350_v43, %v7902_v39  ;;  %v7937_v24 = vmul.f32 0.3275911, %v7905_v34  ;;  %v8385_v18 = vmul.f32 %v8353_v33, %v7905_v34  ;;  %v7906_v37 = vand.u32 2147483647, %v15730_v25 }
0x103e   : > { %v8503_v63 = vsub.f32 1.0, %v8471_v11  ;;  %v7967_v48 = vadd.f32 1.0, %v7935_v15  ;;  %v15747_v11 = vpop.eup %11912  ;;  %v8355_v61 = vsub.f32 0.0, %v7907_v60  ;;  %v15753_v0 = vmul.f32 0.5, %v15670_v22 }
0x103f   : > { %v15750_v39 = vpop.eup %11914  ;;  %v7936_v26 = vmul.f32 0.3275911, %v7904_v40  ;;  %11924 = vpow2.f32 %v8418_v16  ;;  %v8422_v7 = vmul.f32 1.442695, %v8382_v38  ;;  %v8384_v3 = vmul.f32 %v8352_v53, %v7904_v40 }
0x1040   : > { %v8567_v43 = vsub.f32 0.0, %v8503_v63  ;;  %16988 = vst [vmem:[#allocation54_spill] sm:$0xff] %v15753_v0  ;;  %v15755_v15 = vpop.eup %11916  ;;  %v15757_v29 = vmul.f32 0.70710677, %v7747_v62  ;;  %11926 = vrcp.f32 %v7967_v48  ;;  %v7969_v34 = vadd.f32 1.0, %v7937_v24 }
0x1041   : > { %v7939_v4 = vmul.f32 0.3275911, %v7907_v60  ;;  %v7742_v33 = vadd.f32 %v15596_v41, %v15665_v21  ;;  %11928 = vrcp.f32 %v7966_v36  ;;  %v8428_v25 = vmul.f32 1.442695, %v8385_v18  ;;  %v15761_v22 = vpop.eup %11918 }
0x1042   : > { %16989 = vst [vmem:[#allocation56_spill] sm:$0xff] %v15757_v29  ;;  %v8387_v17 = vmul.f32 %v8355_v61, %v7907_v60  ;;  %v8354_v59 = vsub.f32 0.0, %v7906_v37  ;;  %v8599_v0 = vsel %vm8535_vm3, %v8503_v63, %v8567_v43  ;;  %11930 = vpow2.f32 %v8424_v27 }
0x1043   : > { %v7968_v38 = vadd.f32 1.0, %v7936_v26  ;;  %v7938_v53 = vmul.f32 0.3275911, %v7906_v37  ;;  %11932 = vpow2.f32 %v8422_v7  ;;  %v15768_v48 = vmul.f32 0.5, %v15681_v14 }
0x1044   : > { %v15765_v16 = vpop.eup %11920  ;;  %v8426_v40 = vmul.f32 1.442695, %v8384_v3  ;;  %v7909_v21 = vand.u32 2147483647, %v15757_v29  ;;  %11934 = vrcp.f32 %v7969_v34  ;;  %v15774_v60 = vmul.f32 0.5, %v15708_v9 }
0x1045   : > { %16990 = vst [vmem:[#allocation58_spill] sm:$0xff] %v15768_v48  ;;  %v15771_v24 = vpop.eup %11922  ;;  %v7971_v57 = vadd.f32 1.0, %v7939_v4  ;;  %v15776_v63 = vmul.f32 0.70710677, %v7742_v33  ;;  %v8631_v27 = vadd.f32 1.0, %v8599_v0  ;;  %11936 = vpow2.f32 %v8428_v25 }
0x1046   : > { %16991 = vst [vmem:[#allocation60_spill] sm:$0xff] %v15774_v60  ;;  %v8432_v36 = vmul.f32 1.442695, %v8387_v17  ;;  %v8386_v18 = vmul.f32 %v8354_v59, %v7906_v37  ;;  %11938 = vrcp.f32 %v7968_v38  ;;  %v15779_v14 = vmul.f32 0.5, %v15718_v54 }
0x1047   : > { %16992 = vst [vmem:[#allocation62_spill] sm:$0xff] %v15776_v63  ;;  %v7970_v3 = vadd.f32 1.0, %v7938_v53  ;;  %v7757_v61 = vadd.f32 %v15675_v23, %v15596_v41  ;;  %11940 = vpow2.f32 %v8426_v40  ;;  %v15783_v43 = vmul.f32 0.5, %v7747_v62 }
0x1048   : > { %16993 = vst [vmem:[#allocation64_spill] sm:$0xff] %v15779_v14  ;;  %v8357_v9 = vsub.f32 0.0, %v7909_v21  ;;  %v7752_v26 = vadd.f32 %v15596_v41, %v15684_v51  ;;  %11942 = vrcp.f32 %v7971_v57  ;;  %v7941_v0 = vmul.f32 0.3275911, %v7909_v21 }
0x1049   : > { %16994 = vst [vmem:[#allocation66_spill] sm:$0xff] %v15783_v43  ;;  %v7908_v25 = vand.u32 2147483647, %v15776_v63  ;;  %v8054_v59 = vmul.f32 1.0614054, %v15686_v10  ;;  %v15789_v37 = vpop.eup %11924  ;;  %v15792_v54 = vmul.f32 %v8631_v27, %v15626_v12  ;;  %11944 = vpow2.f32 %v8432_v36 }
0x104a   : > { %v8430_v23 = vmul.f32 1.442695, %v8386_v18  ;;  %v15794_v7 = vmul.f32 0.5, %v7742_v33  ;;  %v15796_v62 = vpop.eup %11926  ;;  %11946 = vrcp.f32 %v7970_v3  ;;  %v15798_v34 = vmul.f32 0.70710677, %v7757_v61 }
0x104b   : > { %v8086_v51 = vadd.f32 -1.4531521, %v8054_v59  ;;  %v8056_v4 = vmul.f32 1.0614054, %v15720_v31  ;;  %v15801_v17 = vpop.eup %11928  ;;  %v8389_v38 = vmul.f32 %v8357_v9, %v7909_v21  ;;  %v15803_v53 = vmul.f32 0.70710677, %v7752_v26 }
0x104c   : > { %16995 = vst [vmem:[#allocation68_spill] sm:$0xff] %v15794_v7  ;;  %16996 = vst [vmem:[#allocation72_spill] sm:$0xff] %v15798_v34  ;;  %v8057_v12 = vmul.f32 1.0614054, %v15710_v8  ;;  %v8058_v40 = vmul.f32 1.0614054, %v15747_v11  ;;  %v15807_v57 = vpop.eup %11930  ;;  %11948 = vpow2.f32 %v8430_v23 }
0x104d   : > { %16997 = vst [vmem:[#allocation9_spill] sm:$0xff] %v15803_v53  ;;  %16998 = vst [vmem:[#allocation10_spill] sm:$0xff] %v15807_v57  ;;  %v7973_v33 = vadd.f32 1.0, %v7941_v0  ;;  %v7940_v27 = vmul.f32 0.3275911, %v7908_v25  ;;  %v8118_v36 = vmul.f32 %v15686_v10, %v8086_v51  ;;  %v15810_v59 = vpop.eup %11932  ;;  %v15812_v43 = vmul.f32 0.5, %v7757_v61 }
0x104e   : > { %v8088_v18 = vadd.f32 -1.4531521, %v8056_v4  ;;  %16999 = vst [vmem:[#allocation12_spill] sm:$0xff] %v15810_v59  ;;  %v8089_v21 = vadd.f32 -1.4531521, %v8057_v12  ;;  %v15816_v29 = vpop.eup %11934  ;;  %v8356_v60 = vsub.f32 0.0, %v7908_v25 }
0x104f   : > { %17000 = vst [vmem:[#allocation11_spill] sm:$0xff] %v15812_v43  ;;  %v8090_v9 = vadd.f32 -1.4531521, %v8058_v40  ;;  %v8150_v63 = vadd.f32 1.4214138, %v8118_v36  ;;  %v15820_v51 = vpop.eup %11936  ;;  %v15822_v48 = vmul.f32 0.5, %v7752_v26  ;;  %11950 = vrcp.f32 %v7973_v33 }
0x1050   : > { %v8120_v0 = vmul.f32 %v15720_v31, %v8088_v18  ;;  %v8059_v14 = vmul.f32 1.0614054, %v15737_v1  ;;  %17001 = vst [vmem:[#allocation14_spill] sm:$0xff] %v15820_v51  ;;  %v8436_v4 = vmul.f32 1.442695, %v8389_v38  ;;  %v8121_v61 = vmul.f32 %v15710_v8, %v8089_v21  ;;  %v15828_v40 = vpop.eup %11938 }
0x1051   : > { %v10842_v3 = vpop.f32.mrb[198].mxu1  ;;  %17002 = vst [vmem:[#allocation13_spill] sm:$0xff] %v15822_v48  ;;  %v8122_v23 = vmul.f32 %v15747_v11, %v8090_v9  ;;  %v7911_v43 = vand.u32 2147483647, %v15798_v34  ;;  %v8182_v36 = vmul.f32 %v15686_v10, %v8150_v63  ;;  %v15832_v55 = vpop.eup %11940  ;;  %v15835_v26 = vand.u32 2147483647, %v15803_v53 }
0x1052   : > { %v15814_v7 = vpop.f32.mrb[199].mxu1  ;;  %v8152_v18 = vadd.f32 1.4214138, %v8120_v0  ;;  %v8091_v49 = vadd.f32 -1.4531521, %v8059_v14  ;;  %17003 = vst [vmem:[#allocation16_spill] sm:$0xff] %v15832_v55  ;;  %v15837_v48 = vpop.eup %11942  ;;  %v8388_v51 = vmul.f32 %v8356_v60, %v7908_v25  ;;  %v15847_v0 = vadd.f32 %v10842_v3, %v15596_v41 }
0x1053   : > { %v8153_v38 = vadd.f32 1.4214138, %v8121_v61  ;;  %v8154_v21 = vadd.f32 1.4214138, %v8122_v23  ;;  %17004 = vst [vmem:[#allocation15_spill] sm:$0xff] %v15837_v48  ;;  %v7972_v9 = vadd.f32 1.0, %v7940_v27  ;;  %v15842_v63 = vpop.eup %11944  ;;  %11952 = vpow2.f32 %v8436_v4 }
0x1054   : > { %v8214_v57 = vadd.f32 -0.28449672, %v8182_v36  ;;  %v8184_v45 = vmul.f32 %v15720_v31, %v8152_v18  ;;  %17005 = vst [vmem:[#allocation18_spill] sm:$0xff] %v15842_v63  ;;  %v8123_v61 = vmul.f32 %v15737_v1, %v8091_v49  ;;  %v15852_v27 = vpop.eup %11946  ;;  %v7943_v60 = vmul.f32 0.3275911, %v7911_v43 }
0x1055   : > { %v15826_v12 = vpop.f32.mrb[200].mxu1  ;;  %v8185_v14 = vmul.f32 %v15710_v8, %v8153_v38  ;;  %v8186_v33 = vmul.f32 %v15747_v11, %v8154_v21  ;;  %17006 = vst [vmem:[#allocation17_spill] sm:$0xff] %v15852_v27  ;;  %v8359_v25 = vsub.f32 0.0, %v7911_v43  ;;  %v8434_v48 = vmul.f32 1.442695, %v8388_v51 }
0x1056   : > { %v15840_v34 = vpop.f32.mrb[201].mxu1  ;;  %v8246_v36 = vmul.f32 %v15686_v10, %v8214_v57  ;;  %v8216_v18 = vadd.f32 -0.28449672, %v8184_v45  ;;  %v8155_v21 = vadd.f32 1.4214138, %v8123_v61  ;;  %v15859_v47 = vpop.eup %11948  ;;  %v8358_v51 = vsub.f32 0.0, %v15835_v26 }
0x1057   : > { %v8217_v38 = vadd.f32 -0.28449672, %v8185_v14  ;;  %v8218_v63 = vadd.f32 -0.28449672, %v8186_v33  ;;  %v7942_v3 = vmul.f32 0.3275911, %v15835_v26  ;;  %11954 = vrcp.f32 %v7972_v9 }
0x1058   : > { %v8278_v55 = vadd.f32 0.2548296, %v8246_v36  ;;  %v8248_v49 = vmul.f32 %v15720_v31, %v8216_v18  ;;  %17007 = vst [vmem:[#allocation20_spill] sm:$0xff] %v15859_v47  ;;  %v15865_v57 = vmul.f32 0.70710677, %v15847_v0  ;;  %v8187_v4 = vmul.f32 %v15737_v1, %v8155_v21 }
0x1059   : > { %v15850_v23 = vpop.f32.mrb[202].mxu1  ;;  %v8249_v27 = vmul.f32 %v15710_v8, %v8217_v38  ;;  %v8250_v45 = vmul.f32 %v15747_v11, %v8218_v63  ;;  %v8060_v36 = vmul.f32 1.0614054, %v15765_v16  ;;  %v7975_v21 = vadd.f32 1.0, %v7943_v60 }
0x105a   : > { %v15855_v53 = vpop.f32.mrb[203].mxu1  ;;  %v8310_v33 = vmul.f32 %v15686_v10, %v8278_v55  ;;  %v8280_v61 = vadd.f32 0.2548296, %v8248_v49  ;;  %v8219_v47 = vadd.f32 -0.28449672, %v8187_v4  ;;  %v15882_v10 = vadd.f32 %v15596_v41, %v15814_v7  ;;  %v15884_v49 = vpop.eup %11950 }
0x105b   : > { %v8281_v63 = vadd.f32 0.2548296, %v8249_v27  ;;  %v8282_v38 = vadd.f32 0.2548296, %v8250_v45  ;;  %v15891_v60 = vadd.f32 1.0, %v7942_v3  ;;  %11956 = vpow2.f32 %v8434_v48 }
0x105c   : > { %v8470_v59 = vmul.f32 %v15703_v28, %v8310_v33  ;;  %v8312_v55 = vmul.f32 %v15720_v31, %v8280_v61  ;;  %v8251_v45 = vmul.f32 %v15737_v1, %v8219_v47  ;;  %v7913_v33 = vand.u32 2147483647, %v15865_v57 }
0x105d   : > { %v15868_v14 = vpop.f32.mrb[204].mxu1  ;;  %v8313_v9 = vmul.f32 %v15710_v8, %v8281_v63  ;;  %v8314_v27 = vmul.f32 %v15747_v11, %v8282_v38  ;;  %v8390_v11 = vmul.f32 %v8358_v51, %v15835_v26  ;;  %v15901_v3 = vmul.f32 0.70710677, %v15882_v10 }
0x105e   : > { %v15873_v18 = vpop.f32.mrb[205].mxu1  ;;  %v8502_v28 = vsub.f32 1.0, %v8470_v59  ;;  %v8472_v31 = vmul.f32 %v15732_v58, %v8312_v55  ;;  %v8283_v8 = vadd.f32 0.2548296, %v8251_v45  ;;  %v15903_v59 = vpop.eup %11952  ;;  %v15920_v48 = vadd.f32 %v15826_v12, %v15596_v41 }
0x105f   : > { %17008 = vst [vmem:[#allocation19_spill] sm:$0xff] %v15873_v18  ;;  %v8391_v18 = vmul.f32 %v8359_v25, %v7911_v43  ;;  %v8473_v61 = vmul.f32 %v15725_v46, %v8313_v9  ;;  %v8474_v43 = vmul.f32 %v15755_v15, %v8314_v27  ;;  %v8092_v25 = vadd.f32 -1.4531521, %v8060_v36 }
0x1060   : > { %v8566_v47 = vsub.f32 0.0, %v8502_v28  ;;  %v8504_v63 = vsub.f32 1.0, %v8472_v31  ;;  %v8315_v55 = vmul.f32 %v15737_v1, %v8283_v8  ;;  %v8361_v36 = vsub.f32 0.0, %v7913_v33 }
0x1061   : > { %v15889_v4 = vpop.f32.mrb[206].mxu1  ;;  %v8505_v58 = vsub.f32 1.0, %v8473_v61  ;;  %v8506_v38 = vsub.f32 1.0, %v8474_v43  ;;  %v8124_v46 = vmul.f32 %v15765_v16, %v8092_v25  ;;  %v7912_v43 = vand.u32 2147483647, %v15901_v3  ;;  %v15922_v42 = vpop.eup %11954 }
0x1062   : > { %v15895_v7 = vpop.f32.mrb[207].mxu1  ;;  %v8598_v26 = vsel %vm8534_vm4, %v8502_v28, %v8566_v47  ;;  %v8568_v51 = vsub.f32 0.0, %v8504_v63  ;;  %v8475_v61 = vmul.f32 %v15750_v39, %v8315_v55  ;;  %11958 = vrcp.f32 %v7975_v21 }
0x1063   : > { %v8630_v27 = vadd.f32 1.0, %v8598_v26  ;;  %v8569_v45 = vsub.f32 0.0, %v8505_v58  ;;  %v8570_v31 = vsub.f32 0.0, %v8506_v38  ;;  %v8156_v8 = vadd.f32 1.4214138, %v8124_v46 }
0x1064   : > { %v8600_v1 = vsel %vm8536_vm5, %v8504_v63, %v8568_v51  ;;  %v8507_v46 = vsub.f32 1.0, %v8475_v61  ;;  %v8440_v51 = vmul.f32 1.442695, %v8391_v18  ;;  %v8061_v50 = vmul.f32 1.0614054, %v15761_v22 }
0x1065   : > { %v15908_v15 = vpop.f32.mrb[208].mxu1  ;;  %v8662_v28 = vmul.f32 %v8630_v27, %v15628_v20  ;;  %v8632_v25 = vadd.f32 1.0, %v8600_v1  ;;  %v8601_v47 = vsel %vm8537_vm6, %v8505_v58, %v8569_v45  ;;  %v8602_v39 = vsel %vm8538_vm7, %v8506_v38, %v8570_v31 }
0x1066   : > { %v15912_v9 = vpop.f32.mrb[209].mxu1  ;;  %v8633_v63 = vadd.f32 1.0, %v8601_v47  ;;  %v8634_v55 = vadd.f32 1.0, %v8602_v39  ;;  %v8188_v26 = vmul.f32 %v15765_v16, %v8156_v8  ;;  %v7945_v52 = vmul.f32 0.3275911, %v7913_v33 }
0x1067   : > { %10893 = vmatprep.mubr.f32.mxu1 %v8662_v28  ;;  %v8664_v20 = vmul.f32 %v8632_v25, %v15646_v13  ;;  %v8393_v58 = vmul.f32 %v8361_v36, %v7913_v33  ;;  %v8571_v38 = vsub.f32 0.0, %v8507_v46  ;;  %v8360_v31 = vsub.f32 0.0, %v7912_v43 }
0x1068   : > { %10894 = vmatmul.mubr.f32.vlgmr.msra.gmra.mrb[212].mxu1 %v15792_v54  ;;  %v8220_v27 = vadd.f32 -0.28449672, %v8188_v26  ;;  %v8666_v45 = vmul.f32 %v8634_v55, %v15701_v44  ;;  %v15939_v61 = vmul.f32 0.70710677, %v15920_v48  ;;  %v8093_v21 = vadd.f32 -1.4531521, %v8061_v50  ;;  %v15947_v44 = vpop.eup %11956 }
0x1069   : > { %v15929_v2 = vpop.f32.mrb[210].mxu1  ;;  %10896 = vmatprep.mubr.f32.mxu1 %v8664_v20  ;;  %v8665_v18 = vmul.f32 %v8633_v63, %v15637_v6  ;;  %v8603_v13 = vsel %vm8539_vm8, %v8507_v46, %v8571_v38  ;;  %v8062_v54 = vmul.f32 1.0614054, %v15801_v17  ;;  %v8438_v33 = vmul.f32 1.442695, %v8390_v11 }
0x106a   : > { %v15932_v12 = vpop.f32.mrb[211].mxu1  ;;  %v8252_v1 = vmul.f32 %v15765_v16, %v8220_v27  ;;  %v8635_v36 = vadd.f32 1.0, %v8603_v13  ;;  %v7944_v8 = vmul.f32 0.3275911, %v7912_v43  ;;  %v8125_v28 = vmul.f32 %v15761_v22, %v8093_v21 }
0x106b   : > { %11960 = vpow2.f32 %v8440_v51  ;;  %v7977_v25 = vadd.f32 1.0, %v7945_v52  ;;  %v7772_v6 = vadd.f32 %v15596_v41, %v15840_v34  ;;  %v8444_v30 = vmul.f32 1.442695, %v8393_v58 }
0x106c   : > { %10897 = vmatmul.mubr.f32.gmra.mrb[214].mxu1 %v8665_v18  ;;  %v8284_v47 = vadd.f32 0.2548296, %v8252_v1  ;;  %11962 = vrcp.f32 %v15891_v60  ;;  %v8392_v11 = vmul.f32 %v8360_v31, %v7912_v43  ;;  %v8157_v39 = vadd.f32 1.4214138, %v8125_v28  ;;  %v15964_v50 = vpop.eup %11958 }
0x106d   : > { %10899 = vmatprep.mubr.f32.mxu1 %v8666_v45  ;;  %v8667_v63 = vmul.f32 %v8635_v36, %v15693_v5  ;;  %v7915_v46 = vand.u32 2147483647, %v15939_v61  ;;  %v8094_v26 = vadd.f32 -1.4531521, %v8062_v54  ;;  %11964 = vpow2.f32 %v8438_v33 }
0x106e   : > { %v8316_v55 = vmul.f32 %v15765_v16, %v8284_v47  ;;  %v15957_v51 = vmul.f32 0.5, %v15847_v0  ;;  %v7976_v34 = vadd.f32 1.0, %v7944_v8  ;;  %v8189_v20 = vmul.f32 %v15761_v22, %v8157_v39 }
0x106f   : > { %11966 = vrcp.f32 %v7977_v25  ;;  %v15961_v43 = vmul.f32 0.70710677, %v7772_v6  ;;  %v8126_v5 = vmul.f32 %v15801_v17, %v8094_v26  ;;  %v8442_v16 = vmul.f32 1.442695, %v8392_v11 }
0x1070   : > { %10900 = vmatmul.mubr.f32.gmra.mrb[216].mxu1 %v8667_v63  ;;  %v8476_v60 = vmul.f32 %v15789_v37, %v8316_v55  ;;  %11968 = vpow2.f32 %v8444_v30  ;;  %v8221_v52 = vadd.f32 -0.28449672, %v8189_v20  ;;  %v7787_v0 = vadd.f32 %v15850_v23, %v15596_v41 }
0x1071   : > { %v7947_v38 = vmul.f32 0.3275911, %v7915_v46  ;;  %v8363_v27 = vsub.f32 0.0, %v7915_v46  ;;  %v8158_v45 = vadd.f32 1.4214138, %v8126_v5  ;;  %v15969_v31 = vmul.f32 0.5, %v15882_v10 }
0x1072   : > { %v8508_v58 = vsub.f32 1.0, %v8476_v60  ;;  %11970 = vrcp.f32 %v7976_v34  ;;  %v8253_v37 = vmul.f32 %v15761_v22, %v8221_v52  ;;  %v8063_v21 = vmul.f32 1.0614054, %v15796_v62 }
0x1073   : > { %v15974_v13 = vmul.f32 0.5, %v15920_v48  ;;  %v7914_v1 = vand.u32 2147483647, %v15961_v43  ;;  %v8190_v23 = vmul.f32 %v15801_v17, %v8158_v45  ;;  %11972 = vpow2.f32 %v8442_v16 }
0x1074   : > { %v8572_v18 = vsub.f32 0.0, %v8508_v58  ;;  %v8285_v54 = vadd.f32 0.2548296, %v8253_v37  ;;  %v15978_v33 = vmul.f32 0.70710677, %v7787_v0  ;;  %v7979_v28 = vadd.f32 1.0, %v7947_v38 }
0x1075   : > { %17009 = vst [vmem:[#allocation22_spill] sm:$0xff] %v15974_v13  ;;  %v8095_v36 = vadd.f32 -1.4531521, %v8063_v21  ;;  %v15980_v10 = vpop.eup %11960  ;;  %v8395_v25 = vmul.f32 %v8363_v27, %v7915_v46  ;;  %v8222_v48 = vadd.f32 -0.28449672, %v8190_v23  ;;  %v15988_v39 = vmul.f32 0.5, %v7772_v6 }
0x1076   : > { %v8604_v8 = vsel %vm8540_vm9, %v8508_v58, %v8572_v18  ;;  %v15985_v47 = vpop.eup %11962  ;;  %v8317_v11 = vmul.f32 %v15761_v22, %v8285_v54  ;;  %v15990_v63 = vmul.f32 0.5, %v7787_v0  ;;  %v7946_v55 = vmul.f32 0.3275911, %v7914_v1  ;;  %v17029_v13 = vld [vmem:[#allocation14_spill] sm:$0xff] }
0x1077   : > { %v8636_v30 = vadd.f32 1.0, %v8604_v8  ;;  %v8362_v26 = vsub.f32 0.0, %v7914_v1  ;;  %v8254_v34 = vmul.f32 %v15801_v17, %v8222_v48  ;;  %v8127_v20 = vmul.f32 %v15796_v62, %v8095_v36  ;;  %v15994_v56 = vpop.eup %11964 }
0x1078   : > { %17010 = vst [vmem:[#allocation23_spill] sm:$0xff] %v15990_v63  ;;  %v8477_v60 = vmul.f32 %v15771_v24, %v8317_v11  ;;  %v7917_v5 = vand.u32 2147483647, %v15978_v33  ;;  %v8064_v22 = vmul.f32 1.0614054, %v15828_v40  ;;  %11974 = vrcp.f32 %v7979_v28 }
0x1079   : > { %v8668_v46 = vmul.f32 %v8636_v30, %v15735_v35  ;;  %v16000_v6 = vpop.eup %11966  ;;  %v8448_v16 = vmul.f32 1.442695, %v8395_v25  ;;  %v8286_v52 = vadd.f32 0.2548296, %v8254_v34  ;;  %v8159_v0 = vadd.f32 1.4214138, %v8127_v20 }
0x107a   : > { %v16002_v58 = vpop.eup %11968  ;;  %v8509_v38 = vsub.f32 1.0, %v8477_v60  ;;  %v7782_v35 = vadd.f32 %v15596_v41, %v15855_v53  ;;  %v8096_v24 = vadd.f32 -1.4531521, %v8064_v22  ;;  %v8065_v27 = vmul.f32 1.0614054, %v15816_v29  ;;  %v17011_v53 = vld [vmem:[#allocation12_spill] sm:$0xff] }
0x107b   : > { %10902 = vmatprep.mubr.f32.mxu1 %v8668_v46  ;;  %v7978_v45 = vadd.f32 1.0, %v7946_v55  ;;  %v8394_v37 = vmul.f32 %v8362_v26, %v7914_v1  ;;  %v8318_v21 = vmul.f32 %v15801_v17, %v8286_v52  ;;  %v8191_v18 = vmul.f32 %v15796_v62, %v8159_v0  ;;  %v17013_v52 = vld [vmem:[#allocation50_spill] sm:$0xff] }
0x107c   : > { %v16010_v23 = vpop.eup %11970  ;;  %v8573_v54 = vsub.f32 0.0, %v8509_v38  ;;  %v8365_v36 = vsub.f32 0.0, %v7917_v5  ;;  %v8128_v8 = vmul.f32 %v15828_v40, %v8096_v24  ;;  %v16015_v28 = vadd.f32 %v15868_v14, %v15596_v41 }
0x107d   : > { %11976 = vpow2.f32 %v8448_v16  ;;  %v8478_v25 = vmul.f32 %v17011_v53, %v8318_v21  ;;  %v8223_v48 = vadd.f32 -0.28449672, %v8191_v18  ;;  %v8097_v30 = vadd.f32 -1.4531521, %v8065_v27  ;;  %v16018_v1 = vpop.eup %11972  ;;  %v17014_v27 = vld [vmem:[#allocation46_spill] sm:$0xff] }
0x107e   : > { %v8605_v17 = vsel %vm8541_vm10, %v8509_v38, %v8573_v54  ;;  %v7949_v11 = vmul.f32 0.3275911, %v7917_v5  ;;  %v16022_v55 = vmul.f32 0.70710677, %v7782_v35  ;;  %v8160_v26 = vadd.f32 1.4214138, %v8128_v8 }
0x107f   : > { %v8637_v34 = vadd.f32 1.0, %v8605_v17  ;;  %11978 = vrcp.f32 %v7978_v45  ;;  %v8510_v20 = vsub.f32 1.0, %v8478_v25  ;;  %v8255_v14 = vmul.f32 %v15796_v62, %v8223_v48  ;;  %v17015_v54 = vld [vmem:[#allocation19_spill] sm:$0xff]  ;;  %v17016_v25 = vld [vmem:[#allocation17_spill] sm:$0xff] }
0x1080   : > { %v8446_v46 = vmul.f32 1.442695, %v8394_v37  ;;  %v8397_v60 = vmul.f32 %v8365_v36, %v7917_v5  ;;  %v8192_v22 = vmul.f32 %v15828_v40, %v8160_v26  ;;  %v16027_v16 = vmul.f32 0.70710677, %v16015_v28  ;;  %v17017_v26 = vld [vmem:[#allocation10_spill] sm:$0xff] }
0x1081   : > { %v8669_v0 = vmul.f32 %v8637_v34, %v17013_v52  ;;  %v8574_v32 = vsub.f32 0.0, %v8510_v20  ;;  %v8287_v38 = vadd.f32 0.2548296, %v8255_v14  ;;  %v8129_v24 = vmul.f32 %v15816_v29, %v8097_v30 }
0x1082   : > { %17012 = vst [vmem:[#allocation24_spill] sm:$0xff] %v16027_v16  ;;  %vm8543_vm12 = vcmp.ge.f32.partialorder %v17014_v27, 0.0  ;;  %v7981_v21 = vadd.f32 1.0, %v7949_v11  ;;  %v7916_v45 = vand.u32 2147483647, %v16022_v55  ;;  %v16035_v5 = vadd.f32 %v15596_v41, %v17015_v54  ;;  %v16037_v37 = vpop.eup %11974 }
0x1083   : > { %v8224_v18 = vadd.f32 -0.28449672, %v8192_v22  ;;  %10903 = vmatmul.mubr.f32.gmra.mrb[218].mxu1 %v8669_v0  ;;  %v8606_v36 = vsel %vm8542_vm11, %v8510_v20, %v8574_v32  ;;  %v8319_v8 = vmul.f32 %v15796_v62, %v8287_v38  ;;  %v8161_v53 = vadd.f32 1.4214138, %v8129_v24  ;;  %v16061_v54 = vld [vmem:[%s16537_s17] ss:$0 sm:$0xff] }
0x1084   : > { %v8066_v48 = vmul.f32 1.0614054, %v17016_v25  ;;  %11980 = vpow2.f32 %v8446_v46  ;;  %v8638_v30 = vadd.f32 1.0, %v8606_v36  ;;  %v8452_v17 = vmul.f32 1.442695, %v8397_v60  ;;  %v17020_v46 = vld [vmem:[#allocation48_spill] sm:$0xff] }
0x1085   : > { %v8256_v11 = vmul.f32 %v15828_v40, %v8224_v18  ;;  %v8479_v34 = vmul.f32 %v17017_v26, %v8319_v8  ;;  %v16045_v41 = vmul.f32 0.5, %v7782_v35  ;;  %v7919_v14 = vand.u32 2147483647, %v16027_v16 }
0x1086   : > { %v8193_v22 = vmul.f32 %v15816_v29, %v8161_v53  ;;  %v8670_v20 = vmul.f32 %v8638_v30, %v17019_v19  ;;  %v8364_v52 = vsub.f32 0.0, %v7916_v45  ;;  %v8098_v0 = vadd.f32 -1.4531521, %v8066_v48 }
0x1087   : > { %17018 = vst [vmem:[#allocation25_spill] sm:$0xff] %v16045_v41  ;;  %v8288_v62 = vadd.f32 0.2548296, %v8256_v11  ;;  %v16050_v32 = vpop.eup %11976  ;;  %vm8544_vm13 = vcmp.ge.f32.partialorder %v17020_v46, 0.0  ;;  %11982 = vrcp.f32 %v7981_v21  ;;  %v8511_v60 = vsub.f32 1.0, %v8479_v34 }
0x1088   : > { %v8225_v38 = vadd.f32 -0.28449672, %v8193_v22  ;;  %v16054_v24 = vmul.f32 0.70710677, %v16035_v5  ;;  %10905 = vmatprep.mubr.f32.mxu1 %v8670_v20  ;;  %11984 = vpow2.f32 %v8452_v17  ;;  %v8130_v18 = vmul.f32 %v17016_v25, %v8098_v0  ;;  %v17025_v0 = vld [vmem:[#allocation47_spill] sm:$0xff] }
0x1089   : > { %v8320_v35 = vmul.f32 %v15828_v40, %v8288_v62  ;;  %v16065_v36 = vadd.f32 %v16061_v54, %v15889_v4  ;;  %v16067_v21 = vpop.eup %11978  ;;  %v8575_v8 = vsub.f32 0.0, %v8511_v60  ;;  %v7948_v53 = vmul.f32 0.3275911, %v7916_v45  ;;  %v17023_v40 = vld [vmem:[#allocation16_spill] sm:$0xff]  ;;  %v17024_v4 = vld [vmem:[#allocation15_spill] sm:$0xff] }
0x108a   : > { %17021 = vst [vmem:[#allocation26_spill] sm:$0xff] %v16054_v24  ;;  %v8367_v48 = vsub.f32 0.0, %v7919_v14  ;;  %v8257_v30 = vmul.f32 %v15816_v29, %v8225_v38  ;;  %v8396_v17 = vmul.f32 %v8364_v52, %v7916_v45  ;;  %v7951_v26 = vmul.f32 0.3275911, %v7919_v14 }
0x108b   : > { %17022 = vst [vmem:[#allocation27_spill] sm:$0xff] %v16065_v36  ;;  %v8480_v11 = vmul.f32 %v17023_v40, %v8320_v35  ;;  %v8162_v34 = vadd.f32 1.4214138, %v8130_v18  ;;  %v8607_v22 = vsel %vm8543_vm12, %v8511_v60, %v8575_v8  ;;  %v7918_v20 = vand.u32 2147483647, %v16054_v24  ;;  %v17028_v18 = vld [vmem:[#allocation53_spill] sm:$0xff] }
0x108c   : > { %v8289_v19 = vadd.f32 0.2548296, %v8257_v30  ;;  %v8067_v62 = vmul.f32 1.0614054, %v17024_v4  ;;  %vm8545_vm14 = vcmp.ge.f32.partialorder %v17025_v0, 0.0  ;;  %v8639_v16 = vadd.f32 1.0, %v8607_v22 }
0x108d   : > { %v8512_v63 = vsub.f32 1.0, %v8480_v11  ;;  %v8194_v41 = vmul.f32 %v17016_v25, %v8162_v34  ;;  %v16078_v45 = vmul.f32 0.70710677, %v16065_v36  ;;  %v7980_v52 = vadd.f32 1.0, %v7948_v53 }
0x108e   : > { %v16081_v38 = vmul.f32 0.5, %v16015_v28  ;;  %v8399_v27 = vmul.f32 %v8367_v48, %v7919_v14  ;;  %v8321_v60 = vmul.f32 %v15816_v29, %v8289_v19  ;;  %v16084_v35 = vpop.eup %11980  ;;  %v8671_v8 = vmul.f32 %v8639_v16, %v17028_v18 }
0x108f   : > { %17026 = vst [vmem:[#allocation28_spill] sm:$0xff] %v16078_v45  ;;  %v8450_v30 = vmul.f32 1.442695, %v8396_v17  ;;  %v8576_v40 = vsub.f32 0.0, %v8512_v63  ;;  %v8226_v22 = vadd.f32 -0.28449672, %v8194_v41  ;;  %v16094_v53 = vadd.f32 %v16061_v54, %v15895_v7 }
0x1090   : > { %17027 = vst [vmem:[#allocation29_spill] sm:$0xff] %v16081_v38  ;;  %v7983_v11 = vadd.f32 1.0, %v7951_v26  ;;  %v8481_v34 = vmul.f32 %v17029_v13, %v8321_v60  ;;  %v8366_v24 = vsub.f32 0.0, %v7918_v20  ;;  %v8099_v36 = vadd.f32 -1.4531521, %v8067_v62  ;;  %10906 = vmatmul.mubr.f32.gmra.mrb[220].mxu1 %v8671_v8  ;;  %v17031_v62 = vld [vmem:[#allocation51_spill] sm:$0xff] }
0x1091   : > { %v8608_v28 = vsel %vm8544_vm13, %v8512_v63, %v8576_v40  ;;  %v8258_v14 = vmul.f32 %v17016_v25, %v8226_v22  ;;  %v7921_v29 = vand.u32 2147483647, %v16078_v45  ;;  %17030 = vst [vmem:[#allocation30_spill] sm:$0xff] %v16094_v53  ;;  %v16096_v16 = vpop.eup %11982  ;;  %v8456_v48 = vmul.f32 1.442695, %v8399_v27  ;;  %v17032_v60 = vld [vmem:[#allocation58_spill] sm:$0xff] }
0x1092   : > { %v8640_v41 = vadd.f32 1.0, %v8608_v28  ;;  %v8513_v17 = vsub.f32 1.0, %v8481_v34  ;;  %v8131_v13 = vmul.f32 %v17024_v4, %v8099_v36  ;;  %v16099_v26 = vpop.eup %11984  ;;  %11986 = vrcp.f32 %v7980_v52 }
0x1093   : > { %v7950_v46 = vmul.f32 0.3275911, %v7918_v20  ;;  %v8290_v63 = vadd.f32 0.2548296, %v8258_v14  ;;  %v16102_v19 = vmul.f32 0.70710677, %v16094_v53  ;;  %v8398_v8 = vmul.f32 %v8366_v24, %v7918_v20 }
0x1094   : > { %vm8546_vm15 = vcmp.ge.f32.partialorder %v17031_v62, 0.0  ;;  %v8672_v7 = vmul.f32 %v8640_v41, %v17032_v60  ;;  %v8577_v18 = vsub.f32 0.0, %v8513_v17  ;;  %v8163_v40 = vadd.f32 1.4214138, %v8131_v13  ;;  %v17034_v20 = vld [vmem:[#allocation20_spill] sm:$0xff] }
0x1095   : > { %11988 = vpow2.f32 %v8450_v30  ;;  %v8322_v27 = vmul.f32 %v17016_v25, %v8290_v63  ;;  %v8369_v22 = vsub.f32 0.0, %v7921_v29  ;;  %v8068_v36 = vmul.f32 1.0614054, %v15922_v42 }
0x1096   : > { %10908 = vmatprep.mubr.f32.mxu1 %v8672_v7  ;;  %11990 = vrcp.f32 %v7983_v11  ;;  %v8609_v52 = vsel %vm8545_vm14, %v8513_v17, %v8577_v18  ;;  %v8195_v34 = vmul.f32 %v17024_v4, %v8163_v40  ;;  %v16113_v28 = vadd.f32 %v16061_v54, %v15908_v15  ;;  %v17035_v11 = vld [vmem:[#allocation54_spill] sm:$0xff] }
0x1097   : > { %v8641_v14 = vadd.f32 1.0, %v8609_v52  ;;  %v7982_v24 = vadd.f32 1.0, %v7950_v46  ;;  %v8482_v30 = vmul.f32 %v17034_v20, %v8322_v27  ;;  %v7920_v25 = vand.u32 2147483647, %v16102_v19 }
0x1098   : > { %17033 = vst [vmem:[#allocation31_spill] sm:$0xff] %v16113_v28  ;;  %11992 = vpow2.f32 %v8456_v48  ;;  %v8454_v41 = vmul.f32 1.442695, %v8398_v8  ;;  %v8227_v13 = vadd.f32 -0.28449672, %v8195_v34  ;;  %v8401_v7 = vmul.f32 %v8369_v22, %v7921_v29  ;;  %v17038_v34 = vld [vmem:[#allocation49_spill] sm:$0xff] }
0x1099   : > { %v8100_v63 = vadd.f32 -1.4531521, %v8068_v36  ;;  %v8673_v60 = vmul.f32 %v8641_v14, %v17035_v11  ;;  %v8514_v0 = vsub.f32 1.0, %v8482_v30  ;;  %v7953_v17 = vmul.f32 0.3275911, %v7921_v29 }
0x109a   : > { %v8259_v18 = vmul.f32 %v17024_v4, %v8227_v13  ;;  %v16121_v40 = vmul.f32 0.70710677, %v16113_v28  ;;  %v8069_v46 = vmul.f32 1.0614054, %v15884_v49  ;;  %11994 = vrcp.f32 %v7982_v24 }
0x109b   : > { %v8132_v15 = vmul.f32 %v15922_v42, %v8100_v63  ;;  %10909 = vmatmul.mubr.f32.gmra.mrb[222].mxu1 %v8673_v60  ;;  %v8578_v48 = vsub.f32 0.0, %v8514_v0  ;;  %v8368_v8 = vsub.f32 0.0, %v7920_v25  ;;  %v16126_v27 = vadd.f32 %v16061_v54, %v15912_v9 }
0x109c   : > { %17036 = vst [vmem:[#allocation32_spill] sm:$0xff] %v16121_v40  ;;  %11996 = vpow2.f32 %v8454_v41  ;;  %v8291_v36 = vadd.f32 0.2548296, %v8259_v18  ;;  %v7952_v29 = vmul.f32 0.3275911, %v7920_v25  ;;  %v16128_v52 = vpop.eup %11986  ;;  %vm8547_vm0 = vcmp.ge.f32.partialorder %v17038_v34, 0.0 }
0x109d   : > { %17037 = vst [vmem:[#allocation33_spill] sm:$0xff] %v16126_v27  ;;  %v8164_v22 = vadd.f32 1.4214138, %v8132_v15  ;;  %v8610_v14 = vsel %vm8546_vm15, %v8514_v0, %v8578_v48  ;;  %v7985_v20 = vadd.f32 1.0, %v7953_v17  ;;  %v7923_v24 = vand.u32 2147483647, %v16121_v40 }
0x109e   : > { %v8101_v30 = vadd.f32 -1.4531521, %v8069_v46  ;;  %v8642_v13 = vadd.f32 1.0, %v8610_v14  ;;  %v8460_v63 = vmul.f32 1.442695, %v8401_v7  ;;  %v8323_v9 = vmul.f32 %v17024_v4, %v8291_v36  ;;  %v17040_v17 = vld [vmem:[#allocation64_spill] sm:$0xff] }
0x109f   : > { %v8196_v41 = vmul.f32 %v15922_v42, %v8164_v22  ;;  %v16136_v11 = vpop.eup %11988  ;;  %v8400_v60 = vmul.f32 %v8368_v8, %v7920_v25  ;;  %v16140_v15 = vmul.f32 0.70710677, %v16126_v27  ;;  %v8070_v62 = vmul.f32 1.0614054, %v15985_v47  ;;  %v17041_v48 = vld [vmem:[#allocation18_spill] sm:$0xff]  ;;  %v17045_v34 = vld [vmem:[#allocation60_spill] sm:$0xff] }
0x10a0   : > { %v8133_v18 = vmul.f32 %v15884_v49, %v8101_v30  ;;  %v16143_v0 = vpop.eup %11990  ;;  %v8674_v46 = vmul.f32 %v8642_v13, %v17040_v17  ;;  %v8483_v7 = vmul.f32 %v17041_v48, %v8323_v9  ;;  %v7984_v14 = vadd.f32 1.0, %v7952_v29  ;;  %v17043_v48 = vld [vmem:[#allocation62_spill] sm:$0xff] }
0x10a1   : > { %17039 = vst [vmem:[#allocation34_spill] sm:$0xff] %v16140_v15  ;;  %v8228_v4 = vadd.f32 -0.28449672, %v8196_v41  ;;  %11998 = vrcp.f32 %v7985_v20  ;;  %v7955_v36 = vmul.f32 0.3275911, %v7923_v24  ;;  %v16153_v40 = vadd.f32 %v16061_v54, %v15929_v2 }
0x10a2   : > { %v8165_v22 = vadd.f32 1.4214138, %v8133_v18  ;;  %v7922_v25 = vand.u32 2147483647, %v16140_v15  ;;  %v16148_v8 = vpop.eup %11992  ;;  %10911 = vmatprep.mubr.f32.mxu1 %v8674_v46  ;;  %v8515_v30 = vsub.f32 1.0, %v8483_v7  ;;  %v16156_v13 = vmul.f32 0.5, %v16035_v5 }
0x10a3   : > { %v8260_v28 = vmul.f32 %v15922_v42, %v8228_v4  ;;  %v8102_v27 = vadd.f32 -1.4531521, %v8070_v62  ;;  %17042 = vst [vmem:[#allocation35_spill] sm:$0xff] %v16153_v40  ;;  %12000 = vpow2.f32 %v8460_v63  ;;  %v8458_v29 = vmul.f32 1.442695, %v8400_v60 }
0x10a4   : > { %v8197_v20 = vmul.f32 %v15884_v49, %v8165_v22  ;;  %v8579_v9 = vsub.f32 0.0, %v8515_v30  ;;  %v8371_v18 = vsub.f32 0.0, %v7923_v24  ;;  %v16160_v46 = vpop.eup %11994  ;;  %vm8548_vm1 = vcmp.ge.f32.partialorder %v17043_v48, 0.0 }
0x10a5   : > { %v8292_v41 = vadd.f32 0.2548296, %v8260_v28  ;;  %v8134_v17 = vmul.f32 %v15985_v47, %v8102_v27  ;;  %12002 = vrcp.f32 %v7984_v14  ;;  %v7987_v62 = vadd.f32 1.0, %v7955_v36 }
0x10a6   : > { %v8229_v2 = vadd.f32 -0.28449672, %v8197_v20  ;;  %v7954_v7 = vmul.f32 0.3275911, %v7922_v25  ;;  %v16163_v4 = vpop.eup %11996  ;;  %v8611_v5 = vsel %vm8547_vm0, %v8515_v30, %v8579_v9  ;;  %v16169_v28 = vmul.f32 0.70710677, %v16153_v40 }
0x10a7   : > { %v8324_v63 = vmul.f32 %v15922_v42, %v8292_v41  ;;  %v8166_v60 = vadd.f32 1.4214138, %v8134_v17  ;;  %v8643_v27 = vadd.f32 1.0, %v8611_v5  ;;  %12004 = vpow2.f32 %v8458_v29  ;;  %v17046_v41 = vld [vmem:[#allocation56_spill] sm:$0xff] }
0x10a8   : > { %17044 = vst [vmem:[#allocation36_spill] sm:$0xff] %v16169_v28  ;;  %v8261_v22 = vmul.f32 %v15884_v49, %v8229_v2  ;;  %v8370_v15 = vsub.f32 0.0, %v7922_v25  ;;  %v8403_v36 = vmul.f32 %v8371_v18, %v7923_v24  ;;  %v7925_v45 = vand.u32 2147483647, %v16169_v28 }
0x10a9   : > { %v8484_v14 = vmul.f32 %v15947_v44, %v8324_v63  ;;  %v8198_v20 = vmul.f32 %v15985_v47, %v8166_v60  ;;  %v8675_v30 = vmul.f32 %v8643_v27, %v17045_v34  ;;  %12006 = vrcp.f32 %v7987_v62 }
0x10aa   : > { %v8293_v42 = vadd.f32 0.2548296, %v8261_v22  ;;  %v8071_v9 = vmul.f32 1.0614054, %v15964_v50  ;;  %vm8549_vm2 = vcmp.ge.f32.partialorder %v17046_v41, 0.0  ;;  %v7986_v29 = vadd.f32 1.0, %v7954_v7 }
0x10ab   : > { %v8516_v17 = vsub.f32 1.0, %v8484_v14  ;;  %v8230_v5 = vadd.f32 -0.28449672, %v8198_v20  ;;  %v7957_v2 = vmul.f32 0.3275911, %v7925_v45  ;;  %v16178_v40 = vpop.eup %11998  ;;  %10912 = vmatmul.mubr.f32.gmra.mrb[224].mxu1 %v8675_v30  ;;  %v8402_v24 = vmul.f32 %v8370_v15, %v7922_v25  ;;  %v17049_v30 = vld [vmem:[#allocation9_spill] sm:$0xff] }
0x10ac   : > { %v8325_v44 = vmul.f32 %v15884_v49, %v8293_v42  ;;  %v8103_v18 = vadd.f32 -1.4531521, %v8071_v9  ;;  %v16183_v63 = vadd.f32 %v16061_v54, %v15932_v12  ;;  %v8373_v27 = vsub.f32 0.0, %v7925_v45 }
0x10ad   : > { %v8580_v62 = vsub.f32 0.0, %v8516_v17  ;;  %v8262_v60 = vmul.f32 %v15985_v47, %v8230_v5  ;;  %v8072_v22 = vmul.f32 1.0614054, %v16010_v23  ;;  %v16187_v7 = vpop.eup %12000  ;;  %v16189_v14 = vmul.f32 1.442695, %v8403_v36 }
0x10ae   : > { %17047 = vst [vmem:[#allocation37_spill] sm:$0xff] %v16183_v63  ;;  %v8485_v20 = vmul.f32 %v15903_v59, %v8325_v44  ;;  %v8135_v49 = vmul.f32 %v15964_v50, %v8103_v18  ;;  %v16194_v15 = vmul.f32 0.70710677, %v16183_v63  ;;  %12008 = vrcp.f32 %v7986_v29 }
0x10af   : > { %v8612_v12 = vsel %vm8548_vm1, %v8516_v17, %v8580_v62  ;;  %v8294_v54 = vadd.f32 0.2548296, %v8262_v60  ;;  %v7989_v25 = vadd.f32 1.0, %v7957_v2  ;;  %v16198_v34 = vpop.eup %12002  ;;  %vm8550_vm3 = vcmp.ge.f32.partialorder %v17049_v30, 0.0  ;;  %v17050_v17 = vld [vmem:[#allocation68_spill] sm:$0xff] }
0x10b0   : > { %17048 = vst [vmem:[#allocation38_spill] sm:$0xff] %v16194_v15  ;;  %v8644_v42 = vadd.f32 1.0, %v8612_v12  ;;  %v8517_v36 = vsub.f32 1.0, %v8485_v20  ;;  %v8167_v9 = vadd.f32 1.4214138, %v8135_v49  ;;  %v8405_v18 = vmul.f32 %v8373_v27, %v7925_v45 }
0x10b1   : > { %v7924_v59 = vand.u32 2147483647, %v16194_v15  ;;  %v16202_v5 = vmul.f32 1.442695, %v8402_v24  ;;  %v8326_v44 = vmul.f32 %v15985_v47, %v8294_v54  ;;  %v8104_v28 = vadd.f32 -1.4531521, %v8072_v22  ;;  %v16205_v48 = vpop.eup %12004 }
0x10b2   : > { %v8676_v29 = vmul.f32 %v8644_v42, %v17050_v17  ;;  %v8581_v2 = vsub.f32 0.0, %v8517_v36  ;;  %v8199_v62 = vmul.f32 %v15964_v50, %v8167_v9  ;;  %v8073_v24 = vmul.f32 1.0614054, %v16000_v6  ;;  %v17051_v15 = vld [vmem:[#allocation66_spill] sm:$0xff] }
0x10b3   : > { %v7956_v60 = vmul.f32 0.3275911, %v7924_v59  ;;  %v8486_v12 = vmul.f32 %v15994_v56, %v8326_v44  ;;  %v8372_v20 = vsub.f32 0.0, %v7924_v59  ;;  %v8136_v49 = vmul.f32 %v16010_v23, %v8104_v28  ;;  %v16212_v63 = vpop.eup %12006 }
0x10b4   : > { %10914 = vmatprep.mubr.f32.mxu1 %v8676_v29  ;;  %v8613_v47 = vsel %vm8549_vm2, %v8517_v36, %v8581_v2  ;;  %12010 = vrcp.f32 %v7989_v25  ;;  %v8231_v45 = vadd.f32 -0.28449672, %v8199_v62  ;;  %v8074_v27 = vmul.f32 1.0614054, %v16067_v21 }
0x10b5   : > { %v8645_v22 = vadd.f32 1.0, %v8613_v47  ;;  %v8518_v54 = vsub.f32 1.0, %v8486_v12  ;;  %v8404_v42 = vmul.f32 %v8372_v20, %v7924_v59  ;;  %v8168_v9 = vadd.f32 1.4214138, %v8136_v49 }
0x10b6   : > { %v16217_v56 = vmul.f32 1.442695, %v8405_v18  ;;  %v8263_v28 = vmul.f32 %v15964_v50, %v8231_v45  ;;  %v8105_v44 = vadd.f32 -1.4531521, %v8073_v24  ;;  %v8106_v17 = vadd.f32 -1.4531521, %v8074_v27 }
0x10b7   : > { %v8677_v53 = vmul.f32 %v8645_v22, %v17051_v15  ;;  %v8582_v29 = vsub.f32 0.0, %v8518_v54  ;;  %v7988_v38 = vadd.f32 1.0, %v7956_v60  ;;  %v8200_v41 = vmul.f32 %v16010_v23, %v8168_v9  ;;  %v17052_v18 = vld [vmem:[#allocation72_spill] sm:$0xff] }
0x10b8   : > { %v8295_v25 = vadd.f32 0.2548296, %v8263_v28  ;;  %v8137_v36 = vmul.f32 %v16000_v6, %v8105_v44  ;;  %v8138_v2 = vmul.f32 %v16067_v21, %v8106_v17  ;;  %v8075_v59 = vmul.f32 1.0614054, %v16037_v37  ;;  %v16225_v62 = vpop.eup %12008 }
0x10b9   : > { %vm8551_vm4 = vcmp.ge.f32.partialorder %v17052_v18, 0.0  ;;  %10915 = vmatmul.mubr.f32.gmra.mrb[226].mxu1 %v8677_v53  ;;  %v8614_v12 = vsel %vm8550_vm3, %v8518_v54, %v8582_v29  ;;  %v16230_v15 = vmul.f32 1.442695, %v8404_v42  ;;  %v8232_v60 = vadd.f32 -0.28449672, %v8200_v41  ;;  %v17053_v53 = vld [vmem:[#allocation13_spill] sm:$0xff] }
0x10ba   : > { %v8076_v20 = vmul.f32 1.0614054, %v16128_v52  ;;  %v8646_v49 = vadd.f32 1.0, %v8614_v12  ;;  %v8327_v24 = vmul.f32 %v15964_v50, %v8295_v25  ;;  %v8169_v47 = vadd.f32 1.4214138, %v8137_v36 }
0x10bb   : > { %v8170_v45 = vadd.f32 1.4214138, %v8138_v2  ;;  %v8264_v27 = vmul.f32 %v16010_v23, %v8232_v60  ;;  %v8107_v22 = vadd.f32 -1.4531521, %v8075_v59  ;;  %v8077_v28 = vmul.f32 1.0614054, %v16096_v16 }
0x10bc   : > { %v8108_v9 = vadd.f32 -1.4531521, %v8076_v20  ;;  %v8678_v44 = vmul.f32 %v8646_v49, %v17053_v53  ;;  %v8487_v30 = vmul.f32 %v15980_v10, %v8327_v24  ;;  %v8201_v54 = vmul.f32 %v16000_v6, %v8169_v47 }
0x10bd   : > { %v8202_v42 = vmul.f32 %v16067_v21, %v8170_v45  ;;  %v8296_v17 = vadd.f32 0.2548296, %v8264_v27  ;;  %v8139_v29 = vmul.f32 %v16037_v37, %v8107_v22  ;;  %v8109_v41 = vadd.f32 -1.4531521, %v8077_v28 }
0x10be   : > { %v8140_v50 = vmul.f32 %v16128_v52, %v8108_v9  ;;  %v16242_v25 = vpop.eup %12010  ;;  %vm8552_vm5 = vcmp.ge.f32.partialorder %v15901_v3, 0.0  ;;  %10917 = vmatprep.mubr.f32.mxu1 %v8678_v44  ;;  %v8519_v36 = vsub.f32 1.0, %v8487_v30  ;;  %12012 = vrcp.f32 %v7988_v38 }
0x10bf   : > { %v8233_v2 = vadd.f32 -0.28449672, %v8201_v54  ;;  %v8234_v59 = vadd.f32 -0.28449672, %v8202_v42  ;;  %v8328_v10 = vmul.f32 %v16010_v23, %v8296_v17  ;;  %v8171_v12 = vadd.f32 1.4214138, %v8139_v29 }
0x10c0   : > { %v8172_v60 = vadd.f32 1.4214138, %v8140_v50  ;;  %v8141_v20 = vmul.f32 %v16096_v16, %v8109_v41  ;;  %v8583_v49 = vsub.f32 0.0, %v8519_v36  ;;  %v8078_v45 = vmul.f32 1.0614054, %v16160_v46  ;;  %v17054_v41 = vld [vmem:[#allocation11_spill] sm:$0xff] }
0x10c1   : > { %v8265_v24 = vmul.f32 %v16000_v6, %v8233_v2  ;;  %v8266_v47 = vmul.f32 %v16067_v21, %v8234_v59  ;;  %v8488_v27 = vmul.f32 %v16018_v1, %v8328_v10  ;;  %v8203_v22 = vmul.f32 %v16037_v37, %v8171_v12 }
0x10c2   : > { %v8204_v38 = vmul.f32 %v16128_v52, %v8172_v60  ;;  %v8173_v9 = vadd.f32 1.4214138, %v8141_v20  ;;  %v8615_v23 = vsel %vm8551_vm4, %v8519_v36, %v8583_v49  ;;  %v8110_v44 = vadd.f32 -1.4531521, %v8078_v45 }
0x10c3   : > { %v8297_v28 = vadd.f32 0.2548296, %v8265_v24  ;;  %v8298_v53 = vadd.f32 0.2548296, %v8266_v47  ;;  %vm8553_vm6 = vcmp.ge.f32.partialorder %v15865_v57, 0.0  ;;  %vm8554_vm7 = vcmp.ge.f32.partialorder %v15961_v43, 0.0 }
0x10c4   : > { %v8647_v30 = vadd.f32 1.0, %v8615_v23  ;;  %v8520_v54 = vsub.f32 1.0, %v8488_v27  ;;  %v8235_v42 = vadd.f32 -0.28449672, %v8203_v22  ;;  %v8236_v17 = vadd.f32 -0.28449672, %v8204_v38 }
0x10c5   : > { %v8329_v1 = vmul.f32 %v16000_v6, %v8297_v28  ;;  %v8330_v29 = vmul.f32 %v16067_v21, %v8298_v53  ;;  %v8205_v50 = vmul.f32 %v16096_v16, %v8173_v9  ;;  %v8142_v18 = vmul.f32 %v16160_v46, %v8110_v44 }
0x10c6   : > { %v8679_v36 = vmul.f32 %v8647_v30, %v17054_v41  ;;  %v8584_v2 = vsub.f32 0.0, %v8520_v54  ;;  %v8267_v59 = vmul.f32 %v16037_v37, %v8235_v42  ;;  %v8268_v10 = vmul.f32 %v16128_v52, %v8236_v17 }
0x10c7   : > { %v8489_v12 = vmul.f32 %v16002_v58, %v8329_v1  ;;  %v8490_v60 = vmul.f32 %v16084_v35, %v8330_v29  ;;  %v8237_v20 = vadd.f32 -0.28449672, %v8205_v50  ;;  %v8174_v49 = vadd.f32 1.4214138, %v8142_v18 }
0x10c8   : > { %10918 = vmatmul.mubr.f32.gmra.mrb[228].mxu1 %v8679_v36  ;;  %v8616_v6 = vsel %vm8552_vm5, %v8520_v54, %v8584_v2  ;;  %v8299_v21 = vadd.f32 0.2548296, %v8267_v59  ;;  %v8300_v24 = vadd.f32 0.2548296, %v8268_v10  ;;  %v8079_v47 = vmul.f32 1.0614054, %v16143_v0  ;;  %v16269_v45 = vpop.eup %12012 }
0x10c9   : > { %vm8555_vm8 = vcmp.ge.f32.partialorder %v15939_v61, 0.0  ;;  %vm8556_vm9 = vcmp.ge.f32.partialorder %v16022_v55, 0.0  ;;  %v8648_v27 = vadd.f32 1.0, %v8616_v6  ;;  %v8521_v58 = vsub.f32 1.0, %v8489_v12  ;;  %v17055_v6 = vld [vmem:[#allocation26_spill] sm:$0xff] }
0x10ca   : > { %v8522_v22 = vsub.f32 1.0, %v8490_v60  ;;  %v8269_v35 = vmul.f32 %v16096_v16, %v8237_v20  ;;  %v8331_v38 = vmul.f32 %v16037_v37, %v8299_v21  ;;  %v8332_v3 = vmul.f32 %v16128_v52, %v8300_v24  ;;  %v17056_v61 = vld [vmem:[#allocation22_spill] sm:$0xff] }
0x10cb   : > { %v8206_v9 = vmul.f32 %v16160_v46, %v8174_v49  ;;  %v8111_v23 = vadd.f32 -1.4531521, %v8079_v47  ;;  %v8680_v28 = vmul.f32 %v8648_v27, %v15969_v31  ;;  %v8585_v53 = vsub.f32 0.0, %v8521_v58 }
0x10cc   : > { %v8586_v44 = vsub.f32 0.0, %v8522_v22  ;;  %v8301_v30 = vadd.f32 0.2548296, %v8269_v35  ;;  %vm8557_vm10 = vcmp.ge.f32.partialorder %v15978_v33, 0.0  ;;  %v8491_v54 = vmul.f32 %v16050_v32, %v8331_v38 }
0x10cd   : > { %v8492_v42 = vmul.f32 %v16136_v11, %v8332_v3  ;;  %v8238_v17 = vadd.f32 -0.28449672, %v8206_v9  ;;  %v8143_v1 = vmul.f32 %v16143_v0, %v8111_v23  ;;  %10920 = vmatprep.mubr.f32.mxu1 %v8680_v28  ;;  %v8617_v37 = vsel %vm8553_vm6, %v8521_v58, %v8585_v53  ;;  %v17057_v9 = vld [vmem:[#allocation25_spill] sm:$0xff] }
0x10ce   : > { %v8618_v52 = vsel %vm8554_vm7, %v8522_v22, %v8586_v44  ;;  %v8333_v31 = vmul.f32 %v16096_v16, %v8301_v30  ;;  %v8080_v29 = vmul.f32 1.0614054, %v16198_v34  ;;  %v8649_v50 = vadd.f32 1.0, %v8617_v37 }
0x10cf   : > { %v8650_v18 = vadd.f32 1.0, %v8618_v52  ;;  %v8523_v41 = vsub.f32 1.0, %v8491_v54  ;;  %v8524_v32 = vsub.f32 1.0, %v8492_v42  ;;  %v8270_v36 = vmul.f32 %v16160_v46, %v8238_v17  ;;  %v17058_v17 = vld [vmem:[#allocation23_spill] sm:$0xff]  ;;  %v17059_v52 = vld [vmem:[#allocation24_spill] sm:$0xff] }
0x10d0   : > { %v8493_v11 = vmul.f32 %v16099_v26, %v8333_v31  ;;  %v8175_v2 = vadd.f32 1.4214138, %v8143_v1  ;;  %v8112_v59 = vadd.f32 -1.4531521, %v8080_v29  ;;  %v8681_v57 = vmul.f32 %v8649_v50, %v15957_v51 }
0x10d1   : > { %v8682_v10 = vmul.f32 %v8650_v18, %v15988_v39  ;;  %v8587_v43 = vsub.f32 0.0, %v8523_v41  ;;  %v8588_v12 = vsub.f32 0.0, %v8524_v32  ;;  %v8302_v16 = vadd.f32 0.2548296, %v8270_v36 }
0x10d2   : > { %v8525_v60 = vsub.f32 1.0, %v8493_v11  ;;  %v8207_v20 = vmul.f32 %v16143_v0, %v8175_v2  ;;  %v8144_v49 = vmul.f32 %v16198_v34, %v8112_v59  ;;  %vm8558_vm11 = vcmp.ge.f32.partialorder %v17055_v6, 0.0  ;;  %10921 = vmatmul.mubr.f32.gmra.mrb[230].mxu1 %v8681_v57 }
0x10d3   : > { %v8619_v26 = vsel %vm8555_vm8, %v8523_v41, %v8587_v43  ;;  %v8620_v21 = vsel %vm8556_vm9, %v8524_v32, %v8588_v12  ;;  %v8081_v51 = vmul.f32 1.0614054, %v16178_v40  ;;  %v8082_v39 = vmul.f32 1.0614054, %v16225_v62  ;;  %10923 = vmatprep.mubr.f32.mxu1 %v8682_v10 }
0x10d4   : > { %v8651_v24 = vadd.f32 1.0, %v8619_v26  ;;  %v8652_v47 = vadd.f32 1.0, %v8620_v21  ;;  %v8589_v27 = vsub.f32 0.0, %v8525_v60  ;;  %v8334_v58 = vmul.f32 %v16160_v46, %v8302_v16 }
0x10d5   : > { %12014 = vpow2.f32 %v16189_v14  ;;  %v8239_v22 = vadd.f32 -0.28449672, %v8207_v20  ;;  %v8176_v35 = vadd.f32 1.4214138, %v8144_v49  ;;  %v8113_v38 = vadd.f32 -1.4531521, %v8081_v51 }
0x10d6   : > { %v8683_v3 = vmul.f32 %v8651_v24, %v17056_v61  ;;  %v8684_v55 = vmul.f32 %v8652_v47, %v17057_v9  ;;  %v8621_v23 = vsel %vm8557_vm10, %v8525_v60, %v8589_v27  ;;  %v8494_v28 = vmul.f32 %v16163_v4, %v8334_v58 }
0x10d7   : > { %v8653_v53 = vadd.f32 1.0, %v8621_v23  ;;  %v8271_v44 = vmul.f32 %v16143_v0, %v8239_v22  ;;  %v8208_v30 = vmul.f32 %v16198_v34, %v8176_v35  ;;  %v8145_v46 = vmul.f32 %v16178_v40, %v8113_v38 }
0x10d8   : > { %12016 = vpow2.f32 %v16202_v5  ;;  %10924 = vmatmul.mubr.f32.gmra.mrb[232].mxu1 %v8683_v3  ;;  %v8526_v14 = vsub.f32 1.0, %v8494_v28  ;;  %v8114_v54 = vadd.f32 -1.4531521, %v8082_v39  ;;  %v8083_v42 = vmul.f32 1.0614054, %v16212_v63 }
0x10d9   : > { %10926 = vmatprep.mubr.f32.mxu1 %v8684_v55  ;;  %v8685_v33 = vmul.f32 %v8653_v53, %v17058_v17  ;;  %v8303_v1 = vadd.f32 0.2548296, %v8271_v44  ;;  %v8240_v37 = vadd.f32 -0.28449672, %v8208_v30  ;;  %v8177_v4 = vadd.f32 1.4214138, %v8145_v46 }
0x10da   : > { %vm8559_vm12 = vcmp.ge.f32.partialorder %v17059_v52, 0.0  ;;  %v8590_v31 = vsub.f32 0.0, %v8526_v14  ;;  %v8146_v29 = vmul.f32 %v16225_v62, %v8114_v54  ;;  %v8115_v50 = vadd.f32 -1.4531521, %v8083_v42 }
0x10db   : > { %v8084_v18 = vmul.f32 1.0614054, %v16269_v45  ;;  %v8335_v5 = vmul.f32 %v16143_v0, %v8303_v1  ;;  %v8272_v41 = vmul.f32 %v16198_v34, %v8240_v37  ;;  %v8209_v32 = vmul.f32 %v16178_v40, %v8177_v4 }
0x10dc   : > { %v8085_v11 = vmul.f32 1.0614054, %v16242_v25  ;;  %10927 = vmatmul.mubr.f32.gmra.mrb[234].mxu1 %v8685_v33  ;;  %v8622_v36 = vsel %vm8558_vm11, %v8526_v14, %v8590_v31  ;;  %v8178_v2 = vadd.f32 1.4214138, %v8146_v29  ;;  %v8147_v59 = vmul.f32 %v16212_v63, %v8115_v50  ;;  %v17060_v14 = vld [vmem:[#allocation29_spill] sm:$0xff]  ;;  %v17062_v29 = vld [vmem:[#allocation28_spill] sm:$0xff] }
0x10dd   : > { %v8116_v57 = vadd.f32 -1.4531521, %v8084_v18  ;;  %v8654_v10 = vadd.f32 1.0, %v8622_v36  ;;  %v8495_v43 = vmul.f32 %v16148_v8, %v8335_v5  ;;  %v8304_v12 = vadd.f32 0.2548296, %v8272_v41  ;;  %v17063_v36 = vld [vmem:[#allocation27_spill] sm:$0xff] }
0x10de   : > { %v8241_v60 = vadd.f32 -0.28449672, %v8209_v32  ;;  %v8210_v0 = vmul.f32 %v16225_v62, %v8178_v2  ;;  %v8179_v16 = vadd.f32 1.4214138, %v8147_v59  ;;  %v8117_v49 = vadd.f32 -1.4531521, %v8085_v11 }
0x10df   : > { %v8148_v20 = vmul.f32 %v16269_v45, %v8116_v57  ;;  %v12015_v26 = vpop.eup %12014  ;;  %v8686_v21 = vmul.f32 %v8654_v10, %v16156_v13  ;;  %v8527_v6 = vsub.f32 1.0, %v8495_v43  ;;  %v8336_v51 = vmul.f32 %v16198_v34, %v8304_v12 }
0x10e0   : > { %v8273_v39 = vmul.f32 %v16178_v40, %v8241_v60  ;;  %v8242_v24 = vadd.f32 -0.28449672, %v8210_v0  ;;  %v8211_v47 = vmul.f32 %v16212_v63, %v8179_v16  ;;  %v8149_v27 = vmul.f32 %v16242_v25, %v8117_v49  ;;  %v17064_v0 = vld [vmem:[#allocation34_spill] sm:$0xff] }
0x10e1   : > { %v8180_v8 = vadd.f32 1.4214138, %v8148_v20  ;;  %12018 = vpow2.f32 %v16230_v15  ;;  %10929 = vmatprep.mubr.f32.mxu1 %v8686_v21  ;;  %v8591_v58 = vsub.f32 0.0, %v8527_v6  ;;  %v8496_v22 = vmul.f32 %v16205_v48, %v8336_v51 }
0x10e2   : > { %v8305_v35 = vadd.f32 0.2548296, %v8273_v39  ;;  %v12017_v38 = vpop.eup %12016  ;;  %v8274_v13 = vmul.f32 %v16225_v62, %v8242_v24  ;;  %v8243_v61 = vadd.f32 -0.28449672, %v8211_v47  ;;  %v8181_v3 = vadd.f32 1.4214138, %v8149_v27 }
0x10e3   : > { %v8212_v34 = vmul.f32 %v16269_v45, %v8180_v8  ;;  %12020 = vpow2.f32 %v16217_v56  ;;  %v8623_v9 = vsel %vm8559_vm12, %v8527_v6, %v8591_v58  ;;  %v8528_v55 = vsub.f32 1.0, %v8496_v22  ;;  %v17066_v6 = vld [vmem:[#allocation33_spill] sm:$0xff]  ;;  %v17067_v47 = vld [vmem:[#allocation31_spill] sm:$0xff]  ;;  %v17068_v22 = vld [vmem:[#allocation38_spill] sm:$0xff] }
0x10e4   : > { %v8337_v15 = vmul.f32 %v16178_v40, %v8305_v35  ;;  %v8655_v23 = vadd.f32 1.0, %v8623_v9  ;;  %v8306_v28 = vadd.f32 0.2548296, %v8274_v13  ;;  %v8275_v48 = vmul.f32 %v16212_v63, %v8243_v61  ;;  %v17061_v40 = vld [vmem:[#allocation30_spill] sm:$0xff]  ;;  %v17069_v61 = vld [vmem:[#allocation37_spill] sm:$0xff] }
0x10e5   : > { %v8244_v53 = vadd.f32 -0.28449672, %v8212_v34  ;;  %vm8560_vm13 = vcmp.ge.f32.partialorder %v16102_v19, 0.0  ;;  %v8592_v44 = vsub.f32 0.0, %v8528_v55  ;;  %v8213_v46 = vmul.f32 %v16242_v25, %v8181_v3 }
0x10e6   : > { %v8497_v30 = vmul.f32 %v16187_v7, %v8337_v15  ;;  %v8687_v56 = vmul.f32 %v8655_v23, %v17060_v14  ;;  %v8338_v54 = vmul.f32 %v16225_v62, %v8306_v28  ;;  %v8307_v42 = vadd.f32 0.2548296, %v8275_v48  ;;  %v17070_v15 = vld [vmem:[#allocation36_spill] sm:$0xff]  ;;  %v17071_v48 = vld [vmem:[#allocation35_spill] sm:$0xff] }
0x10e7   : > { %v8276_v17 = vmul.f32 %v16269_v45, %v8244_v53  ;;  %v7856_v33 = vmul.f32 0.5, %v17061_v40  ;;  %v8624_v1 = vsel %vm8560_vm13, %v8528_v55, %v8592_v44  ;;  %v8245_v4 = vadd.f32 -0.28449672, %v8213_v46  ;;  %v16366_v46 = vld [vmem:[%s16539_s19] ss:$0 sm:$0xff] }
0x10e8   : > { %v8529_v37 = vsub.f32 1.0, %v8497_v30  ;;  %10930 = vmatmul.mubr.f32.gmra.mrb[236].mxu1 %v8687_v56  ;;  %v8656_v52 = vadd.f32 1.0, %v8624_v1  ;;  %v8498_v19 = vmul.f32 %v12017_v38, %v8338_v54  ;;  %v8339_v31 = vmul.f32 %v16212_v63, %v8307_v42 }
0x10e9   : > { %v8308_v7 = vadd.f32 0.2548296, %v8276_v17  ;;  %vm8561_vm14 = vcmp.ge.f32.partialorder %v17062_v29, 0.0  ;;  %v8277_v18 = vmul.f32 %v16242_v25, %v8245_v4  ;;  %v7857_v2 = vmul.f32 0.5, %v17063_v36  ;;  %v17072_v17 = vld [vmem:[#allocation88_spill] sm:$0xff]  ;;  %v17075_v29 = vld [vmem:[#allocation89_spill] sm:$0xff] }
0x10ea   : > { %v8593_v50 = vsub.f32 0.0, %v8529_v37  ;;  %v8688_v62 = vmul.f32 %v8656_v52, %v7856_v33  ;;  %v8530_v5 = vsub.f32 1.0, %v8498_v19  ;;  %v8499_v41 = vmul.f32 %v12015_v26, %v8339_v31  ;;  %v17073_v33 = vld [vmem:[#allocation85_spill] sm:$0xff]  ;;  %v17074_v31 = vld [vmem:[#allocation87_spill] sm:$0xff]  ;;  %v17077_v36 = vld [vmem:[#allocation44_spill] sm:$0xff] }
0x10eb   : > { %v8340_v32 = vmul.f32 %v16269_v45, %v8308_v7  ;;  %v12019_v11 = vpop.eup %12018  ;;  %v8309_v57 = vadd.f32 0.2548296, %v8277_v18  ;;  %vm8562_vm15 = vcmp.ge.f32.partialorder %v17064_v0, 0.0  ;;  %v17065_v45 = vld [vmem:[#allocation32_spill] sm:$0xff]  ;;  %v7858_v51 = vmul.f32 0.5, %v17066_v6  ;;  %v17081_v6 = vld [vmem:[#allocation59_spill] sm:$0xff] }
0x10ec   : > { %v8625_v59 = vsel %vm8561_vm14, %v8529_v37, %v8593_v50  ;;  %10932 = vmatprep.mubr.f32.mxu1 %v8688_v62  ;;  %v8594_v43 = vsub.f32 0.0, %v8530_v5  ;;  %v8531_v63 = vsub.f32 1.0, %v8499_v41  ;;  %vm8563_vm0 = vcmp.ge.f32.partialorder %v17065_v45, 0.0 }
0x10ed   : > { %v8657_v10 = vadd.f32 1.0, %v8625_v59  ;;  %v8500_v12 = vmul.f32 %v12019_v11, %v8340_v32  ;;  %v12021_v60 = vpop.eup %12020  ;;  %v8341_v16 = vmul.f32 %v16242_v25, %v8309_v57  ;;  %v7859_v8 = vmul.f32 0.5, %v17067_v47  ;;  %v17076_v32 = vld [vmem:[#allocation21_spill] sm:$0xff] }
0x10ee   : > { %v8626_v49 = vsel %vm8562_vm15, %v8530_v5, %v8594_v43  ;;  %v8595_v26 = vsub.f32 0.0, %v8531_v63  ;;  %vm8564_vm1 = vcmp.ge.f32.partialorder %v17068_v22, 0.0  ;;  %v7860_v34 = vmul.f32 0.5, %v17069_v61  ;;  %v17083_v22 = vld [vmem:[#allocation63_spill] sm:$0xff] }
0x10ef   : > { %v8689_v20 = vmul.f32 %v8657_v10, %v7857_v2  ;;  %v8532_v21 = vsub.f32 1.0, %v8500_v12  ;;  %v8658_v39 = vadd.f32 1.0, %v8626_v49  ;;  %v8501_v24 = vmul.f32 %v12021_v60, %v8341_v16  ;;  %v17079_v60 = vld [vmem:[#allocation57_spill] sm:$0xff] }
0x10f0   : > { %v8627_v27 = vsel %vm8563_vm0, %v8531_v63, %v8595_v26  ;;  %vm8565_vm2 = vcmp.ge.f32.partialorder %v17070_v15, 0.0  ;;  %v7861_v53 = vmul.f32 0.5, %v17071_v48  ;;  %v17078_v63 = vld [vmem:[#allocation52_spill] sm:$0xff] }
0x10f1   : > { %10933 = vmatmul.mubr.f32.gmra.mrb[238].mxu1 %v8689_v20  ;;  %v8596_v58 = vsub.f32 0.0, %v8532_v21  ;;  %v8690_v35 = vmul.f32 %v8658_v39, %v7858_v51  ;;  %v8659_v38 = vadd.f32 1.0, %v8627_v27  ;;  %v8533_v25 = vsub.f32 1.0, %v8501_v24  ;;  %v17082_v27 = vld [vmem:[#allocation61_spill] sm:$0xff] }
0x10f3   : > { %v8628_v13 = vsel %vm8564_vm1, %v8532_v21, %v8596_v58  ;;  %10935 = vmatprep.mubr.f32.mxu1 %v8690_v35  ;;  %v8691_v3 = vmul.f32 %v8659_v38, %v7859_v8  ;;  %v8597_v55 = vsub.f32 0.0, %v8533_v25  ;;  %v17080_v21 = vld [vmem:[#allocation70_spill] sm:$0xff] }
0x10f4   : > { %v8660_v9 = vadd.f32 1.0, %v8628_v13 }
0x10f5   : > { %10936 = vmatmul.mubr.f32.gmra.mrb[240].mxu1 %v8691_v3  ;;  %v8629_v28 = vsel %vm8565_vm2, %v8533_v25, %v8597_v55 }
0x10f6   : > { %v8692_v23 = vmul.f32 %v8660_v9, %v7860_v34  ;;  %v8661_v44 = vadd.f32 1.0, %v8629_v28  ;;  %v17084_v34 = vld [vmem:[#allocation65_spill] sm:$0xff]  ;;  %v17085_v9 = vld [vmem:[#allocation67_spill] sm:$0xff] }
0x10f8   : > { %10938 = vmatprep.mubr.f32.mxu1 %v8692_v23  ;;  %v8693_v30 = vmul.f32 %v8661_v44, %v7861_v53  ;;  %v17086_v53 = vld [vmem:[#allocation69_spill] sm:$0xff] }
0x10fa   : > { %10939 = vmatmul.mubr.f32.gmra.mrb[242].mxu1 %v8693_v30  ;;  %v17087_v30 = vld [vmem:[#allocation71_spill] sm:$0xff] }
0x113b   : > { %v10895_v14 = vpop.f32.mrb[212].mxu1 }
0x113c   : > { %v8789_v56 = vadd.f32 %v10895_v14, %v16366_v46  ;;  %v8783_v54 = vpop.f32.mrb[213].mxu1 }
0x113d   : > { %v8784_v42 = vadd.f32 %v16366_v46, %v8783_v54 }
0x113e   : > { %v8943_v40 = vadd.f32 %v8789_v56, %v17072_v17 }
0x113f   : > { %v8942_v1 = vadd.f32 %v8784_v42, %v17073_v33  ;;  %v10898_v37 = vpop.f32.mrb[214].mxu1 }
0x1140   : > { %8975 = vst [vmem:[%s16374_s20 + $0x8] sm:$0xff] %v8943_v40  ;;  %v8799_v4 = vadd.f32 %v10898_v37, %v16366_v46  ;;  %v8793_v52 = vpop.f32.mrb[215].mxu1  ;;  %v17088_v40 = vld [vmem:[#allocation73_spill] sm:$0xff] }
0x1141   : > { %8974 = vst [vmem:[%s16374_s20] sm:$0xff] %v8942_v1  ;;  %v8794_v19 = vadd.f32 %v16366_v46, %v8793_v52  ;;  %v17089_v1 = vld [vmem:[#allocation74_spill] sm:$0xff] }
0x1142   : > { %v8945_v7 = vadd.f32 %v8799_v4, %v17074_v31 }
0x1143   : > { %v8944_v50 = vadd.f32 %v8794_v19, %v17075_v29  ;;  %v10901_v18 = vpop.f32.mrb[216].mxu1 }
0x1144   : > { %8977 = vst [vmem:[%s16374_s20 + $0x18] sm:$0xff] %v8945_v7  ;;  %v8809_v62 = vadd.f32 %v10901_v18, %v16366_v46  ;;  %v8803_v5 = vpop.f32.mrb[217].mxu1  ;;  %v17090_v7 = vld [vmem:[#allocation76_spill] sm:$0xff] }
0x1145   : > { %8976 = vst [vmem:[%s16374_s20 + $0x10] sm:$0xff] %v8944_v50  ;;  %v8804_v41 = vadd.f32 %v16366_v46, %v8803_v5  ;;  %v17091_v50 = vld [vmem:[#allocation75_spill] sm:$0xff] }
0x1146   : > { %v8947_v11 = vadd.f32 %v8809_v62, %v17076_v32 }
0x1147   : > { %v8946_v2 = vadd.f32 %v8804_v41, %v17077_v36 }
0x1148   : > { %8979 = vst [vmem:[%s16374_s20 + $0x28] sm:$0xff] %v8947_v11  ;;  %v17092_v11 = vld [vmem:[#allocation78_spill] sm:$0xff] }
0x1149   : > { %8978 = vst [vmem:[%s16374_s20 + $0x20] sm:$0xff] %v8946_v2  ;;  %v17093_v2 = vld [vmem:[#allocation77_spill] sm:$0xff] }
0x1156   : > { %v10904_v59 = vpop.f32.mrb[218].mxu1 }
0x1157   : > { %v8819_v57 = vadd.f32 %v10904_v59, %v16366_v46  ;;  %v8813_v10 = vpop.f32.mrb[219].mxu1 }
0x1158   : > { %v8814_v43 = vadd.f32 %v16366_v46, %v8813_v10 }
0x1159   : > { %v8949_v12 = vadd.f32 %v8819_v57, %v17078_v63 }
0x115a   : > { %v8948_v0 = vadd.f32 %v8814_v43, %v17079_v60 }
0x115b   : > { %8981 = vst [vmem:[%s16374_s20 + $0x38] sm:$0xff] %v8949_v12  ;;  %v17094_v12 = vld [vmem:[#allocation80_spill] sm:$0xff] }
0x115c   : > { %8980 = vst [vmem:[%s16374_s20 + $0x30] sm:$0xff] %v8948_v0  ;;  %v17095_v0 = vld [vmem:[#allocation79_spill] sm:$0xff] }
0x1163   : > { %v10907_v16 = vpop.f32.mrb[220].mxu1 }
0x1164   : > { %v8829_v20 = vadd.f32 %v10907_v16, %v16366_v46  ;;  %v8823_v49 = vpop.f32.mrb[221].mxu1 }
0x1165   : > { %v8824_v26 = vadd.f32 %v16366_v46, %v8823_v49 }
0x1166   : > { %v8951_v45 = vadd.f32 %v8829_v20, %v17080_v21 }
0x1167   : > { %v8950_v51 = vadd.f32 %v8824_v26, %v17081_v6 }
0x1168   : > { %8983 = vst [vmem:[%s16374_s20 + $0x48] sm:$0xff] %v8951_v45  ;;  %v17096_v45 = vld [vmem:[#allocation82_spill] sm:$0xff] }
0x1169   : > { %8982 = vst [vmem:[%s16374_s20 + $0x40] sm:$0xff] %v8950_v51  ;;  %v17097_v51 = vld [vmem:[#allocation81_spill] sm:$0xff] }
0x116e   : > { %v10910_v39 = vpop.f32.mrb[222].mxu1 }
0x116f   : > { %v8839_v24 = vadd.f32 %v10910_v39, %v16366_v46  ;;  %v8833_v47 = vpop.f32.mrb[223].mxu1 }
0x1170   : > { %v8834_v8 = vadd.f32 %v16366_v46, %v8833_v47 }
0x1171   : > { %v8953_v58 = vadd.f32 %v8839_v24, %v17082_v27 }
0x1172   : > { %v8952_v35 = vadd.f32 %v8834_v8, %v17083_v22 }
0x1173   : > { %8985 = vst [vmem:[%s16374_s20 + $0x58] sm:$0xff] %v8953_v58  ;;  %v17098_v58 = vld [vmem:[#allocation84_spill] sm:$0xff] }
0x1174   : > { %8984 = vst [vmem:[%s16374_s20 + $0x50] sm:$0xff] %v8952_v35  ;;  %v17099_v35 = vld [vmem:[#allocation83_spill] sm:$0xff] }
0x117e   : > { %v10913_v38 = vpop.f32.mrb[224].mxu1 }
0x117f   : > { %v8849_v25 = vadd.f32 %v10913_v38, %v16366_v46  ;;  %v8843_v13 = vpop.f32.mrb[225].mxu1 }
0x1180   : > { %v8844_v61 = vadd.f32 %v16366_v46, %v8843_v13 }
0x1181   : > { %v8955_v3 = vadd.f32 %v8849_v25, %v17084_v34 }
0x1182   : > { %v8954_v55 = vadd.f32 %v8844_v61, %v17085_v9 }
0x1183   : > { %8987 = vst [vmem:[%s16374_s20 + $0x68] sm:$0xff] %v8955_v3  ;;  %v17100_v3 = vld [vmem:[#allocation86_spill] sm:$0xff] }
0x1184   : > { %8986 = vst [vmem:[%s16374_s20 + $0x60] sm:$0xff] %v8954_v55  ;;  %v17101_v55 = vld [vmem:[#allocation43_spill] sm:$0xff] }
0x118c   : > { %v10916_v15 = vpop.f32.mrb[226].mxu1 }
0x118d   : > { %v8859_v23 = vadd.f32 %v10916_v15, %v16366_v46  ;;  %v8853_v28 = vpop.f32.mrb[227].mxu1 }
0x118e   : > { %v8854_v48 = vadd.f32 %v16366_v46, %v8853_v28 }
0x118f   : > { %v8957_v44 = vadd.f32 %v8859_v23, %v17086_v53 }
0x1190   : > { %v8956_v14 = vadd.f32 %v8854_v48, %v17087_v30 }
0x1191   : > { %8989 = vst [vmem:[%s16374_s20 + $0x78] sm:$0xff] %v8957_v44  ;;  %v17102_v44 = vld [vmem:[#allocation42_spill] sm:$0xff] }
0x1192   : > { %8988 = vst [vmem:[%s16374_s20 + $0x70] sm:$0xff] %v8956_v14  ;;  %v17104_v14 = vld [vmem:[#allocation45_spill] sm:$0xff] }
0x119b   : > { %v10919_v56 = vpop.f32.mrb[228].mxu1 }
0x119c   : > { %v8869_v54 = vadd.f32 %v10919_v56, %v16366_v46  ;;  %v8863_v42 = vpop.f32.mrb[229].mxu1 }
0x119d   : > { %v8864_v17 = vadd.f32 %v16366_v46, %v8863_v42 }
0x119e   : > { %v8959_v33 = vadd.f32 %v8869_v54, %v17088_v40 }
0x119f   : > { %v8958_v37 = vadd.f32 %v8864_v17, %v17089_v1 }
0x11a0   : > { %8991 = vst [vmem:[%s16374_s20 + $0x88] sm:$0xff] %v8959_v33 }
0x11a1   : > { %8990 = vst [vmem:[%s16374_s20 + $0x80] sm:$0xff] %v8958_v37 }
0x11a5   : > { %v10922_v4 = vpop.f32.mrb[230].mxu1 }
0x11a6   : > { %v8879_v52 = vadd.f32 %v10922_v4, %v16366_v46  ;;  %v8873_v19 = vpop.f32.mrb[231].mxu1 }
0x11a7   : > { %v8874_v31 = vadd.f32 %v16366_v46, %v8873_v19 }
0x11a8   : > { %v8961_v29 = vadd.f32 %v8879_v52, %v17090_v7 }
0x11a9   : > { %v8960_v18 = vadd.f32 %v8874_v31, %v17091_v50 }
0x11aa   : > { %8993 = vst [vmem:[%s16374_s20 + $0x98] sm:$0xff] %v8961_v29 }
0x11ab   : > { %v10925_v62 = vpop.f32.mrb[232].mxu1  ;;  %8992 = vst [vmem:[%s16374_s20 + $0x90] sm:$0xff] %v8960_v18 }
0x11ac   : > { %v8889_v5 = vadd.f32 %v10925_v62, %v16366_v46  ;;  %v8883_v41 = vpop.f32.mrb[233].mxu1 }
0x11ad   : > { %v8884_v32 = vadd.f32 %v16366_v46, %v8883_v41 }
0x11ae   : > { %v8963_v36 = vadd.f32 %v8889_v5, %v17092_v11 }
0x11af   : > { %v8962_v59 = vadd.f32 %v8884_v32, %v17093_v2  ;;  %v10928_v57 = vpop.f32.mrb[234].mxu1 }
0x11b0   : > { %8995 = vst [vmem:[%s16374_s20 + $0xa8] sm:$0xff] %v8963_v36  ;;  %v8899_v10 = vadd.f32 %v10928_v57, %v16366_v46  ;;  %v8893_v43 = vpop.f32.mrb[235].mxu1 }
0x11b1   : > { %8994 = vst [vmem:[%s16374_s20 + $0xa0] sm:$0xff] %v8962_v59  ;;  %v8894_v63 = vadd.f32 %v16366_v46, %v8893_v43 }
0x11b2   : > { %v8965_v60 = vadd.f32 %v8899_v10, %v17094_v12 }
0x11b3   : > { %v8964_v16 = vadd.f32 %v8894_v63, %v17095_v0 }
0x11b4   : > { %8997 = vst [vmem:[%s16374_s20 + $0xb8] sm:$0xff] %v8965_v60 }
0x11b5   : > { %8996 = vst [vmem:[%s16374_s20 + $0xb0] sm:$0xff] %v8964_v16 }
0x11bb   : > { %v10931_v20 = vpop.f32.mrb[236].mxu1 }
0x11bc   : > { %v8909_v49 = vadd.f32 %v10931_v20, %v16366_v46  ;;  %v8903_v26 = vpop.f32.mrb[237].mxu1 }
0x11bd   : > { %v8904_v21 = vadd.f32 %v16366_v46, %v8903_v26 }
0x11be   : > { %v8967_v6 = vadd.f32 %v8909_v49, %v17096_v45 }
0x11bf   : > { %v8966_v39 = vadd.f32 %v8904_v21, %v17097_v51 }
0x11c0   : > { %8999 = vst [vmem:[%s16374_s20 + $0xc8] sm:$0xff] %v8967_v6 }
0x11c1   : > { %8998 = vst [vmem:[%s16374_s20 + $0xc0] sm:$0xff] %v8966_v39 }
0x11c4   : > { %v10934_v24 = vpop.f32.mrb[238].mxu1 }
0x11c5   : > { %v8919_v47 = vadd.f32 %v10934_v24, %v16366_v46  ;;  %v8913_v8 = vpop.f32.mrb[239].mxu1 }
0x11c6   : > { %v8914_v27 = vadd.f32 %v16366_v46, %v8913_v8 }
0x11c7   : > { %v8969_v22 = vadd.f32 %v8919_v47, %v17098_v58 }
0x11c8   : > { %v8968_v38 = vadd.f32 %v8914_v27, %v17099_v35  ;;  %v10937_v25 = vpop.f32.mrb[240].mxu1 }
0x11c9   : > { %9001 = vst [vmem:[%s16374_s20 + $0xd8] sm:$0xff] %v8969_v22  ;;  %v8929_v13 = vadd.f32 %v10937_v25, %v16366_v46  ;;  %v8923_v61 = vpop.f32.mrb[241].mxu1 }
0x11ca   : > { %9000 = vst [vmem:[%s16374_s20 + $0xd0] sm:$0xff] %v8968_v38  ;;  %v8924_v34 = vadd.f32 %v16366_v46, %v8923_v61 }
0x11cb   : > { %v8971_v9 = vadd.f32 %v8929_v13, %v17100_v3 }
0x11cc   : > { %v8970_v15 = vadd.f32 %v8924_v34, %v17101_v55 }
0x11cd   : > { %9003 = vst [vmem:[%s16374_s20 + $0xe8] sm:$0xff] %v8971_v9  ;;  %v10940_v23 = vpop.f32.mrb[242].mxu1 }
0x11ce   : > { %9002 = vst [vmem:[%s16374_s20 + $0xe0] sm:$0xff] %v8970_v15  ;;  %v8939_v28 = vadd.f32 %v10940_v23, %v16366_v46  ;;  %v8933_v48 = vpop.f32.mrb[243].mxu1 }
0x11cf   : > { %v8934_v53 = vadd.f32 %v16366_v46, %v8933_v48 }
0x11d0   : > { %v8973_v30 = vadd.f32 %v8939_v28, %v17102_v44 }
0x11d1   : > { %v8972_v56 = vadd.f32 %v8934_v53, %v17104_v14 }
0x11d2   : > { %9005 = vst [vmem:[%s16374_s20 + $0xf8] sm:$0xff] %v8973_v30 }
0x11d3   : > { %9004 = vst [vmem:[%s16374_s20 + $0xf0] sm:$0xff] %v8972_v56 }
0x11d4   : > { %12036 = shalt.err (!%p12033_p3)
}
0x11d5   : > { %s12037_s30 = scalar_lea.hbm %s16470_s28, 4096  ;;  %s12041_s21 = scalar_lea.hbm %s17103_s3, 8192 }
0x11d6   : > { %p12038_p4 = scmp.ne.s32.totalorder %s16470_s28, %s12037_s30  ;;  %p12042_p9 = scmp.lt.u32.totalorder %s16470_s28, %s17103_s3 }
0x11d7   : > { %p12043_p10 = scmp.lt.u32.totalorder %s12041_s21, %s12037_s30  ;;  %p12045_p12 = scmp.lt.u32.totalorder %s12037_s30, %s16470_s28 }
0x11d8   : > { %p12039_p7 = pnand %p12038_p4, %p12239_p5 }
0x11d9   : > { %p12044_p11 = por %p12043_p10, %p12042_p9 }
0x11da   : > { %p12040_p8 = pneg %p12039_p7 }
0x11db   : > { %p12046_p13 = por %p12045_p12, %p12044_p11 }
0x11dd   : > { %p12047_p0 = pnand %p12046_p13, %p12040_p8 }
0x11df   : > { %12050 = shalt.err (!%p12047_p0)
}
0x11e0   : > { %s12094_s0 = smov 128   ;;  %s12095_s27 = smov 8  }
0x11e1   : > { %11205 = dma.vmem_to_hbm [thread:$0]  (%p12239_p5), %s16472_s1, 4096, %s16470_s28, %s16479_s2, %s12094_s0, %s12094_s0, %s12095_s27  }
0x11e2 PF: > { %s17105_s20 = sld [smem:[#allocation5_spill]]  ;;  %p11211_p1 = scmp.ge.s32.totalorder %s12085_s24, 2 }
0x11e4   : > { %p11208_p2 = pnand %p11211_p1, %p12243_p6 }
0x11e8   : > { %s9035_s23 = sand.u32 1, %s17105_s20  }
0x11e9   : > { %s9036_s30 = scalar_lea.sflag [#allocation3], %s9035_s23 }
0x11ea   : > { %12068 = dma.done.wait (!%p11208_p2), %s9036_s30, 4096  }
0x11eb   : > { %12070 = vsyncadd (!%p11208_p2), %s9036_s30, 4294963200  ;;  %s17106_s24 = sld [smem:[#allocation7_spill]]  ;;  %s17107_s21 = sld [smem:[#allocation6_spill]] }
0x11ec   : > { %s17108_s23 = sld [smem:[#allocation8_spill]]  ;;  %s17109_s1 = smov %s12077_s22 }
0x11f1   : > { %p30_p3 = scmp.ge.s32.totalorder %s17106_s24, 4   ;;  %s17110_s22 = smov %s17107_s21 }
0x11f3   :  { %32 = sbr.rel (!%p30_p3) target bundleno = 10 (0xa), region = 138 }
0x11fa   :  { %9041 = vsyncpa [#allocation3], 1 }
0x11fb   :  { %9043 = vsyncpa [#allocation3 + $0x1], 1 }

</bundles_post_ra>
